<compile_context>
chip_gen: v6e
topology: v6e:2x2x1
jax: 0.10.0
libtpu: 0.0.40
codegen_flags: <defaults>
</compile_context>

<pallas_src>
import jax
import jax.numpy as jnp
from jax import lax
from jax.experimental import pallas as pl
from jax.experimental.pallas import tpu as pltpu

EPS = 1e-5


def _upsample_conv_kernel(x_ref, w_ref, b_ref, y_ref, part_ref, xpad_ref):
    """Fused nearest-2x upsample + zero-pad + 3x3 conv (+bias) + BN partial stats.

    x_ref    : (1, Ci, H, W)     one batch of the NCHW input (VMEM)
    w_ref    : (Co*Ci*9,)        conv weights, flattened row-major (SMEM scalars)
    b_ref    : (Co,)             conv bias (SMEM scalars)
    y_ref    : (1, Co, 2H, 2W)   conv output (VMEM)
    part_ref : (1, 2*Co, 2W)     rows [0,Co): per-column sums; rows [Co,2Co): sums of squares
    xpad_ref : (Ci, 2H+2, 2W+2)  VMEM scratch: upsampled + zero-padded input
    """
    _, Ci, H, W = x_ref.shape
    _, Co, Hup, Wup = y_ref.shape

    # --- 0/1 nearest-upsample matrices, built in-kernel (no extra inputs) ------
    gi = lax.broadcasted_iota(jnp.int32, (Hup, H), 0)
    hi = lax.broadcasted_iota(jnp.int32, (Hup, H), 1)
    uh = ((gi >> 1) == hi).astype(jnp.float32)        # (Hup, H): out row g <- row g//2
    wi = lax.broadcasted_iota(jnp.int32, (W, Wup), 0)
    vi = lax.broadcasted_iota(jnp.int32, (W, Wup), 1)
    uw = (wi == (vi >> 1)).astype(jnp.float32)        # (W, Wup): out col v <- col v//2

    # --- upsample + 1px zero-pad into a VMEM scratch (no jnp.pad, no HBM copy) -
    xpad_ref[...] = jnp.zeros((Ci, Hup + 2, Wup + 2), jnp.float32)
    for ci in range(Ci):
        xc = x_ref[0, ci, :, :]                                       # (H, W)
        xh = jnp.dot(uh, xc, preferred_element_type=jnp.float32)      # (Hup, W)
        xu = jnp.dot(xh, uw, preferred_element_type=jnp.float32)      # (Hup, Wup)
        xpad_ref[ci, 1:1 + Hup, 1:1 + Wup] = xu

    # --- 3x3 full conv as VPU scalar-FMA taps (tiny Ci/Co; weights in SMEM) ----
    accs = [jnp.full((Hup, Wup), b_ref[co], dtype=jnp.float32) for co in range(Co)]
    for ci in range(Ci):
        for ky in range(3):
            for kx in range(3):
                xs = xpad_ref[ci, ky:ky + Hup, kx:kx + Wup]           # (Hup, Wup)
                for co in range(Co):
                    w = w_ref[(((co * Ci) + ci) * 3 + ky) * 3 + kx]
                    accs[co] = accs[co] + w * xs

    # --- write conv output + single-pass BN partials (sum, sum of squares) -----
    for co in range(Co):
        acc = accs[co]
        y_ref[0, co, :, :] = acc
        part_ref[0, co:co + 1, :] = jnp.sum(acc, axis=0, keepdims=True)
        part_ref[0, Co + co:Co + co + 1, :] = jnp.sum(acc * acc, axis=0, keepdims=True)


def _bn_relu_kernel(y_ref, aff_ref, o_ref):
    """Apply folded BatchNorm affine (scale/shift) + ReLU.

    y_ref   : (1, Co, Hup, Wup)  conv output block (VMEM)
    aff_ref : (2, Co)            SMEM: row 0 = gamma*rsqrt(var+eps), row 1 = beta - mean*scale
    o_ref   : (1, Co, Hup, Wup)  final output block
    """
    Co = o_ref.shape[1]
    for co in range(Co):
        sc = aff_ref[0, co]
        sh = aff_ref[1, co]
        o_ref[0, co, :, :] = jnp.maximum(y_ref[0, co, :, :] * sc + sh, 0.0)


def up_conv(x, p):
    """Full up_conv forward. Input/output are NCHW (PyTorch convention)."""
    N, Ci, H, W = x.shape
    Co = p["conv_w"].shape[0]
    Hup, Wup = 2 * H, 2 * W

    x = x.astype(jnp.float32)
    w_flat = p["conv_w"].astype(jnp.float32).reshape(-1)   # (Co*Ci*9,) row-major (Co,Ci,3,3)
    b = p["conv_b"].astype(jnp.float32)

    conv_flops = 2 * N * Co * Ci * 9 * Hup * Wup
    upsample_flops = 2 * N * Ci * (Hup * H * W + Hup * W * Wup)
    bytes_accessed = 4 * (N * Ci * H * W + N * Co * Hup * Wup + N * 2 * Co * Wup
                          + w_flat.size + b.size)

    y1, part = pl.pallas_call(
        _upsample_conv_kernel,
        out_shape=(
            jax.ShapeDtypeStruct((N, Co, Hup, Wup), jnp.float32),
            jax.ShapeDtypeStruct((N, 2 * Co, Wup), jnp.float32),
        ),
        grid=(N,),
        in_specs=[
            pl.BlockSpec((1, Ci, H, W), lambda n: (n, 0, 0, 0)),
            pl.BlockSpec(memory_space=pltpu.MemorySpace.SMEM),   # conv weights (scalars)
            pl.BlockSpec(memory_space=pltpu.MemorySpace.SMEM),   # conv bias (scalars)
        ],
        out_specs=(
            pl.BlockSpec((1, Co, Hup, Wup), lambda n: (n, 0, 0, 0)),
            pl.BlockSpec((1, 2 * Co, Wup), lambda n: (n, 0, 0)),
        ),
        scratch_shapes=[pltpu.VMEM((Ci, Hup + 2, Wup + 2), jnp.float32)],
        compiler_params=pltpu.CompilerParams(dimension_semantics=("parallel",)),
        cost_estimate=pl.CostEstimate(
            flops=conv_flops + upsample_flops,
            transcendentals=0,
            bytes_accessed=bytes_accessed,
        ),
    )(x, w_flat, b)

    # Finalize BN batch statistics (2*Co floats of glue) and fold gamma/beta in.
    # TODO(synk): PyTorch BatchNorm2d also updates running_mean/running_var as a
    # training side effect; that buffer update has no effect on the returned
    # tensor and is not implemented here.
    cnt = N * Hup * Wup
    s = jnp.sum(part[:, :Co, :], axis=(0, 2))
    ss = jnp.sum(part[:, Co:, :], axis=(0, 2))
    mean = s / cnt
    var = ss / cnt - mean * mean                     # biased batch variance
    scale = p["gamma"].astype(jnp.float32) * lax.rsqrt(var + EPS)
    shift = p["beta"].astype(jnp.float32) - mean * scale
    aff = jnp.stack([scale, shift], axis=0)          # (2, Co)

    out = pl.pallas_call(
        _bn_relu_kernel,
        out_shape=jax.ShapeDtypeStruct((N, Co, Hup, Wup), jnp.float32),
        grid=(N,),
        in_specs=[
            pl.BlockSpec((1, Co, Hup, Wup), lambda n: (n, 0, 0, 0)),
            pl.BlockSpec(memory_space=pltpu.MemorySpace.SMEM),
        ],
        out_specs=pl.BlockSpec((1, Co, Hup, Wup), lambda n: (n, 0, 0, 0)),
        compiler_params=pltpu.CompilerParams(dimension_semantics=("parallel",)),
    )(y1, aff)
    return out


# ---------- pure-JAX reference (mirrors the PyTorch forward, NCHW) ----------
def _ref_forward(x, p):
    xu = jnp.repeat(jnp.repeat(x, 2, axis=2), 2, axis=3)            # nearest 2x
    y = lax.conv_general_dilated(
        xu, p["conv_w"], (1, 1), ((1, 1), (1, 1)),
        dimension_numbers=("NCHW", "OIHW", "NCHW"),
        precision=lax.Precision.HIGHEST)
    y = y + p["conv_b"][None, :, None, None]
    mean = jnp.mean(y, axis=(0, 2, 3), keepdims=True)
    var = jnp.mean(jnp.square(y - mean), axis=(0, 2, 3), keepdims=True)
    yn = (y - mean) * lax.rsqrt(var + EPS)
    return jnp.maximum(yn * p["gamma"][None, :, None, None]
                       + p["beta"][None, :, None, None], 0.0)


if __name__ == "__main__":
    key = jax.random.PRNGKey(0)
    N, ch_in, ch_out, H, W = 2, 4, 8, 16, 16
    ks = jax.random.split(key, 5)
    nrm = jax.random.normal

    x = nrm(ks[0], (N, ch_in, H, W), jnp.float32)                   # NCHW, like PyTorch

    params = {
        "conv_w": 0.2 * nrm(ks[1], (ch_out, ch_in, 3, 3), jnp.float32),
        "conv_b": 0.1 * nrm(ks[2], (ch_out,), jnp.float32),
        "gamma": 1.0 + 0.1 * nrm(ks[3], (ch_out,), jnp.float32),
        "beta": 0.1 * nrm(ks[4], (ch_out,), jnp.float32),
    }

    y = up_conv(x, params)
    jax.block_until_ready(y)
    assert y.shape == (N, ch_out, 2 * H, 2 * W)

    y_ref = _ref_forward(x, params)
    err = float(jnp.max(jnp.abs(y - y_ref)))
    assert err < 2e-4, f"mismatch vs reference: {err}"

    print("KERNEL_OK")
</pallas_src>

<mosaic_0001>
module attributes {stable_mosaic.version = 11 : i64} {
  func.func @_upsample_conv_kernel(%arg0: i32, %arg1: memref<1x4x16x16xf32, #tpu.memory_space<vmem>>, %arg2: memref<288xf32, #tpu.memory_space<smem>>, %arg3: memref<8xf32, #tpu.memory_space<smem>>, %arg4: memref<1x8x32x32xf32, #tpu.memory_space<vmem>>, %arg5: memref<1x16x32xf32, #tpu.memory_space<vmem>>, %arg6: memref<4x34x34xf32, #tpu.memory_space<vmem>>) attributes {dimension_semantics = [#tpu.dimension_semantics<parallel>], iteration_bounds = array<i64: 2>, scalar_prefetch = 0 : i64, scratch_operands = 1 : i64, tpu.core_type = #tpu.core_type<tc>, window_params = [{transform_indices = @transform_0, window_bounds = array<i64: 1, 4, 16, 16>}, {transform_indices = @transform_1, window_bounds = array<i64: 288>}, {transform_indices = @transform_2, window_bounds = array<i64: 8>}, {transform_indices = @transform_3, window_bounds = array<i64: 1, 8, 32, 32>}, {transform_indices = @transform_4, window_bounds = array<i64: 1, 16, 32>}]} {
    %0 = tpu.iota {dimensions = array<i32: 0>} : vector<32x16xi32>
    %1 = tpu.iota {dimensions = array<i32: 1>} : vector<32x16xi32>
    %c1_i32 = arith.constant 1 : i32
    %2 = vector.broadcast %c1_i32 : i32 to vector<32x16xi32>
    %3 = arith.shrsi %0, %2 : vector<32x16xi32>
    %4 = arith.cmpi eq, %3, %1 : vector<32x16xi32>
    %5 = arith.extui %4 : vector<32x16xi1> to vector<32x16xi32>
    %6 = arith.sitofp %5 : vector<32x16xi32> to vector<32x16xf32>
    %7 = tpu.iota {dimensions = array<i32: 0>} : vector<16x32xi32>
    %8 = tpu.iota {dimensions = array<i32: 1>} : vector<16x32xi32>
    %c1_i32_0 = arith.constant 1 : i32
    %9 = vector.broadcast %c1_i32_0 : i32 to vector<16x32xi32>
    %10 = arith.shrsi %8, %9 : vector<16x32xi32>
    %11 = arith.cmpi eq, %7, %10 : vector<16x32xi32>
    %12 = arith.extui %11 : vector<16x32xi1> to vector<16x32xi32>
    %13 = arith.sitofp %12 : vector<16x32xi32> to vector<16x32xf32>
    %cst = arith.constant 0.000000e+00 : f32
    %14 = vector.broadcast %cst : f32 to vector<4x34x34xf32>
    %c0 = arith.constant 0 : index
    %c0_1 = arith.constant 0 : index
    %c0_2 = arith.constant 0 : index
    %15 = vector.load %arg6[%c0, %c0_1, %c0_2] : memref<4x34x34xf32, #tpu.memory_space<vmem>>, vector<4x34x34xf32>
    tpu.vector_store %arg6[%c0, %c0_1, %c0_2], %14 {strides = array<i32>} : memref<4x34x34xf32, #tpu.memory_space<vmem>>, vector<4x34x34xf32>,
    %c0_3 = arith.constant 0 : index
    %c0_4 = arith.constant 0 : index
    %c0_5 = arith.constant 0 : index
    %c0_6 = arith.constant 0 : index
    %16 = vector.load %arg1[%c0_3, %c0_4, %c0_5, %c0_6] : memref<1x4x16x16xf32, #tpu.memory_space<vmem>>, vector<1x1x16x16xf32>
    %17 = vector.shape_cast %16 : vector<1x1x16x16xf32> to vector<16x16xf32>
    %cst_7 = arith.constant dense<0.000000e+00> : vector<32x16xf32>
    %18 = tpu.matmul %6, %17, %cst_7 {dimension_numbers = #tpu.dot_dimension_numbers<[1], [0], [0], [1], [0, 0, 1, 1], [], []>} : vector<32x16xf32>, vector<16x16xf32>, vector<32x16xf32> -> vector<32x16xf32>
    %cst_8 = arith.constant dense<0.000000e+00> : vector<32x32xf32>
    %19 = tpu.matmul %18, %13, %cst_8 {dimension_numbers = #tpu.dot_dimension_numbers<[1], [0], [0], [1], [0, 0, 1, 1], [], []>} : vector<32x16xf32>, vector<16x32xf32>, vector<32x32xf32> -> vector<32x32xf32>
    %c0_9 = arith.constant 0 : index
    %c1 = arith.constant 1 : index
    %c1_10 = arith.constant 1 : index
    %20 = vector.load %arg6[%c0_9, %c1, %c1_10] : memref<4x34x34xf32, #tpu.memory_space<vmem>>, vector<1x32x32xf32>
    %21 = vector.shape_cast %20 : vector<1x32x32xf32> to vector<32x32xf32>
    %22 = vector.shape_cast %19 : vector<32x32xf32> to vector<1x32x32xf32>
    tpu.vector_store %arg6[%c0_9, %c1, %c1_10], %22 {strides = array<i32>} : memref<4x34x34xf32, #tpu.memory_space<vmem>>, vector<1x32x32xf32>,
    %c0_11 = arith.constant 0 : index
    %c1_12 = arith.constant 1 : index
    %c0_13 = arith.constant 0 : index
    %c0_14 = arith.constant 0 : index
    %23 = vector.load %arg1[%c0_11, %c1_12, %c0_13, %c0_14] : memref<1x4x16x16xf32, #tpu.memory_space<vmem>>, vector<1x1x16x16xf32>
    %24 = vector.shape_cast %23 : vector<1x1x16x16xf32> to vector<16x16xf32>
    %cst_15 = arith.constant dense<0.000000e+00> : vector<32x16xf32>
    %25 = tpu.matmul %6, %24, %cst_15 {dimension_numbers = #tpu.dot_dimension_numbers<[1], [0], [0], [1], [0, 0, 1, 1], [], []>} : vector<32x16xf32>, vector<16x16xf32>, vector<32x16xf32> -> vector<32x16xf32>
    %cst_16 = arith.constant dense<0.000000e+00> : vector<32x32xf32>
    %26 = tpu.matmul %25, %13, %cst_16 {dimension_numbers = #tpu.dot_dimension_numbers<[1], [0], [0], [1], [0, 0, 1, 1], [], []>} : vector<32x16xf32>, vector<16x32xf32>, vector<32x32xf32> -> vector<32x32xf32>
    %c1_17 = arith.constant 1 : index
    %c1_18 = arith.constant 1 : index
    %c1_19 = arith.constant 1 : index
    %27 = vector.load %arg6[%c1_17, %c1_18, %c1_19] : memref<4x34x34xf32, #tpu.memory_space<vmem>>, vector<1x32x32xf32>
    %28 = vector.shape_cast %27 : vector<1x32x32xf32> to vector<32x32xf32>
    %29 = vector.shape_cast %26 : vector<32x32xf32> to vector<1x32x32xf32>
    tpu.vector_store %arg6[%c1_17, %c1_18, %c1_19], %29 {strides = array<i32>} : memref<4x34x34xf32, #tpu.memory_space<vmem>>, vector<1x32x32xf32>,
    %c0_20 = arith.constant 0 : index
    %c2 = arith.constant 2 : index
    %c0_21 = arith.constant 0 : index
    %c0_22 = arith.constant 0 : index
    %30 = vector.load %arg1[%c0_20, %c2, %c0_21, %c0_22] : memref<1x4x16x16xf32, #tpu.memory_space<vmem>>, vector<1x1x16x16xf32>
    %31 = vector.shape_cast %30 : vector<1x1x16x16xf32> to vector<16x16xf32>
    %cst_23 = arith.constant dense<0.000000e+00> : vector<32x16xf32>
    %32 = tpu.matmul %6, %31, %cst_23 {dimension_numbers = #tpu.dot_dimension_numbers<[1], [0], [0], [1], [0, 0, 1, 1], [], []>} : vector<32x16xf32>, vector<16x16xf32>, vector<32x16xf32> -> vector<32x16xf32>
    %cst_24 = arith.constant dense<0.000000e+00> : vector<32x32xf32>
    %33 = tpu.matmul %32, %13, %cst_24 {dimension_numbers = #tpu.dot_dimension_numbers<[1], [0], [0], [1], [0, 0, 1, 1], [], []>} : vector<32x16xf32>, vector<16x32xf32>, vector<32x32xf32> -> vector<32x32xf32>
    %c2_25 = arith.constant 2 : index
    %c1_26 = arith.constant 1 : index
    %c1_27 = arith.constant 1 : index
    %34 = vector.load %arg6[%c2_25, %c1_26, %c1_27] : memref<4x34x34xf32, #tpu.memory_space<vmem>>, vector<1x32x32xf32>
    %35 = vector.shape_cast %34 : vector<1x32x32xf32> to vector<32x32xf32>
    %36 = vector.shape_cast %33 : vector<32x32xf32> to vector<1x32x32xf32>
    tpu.vector_store %arg6[%c2_25, %c1_26, %c1_27], %36 {strides = array<i32>} : memref<4x34x34xf32, #tpu.memory_space<vmem>>, vector<1x32x32xf32>,
    %c0_28 = arith.constant 0 : index
    %c3 = arith.constant 3 : index
    %c0_29 = arith.constant 0 : index
    %c0_30 = arith.constant 0 : index
    %37 = vector.load %arg1[%c0_28, %c3, %c0_29, %c0_30] : memref<1x4x16x16xf32, #tpu.memory_space<vmem>>, vector<1x1x16x16xf32>
    %38 = vector.shape_cast %37 : vector<1x1x16x16xf32> to vector<16x16xf32>
    %cst_31 = arith.constant dense<0.000000e+00> : vector<32x16xf32>
    %39 = tpu.matmul %6, %38, %cst_31 {dimension_numbers = #tpu.dot_dimension_numbers<[1], [0], [0], [1], [0, 0, 1, 1], [], []>} : vector<32x16xf32>, vector<16x16xf32>, vector<32x16xf32> -> vector<32x16xf32>
    %cst_32 = arith.constant dense<0.000000e+00> : vector<32x32xf32>
    %40 = tpu.matmul %39, %13, %cst_32 {dimension_numbers = #tpu.dot_dimension_numbers<[1], [0], [0], [1], [0, 0, 1, 1], [], []>} : vector<32x16xf32>, vector<16x32xf32>, vector<32x32xf32> -> vector<32x32xf32>
    %c3_33 = arith.constant 3 : index
    %c1_34 = arith.constant 1 : index
    %c1_35 = arith.constant 1 : index
    %41 = vector.load %arg6[%c3_33, %c1_34, %c1_35] : memref<4x34x34xf32, #tpu.memory_space<vmem>>, vector<1x32x32xf32>
    %42 = vector.shape_cast %41 : vector<1x32x32xf32> to vector<32x32xf32>
    %43 = vector.shape_cast %40 : vector<32x32xf32> to vector<1x32x32xf32>
    tpu.vector_store %arg6[%c3_33, %c1_34, %c1_35], %43 {strides = array<i32>} : memref<4x34x34xf32, #tpu.memory_space<vmem>>, vector<1x32x32xf32>,
    %c0_36 = arith.constant 0 : index
    %44 = memref.load %arg3[%c0_36] : memref<8xf32, #tpu.memory_space<smem>>
    %45 = vector.broadcast %44 : f32 to vector<32x32xf32>
    %c1_37 = arith.constant 1 : index
    %46 = memref.load %arg3[%c1_37] : memref<8xf32, #tpu.memory_space<smem>>
    %47 = vector.broadcast %46 : f32 to vector<32x32xf32>
    %c2_38 = arith.constant 2 : index
    %48 = memref.load %arg3[%c2_38] : memref<8xf32, #tpu.memory_space<smem>>
    %49 = vector.broadcast %48 : f32 to vector<32x32xf32>
    %c3_39 = arith.constant 3 : index
    %50 = memref.load %arg3[%c3_39] : memref<8xf32, #tpu.memory_space<smem>>
    %51 = vector.broadcast %50 : f32 to vector<32x32xf32>
    %c4 = arith.constant 4 : index
    %52 = memref.load %arg3[%c4] : memref<8xf32, #tpu.memory_space<smem>>
    %53 = vector.broadcast %52 : f32 to vector<32x32xf32>
    %c5 = arith.constant 5 : index
    %54 = memref.load %arg3[%c5] : memref<8xf32, #tpu.memory_space<smem>>
    %55 = vector.broadcast %54 : f32 to vector<32x32xf32>
    %c6 = arith.constant 6 : index
    %56 = memref.load %arg3[%c6] : memref<8xf32, #tpu.memory_space<smem>>
    %57 = vector.broadcast %56 : f32 to vector<32x32xf32>
    %c7 = arith.constant 7 : index
    %58 = memref.load %arg3[%c7] : memref<8xf32, #tpu.memory_space<smem>>
    %59 = vector.broadcast %58 : f32 to vector<32x32xf32>
    %c0_40 = arith.constant 0 : index
    %c0_41 = arith.constant 0 : index
    %c0_42 = arith.constant 0 : index
    %60 = vector.load %arg6[%c0_40, %c0_41, %c0_42] : memref<4x34x34xf32, #tpu.memory_space<vmem>>, vector<1x32x32xf32>
    %61 = vector.shape_cast %60 : vector<1x32x32xf32> to vector<32x32xf32>
    %c0_43 = arith.constant 0 : index
    %62 = memref.load %arg2[%c0_43] : memref<288xf32, #tpu.memory_space<smem>>
    %63 = vector.broadcast %62 : f32 to vector<32x32xf32>
    %64 = arith.mulf %63, %61 : vector<32x32xf32>
    %65 = arith.addf %45, %64 : vector<32x32xf32>
    %c36 = arith.constant 36 : index
    %66 = memref.load %arg2[%c36] : memref<288xf32, #tpu.memory_space<smem>>
    %67 = vector.broadcast %66 : f32 to vector<32x32xf32>
    %68 = arith.mulf %67, %61 : vector<32x32xf32>
    %69 = arith.addf %47, %68 : vector<32x32xf32>
    %c72 = arith.constant 72 : index
    %70 = memref.load %arg2[%c72] : memref<288xf32, #tpu.memory_space<smem>>
    %71 = vector.broadcast %70 : f32 to vector<32x32xf32>
    %72 = arith.mulf %71, %61 : vector<32x32xf32>
    %73 = arith.addf %49, %72 : vector<32x32xf32>
    %c108 = arith.constant 108 : index
    %74 = memref.load %arg2[%c108] : memref<288xf32, #tpu.memory_space<smem>>
    %75 = vector.broadcast %74 : f32 to vector<32x32xf32>
    %76 = arith.mulf %75, %61 : vector<32x32xf32>
    %77 = arith.addf %51, %76 : vector<32x32xf32>
    %c144 = arith.constant 144 : index
    %78 = memref.load %arg2[%c144] : memref<288xf32, #tpu.memory_space<smem>>
    %79 = vector.broadcast %78 : f32 to vector<32x32xf32>
    %80 = arith.mulf %79, %61 : vector<32x32xf32>
    %81 = arith.addf %53, %80 : vector<32x32xf32>
    %c180 = arith.constant 180 : index
    %82 = memref.load %arg2[%c180] : memref<288xf32, #tpu.memory_space<smem>>
    %83 = vector.broadcast %82 : f32 to vector<32x32xf32>
    %84 = arith.mulf %83, %61 : vector<32x32xf32>
    %85 = arith.addf %55, %84 : vector<32x32xf32>
    %c216 = arith.constant 216 : index
    %86 = memref.load %arg2[%c216] : memref<288xf32, #tpu.memory_space<smem>>
    %87 = vector.broadcast %86 : f32 to vector<32x32xf32>
    %88 = arith.mulf %87, %61 : vector<32x32xf32>
    %89 = arith.addf %57, %88 : vector<32x32xf32>
    %c252 = arith.constant 252 : index
    %90 = memref.load %arg2[%c252] : memref<288xf32, #tpu.memory_space<smem>>
    %91 = vector.broadcast %90 : f32 to vector<32x32xf32>
    %92 = arith.mulf %91, %61 : vector<32x32xf32>
    %93 = arith.addf %59, %92 : vector<32x32xf32>
    %c0_44 = arith.constant 0 : index
    %c0_45 = arith.constant 0 : index
    %c1_46 = arith.constant 1 : index
    %94 = vector.load %arg6[%c0_44, %c0_45, %c1_46] : memref<4x34x34xf32, #tpu.memory_space<vmem>>, vector<1x32x32xf32>
    %95 = vector.shape_cast %94 : vector<1x32x32xf32> to vector<32x32xf32>
    %c1_47 = arith.constant 1 : index
    %96 = memref.load %arg2[%c1_47] : memref<288xf32, #tpu.memory_space<smem>>
    %97 = vector.broadcast %96 : f32 to vector<32x32xf32>
    %98 = arith.mulf %97, %95 : vector<32x32xf32>
    %99 = arith.addf %65, %98 : vector<32x32xf32>
    %c37 = arith.constant 37 : index
    %100 = memref.load %arg2[%c37] : memref<288xf32, #tpu.memory_space<smem>>
    %101 = vector.broadcast %100 : f32 to vector<32x32xf32>
    %102 = arith.mulf %101, %95 : vector<32x32xf32>
    %103 = arith.addf %69, %102 : vector<32x32xf32>
    %c73 = arith.constant 73 : index
    %104 = memref.load %arg2[%c73] : memref<288xf32, #tpu.memory_space<smem>>
    %105 = vector.broadcast %104 : f32 to vector<32x32xf32>
    %106 = arith.mulf %105, %95 : vector<32x32xf32>
    %107 = arith.addf %73, %106 : vector<32x32xf32>
    %c109 = arith.constant 109 : index
    %108 = memref.load %arg2[%c109] : memref<288xf32, #tpu.memory_space<smem>>
    %109 = vector.broadcast %108 : f32 to vector<32x32xf32>
    %110 = arith.mulf %109, %95 : vector<32x32xf32>
    %111 = arith.addf %77, %110 : vector<32x32xf32>
    %c145 = arith.constant 145 : index
    %112 = memref.load %arg2[%c145] : memref<288xf32, #tpu.memory_space<smem>>
    %113 = vector.broadcast %112 : f32 to vector<32x32xf32>
    %114 = arith.mulf %113, %95 : vector<32x32xf32>
    %115 = arith.addf %81, %114 : vector<32x32xf32>
    %c181 = arith.constant 181 : index
    %116 = memref.load %arg2[%c181] : memref<288xf32, #tpu.memory_space<smem>>
    %117 = vector.broadcast %116 : f32 to vector<32x32xf32>
    %118 = arith.mulf %117, %95 : vector<32x32xf32>
    %119 = arith.addf %85, %118 : vector<32x32xf32>
    %c217 = arith.constant 217 : index
    %120 = memref.load %arg2[%c217] : memref<288xf32, #tpu.memory_space<smem>>
    %121 = vector.broadcast %120 : f32 to vector<32x32xf32>
    %122 = arith.mulf %121, %95 : vector<32x32xf32>
    %123 = arith.addf %89, %122 : vector<32x32xf32>
    %c253 = arith.constant 253 : index
    %124 = memref.load %arg2[%c253] : memref<288xf32, #tpu.memory_space<smem>>
    %125 = vector.broadcast %124 : f32 to vector<32x32xf32>
    %126 = arith.mulf %125, %95 : vector<32x32xf32>
    %127 = arith.addf %93, %126 : vector<32x32xf32>
    %c0_48 = arith.constant 0 : index
    %c0_49 = arith.constant 0 : index
    %c2_50 = arith.constant 2 : index
    %128 = vector.load %arg6[%c0_48, %c0_49, %c2_50] : memref<4x34x34xf32, #tpu.memory_space<vmem>>, vector<1x32x32xf32>
    %129 = vector.shape_cast %128 : vector<1x32x32xf32> to vector<32x32xf32>
    %c2_51 = arith.constant 2 : index
    %130 = memref.load %arg2[%c2_51] : memref<288xf32, #tpu.memory_space<smem>>
    %131 = vector.broadcast %130 : f32 to vector<32x32xf32>
    %132 = arith.mulf %131, %129 : vector<32x32xf32>
    %133 = arith.addf %99, %132 : vector<32x32xf32>
    %c38 = arith.constant 38 : index
    %134 = memref.load %arg2[%c38] : memref<288xf32, #tpu.memory_space<smem>>
    %135 = vector.broadcast %134 : f32 to vector<32x32xf32>
    %136 = arith.mulf %135, %129 : vector<32x32xf32>
    %137 = arith.addf %103, %136 : vector<32x32xf32>
    %c74 = arith.constant 74 : index
    %138 = memref.load %arg2[%c74] : memref<288xf32, #tpu.memory_space<smem>>
    %139 = vector.broadcast %138 : f32 to vector<32x32xf32>
    %140 = arith.mulf %139, %129 : vector<32x32xf32>
    %141 = arith.addf %107, %140 : vector<32x32xf32>
    %c110 = arith.constant 110 : index
    %142 = memref.load %arg2[%c110] : memref<288xf32, #tpu.memory_space<smem>>
    %143 = vector.broadcast %142 : f32 to vector<32x32xf32>
    %144 = arith.mulf %143, %129 : vector<32x32xf32>
    %145 = arith.addf %111, %144 : vector<32x32xf32>
    %c146 = arith.constant 146 : index
    %146 = memref.load %arg2[%c146] : memref<288xf32, #tpu.memory_space<smem>>
    %147 = vector.broadcast %146 : f32 to vector<32x32xf32>
    %148 = arith.mulf %147, %129 : vector<32x32xf32>
    %149 = arith.addf %115, %148 : vector<32x32xf32>
    %c182 = arith.constant 182 : index
    %150 = memref.load %arg2[%c182] : memref<288xf32, #tpu.memory_space<smem>>
    %151 = vector.broadcast %150 : f32 to vector<32x32xf32>
    %152 = arith.mulf %151, %129 : vector<32x32xf32>
    %153 = arith.addf %119, %152 : vector<32x32xf32>
    %c218 = arith.constant 218 : index
    %154 = memref.load %arg2[%c218] : memref<288xf32, #tpu.memory_space<smem>>
    %155 = vector.broadcast %154 : f32 to vector<32x32xf32>
    %156 = arith.mulf %155, %129 : vector<32x32xf32>
    %157 = arith.addf %123, %156 : vector<32x32xf32>
    %c254 = arith.constant 254 : index
    %158 = memref.load %arg2[%c254] : memref<288xf32, #tpu.memory_space<smem>>
    %159 = vector.broadcast %158 : f32 to vector<32x32xf32>
    %160 = arith.mulf %159, %129 : vector<32x32xf32>
    %161 = arith.addf %127, %160 : vector<32x32xf32>
    %c0_52 = arith.constant 0 : index
    %c1_53 = arith.constant 1 : index
    %c0_54 = arith.constant 0 : index
    %162 = vector.load %arg6[%c0_52, %c1_53, %c0_54] : memref<4x34x34xf32, #tpu.memory_space<vmem>>, vector<1x32x32xf32>
    %163 = vector.shape_cast %162 : vector<1x32x32xf32> to vector<32x32xf32>
    %c3_55 = arith.constant 3 : index
    %164 = memref.load %arg2[%c3_55] : memref<288xf32, #tpu.memory_space<smem>>
    %165 = vector.broadcast %164 : f32 to vector<32x32xf32>
    %166 = arith.mulf %165, %163 : vector<32x32xf32>
    %167 = arith.addf %133, %166 : vector<32x32xf32>
    %c39 = arith.constant 39 : index
    %168 = memref.load %arg2[%c39] : memref<288xf32, #tpu.memory_space<smem>>
    %169 = vector.broadcast %168 : f32 to vector<32x32xf32>
    %170 = arith.mulf %169, %163 : vector<32x32xf32>
    %171 = arith.addf %137, %170 : vector<32x32xf32>
    %c75 = arith.constant 75 : index
    %172 = memref.load %arg2[%c75] : memref<288xf32, #tpu.memory_space<smem>>
    %173 = vector.broadcast %172 : f32 to vector<32x32xf32>
    %174 = arith.mulf %173, %163 : vector<32x32xf32>
    %175 = arith.addf %141, %174 : vector<32x32xf32>
    %c111 = arith.constant 111 : index
    %176 = memref.load %arg2[%c111] : memref<288xf32, #tpu.memory_space<smem>>
    %177 = vector.broadcast %176 : f32 to vector<32x32xf32>
    %178 = arith.mulf %177, %163 : vector<32x32xf32>
    %179 = arith.addf %145, %178 : vector<32x32xf32>
    %c147 = arith.constant 147 : index
    %180 = memref.load %arg2[%c147] : memref<288xf32, #tpu.memory_space<smem>>
    %181 = vector.broadcast %180 : f32 to vector<32x32xf32>
    %182 = arith.mulf %181, %163 : vector<32x32xf32>
    %183 = arith.addf %149, %182 : vector<32x32xf32>
    %c183 = arith.constant 183 : index
    %184 = memref.load %arg2[%c183] : memref<288xf32, #tpu.memory_space<smem>>
    %185 = vector.broadcast %184 : f32 to vector<32x32xf32>
    %186 = arith.mulf %185, %163 : vector<32x32xf32>
    %187 = arith.addf %153, %186 : vector<32x32xf32>
    %c219 = arith.constant 219 : index
    %188 = memref.load %arg2[%c219] : memref<288xf32, #tpu.memory_space<smem>>
    %189 = vector.broadcast %188 : f32 to vector<32x32xf32>
    %190 = arith.mulf %189, %163 : vector<32x32xf32>
    %191 = arith.addf %157, %190 : vector<32x32xf32>
    %c255 = arith.constant 255 : index
    %192 = memref.load %arg2[%c255] : memref<288xf32, #tpu.memory_space<smem>>
    %193 = vector.broadcast %192 : f32 to vector<32x32xf32>
    %194 = arith.mulf %193, %163 : vector<32x32xf32>
    %195 = arith.addf %161, %194 : vector<32x32xf32>
    %c0_56 = arith.constant 0 : index
    %c1_57 = arith.constant 1 : index
    %c1_58 = arith.constant 1 : index
    %196 = vector.load %arg6[%c0_56, %c1_57, %c1_58] : memref<4x34x34xf32, #tpu.memory_space<vmem>>, vector<1x32x32xf32>
    %197 = vector.shape_cast %196 : vector<1x32x32xf32> to vector<32x32xf32>
    %c4_59 = arith.constant 4 : index
    %198 = memref.load %arg2[%c4_59] : memref<288xf32, #tpu.memory_space<smem>>
    %199 = vector.broadcast %198 : f32 to vector<32x32xf32>
    %200 = arith.mulf %199, %197 : vector<32x32xf32>
    %201 = arith.addf %167, %200 : vector<32x32xf32>
    %c40 = arith.constant 40 : index
    %202 = memref.load %arg2[%c40] : memref<288xf32, #tpu.memory_space<smem>>
    %203 = vector.broadcast %202 : f32 to vector<32x32xf32>
    %204 = arith.mulf %203, %197 : vector<32x32xf32>
    %205 = arith.addf %171, %204 : vector<32x32xf32>
    %c76 = arith.constant 76 : index
    %206 = memref.load %arg2[%c76] : memref<288xf32, #tpu.memory_space<smem>>
    %207 = vector.broadcast %206 : f32 to vector<32x32xf32>
    %208 = arith.mulf %207, %197 : vector<32x32xf32>
    %209 = arith.addf %175, %208 : vector<32x32xf32>
    %c112 = arith.constant 112 : index
    %210 = memref.load %arg2[%c112] : memref<288xf32, #tpu.memory_space<smem>>
    %211 = vector.broadcast %210 : f32 to vector<32x32xf32>
    %212 = arith.mulf %211, %197 : vector<32x32xf32>
    %213 = arith.addf %179, %212 : vector<32x32xf32>
    %c148 = arith.constant 148 : index
    %214 = memref.load %arg2[%c148] : memref<288xf32, #tpu.memory_space<smem>>
    %215 = vector.broadcast %214 : f32 to vector<32x32xf32>
    %216 = arith.mulf %215, %197 : vector<32x32xf32>
    %217 = arith.addf %183, %216 : vector<32x32xf32>
    %c184 = arith.constant 184 : index
    %218 = memref.load %arg2[%c184] : memref<288xf32, #tpu.memory_space<smem>>
    %219 = vector.broadcast %218 : f32 to vector<32x32xf32>
    %220 = arith.mulf %219, %197 : vector<32x32xf32>
    %221 = arith.addf %187, %220 : vector<32x32xf32>
    %c220 = arith.constant 220 : index
    %222 = memref.load %arg2[%c220] : memref<288xf32, #tpu.memory_space<smem>>
    %223 = vector.broadcast %222 : f32 to vector<32x32xf32>
    %224 = arith.mulf %223, %197 : vector<32x32xf32>
    %225 = arith.addf %191, %224 : vector<32x32xf32>
    %c256 = arith.constant 256 : index
    %226 = memref.load %arg2[%c256] : memref<288xf32, #tpu.memory_space<smem>>
    %227 = vector.broadcast %226 : f32 to vector<32x32xf32>
    %228 = arith.mulf %227, %197 : vector<32x32xf32>
    %229 = arith.addf %195, %228 : vector<32x32xf32>
    %c0_60 = arith.constant 0 : index
    %c1_61 = arith.constant 1 : index
    %c2_62 = arith.constant 2 : index
    %230 = vector.load %arg6[%c0_60, %c1_61, %c2_62] : memref<4x34x34xf32, #tpu.memory_space<vmem>>, vector<1x32x32xf32>
    %231 = vector.shape_cast %230 : vector<1x32x32xf32> to vector<32x32xf32>
    %c5_63 = arith.constant 5 : index
    %232 = memref.load %arg2[%c5_63] : memref<288xf32, #tpu.memory_space<smem>>
    %233 = vector.broadcast %232 : f32 to vector<32x32xf32>
    %234 = arith.mulf %233, %231 : vector<32x32xf32>
    %235 = arith.addf %201, %234 : vector<32x32xf32>
    %c41 = arith.constant 41 : index
    %236 = memref.load %arg2[%c41] : memref<288xf32, #tpu.memory_space<smem>>
    %237 = vector.broadcast %236 : f32 to vector<32x32xf32>
    %238 = arith.mulf %237, %231 : vector<32x32xf32>
    %239 = arith.addf %205, %238 : vector<32x32xf32>
    %c77 = arith.constant 77 : index
    %240 = memref.load %arg2[%c77] : memref<288xf32, #tpu.memory_space<smem>>
    %241 = vector.broadcast %240 : f32 to vector<32x32xf32>
    %242 = arith.mulf %241, %231 : vector<32x32xf32>
    %243 = arith.addf %209, %242 : vector<32x32xf32>
    %c113 = arith.constant 113 : index
    %244 = memref.load %arg2[%c113] : memref<288xf32, #tpu.memory_space<smem>>
    %245 = vector.broadcast %244 : f32 to vector<32x32xf32>
    %246 = arith.mulf %245, %231 : vector<32x32xf32>
    %247 = arith.addf %213, %246 : vector<32x32xf32>
    %c149 = arith.constant 149 : index
    %248 = memref.load %arg2[%c149] : memref<288xf32, #tpu.memory_space<smem>>
    %249 = vector.broadcast %248 : f32 to vector<32x32xf32>
    %250 = arith.mulf %249, %231 : vector<32x32xf32>
    %251 = arith.addf %217, %250 : vector<32x32xf32>
    %c185 = arith.constant 185 : index
    %252 = memref.load %arg2[%c185] : memref<288xf32, #tpu.memory_space<smem>>
    %253 = vector.broadcast %252 : f32 to vector<32x32xf32>
    %254 = arith.mulf %253, %231 : vector<32x32xf32>
    %255 = arith.addf %221, %254 : vector<32x32xf32>
    %c221 = arith.constant 221 : index
    %256 = memref.load %arg2[%c221] : memref<288xf32, #tpu.memory_space<smem>>
    %257 = vector.broadcast %256 : f32 to vector<32x32xf32>
    %258 = arith.mulf %257, %231 : vector<32x32xf32>
    %259 = arith.addf %225, %258 : vector<32x32xf32>
    %c257 = arith.constant 257 : index
    %260 = memref.load %arg2[%c257] : memref<288xf32, #tpu.memory_space<smem>>
    %261 = vector.broadcast %260 : f32 to vector<32x32xf32>
    %262 = arith.mulf %261, %231 : vector<32x32xf32>
    %263 = arith.addf %229, %262 : vector<32x32xf32>
    %c0_64 = arith.constant 0 : index
    %c2_65 = arith.constant 2 : index
    %c0_66 = arith.constant 0 : index
    %264 = vector.load %arg6[%c0_64, %c2_65, %c0_66] : memref<4x34x34xf32, #tpu.memory_space<vmem>>, vector<1x32x32xf32>
    %265 = vector.shape_cast %264 : vector<1x32x32xf32> to vector<32x32xf32>
    %c6_67 = arith.constant 6 : index
    %266 = memref.load %arg2[%c6_67] : memref<288xf32, #tpu.memory_space<smem>>
    %267 = vector.broadcast %266 : f32 to vector<32x32xf32>
    %268 = arith.mulf %267, %265 : vector<32x32xf32>
    %269 = arith.addf %235, %268 : vector<32x32xf32>
    %c42 = arith.constant 42 : index
    %270 = memref.load %arg2[%c42] : memref<288xf32, #tpu.memory_space<smem>>
    %271 = vector.broadcast %270 : f32 to vector<32x32xf32>
    %272 = arith.mulf %271, %265 : vector<32x32xf32>
    %273 = arith.addf %239, %272 : vector<32x32xf32>
    %c78 = arith.constant 78 : index
    %274 = memref.load %arg2[%c78] : memref<288xf32, #tpu.memory_space<smem>>
    %275 = vector.broadcast %274 : f32 to vector<32x32xf32>
    %276 = arith.mulf %275, %265 : vector<32x32xf32>
    %277 = arith.addf %243, %276 : vector<32x32xf32>
    %c114 = arith.constant 114 : index
    %278 = memref.load %arg2[%c114] : memref<288xf32, #tpu.memory_space<smem>>
    %279 = vector.broadcast %278 : f32 to vector<32x32xf32>
    %280 = arith.mulf %279, %265 : vector<32x32xf32>
    %281 = arith.addf %247, %280 : vector<32x32xf32>
    %c150 = arith.constant 150 : index
    %282 = memref.load %arg2[%c150] : memref<288xf32, #tpu.memory_space<smem>>
    %283 = vector.broadcast %282 : f32 to vector<32x32xf32>
    %284 = arith.mulf %283, %265 : vector<32x32xf32>
    %285 = arith.addf %251, %284 : vector<32x32xf32>
    %c186 = arith.constant 186 : index
    %286 = memref.load %arg2[%c186] : memref<288xf32, #tpu.memory_space<smem>>
    %287 = vector.broadcast %286 : f32 to vector<32x32xf32>
    %288 = arith.mulf %287, %265 : vector<32x32xf32>
    %289 = arith.addf %255, %288 : vector<32x32xf32>
    %c222 = arith.constant 222 : index
    %290 = memref.load %arg2[%c222] : memref<288xf32, #tpu.memory_space<smem>>
    %291 = vector.broadcast %290 : f32 to vector<32x32xf32>
    %292 = arith.mulf %291, %265 : vector<32x32xf32>
    %293 = arith.addf %259, %292 : vector<32x32xf32>
    %c258 = arith.constant 258 : index
    %294 = memref.load %arg2[%c258] : memref<288xf32, #tpu.memory_space<smem>>
    %295 = vector.broadcast %294 : f32 to vector<32x32xf32>
    %296 = arith.mulf %295, %265 : vector<32x32xf32>
    %297 = arith.addf %263, %296 : vector<32x32xf32>
    %c0_68 = arith.constant 0 : index
    %c2_69 = arith.constant 2 : index
    %c1_70 = arith.constant 1 : index
    %298 = vector.load %arg6[%c0_68, %c2_69, %c1_70] : memref<4x34x34xf32, #tpu.memory_space<vmem>>, vector<1x32x32xf32>
    %299 = vector.shape_cast %298 : vector<1x32x32xf32> to vector<32x32xf32>
    %c7_71 = arith.constant 7 : index
    %300 = memref.load %arg2[%c7_71] : memref<288xf32, #tpu.memory_space<smem>>
    %301 = vector.broadcast %300 : f32 to vector<32x32xf32>
    %302 = arith.mulf %301, %299 : vector<32x32xf32>
    %303 = arith.addf %269, %302 : vector<32x32xf32>
    %c43 = arith.constant 43 : index
    %304 = memref.load %arg2[%c43] : memref<288xf32, #tpu.memory_space<smem>>
    %305 = vector.broadcast %304 : f32 to vector<32x32xf32>
    %306 = arith.mulf %305, %299 : vector<32x32xf32>
    %307 = arith.addf %273, %306 : vector<32x32xf32>
    %c79 = arith.constant 79 : index
    %308 = memref.load %arg2[%c79] : memref<288xf32, #tpu.memory_space<smem>>
    %309 = vector.broadcast %308 : f32 to vector<32x32xf32>
    %310 = arith.mulf %309, %299 : vector<32x32xf32>
    %311 = arith.addf %277, %310 : vector<32x32xf32>
    %c115 = arith.constant 115 : index
    %312 = memref.load %arg2[%c115] : memref<288xf32, #tpu.memory_space<smem>>
    %313 = vector.broadcast %312 : f32 to vector<32x32xf32>
    %314 = arith.mulf %313, %299 : vector<32x32xf32>
    %315 = arith.addf %281, %314 : vector<32x32xf32>
    %c151 = arith.constant 151 : index
    %316 = memref.load %arg2[%c151] : memref<288xf32, #tpu.memory_space<smem>>
    %317 = vector.broadcast %316 : f32 to vector<32x32xf32>
    %318 = arith.mulf %317, %299 : vector<32x32xf32>
    %319 = arith.addf %285, %318 : vector<32x32xf32>
    %c187 = arith.constant 187 : index
    %320 = memref.load %arg2[%c187] : memref<288xf32, #tpu.memory_space<smem>>
    %321 = vector.broadcast %320 : f32 to vector<32x32xf32>
    %322 = arith.mulf %321, %299 : vector<32x32xf32>
    %323 = arith.addf %289, %322 : vector<32x32xf32>
    %c223 = arith.constant 223 : index
    %324 = memref.load %arg2[%c223] : memref<288xf32, #tpu.memory_space<smem>>
    %325 = vector.broadcast %324 : f32 to vector<32x32xf32>
    %326 = arith.mulf %325, %299 : vector<32x32xf32>
    %327 = arith.addf %293, %326 : vector<32x32xf32>
    %c259 = arith.constant 259 : index
    %328 = memref.load %arg2[%c259] : memref<288xf32, #tpu.memory_space<smem>>
    %329 = vector.broadcast %328 : f32 to vector<32x32xf32>
    %330 = arith.mulf %329, %299 : vector<32x32xf32>
    %331 = arith.addf %297, %330 : vector<32x32xf32>
    %c0_72 = arith.constant 0 : index
    %c2_73 = arith.constant 2 : index
    %c2_74 = arith.constant 2 : index
    %332 = vector.load %arg6[%c0_72, %c2_73, %c2_74] : memref<4x34x34xf32, #tpu.memory_space<vmem>>, vector<1x32x32xf32>
    %333 = vector.shape_cast %332 : vector<1x32x32xf32> to vector<32x32xf32>
    %c8 = arith.constant 8 : index
    %334 = memref.load %arg2[%c8] : memref<288xf32, #tpu.memory_space<smem>>
    %335 = vector.broadcast %334 : f32 to vector<32x32xf32>
    %336 = arith.mulf %335, %333 : vector<32x32xf32>
    %337 = arith.addf %303, %336 : vector<32x32xf32>
    %c44 = arith.constant 44 : index
    %338 = memref.load %arg2[%c44] : memref<288xf32, #tpu.memory_space<smem>>
    %339 = vector.broadcast %338 : f32 to vector<32x32xf32>
    %340 = arith.mulf %339, %333 : vector<32x32xf32>
    %341 = arith.addf %307, %340 : vector<32x32xf32>
    %c80 = arith.constant 80 : index
    %342 = memref.load %arg2[%c80] : memref<288xf32, #tpu.memory_space<smem>>
    %343 = vector.broadcast %342 : f32 to vector<32x32xf32>
    %344 = arith.mulf %343, %333 : vector<32x32xf32>
    %345 = arith.addf %311, %344 : vector<32x32xf32>
    %c116 = arith.constant 116 : index
    %346 = memref.load %arg2[%c116] : memref<288xf32, #tpu.memory_space<smem>>
    %347 = vector.broadcast %346 : f32 to vector<32x32xf32>
    %348 = arith.mulf %347, %333 : vector<32x32xf32>
    %349 = arith.addf %315, %348 : vector<32x32xf32>
    %c152 = arith.constant 152 : index
    %350 = memref.load %arg2[%c152] : memref<288xf32, #tpu.memory_space<smem>>
    %351 = vector.broadcast %350 : f32 to vector<32x32xf32>
    %352 = arith.mulf %351, %333 : vector<32x32xf32>
    %353 = arith.addf %319, %352 : vector<32x32xf32>
    %c188 = arith.constant 188 : index
    %354 = memref.load %arg2[%c188] : memref<288xf32, #tpu.memory_space<smem>>
    %355 = vector.broadcast %354 : f32 to vector<32x32xf32>
    %356 = arith.mulf %355, %333 : vector<32x32xf32>
    %357 = arith.addf %323, %356 : vector<32x32xf32>
    %c224 = arith.constant 224 : index
    %358 = memref.load %arg2[%c224] : memref<288xf32, #tpu.memory_space<smem>>
    %359 = vector.broadcast %358 : f32 to vector<32x32xf32>
    %360 = arith.mulf %359, %333 : vector<32x32xf32>
    %361 = arith.addf %327, %360 : vector<32x32xf32>
    %c260 = arith.constant 260 : index
    %362 = memref.load %arg2[%c260] : memref<288xf32, #tpu.memory_space<smem>>
    %363 = vector.broadcast %362 : f32 to vector<32x32xf32>
    %364 = arith.mulf %363, %333 : vector<32x32xf32>
    %365 = arith.addf %331, %364 : vector<32x32xf32>
    %c1_75 = arith.constant 1 : index
    %c0_76 = arith.constant 0 : index
    %c0_77 = arith.constant 0 : index
    %366 = vector.load %arg6[%c1_75, %c0_76, %c0_77] : memref<4x34x34xf32, #tpu.memory_space<vmem>>, vector<1x32x32xf32>
    %367 = vector.shape_cast %366 : vector<1x32x32xf32> to vector<32x32xf32>
    %c9 = arith.constant 9 : index
    %368 = memref.load %arg2[%c9] : memref<288xf32, #tpu.memory_space<smem>>
    %369 = vector.broadcast %368 : f32 to vector<32x32xf32>
    %370 = arith.mulf %369, %367 : vector<32x32xf32>
    %371 = arith.addf %337, %370 : vector<32x32xf32>
    %c45 = arith.constant 45 : index
    %372 = memref.load %arg2[%c45] : memref<288xf32, #tpu.memory_space<smem>>
    %373 = vector.broadcast %372 : f32 to vector<32x32xf32>
    %374 = arith.mulf %373, %367 : vector<32x32xf32>
    %375 = arith.addf %341, %374 : vector<32x32xf32>
    %c81 = arith.constant 81 : index
    %376 = memref.load %arg2[%c81] : memref<288xf32, #tpu.memory_space<smem>>
    %377 = vector.broadcast %376 : f32 to vector<32x32xf32>
    %378 = arith.mulf %377, %367 : vector<32x32xf32>
    %379 = arith.addf %345, %378 : vector<32x32xf32>
    %c117 = arith.constant 117 : index
    %380 = memref.load %arg2[%c117] : memref<288xf32, #tpu.memory_space<smem>>
    %381 = vector.broadcast %380 : f32 to vector<32x32xf32>
    %382 = arith.mulf %381, %367 : vector<32x32xf32>
    %383 = arith.addf %349, %382 : vector<32x32xf32>
    %c153 = arith.constant 153 : index
    %384 = memref.load %arg2[%c153] : memref<288xf32, #tpu.memory_space<smem>>
    %385 = vector.broadcast %384 : f32 to vector<32x32xf32>
    %386 = arith.mulf %385, %367 : vector<32x32xf32>
    %387 = arith.addf %353, %386 : vector<32x32xf32>
    %c189 = arith.constant 189 : index
    %388 = memref.load %arg2[%c189] : memref<288xf32, #tpu.memory_space<smem>>
    %389 = vector.broadcast %388 : f32 to vector<32x32xf32>
    %390 = arith.mulf %389, %367 : vector<32x32xf32>
    %391 = arith.addf %357, %390 : vector<32x32xf32>
    %c225 = arith.constant 225 : index
    %392 = memref.load %arg2[%c225] : memref<288xf32, #tpu.memory_space<smem>>
    %393 = vector.broadcast %392 : f32 to vector<32x32xf32>
    %394 = arith.mulf %393, %367 : vector<32x32xf32>
    %395 = arith.addf %361, %394 : vector<32x32xf32>
    %c261 = arith.constant 261 : index
    %396 = memref.load %arg2[%c261] : memref<288xf32, #tpu.memory_space<smem>>
    %397 = vector.broadcast %396 : f32 to vector<32x32xf32>
    %398 = arith.mulf %397, %367 : vector<32x32xf32>
    %399 = arith.addf %365, %398 : vector<32x32xf32>
    %c1_78 = arith.constant 1 : index
    %c0_79 = arith.constant 0 : index
    %c1_80 = arith.constant 1 : index
    %400 = vector.load %arg6[%c1_78, %c0_79, %c1_80] : memref<4x34x34xf32, #tpu.memory_space<vmem>>, vector<1x32x32xf32>
    %401 = vector.shape_cast %400 : vector<1x32x32xf32> to vector<32x32xf32>
    %c10 = arith.constant 10 : index
    %402 = memref.load %arg2[%c10] : memref<288xf32, #tpu.memory_space<smem>>
    %403 = vector.broadcast %402 : f32 to vector<32x32xf32>
    %404 = arith.mulf %403, %401 : vector<32x32xf32>
    %405 = arith.addf %371, %404 : vector<32x32xf32>
    %c46 = arith.constant 46 : index
    %406 = memref.load %arg2[%c46] : memref<288xf32, #tpu.memory_space<smem>>
    %407 = vector.broadcast %406 : f32 to vector<32x32xf32>
    %408 = arith.mulf %407, %401 : vector<32x32xf32>
    %409 = arith.addf %375, %408 : vector<32x32xf32>
    %c82 = arith.constant 82 : index
    %410 = memref.load %arg2[%c82] : memref<288xf32, #tpu.memory_space<smem>>
    %411 = vector.broadcast %410 : f32 to vector<32x32xf32>
    %412 = arith.mulf %411, %401 : vector<32x32xf32>
    %413 = arith.addf %379, %412 : vector<32x32xf32>
    %c118 = arith.constant 118 : index
    %414 = memref.load %arg2[%c118] : memref<288xf32, #tpu.memory_space<smem>>
    %415 = vector.broadcast %414 : f32 to vector<32x32xf32>
    %416 = arith.mulf %415, %401 : vector<32x32xf32>
    %417 = arith.addf %383, %416 : vector<32x32xf32>
    %c154 = arith.constant 154 : index
    %418 = memref.load %arg2[%c154] : memref<288xf32, #tpu.memory_space<smem>>
    %419 = vector.broadcast %418 : f32 to vector<32x32xf32>
    %420 = arith.mulf %419, %401 : vector<32x32xf32>
    %421 = arith.addf %387, %420 : vector<32x32xf32>
    %c190 = arith.constant 190 : index
    %422 = memref.load %arg2[%c190] : memref<288xf32, #tpu.memory_space<smem>>
    %423 = vector.broadcast %422 : f32 to vector<32x32xf32>
    %424 = arith.mulf %423, %401 : vector<32x32xf32>
    %425 = arith.addf %391, %424 : vector<32x32xf32>
    %c226 = arith.constant 226 : index
    %426 = memref.load %arg2[%c226] : memref<288xf32, #tpu.memory_space<smem>>
    %427 = vector.broadcast %426 : f32 to vector<32x32xf32>
    %428 = arith.mulf %427, %401 : vector<32x32xf32>
    %429 = arith.addf %395, %428 : vector<32x32xf32>
    %c262 = arith.constant 262 : index
    %430 = memref.load %arg2[%c262] : memref<288xf32, #tpu.memory_space<smem>>
    %431 = vector.broadcast %430 : f32 to vector<32x32xf32>
    %432 = arith.mulf %431, %401 : vector<32x32xf32>
    %433 = arith.addf %399, %432 : vector<32x32xf32>
    %c1_81 = arith.constant 1 : index
    %c0_82 = arith.constant 0 : index
    %c2_83 = arith.constant 2 : index
    %434 = vector.load %arg6[%c1_81, %c0_82, %c2_83] : memref<4x34x34xf32, #tpu.memory_space<vmem>>, vector<1x32x32xf32>
    %435 = vector.shape_cast %434 : vector<1x32x32xf32> to vector<32x32xf32>
    %c11 = arith.constant 11 : index
    %436 = memref.load %arg2[%c11] : memref<288xf32, #tpu.memory_space<smem>>
    %437 = vector.broadcast %436 : f32 to vector<32x32xf32>
    %438 = arith.mulf %437, %435 : vector<32x32xf32>
    %439 = arith.addf %405, %438 : vector<32x32xf32>
    %c47 = arith.constant 47 : index
    %440 = memref.load %arg2[%c47] : memref<288xf32, #tpu.memory_space<smem>>
    %441 = vector.broadcast %440 : f32 to vector<32x32xf32>
    %442 = arith.mulf %441, %435 : vector<32x32xf32>
    %443 = arith.addf %409, %442 : vector<32x32xf32>
    %c83 = arith.constant 83 : index
    %444 = memref.load %arg2[%c83] : memref<288xf32, #tpu.memory_space<smem>>
    %445 = vector.broadcast %444 : f32 to vector<32x32xf32>
    %446 = arith.mulf %445, %435 : vector<32x32xf32>
    %447 = arith.addf %413, %446 : vector<32x32xf32>
    %c119 = arith.constant 119 : index
    %448 = memref.load %arg2[%c119] : memref<288xf32, #tpu.memory_space<smem>>
    %449 = vector.broadcast %448 : f32 to vector<32x32xf32>
    %450 = arith.mulf %449, %435 : vector<32x32xf32>
    %451 = arith.addf %417, %450 : vector<32x32xf32>
    %c155 = arith.constant 155 : index
    %452 = memref.load %arg2[%c155] : memref<288xf32, #tpu.memory_space<smem>>
    %453 = vector.broadcast %452 : f32 to vector<32x32xf32>
    %454 = arith.mulf %453, %435 : vector<32x32xf32>
    %455 = arith.addf %421, %454 : vector<32x32xf32>
    %c191 = arith.constant 191 : index
    %456 = memref.load %arg2[%c191] : memref<288xf32, #tpu.memory_space<smem>>
    %457 = vector.broadcast %456 : f32 to vector<32x32xf32>
    %458 = arith.mulf %457, %435 : vector<32x32xf32>
    %459 = arith.addf %425, %458 : vector<32x32xf32>
    %c227 = arith.constant 227 : index
    %460 = memref.load %arg2[%c227] : memref<288xf32, #tpu.memory_space<smem>>
    %461 = vector.broadcast %460 : f32 to vector<32x32xf32>
    %462 = arith.mulf %461, %435 : vector<32x32xf32>
    %463 = arith.addf %429, %462 : vector<32x32xf32>
    %c263 = arith.constant 263 : index
    %464 = memref.load %arg2[%c263] : memref<288xf32, #tpu.memory_space<smem>>
    %465 = vector.broadcast %464 : f32 to vector<32x32xf32>
    %466 = arith.mulf %465, %435 : vector<32x32xf32>
    %467 = arith.addf %433, %466 : vector<32x32xf32>
    %c1_84 = arith.constant 1 : index
    %c1_85 = arith.constant 1 : index
    %c0_86 = arith.constant 0 : index
    %468 = vector.load %arg6[%c1_84, %c1_85, %c0_86] : memref<4x34x34xf32, #tpu.memory_space<vmem>>, vector<1x32x32xf32>
    %469 = vector.shape_cast %468 : vector<1x32x32xf32> to vector<32x32xf32>
    %c12 = arith.constant 12 : index
    %470 = memref.load %arg2[%c12] : memref<288xf32, #tpu.memory_space<smem>>
    %471 = vector.broadcast %470 : f32 to vector<32x32xf32>
    %472 = arith.mulf %471, %469 : vector<32x32xf32>
    %473 = arith.addf %439, %472 : vector<32x32xf32>
    %c48 = arith.constant 48 : index
    %474 = memref.load %arg2[%c48] : memref<288xf32, #tpu.memory_space<smem>>
    %475 = vector.broadcast %474 : f32 to vector<32x32xf32>
    %476 = arith.mulf %475, %469 : vector<32x32xf32>
    %477 = arith.addf %443, %476 : vector<32x32xf32>
    %c84 = arith.constant 84 : index
    %478 = memref.load %arg2[%c84] : memref<288xf32, #tpu.memory_space<smem>>
    %479 = vector.broadcast %478 : f32 to vector<32x32xf32>
    %480 = arith.mulf %479, %469 : vector<32x32xf32>
    %481 = arith.addf %447, %480 : vector<32x32xf32>
    %c120 = arith.constant 120 : index
    %482 = memref.load %arg2[%c120] : memref<288xf32, #tpu.memory_space<smem>>
    %483 = vector.broadcast %482 : f32 to vector<32x32xf32>
    %484 = arith.mulf %483, %469 : vector<32x32xf32>
    %485 = arith.addf %451, %484 : vector<32x32xf32>
    %c156 = arith.constant 156 : index
    %486 = memref.load %arg2[%c156] : memref<288xf32, #tpu.memory_space<smem>>
    %487 = vector.broadcast %486 : f32 to vector<32x32xf32>
    %488 = arith.mulf %487, %469 : vector<32x32xf32>
    %489 = arith.addf %455, %488 : vector<32x32xf32>
    %c192 = arith.constant 192 : index
    %490 = memref.load %arg2[%c192] : memref<288xf32, #tpu.memory_space<smem>>
    %491 = vector.broadcast %490 : f32 to vector<32x32xf32>
    %492 = arith.mulf %491, %469 : vector<32x32xf32>
    %493 = arith.addf %459, %492 : vector<32x32xf32>
    %c228 = arith.constant 228 : index
    %494 = memref.load %arg2[%c228] : memref<288xf32, #tpu.memory_space<smem>>
    %495 = vector.broadcast %494 : f32 to vector<32x32xf32>
    %496 = arith.mulf %495, %469 : vector<32x32xf32>
    %497 = arith.addf %463, %496 : vector<32x32xf32>
    %c264 = arith.constant 264 : index
    %498 = memref.load %arg2[%c264] : memref<288xf32, #tpu.memory_space<smem>>
    %499 = vector.broadcast %498 : f32 to vector<32x32xf32>
    %500 = arith.mulf %499, %469 : vector<32x32xf32>
    %501 = arith.addf %467, %500 : vector<32x32xf32>
    %c1_87 = arith.constant 1 : index
    %c1_88 = arith.constant 1 : index
    %c1_89 = arith.constant 1 : index
    %502 = vector.load %arg6[%c1_87, %c1_88, %c1_89] : memref<4x34x34xf32, #tpu.memory_space<vmem>>, vector<1x32x32xf32>
    %503 = vector.shape_cast %502 : vector<1x32x32xf32> to vector<32x32xf32>
    %c13 = arith.constant 13 : index
    %504 = memref.load %arg2[%c13] : memref<288xf32, #tpu.memory_space<smem>>
    %505 = vector.broadcast %504 : f32 to vector<32x32xf32>
    %506 = arith.mulf %505, %503 : vector<32x32xf32>
    %507 = arith.addf %473, %506 : vector<32x32xf32>
    %c49 = arith.constant 49 : index
    %508 = memref.load %arg2[%c49] : memref<288xf32, #tpu.memory_space<smem>>
    %509 = vector.broadcast %508 : f32 to vector<32x32xf32>
    %510 = arith.mulf %509, %503 : vector<32x32xf32>
    %511 = arith.addf %477, %510 : vector<32x32xf32>
    %c85 = arith.constant 85 : index
    %512 = memref.load %arg2[%c85] : memref<288xf32, #tpu.memory_space<smem>>
    %513 = vector.broadcast %512 : f32 to vector<32x32xf32>
    %514 = arith.mulf %513, %503 : vector<32x32xf32>
    %515 = arith.addf %481, %514 : vector<32x32xf32>
    %c121 = arith.constant 121 : index
    %516 = memref.load %arg2[%c121] : memref<288xf32, #tpu.memory_space<smem>>
    %517 = vector.broadcast %516 : f32 to vector<32x32xf32>
    %518 = arith.mulf %517, %503 : vector<32x32xf32>
    %519 = arith.addf %485, %518 : vector<32x32xf32>
    %c157 = arith.constant 157 : index
    %520 = memref.load %arg2[%c157] : memref<288xf32, #tpu.memory_space<smem>>
    %521 = vector.broadcast %520 : f32 to vector<32x32xf32>
    %522 = arith.mulf %521, %503 : vector<32x32xf32>
    %523 = arith.addf %489, %522 : vector<32x32xf32>
    %c193 = arith.constant 193 : index
    %524 = memref.load %arg2[%c193] : memref<288xf32, #tpu.memory_space<smem>>
    %525 = vector.broadcast %524 : f32 to vector<32x32xf32>
    %526 = arith.mulf %525, %503 : vector<32x32xf32>
    %527 = arith.addf %493, %526 : vector<32x32xf32>
    %c229 = arith.constant 229 : index
    %528 = memref.load %arg2[%c229] : memref<288xf32, #tpu.memory_space<smem>>
    %529 = vector.broadcast %528 : f32 to vector<32x32xf32>
    %530 = arith.mulf %529, %503 : vector<32x32xf32>
    %531 = arith.addf %497, %530 : vector<32x32xf32>
    %c265 = arith.constant 265 : index
    %532 = memref.load %arg2[%c265] : memref<288xf32, #tpu.memory_space<smem>>
    %533 = vector.broadcast %532 : f32 to vector<32x32xf32>
    %534 = arith.mulf %533, %503 : vector<32x32xf32>
    %535 = arith.addf %501, %534 : vector<32x32xf32>
    %c1_90 = arith.constant 1 : index
    %c1_91 = arith.constant 1 : index
    %c2_92 = arith.constant 2 : index
    %536 = vector.load %arg6[%c1_90, %c1_91, %c2_92] : memref<4x34x34xf32, #tpu.memory_space<vmem>>, vector<1x32x32xf32>
    %537 = vector.shape_cast %536 : vector<1x32x32xf32> to vector<32x32xf32>
    %c14 = arith.constant 14 : index
    %538 = memref.load %arg2[%c14] : memref<288xf32, #tpu.memory_space<smem>>
    %539 = vector.broadcast %538 : f32 to vector<32x32xf32>
    %540 = arith.mulf %539, %537 : vector<32x32xf32>
    %541 = arith.addf %507, %540 : vector<32x32xf32>
    %c50 = arith.constant 50 : index
    %542 = memref.load %arg2[%c50] : memref<288xf32, #tpu.memory_space<smem>>
    %543 = vector.broadcast %542 : f32 to vector<32x32xf32>
    %544 = arith.mulf %543, %537 : vector<32x32xf32>
    %545 = arith.addf %511, %544 : vector<32x32xf32>
    %c86 = arith.constant 86 : index
    %546 = memref.load %arg2[%c86] : memref<288xf32, #tpu.memory_space<smem>>
    %547 = vector.broadcast %546 : f32 to vector<32x32xf32>
    %548 = arith.mulf %547, %537 : vector<32x32xf32>
    %549 = arith.addf %515, %548 : vector<32x32xf32>
    %c122 = arith.constant 122 : index
    %550 = memref.load %arg2[%c122] : memref<288xf32, #tpu.memory_space<smem>>
    %551 = vector.broadcast %550 : f32 to vector<32x32xf32>
    %552 = arith.mulf %551, %537 : vector<32x32xf32>
    %553 = arith.addf %519, %552 : vector<32x32xf32>
    %c158 = arith.constant 158 : index
    %554 = memref.load %arg2[%c158] : memref<288xf32, #tpu.memory_space<smem>>
    %555 = vector.broadcast %554 : f32 to vector<32x32xf32>
    %556 = arith.mulf %555, %537 : vector<32x32xf32>
    %557 = arith.addf %523, %556 : vector<32x32xf32>
    %c194 = arith.constant 194 : index
    %558 = memref.load %arg2[%c194] : memref<288xf32, #tpu.memory_space<smem>>
    %559 = vector.broadcast %558 : f32 to vector<32x32xf32>
    %560 = arith.mulf %559, %537 : vector<32x32xf32>
    %561 = arith.addf %527, %560 : vector<32x32xf32>
    %c230 = arith.constant 230 : index
    %562 = memref.load %arg2[%c230] : memref<288xf32, #tpu.memory_space<smem>>
    %563 = vector.broadcast %562 : f32 to vector<32x32xf32>
    %564 = arith.mulf %563, %537 : vector<32x32xf32>
    %565 = arith.addf %531, %564 : vector<32x32xf32>
    %c266 = arith.constant 266 : index
    %566 = memref.load %arg2[%c266] : memref<288xf32, #tpu.memory_space<smem>>
    %567 = vector.broadcast %566 : f32 to vector<32x32xf32>
    %568 = arith.mulf %567, %537 : vector<32x32xf32>
    %569 = arith.addf %535, %568 : vector<32x32xf32>
    %c1_93 = arith.constant 1 : index
    %c2_94 = arith.constant 2 : index
    %c0_95 = arith.constant 0 : index
    %570 = vector.load %arg6[%c1_93, %c2_94, %c0_95] : memref<4x34x34xf32, #tpu.memory_space<vmem>>, vector<1x32x32xf32>
    %571 = vector.shape_cast %570 : vector<1x32x32xf32> to vector<32x32xf32>
    %c15 = arith.constant 15 : index
    %572 = memref.load %arg2[%c15] : memref<288xf32, #tpu.memory_space<smem>>
    %573 = vector.broadcast %572 : f32 to vector<32x32xf32>
    %574 = arith.mulf %573, %571 : vector<32x32xf32>
    %575 = arith.addf %541, %574 : vector<32x32xf32>
    %c51 = arith.constant 51 : index
    %576 = memref.load %arg2[%c51] : memref<288xf32, #tpu.memory_space<smem>>
    %577 = vector.broadcast %576 : f32 to vector<32x32xf32>
    %578 = arith.mulf %577, %571 : vector<32x32xf32>
    %579 = arith.addf %545, %578 : vector<32x32xf32>
    %c87 = arith.constant 87 : index
    %580 = memref.load %arg2[%c87] : memref<288xf32, #tpu.memory_space<smem>>
    %581 = vector.broadcast %580 : f32 to vector<32x32xf32>
    %582 = arith.mulf %581, %571 : vector<32x32xf32>
    %583 = arith.addf %549, %582 : vector<32x32xf32>
    %c123 = arith.constant 123 : index
    %584 = memref.load %arg2[%c123] : memref<288xf32, #tpu.memory_space<smem>>
    %585 = vector.broadcast %584 : f32 to vector<32x32xf32>
    %586 = arith.mulf %585, %571 : vector<32x32xf32>
    %587 = arith.addf %553, %586 : vector<32x32xf32>
    %c159 = arith.constant 159 : index
    %588 = memref.load %arg2[%c159] : memref<288xf32, #tpu.memory_space<smem>>
    %589 = vector.broadcast %588 : f32 to vector<32x32xf32>
    %590 = arith.mulf %589, %571 : vector<32x32xf32>
    %591 = arith.addf %557, %590 : vector<32x32xf32>
    %c195 = arith.constant 195 : index
    %592 = memref.load %arg2[%c195] : memref<288xf32, #tpu.memory_space<smem>>
    %593 = vector.broadcast %592 : f32 to vector<32x32xf32>
    %594 = arith.mulf %593, %571 : vector<32x32xf32>
    %595 = arith.addf %561, %594 : vector<32x32xf32>
    %c231 = arith.constant 231 : index
    %596 = memref.load %arg2[%c231] : memref<288xf32, #tpu.memory_space<smem>>
    %597 = vector.broadcast %596 : f32 to vector<32x32xf32>
    %598 = arith.mulf %597, %571 : vector<32x32xf32>
    %599 = arith.addf %565, %598 : vector<32x32xf32>
    %c267 = arith.constant 267 : index
    %600 = memref.load %arg2[%c267] : memref<288xf32, #tpu.memory_space<smem>>
    %601 = vector.broadcast %600 : f32 to vector<32x32xf32>
    %602 = arith.mulf %601, %571 : vector<32x32xf32>
    %603 = arith.addf %569, %602 : vector<32x32xf32>
    %c1_96 = arith.constant 1 : index
    %c2_97 = arith.constant 2 : index
    %c1_98 = arith.constant 1 : index
    %604 = vector.load %arg6[%c1_96, %c2_97, %c1_98] : memref<4x34x34xf32, #tpu.memory_space<vmem>>, vector<1x32x32xf32>
    %605 = vector.shape_cast %604 : vector<1x32x32xf32> to vector<32x32xf32>
    %c16 = arith.constant 16 : index
    %606 = memref.load %arg2[%c16] : memref<288xf32, #tpu.memory_space<smem>>
    %607 = vector.broadcast %606 : f32 to vector<32x32xf32>
    %608 = arith.mulf %607, %605 : vector<32x32xf32>
    %609 = arith.addf %575, %608 : vector<32x32xf32>
    %c52 = arith.constant 52 : index
    %610 = memref.load %arg2[%c52] : memref<288xf32, #tpu.memory_space<smem>>
    %611 = vector.broadcast %610 : f32 to vector<32x32xf32>
    %612 = arith.mulf %611, %605 : vector<32x32xf32>
    %613 = arith.addf %579, %612 : vector<32x32xf32>
    %c88 = arith.constant 88 : index
    %614 = memref.load %arg2[%c88] : memref<288xf32, #tpu.memory_space<smem>>
    %615 = vector.broadcast %614 : f32 to vector<32x32xf32>
    %616 = arith.mulf %615, %605 : vector<32x32xf32>
    %617 = arith.addf %583, %616 : vector<32x32xf32>
    %c124 = arith.constant 124 : index
    %618 = memref.load %arg2[%c124] : memref<288xf32, #tpu.memory_space<smem>>
    %619 = vector.broadcast %618 : f32 to vector<32x32xf32>
    %620 = arith.mulf %619, %605 : vector<32x32xf32>
    %621 = arith.addf %587, %620 : vector<32x32xf32>
    %c160 = arith.constant 160 : index
    %622 = memref.load %arg2[%c160] : memref<288xf32, #tpu.memory_space<smem>>
    %623 = vector.broadcast %622 : f32 to vector<32x32xf32>
    %624 = arith.mulf %623, %605 : vector<32x32xf32>
    %625 = arith.addf %591, %624 : vector<32x32xf32>
    %c196 = arith.constant 196 : index
    %626 = memref.load %arg2[%c196] : memref<288xf32, #tpu.memory_space<smem>>
    %627 = vector.broadcast %626 : f32 to vector<32x32xf32>
    %628 = arith.mulf %627, %605 : vector<32x32xf32>
    %629 = arith.addf %595, %628 : vector<32x32xf32>
    %c232 = arith.constant 232 : index
    %630 = memref.load %arg2[%c232] : memref<288xf32, #tpu.memory_space<smem>>
    %631 = vector.broadcast %630 : f32 to vector<32x32xf32>
    %632 = arith.mulf %631, %605 : vector<32x32xf32>
    %633 = arith.addf %599, %632 : vector<32x32xf32>
    %c268 = arith.constant 268 : index
    %634 = memref.load %arg2[%c268] : memref<288xf32, #tpu.memory_space<smem>>
    %635 = vector.broadcast %634 : f32 to vector<32x32xf32>
    %636 = arith.mulf %635, %605 : vector<32x32xf32>
    %637 = arith.addf %603, %636 : vector<32x32xf32>
    %c1_99 = arith.constant 1 : index
    %c2_100 = arith.constant 2 : index
    %c2_101 = arith.constant 2 : index
    %638 = vector.load %arg6[%c1_99, %c2_100, %c2_101] : memref<4x34x34xf32, #tpu.memory_space<vmem>>, vector<1x32x32xf32>
    %639 = vector.shape_cast %638 : vector<1x32x32xf32> to vector<32x32xf32>
    %c17 = arith.constant 17 : index
    %640 = memref.load %arg2[%c17] : memref<288xf32, #tpu.memory_space<smem>>
    %641 = vector.broadcast %640 : f32 to vector<32x32xf32>
    %642 = arith.mulf %641, %639 : vector<32x32xf32>
    %643 = arith.addf %609, %642 : vector<32x32xf32>
    %c53 = arith.constant 53 : index
    %644 = memref.load %arg2[%c53] : memref<288xf32, #tpu.memory_space<smem>>
    %645 = vector.broadcast %644 : f32 to vector<32x32xf32>
    %646 = arith.mulf %645, %639 : vector<32x32xf32>
    %647 = arith.addf %613, %646 : vector<32x32xf32>
    %c89 = arith.constant 89 : index
    %648 = memref.load %arg2[%c89] : memref<288xf32, #tpu.memory_space<smem>>
    %649 = vector.broadcast %648 : f32 to vector<32x32xf32>
    %650 = arith.mulf %649, %639 : vector<32x32xf32>
    %651 = arith.addf %617, %650 : vector<32x32xf32>
    %c125 = arith.constant 125 : index
    %652 = memref.load %arg2[%c125] : memref<288xf32, #tpu.memory_space<smem>>
    %653 = vector.broadcast %652 : f32 to vector<32x32xf32>
    %654 = arith.mulf %653, %639 : vector<32x32xf32>
    %655 = arith.addf %621, %654 : vector<32x32xf32>
    %c161 = arith.constant 161 : index
    %656 = memref.load %arg2[%c161] : memref<288xf32, #tpu.memory_space<smem>>
    %657 = vector.broadcast %656 : f32 to vector<32x32xf32>
    %658 = arith.mulf %657, %639 : vector<32x32xf32>
    %659 = arith.addf %625, %658 : vector<32x32xf32>
    %c197 = arith.constant 197 : index
    %660 = memref.load %arg2[%c197] : memref<288xf32, #tpu.memory_space<smem>>
    %661 = vector.broadcast %660 : f32 to vector<32x32xf32>
    %662 = arith.mulf %661, %639 : vector<32x32xf32>
    %663 = arith.addf %629, %662 : vector<32x32xf32>
    %c233 = arith.constant 233 : index
    %664 = memref.load %arg2[%c233] : memref<288xf32, #tpu.memory_space<smem>>
    %665 = vector.broadcast %664 : f32 to vector<32x32xf32>
    %666 = arith.mulf %665, %639 : vector<32x32xf32>
    %667 = arith.addf %633, %666 : vector<32x32xf32>
    %c269 = arith.constant 269 : index
    %668 = memref.load %arg2[%c269] : memref<288xf32, #tpu.memory_space<smem>>
    %669 = vector.broadcast %668 : f32 to vector<32x32xf32>
    %670 = arith.mulf %669, %639 : vector<32x32xf32>
    %671 = arith.addf %637, %670 : vector<32x32xf32>
    %c2_102 = arith.constant 2 : index
    %c0_103 = arith.constant 0 : index
    %c0_104 = arith.constant 0 : index
    %672 = vector.load %arg6[%c2_102, %c0_103, %c0_104] : memref<4x34x34xf32, #tpu.memory_space<vmem>>, vector<1x32x32xf32>
    %673 = vector.shape_cast %672 : vector<1x32x32xf32> to vector<32x32xf32>
    %c18 = arith.constant 18 : index
    %674 = memref.load %arg2[%c18] : memref<288xf32, #tpu.memory_space<smem>>
    %675 = vector.broadcast %674 : f32 to vector<32x32xf32>
    %676 = arith.mulf %675, %673 : vector<32x32xf32>
    %677 = arith.addf %643, %676 : vector<32x32xf32>
    %c54 = arith.constant 54 : index
    %678 = memref.load %arg2[%c54] : memref<288xf32, #tpu.memory_space<smem>>
    %679 = vector.broadcast %678 : f32 to vector<32x32xf32>
    %680 = arith.mulf %679, %673 : vector<32x32xf32>
    %681 = arith.addf %647, %680 : vector<32x32xf32>
    %c90 = arith.constant 90 : index
    %682 = memref.load %arg2[%c90] : memref<288xf32, #tpu.memory_space<smem>>
    %683 = vector.broadcast %682 : f32 to vector<32x32xf32>
    %684 = arith.mulf %683, %673 : vector<32x32xf32>
    %685 = arith.addf %651, %684 : vector<32x32xf32>
    %c126 = arith.constant 126 : index
    %686 = memref.load %arg2[%c126] : memref<288xf32, #tpu.memory_space<smem>>
    %687 = vector.broadcast %686 : f32 to vector<32x32xf32>
    %688 = arith.mulf %687, %673 : vector<32x32xf32>
    %689 = arith.addf %655, %688 : vector<32x32xf32>
    %c162 = arith.constant 162 : index
    %690 = memref.load %arg2[%c162] : memref<288xf32, #tpu.memory_space<smem>>
    %691 = vector.broadcast %690 : f32 to vector<32x32xf32>
    %692 = arith.mulf %691, %673 : vector<32x32xf32>
    %693 = arith.addf %659, %692 : vector<32x32xf32>
    %c198 = arith.constant 198 : index
    %694 = memref.load %arg2[%c198] : memref<288xf32, #tpu.memory_space<smem>>
    %695 = vector.broadcast %694 : f32 to vector<32x32xf32>
    %696 = arith.mulf %695, %673 : vector<32x32xf32>
    %697 = arith.addf %663, %696 : vector<32x32xf32>
    %c234 = arith.constant 234 : index
    %698 = memref.load %arg2[%c234] : memref<288xf32, #tpu.memory_space<smem>>
    %699 = vector.broadcast %698 : f32 to vector<32x32xf32>
    %700 = arith.mulf %699, %673 : vector<32x32xf32>
    %701 = arith.addf %667, %700 : vector<32x32xf32>
    %c270 = arith.constant 270 : index
    %702 = memref.load %arg2[%c270] : memref<288xf32, #tpu.memory_space<smem>>
    %703 = vector.broadcast %702 : f32 to vector<32x32xf32>
    %704 = arith.mulf %703, %673 : vector<32x32xf32>
    %705 = arith.addf %671, %704 : vector<32x32xf32>
    %c2_105 = arith.constant 2 : index
    %c0_106 = arith.constant 0 : index
    %c1_107 = arith.constant 1 : index
    %706 = vector.load %arg6[%c2_105, %c0_106, %c1_107] : memref<4x34x34xf32, #tpu.memory_space<vmem>>, vector<1x32x32xf32>
    %707 = vector.shape_cast %706 : vector<1x32x32xf32> to vector<32x32xf32>
    %c19 = arith.constant 19 : index
    %708 = memref.load %arg2[%c19] : memref<288xf32, #tpu.memory_space<smem>>
    %709 = vector.broadcast %708 : f32 to vector<32x32xf32>
    %710 = arith.mulf %709, %707 : vector<32x32xf32>
    %711 = arith.addf %677, %710 : vector<32x32xf32>
    %c55 = arith.constant 55 : index
    %712 = memref.load %arg2[%c55] : memref<288xf32, #tpu.memory_space<smem>>
    %713 = vector.broadcast %712 : f32 to vector<32x32xf32>
    %714 = arith.mulf %713, %707 : vector<32x32xf32>
    %715 = arith.addf %681, %714 : vector<32x32xf32>
    %c91 = arith.constant 91 : index
    %716 = memref.load %arg2[%c91] : memref<288xf32, #tpu.memory_space<smem>>
    %717 = vector.broadcast %716 : f32 to vector<32x32xf32>
    %718 = arith.mulf %717, %707 : vector<32x32xf32>
    %719 = arith.addf %685, %718 : vector<32x32xf32>
    %c127 = arith.constant 127 : index
    %720 = memref.load %arg2[%c127] : memref<288xf32, #tpu.memory_space<smem>>
    %721 = vector.broadcast %720 : f32 to vector<32x32xf32>
    %722 = arith.mulf %721, %707 : vector<32x32xf32>
    %723 = arith.addf %689, %722 : vector<32x32xf32>
    %c163 = arith.constant 163 : index
    %724 = memref.load %arg2[%c163] : memref<288xf32, #tpu.memory_space<smem>>
    %725 = vector.broadcast %724 : f32 to vector<32x32xf32>
    %726 = arith.mulf %725, %707 : vector<32x32xf32>
    %727 = arith.addf %693, %726 : vector<32x32xf32>
    %c199 = arith.constant 199 : index
    %728 = memref.load %arg2[%c199] : memref<288xf32, #tpu.memory_space<smem>>
    %729 = vector.broadcast %728 : f32 to vector<32x32xf32>
    %730 = arith.mulf %729, %707 : vector<32x32xf32>
    %731 = arith.addf %697, %730 : vector<32x32xf32>
    %c235 = arith.constant 235 : index
    %732 = memref.load %arg2[%c235] : memref<288xf32, #tpu.memory_space<smem>>
    %733 = vector.broadcast %732 : f32 to vector<32x32xf32>
    %734 = arith.mulf %733, %707 : vector<32x32xf32>
    %735 = arith.addf %701, %734 : vector<32x32xf32>
    %c271 = arith.constant 271 : index
    %736 = memref.load %arg2[%c271] : memref<288xf32, #tpu.memory_space<smem>>
    %737 = vector.broadcast %736 : f32 to vector<32x32xf32>
    %738 = arith.mulf %737, %707 : vector<32x32xf32>
    %739 = arith.addf %705, %738 : vector<32x32xf32>
    %c2_108 = arith.constant 2 : index
    %c0_109 = arith.constant 0 : index
    %c2_110 = arith.constant 2 : index
    %740 = vector.load %arg6[%c2_108, %c0_109, %c2_110] : memref<4x34x34xf32, #tpu.memory_space<vmem>>, vector<1x32x32xf32>
    %741 = vector.shape_cast %740 : vector<1x32x32xf32> to vector<32x32xf32>
    %c20 = arith.constant 20 : index
    %742 = memref.load %arg2[%c20] : memref<288xf32, #tpu.memory_space<smem>>
    %743 = vector.broadcast %742 : f32 to vector<32x32xf32>
    %744 = arith.mulf %743, %741 : vector<32x32xf32>
    %745 = arith.addf %711, %744 : vector<32x32xf32>
    %c56 = arith.constant 56 : index
    %746 = memref.load %arg2[%c56] : memref<288xf32, #tpu.memory_space<smem>>
    %747 = vector.broadcast %746 : f32 to vector<32x32xf32>
    %748 = arith.mulf %747, %741 : vector<32x32xf32>
    %749 = arith.addf %715, %748 : vector<32x32xf32>
    %c92 = arith.constant 92 : index
    %750 = memref.load %arg2[%c92] : memref<288xf32, #tpu.memory_space<smem>>
    %751 = vector.broadcast %750 : f32 to vector<32x32xf32>
    %752 = arith.mulf %751, %741 : vector<32x32xf32>
    %753 = arith.addf %719, %752 : vector<32x32xf32>
    %c128 = arith.constant 128 : index
    %754 = memref.load %arg2[%c128] : memref<288xf32, #tpu.memory_space<smem>>
    %755 = vector.broadcast %754 : f32 to vector<32x32xf32>
    %756 = arith.mulf %755, %741 : vector<32x32xf32>
    %757 = arith.addf %723, %756 : vector<32x32xf32>
    %c164 = arith.constant 164 : index
    %758 = memref.load %arg2[%c164] : memref<288xf32, #tpu.memory_space<smem>>
    %759 = vector.broadcast %758 : f32 to vector<32x32xf32>
    %760 = arith.mulf %759, %741 : vector<32x32xf32>
    %761 = arith.addf %727, %760 : vector<32x32xf32>
    %c200 = arith.constant 200 : index
    %762 = memref.load %arg2[%c200] : memref<288xf32, #tpu.memory_space<smem>>
    %763 = vector.broadcast %762 : f32 to vector<32x32xf32>
    %764 = arith.mulf %763, %741 : vector<32x32xf32>
    %765 = arith.addf %731, %764 : vector<32x32xf32>
    %c236 = arith.constant 236 : index
    %766 = memref.load %arg2[%c236] : memref<288xf32, #tpu.memory_space<smem>>
    %767 = vector.broadcast %766 : f32 to vector<32x32xf32>
    %768 = arith.mulf %767, %741 : vector<32x32xf32>
    %769 = arith.addf %735, %768 : vector<32x32xf32>
    %c272 = arith.constant 272 : index
    %770 = memref.load %arg2[%c272] : memref<288xf32, #tpu.memory_space<smem>>
    %771 = vector.broadcast %770 : f32 to vector<32x32xf32>
    %772 = arith.mulf %771, %741 : vector<32x32xf32>
    %773 = arith.addf %739, %772 : vector<32x32xf32>
    %c2_111 = arith.constant 2 : index
    %c1_112 = arith.constant 1 : index
    %c0_113 = arith.constant 0 : index
    %774 = vector.load %arg6[%c2_111, %c1_112, %c0_113] : memref<4x34x34xf32, #tpu.memory_space<vmem>>, vector<1x32x32xf32>
    %775 = vector.shape_cast %774 : vector<1x32x32xf32> to vector<32x32xf32>
    %c21 = arith.constant 21 : index
    %776 = memref.load %arg2[%c21] : memref<288xf32, #tpu.memory_space<smem>>
    %777 = vector.broadcast %776 : f32 to vector<32x32xf32>
    %778 = arith.mulf %777, %775 : vector<32x32xf32>
    %779 = arith.addf %745, %778 : vector<32x32xf32>
    %c57 = arith.constant 57 : index
    %780 = memref.load %arg2[%c57] : memref<288xf32, #tpu.memory_space<smem>>
    %781 = vector.broadcast %780 : f32 to vector<32x32xf32>
    %782 = arith.mulf %781, %775 : vector<32x32xf32>
    %783 = arith.addf %749, %782 : vector<32x32xf32>
    %c93 = arith.constant 93 : index
    %784 = memref.load %arg2[%c93] : memref<288xf32, #tpu.memory_space<smem>>
    %785 = vector.broadcast %784 : f32 to vector<32x32xf32>
    %786 = arith.mulf %785, %775 : vector<32x32xf32>
    %787 = arith.addf %753, %786 : vector<32x32xf32>
    %c129 = arith.constant 129 : index
    %788 = memref.load %arg2[%c129] : memref<288xf32, #tpu.memory_space<smem>>
    %789 = vector.broadcast %788 : f32 to vector<32x32xf32>
    %790 = arith.mulf %789, %775 : vector<32x32xf32>
    %791 = arith.addf %757, %790 : vector<32x32xf32>
    %c165 = arith.constant 165 : index
    %792 = memref.load %arg2[%c165] : memref<288xf32, #tpu.memory_space<smem>>
    %793 = vector.broadcast %792 : f32 to vector<32x32xf32>
    %794 = arith.mulf %793, %775 : vector<32x32xf32>
    %795 = arith.addf %761, %794 : vector<32x32xf32>
    %c201 = arith.constant 201 : index
    %796 = memref.load %arg2[%c201] : memref<288xf32, #tpu.memory_space<smem>>
    %797 = vector.broadcast %796 : f32 to vector<32x32xf32>
    %798 = arith.mulf %797, %775 : vector<32x32xf32>
    %799 = arith.addf %765, %798 : vector<32x32xf32>
    %c237 = arith.constant 237 : index
    %800 = memref.load %arg2[%c237] : memref<288xf32, #tpu.memory_space<smem>>
    %801 = vector.broadcast %800 : f32 to vector<32x32xf32>
    %802 = arith.mulf %801, %775 : vector<32x32xf32>
    %803 = arith.addf %769, %802 : vector<32x32xf32>
    %c273 = arith.constant 273 : index
    %804 = memref.load %arg2[%c273] : memref<288xf32, #tpu.memory_space<smem>>
    %805 = vector.broadcast %804 : f32 to vector<32x32xf32>
    %806 = arith.mulf %805, %775 : vector<32x32xf32>
    %807 = arith.addf %773, %806 : vector<32x32xf32>
    %c2_114 = arith.constant 2 : index
    %c1_115 = arith.constant 1 : index
    %c1_116 = arith.constant 1 : index
    %808 = vector.load %arg6[%c2_114, %c1_115, %c1_116] : memref<4x34x34xf32, #tpu.memory_space<vmem>>, vector<1x32x32xf32>
    %809 = vector.shape_cast %808 : vector<1x32x32xf32> to vector<32x32xf32>
    %c22 = arith.constant 22 : index
    %810 = memref.load %arg2[%c22] : memref<288xf32, #tpu.memory_space<smem>>
    %811 = vector.broadcast %810 : f32 to vector<32x32xf32>
    %812 = arith.mulf %811, %809 : vector<32x32xf32>
    %813 = arith.addf %779, %812 : vector<32x32xf32>
    %c58 = arith.constant 58 : index
    %814 = memref.load %arg2[%c58] : memref<288xf32, #tpu.memory_space<smem>>
    %815 = vector.broadcast %814 : f32 to vector<32x32xf32>
    %816 = arith.mulf %815, %809 : vector<32x32xf32>
    %817 = arith.addf %783, %816 : vector<32x32xf32>
    %c94 = arith.constant 94 : index
    %818 = memref.load %arg2[%c94] : memref<288xf32, #tpu.memory_space<smem>>
    %819 = vector.broadcast %818 : f32 to vector<32x32xf32>
    %820 = arith.mulf %819, %809 : vector<32x32xf32>
    %821 = arith.addf %787, %820 : vector<32x32xf32>
    %c130 = arith.constant 130 : index
    %822 = memref.load %arg2[%c130] : memref<288xf32, #tpu.memory_space<smem>>
    %823 = vector.broadcast %822 : f32 to vector<32x32xf32>
    %824 = arith.mulf %823, %809 : vector<32x32xf32>
    %825 = arith.addf %791, %824 : vector<32x32xf32>
    %c166 = arith.constant 166 : index
    %826 = memref.load %arg2[%c166] : memref<288xf32, #tpu.memory_space<smem>>
    %827 = vector.broadcast %826 : f32 to vector<32x32xf32>
    %828 = arith.mulf %827, %809 : vector<32x32xf32>
    %829 = arith.addf %795, %828 : vector<32x32xf32>
    %c202 = arith.constant 202 : index
    %830 = memref.load %arg2[%c202] : memref<288xf32, #tpu.memory_space<smem>>
    %831 = vector.broadcast %830 : f32 to vector<32x32xf32>
    %832 = arith.mulf %831, %809 : vector<32x32xf32>
    %833 = arith.addf %799, %832 : vector<32x32xf32>
    %c238 = arith.constant 238 : index
    %834 = memref.load %arg2[%c238] : memref<288xf32, #tpu.memory_space<smem>>
    %835 = vector.broadcast %834 : f32 to vector<32x32xf32>
    %836 = arith.mulf %835, %809 : vector<32x32xf32>
    %837 = arith.addf %803, %836 : vector<32x32xf32>
    %c274 = arith.constant 274 : index
    %838 = memref.load %arg2[%c274] : memref<288xf32, #tpu.memory_space<smem>>
    %839 = vector.broadcast %838 : f32 to vector<32x32xf32>
    %840 = arith.mulf %839, %809 : vector<32x32xf32>
    %841 = arith.addf %807, %840 : vector<32x32xf32>
    %c2_117 = arith.constant 2 : index
    %c1_118 = arith.constant 1 : index
    %c2_119 = arith.constant 2 : index
    %842 = vector.load %arg6[%c2_117, %c1_118, %c2_119] : memref<4x34x34xf32, #tpu.memory_space<vmem>>, vector<1x32x32xf32>
    %843 = vector.shape_cast %842 : vector<1x32x32xf32> to vector<32x32xf32>
    %c23 = arith.constant 23 : index
    %844 = memref.load %arg2[%c23] : memref<288xf32, #tpu.memory_space<smem>>
    %845 = vector.broadcast %844 : f32 to vector<32x32xf32>
    %846 = arith.mulf %845, %843 : vector<32x32xf32>
    %847 = arith.addf %813, %846 : vector<32x32xf32>
    %c59 = arith.constant 59 : index
    %848 = memref.load %arg2[%c59] : memref<288xf32, #tpu.memory_space<smem>>
    %849 = vector.broadcast %848 : f32 to vector<32x32xf32>
    %850 = arith.mulf %849, %843 : vector<32x32xf32>
    %851 = arith.addf %817, %850 : vector<32x32xf32>
    %c95 = arith.constant 95 : index
    %852 = memref.load %arg2[%c95] : memref<288xf32, #tpu.memory_space<smem>>
    %853 = vector.broadcast %852 : f32 to vector<32x32xf32>
    %854 = arith.mulf %853, %843 : vector<32x32xf32>
    %855 = arith.addf %821, %854 : vector<32x32xf32>
    %c131 = arith.constant 131 : index
    %856 = memref.load %arg2[%c131] : memref<288xf32, #tpu.memory_space<smem>>
    %857 = vector.broadcast %856 : f32 to vector<32x32xf32>
    %858 = arith.mulf %857, %843 : vector<32x32xf32>
    %859 = arith.addf %825, %858 : vector<32x32xf32>
    %c167 = arith.constant 167 : index
    %860 = memref.load %arg2[%c167] : memref<288xf32, #tpu.memory_space<smem>>
    %861 = vector.broadcast %860 : f32 to vector<32x32xf32>
    %862 = arith.mulf %861, %843 : vector<32x32xf32>
    %863 = arith.addf %829, %862 : vector<32x32xf32>
    %c203 = arith.constant 203 : index
    %864 = memref.load %arg2[%c203] : memref<288xf32, #tpu.memory_space<smem>>
    %865 = vector.broadcast %864 : f32 to vector<32x32xf32>
    %866 = arith.mulf %865, %843 : vector<32x32xf32>
    %867 = arith.addf %833, %866 : vector<32x32xf32>
    %c239 = arith.constant 239 : index
    %868 = memref.load %arg2[%c239] : memref<288xf32, #tpu.memory_space<smem>>
    %869 = vector.broadcast %868 : f32 to vector<32x32xf32>
    %870 = arith.mulf %869, %843 : vector<32x32xf32>
    %871 = arith.addf %837, %870 : vector<32x32xf32>
    %c275 = arith.constant 275 : index
    %872 = memref.load %arg2[%c275] : memref<288xf32, #tpu.memory_space<smem>>
    %873 = vector.broadcast %872 : f32 to vector<32x32xf32>
    %874 = arith.mulf %873, %843 : vector<32x32xf32>
    %875 = arith.addf %841, %874 : vector<32x32xf32>
    %c2_120 = arith.constant 2 : index
    %c2_121 = arith.constant 2 : index
    %c0_122 = arith.constant 0 : index
    %876 = vector.load %arg6[%c2_120, %c2_121, %c0_122] : memref<4x34x34xf32, #tpu.memory_space<vmem>>, vector<1x32x32xf32>
    %877 = vector.shape_cast %876 : vector<1x32x32xf32> to vector<32x32xf32>
    %c24 = arith.constant 24 : index
    %878 = memref.load %arg2[%c24] : memref<288xf32, #tpu.memory_space<smem>>
    %879 = vector.broadcast %878 : f32 to vector<32x32xf32>
    %880 = arith.mulf %879, %877 : vector<32x32xf32>
    %881 = arith.addf %847, %880 : vector<32x32xf32>
    %c60 = arith.constant 60 : index
    %882 = memref.load %arg2[%c60] : memref<288xf32, #tpu.memory_space<smem>>
    %883 = vector.broadcast %882 : f32 to vector<32x32xf32>
    %884 = arith.mulf %883, %877 : vector<32x32xf32>
    %885 = arith.addf %851, %884 : vector<32x32xf32>
    %c96 = arith.constant 96 : index
    %886 = memref.load %arg2[%c96] : memref<288xf32, #tpu.memory_space<smem>>
    %887 = vector.broadcast %886 : f32 to vector<32x32xf32>
    %888 = arith.mulf %887, %877 : vector<32x32xf32>
    %889 = arith.addf %855, %888 : vector<32x32xf32>
    %c132 = arith.constant 132 : index
    %890 = memref.load %arg2[%c132] : memref<288xf32, #tpu.memory_space<smem>>
    %891 = vector.broadcast %890 : f32 to vector<32x32xf32>
    %892 = arith.mulf %891, %877 : vector<32x32xf32>
    %893 = arith.addf %859, %892 : vector<32x32xf32>
    %c168 = arith.constant 168 : index
    %894 = memref.load %arg2[%c168] : memref<288xf32, #tpu.memory_space<smem>>
    %895 = vector.broadcast %894 : f32 to vector<32x32xf32>
    %896 = arith.mulf %895, %877 : vector<32x32xf32>
    %897 = arith.addf %863, %896 : vector<32x32xf32>
    %c204 = arith.constant 204 : index
    %898 = memref.load %arg2[%c204] : memref<288xf32, #tpu.memory_space<smem>>
    %899 = vector.broadcast %898 : f32 to vector<32x32xf32>
    %900 = arith.mulf %899, %877 : vector<32x32xf32>
    %901 = arith.addf %867, %900 : vector<32x32xf32>
    %c240 = arith.constant 240 : index
    %902 = memref.load %arg2[%c240] : memref<288xf32, #tpu.memory_space<smem>>
    %903 = vector.broadcast %902 : f32 to vector<32x32xf32>
    %904 = arith.mulf %903, %877 : vector<32x32xf32>
    %905 = arith.addf %871, %904 : vector<32x32xf32>
    %c276 = arith.constant 276 : index
    %906 = memref.load %arg2[%c276] : memref<288xf32, #tpu.memory_space<smem>>
    %907 = vector.broadcast %906 : f32 to vector<32x32xf32>
    %908 = arith.mulf %907, %877 : vector<32x32xf32>
    %909 = arith.addf %875, %908 : vector<32x32xf32>
    %c2_123 = arith.constant 2 : index
    %c2_124 = arith.constant 2 : index
    %c1_125 = arith.constant 1 : index
    %910 = vector.load %arg6[%c2_123, %c2_124, %c1_125] : memref<4x34x34xf32, #tpu.memory_space<vmem>>, vector<1x32x32xf32>
    %911 = vector.shape_cast %910 : vector<1x32x32xf32> to vector<32x32xf32>
    %c25 = arith.constant 25 : index
    %912 = memref.load %arg2[%c25] : memref<288xf32, #tpu.memory_space<smem>>
    %913 = vector.broadcast %912 : f32 to vector<32x32xf32>
    %914 = arith.mulf %913, %911 : vector<32x32xf32>
    %915 = arith.addf %881, %914 : vector<32x32xf32>
    %c61 = arith.constant 61 : index
    %916 = memref.load %arg2[%c61] : memref<288xf32, #tpu.memory_space<smem>>
    %917 = vector.broadcast %916 : f32 to vector<32x32xf32>
    %918 = arith.mulf %917, %911 : vector<32x32xf32>
    %919 = arith.addf %885, %918 : vector<32x32xf32>
    %c97 = arith.constant 97 : index
    %920 = memref.load %arg2[%c97] : memref<288xf32, #tpu.memory_space<smem>>
    %921 = vector.broadcast %920 : f32 to vector<32x32xf32>
    %922 = arith.mulf %921, %911 : vector<32x32xf32>
    %923 = arith.addf %889, %922 : vector<32x32xf32>
    %c133 = arith.constant 133 : index
    %924 = memref.load %arg2[%c133] : memref<288xf32, #tpu.memory_space<smem>>
    %925 = vector.broadcast %924 : f32 to vector<32x32xf32>
    %926 = arith.mulf %925, %911 : vector<32x32xf32>
    %927 = arith.addf %893, %926 : vector<32x32xf32>
    %c169 = arith.constant 169 : index
    %928 = memref.load %arg2[%c169] : memref<288xf32, #tpu.memory_space<smem>>
    %929 = vector.broadcast %928 : f32 to vector<32x32xf32>
    %930 = arith.mulf %929, %911 : vector<32x32xf32>
    %931 = arith.addf %897, %930 : vector<32x32xf32>
    %c205 = arith.constant 205 : index
    %932 = memref.load %arg2[%c205] : memref<288xf32, #tpu.memory_space<smem>>
    %933 = vector.broadcast %932 : f32 to vector<32x32xf32>
    %934 = arith.mulf %933, %911 : vector<32x32xf32>
    %935 = arith.addf %901, %934 : vector<32x32xf32>
    %c241 = arith.constant 241 : index
    %936 = memref.load %arg2[%c241] : memref<288xf32, #tpu.memory_space<smem>>
    %937 = vector.broadcast %936 : f32 to vector<32x32xf32>
    %938 = arith.mulf %937, %911 : vector<32x32xf32>
    %939 = arith.addf %905, %938 : vector<32x32xf32>
    %c277 = arith.constant 277 : index
    %940 = memref.load %arg2[%c277] : memref<288xf32, #tpu.memory_space<smem>>
    %941 = vector.broadcast %940 : f32 to vector<32x32xf32>
    %942 = arith.mulf %941, %911 : vector<32x32xf32>
    %943 = arith.addf %909, %942 : vector<32x32xf32>
    %c2_126 = arith.constant 2 : index
    %c2_127 = arith.constant 2 : index
    %c2_128 = arith.constant 2 : index
    %944 = vector.load %arg6[%c2_126, %c2_127, %c2_128] : memref<4x34x34xf32, #tpu.memory_space<vmem>>, vector<1x32x32xf32>
    %945 = vector.shape_cast %944 : vector<1x32x32xf32> to vector<32x32xf32>
    %c26 = arith.constant 26 : index
    %946 = memref.load %arg2[%c26] : memref<288xf32, #tpu.memory_space<smem>>
    %947 = vector.broadcast %946 : f32 to vector<32x32xf32>
    %948 = arith.mulf %947, %945 : vector<32x32xf32>
    %949 = arith.addf %915, %948 : vector<32x32xf32>
    %c62 = arith.constant 62 : index
    %950 = memref.load %arg2[%c62] : memref<288xf32, #tpu.memory_space<smem>>
    %951 = vector.broadcast %950 : f32 to vector<32x32xf32>
    %952 = arith.mulf %951, %945 : vector<32x32xf32>
    %953 = arith.addf %919, %952 : vector<32x32xf32>
    %c98 = arith.constant 98 : index
    %954 = memref.load %arg2[%c98] : memref<288xf32, #tpu.memory_space<smem>>
    %955 = vector.broadcast %954 : f32 to vector<32x32xf32>
    %956 = arith.mulf %955, %945 : vector<32x32xf32>
    %957 = arith.addf %923, %956 : vector<32x32xf32>
    %c134 = arith.constant 134 : index
    %958 = memref.load %arg2[%c134] : memref<288xf32, #tpu.memory_space<smem>>
    %959 = vector.broadcast %958 : f32 to vector<32x32xf32>
    %960 = arith.mulf %959, %945 : vector<32x32xf32>
    %961 = arith.addf %927, %960 : vector<32x32xf32>
    %c170 = arith.constant 170 : index
    %962 = memref.load %arg2[%c170] : memref<288xf32, #tpu.memory_space<smem>>
    %963 = vector.broadcast %962 : f32 to vector<32x32xf32>
    %964 = arith.mulf %963, %945 : vector<32x32xf32>
    %965 = arith.addf %931, %964 : vector<32x32xf32>
    %c206 = arith.constant 206 : index
    %966 = memref.load %arg2[%c206] : memref<288xf32, #tpu.memory_space<smem>>
    %967 = vector.broadcast %966 : f32 to vector<32x32xf32>
    %968 = arith.mulf %967, %945 : vector<32x32xf32>
    %969 = arith.addf %935, %968 : vector<32x32xf32>
    %c242 = arith.constant 242 : index
    %970 = memref.load %arg2[%c242] : memref<288xf32, #tpu.memory_space<smem>>
    %971 = vector.broadcast %970 : f32 to vector<32x32xf32>
    %972 = arith.mulf %971, %945 : vector<32x32xf32>
    %973 = arith.addf %939, %972 : vector<32x32xf32>
    %c278 = arith.constant 278 : index
    %974 = memref.load %arg2[%c278] : memref<288xf32, #tpu.memory_space<smem>>
    %975 = vector.broadcast %974 : f32 to vector<32x32xf32>
    %976 = arith.mulf %975, %945 : vector<32x32xf32>
    %977 = arith.addf %943, %976 : vector<32x32xf32>
    %c3_129 = arith.constant 3 : index
    %c0_130 = arith.constant 0 : index
    %c0_131 = arith.constant 0 : index
    %978 = vector.load %arg6[%c3_129, %c0_130, %c0_131] : memref<4x34x34xf32, #tpu.memory_space<vmem>>, vector<1x32x32xf32>
    %979 = vector.shape_cast %978 : vector<1x32x32xf32> to vector<32x32xf32>
    %c27 = arith.constant 27 : index
    %980 = memref.load %arg2[%c27] : memref<288xf32, #tpu.memory_space<smem>>
    %981 = vector.broadcast %980 : f32 to vector<32x32xf32>
    %982 = arith.mulf %981, %979 : vector<32x32xf32>
    %983 = arith.addf %949, %982 : vector<32x32xf32>
    %c63 = arith.constant 63 : index
    %984 = memref.load %arg2[%c63] : memref<288xf32, #tpu.memory_space<smem>>
    %985 = vector.broadcast %984 : f32 to vector<32x32xf32>
    %986 = arith.mulf %985, %979 : vector<32x32xf32>
    %987 = arith.addf %953, %986 : vector<32x32xf32>
    %c99 = arith.constant 99 : index
    %988 = memref.load %arg2[%c99] : memref<288xf32, #tpu.memory_space<smem>>
    %989 = vector.broadcast %988 : f32 to vector<32x32xf32>
    %990 = arith.mulf %989, %979 : vector<32x32xf32>
    %991 = arith.addf %957, %990 : vector<32x32xf32>
    %c135 = arith.constant 135 : index
    %992 = memref.load %arg2[%c135] : memref<288xf32, #tpu.memory_space<smem>>
    %993 = vector.broadcast %992 : f32 to vector<32x32xf32>
    %994 = arith.mulf %993, %979 : vector<32x32xf32>
    %995 = arith.addf %961, %994 : vector<32x32xf32>
    %c171 = arith.constant 171 : index
    %996 = memref.load %arg2[%c171] : memref<288xf32, #tpu.memory_space<smem>>
    %997 = vector.broadcast %996 : f32 to vector<32x32xf32>
    %998 = arith.mulf %997, %979 : vector<32x32xf32>
    %999 = arith.addf %965, %998 : vector<32x32xf32>
    %c207 = arith.constant 207 : index
    %1000 = memref.load %arg2[%c207] : memref<288xf32, #tpu.memory_space<smem>>
    %1001 = vector.broadcast %1000 : f32 to vector<32x32xf32>
    %1002 = arith.mulf %1001, %979 : vector<32x32xf32>
    %1003 = arith.addf %969, %1002 : vector<32x32xf32>
    %c243 = arith.constant 243 : index
    %1004 = memref.load %arg2[%c243] : memref<288xf32, #tpu.memory_space<smem>>
    %1005 = vector.broadcast %1004 : f32 to vector<32x32xf32>
    %1006 = arith.mulf %1005, %979 : vector<32x32xf32>
    %1007 = arith.addf %973, %1006 : vector<32x32xf32>
    %c279 = arith.constant 279 : index
    %1008 = memref.load %arg2[%c279] : memref<288xf32, #tpu.memory_space<smem>>
    %1009 = vector.broadcast %1008 : f32 to vector<32x32xf32>
    %1010 = arith.mulf %1009, %979 : vector<32x32xf32>
    %1011 = arith.addf %977, %1010 : vector<32x32xf32>
    %c3_132 = arith.constant 3 : index
    %c0_133 = arith.constant 0 : index
    %c1_134 = arith.constant 1 : index
    %1012 = vector.load %arg6[%c3_132, %c0_133, %c1_134] : memref<4x34x34xf32, #tpu.memory_space<vmem>>, vector<1x32x32xf32>
    %1013 = vector.shape_cast %1012 : vector<1x32x32xf32> to vector<32x32xf32>
    %c28 = arith.constant 28 : index
    %1014 = memref.load %arg2[%c28] : memref<288xf32, #tpu.memory_space<smem>>
    %1015 = vector.broadcast %1014 : f32 to vector<32x32xf32>
    %1016 = arith.mulf %1015, %1013 : vector<32x32xf32>
    %1017 = arith.addf %983, %1016 : vector<32x32xf32>
    %c64 = arith.constant 64 : index
    %1018 = memref.load %arg2[%c64] : memref<288xf32, #tpu.memory_space<smem>>
    %1019 = vector.broadcast %1018 : f32 to vector<32x32xf32>
    %1020 = arith.mulf %1019, %1013 : vector<32x32xf32>
    %1021 = arith.addf %987, %1020 : vector<32x32xf32>
    %c100 = arith.constant 100 : index
    %1022 = memref.load %arg2[%c100] : memref<288xf32, #tpu.memory_space<smem>>
    %1023 = vector.broadcast %1022 : f32 to vector<32x32xf32>
    %1024 = arith.mulf %1023, %1013 : vector<32x32xf32>
    %1025 = arith.addf %991, %1024 : vector<32x32xf32>
    %c136 = arith.constant 136 : index
    %1026 = memref.load %arg2[%c136] : memref<288xf32, #tpu.memory_space<smem>>
    %1027 = vector.broadcast %1026 : f32 to vector<32x32xf32>
    %1028 = arith.mulf %1027, %1013 : vector<32x32xf32>
    %1029 = arith.addf %995, %1028 : vector<32x32xf32>
    %c172 = arith.constant 172 : index
    %1030 = memref.load %arg2[%c172] : memref<288xf32, #tpu.memory_space<smem>>
    %1031 = vector.broadcast %1030 : f32 to vector<32x32xf32>
    %1032 = arith.mulf %1031, %1013 : vector<32x32xf32>
    %1033 = arith.addf %999, %1032 : vector<32x32xf32>
    %c208 = arith.constant 208 : index
    %1034 = memref.load %arg2[%c208] : memref<288xf32, #tpu.memory_space<smem>>
    %1035 = vector.broadcast %1034 : f32 to vector<32x32xf32>
    %1036 = arith.mulf %1035, %1013 : vector<32x32xf32>
    %1037 = arith.addf %1003, %1036 : vector<32x32xf32>
    %c244 = arith.constant 244 : index
    %1038 = memref.load %arg2[%c244] : memref<288xf32, #tpu.memory_space<smem>>
    %1039 = vector.broadcast %1038 : f32 to vector<32x32xf32>
    %1040 = arith.mulf %1039, %1013 : vector<32x32xf32>
    %1041 = arith.addf %1007, %1040 : vector<32x32xf32>
    %c280 = arith.constant 280 : index
    %1042 = memref.load %arg2[%c280] : memref<288xf32, #tpu.memory_space<smem>>
    %1043 = vector.broadcast %1042 : f32 to vector<32x32xf32>
    %1044 = arith.mulf %1043, %1013 : vector<32x32xf32>
    %1045 = arith.addf %1011, %1044 : vector<32x32xf32>
    %c3_135 = arith.constant 3 : index
    %c0_136 = arith.constant 0 : index
    %c2_137 = arith.constant 2 : index
    %1046 = vector.load %arg6[%c3_135, %c0_136, %c2_137] : memref<4x34x34xf32, #tpu.memory_space<vmem>>, vector<1x32x32xf32>
    %1047 = vector.shape_cast %1046 : vector<1x32x32xf32> to vector<32x32xf32>
    %c29 = arith.constant 29 : index
    %1048 = memref.load %arg2[%c29] : memref<288xf32, #tpu.memory_space<smem>>
    %1049 = vector.broadcast %1048 : f32 to vector<32x32xf32>
    %1050 = arith.mulf %1049, %1047 : vector<32x32xf32>
    %1051 = arith.addf %1017, %1050 : vector<32x32xf32>
    %c65 = arith.constant 65 : index
    %1052 = memref.load %arg2[%c65] : memref<288xf32, #tpu.memory_space<smem>>
    %1053 = vector.broadcast %1052 : f32 to vector<32x32xf32>
    %1054 = arith.mulf %1053, %1047 : vector<32x32xf32>
    %1055 = arith.addf %1021, %1054 : vector<32x32xf32>
    %c101 = arith.constant 101 : index
    %1056 = memref.load %arg2[%c101] : memref<288xf32, #tpu.memory_space<smem>>
    %1057 = vector.broadcast %1056 : f32 to vector<32x32xf32>
    %1058 = arith.mulf %1057, %1047 : vector<32x32xf32>
    %1059 = arith.addf %1025, %1058 : vector<32x32xf32>
    %c137 = arith.constant 137 : index
    %1060 = memref.load %arg2[%c137] : memref<288xf32, #tpu.memory_space<smem>>
    %1061 = vector.broadcast %1060 : f32 to vector<32x32xf32>
    %1062 = arith.mulf %1061, %1047 : vector<32x32xf32>
    %1063 = arith.addf %1029, %1062 : vector<32x32xf32>
    %c173 = arith.constant 173 : index
    %1064 = memref.load %arg2[%c173] : memref<288xf32, #tpu.memory_space<smem>>
    %1065 = vector.broadcast %1064 : f32 to vector<32x32xf32>
    %1066 = arith.mulf %1065, %1047 : vector<32x32xf32>
    %1067 = arith.addf %1033, %1066 : vector<32x32xf32>
    %c209 = arith.constant 209 : index
    %1068 = memref.load %arg2[%c209] : memref<288xf32, #tpu.memory_space<smem>>
    %1069 = vector.broadcast %1068 : f32 to vector<32x32xf32>
    %1070 = arith.mulf %1069, %1047 : vector<32x32xf32>
    %1071 = arith.addf %1037, %1070 : vector<32x32xf32>
    %c245 = arith.constant 245 : index
    %1072 = memref.load %arg2[%c245] : memref<288xf32, #tpu.memory_space<smem>>
    %1073 = vector.broadcast %1072 : f32 to vector<32x32xf32>
    %1074 = arith.mulf %1073, %1047 : vector<32x32xf32>
    %1075 = arith.addf %1041, %1074 : vector<32x32xf32>
    %c281 = arith.constant 281 : index
    %1076 = memref.load %arg2[%c281] : memref<288xf32, #tpu.memory_space<smem>>
    %1077 = vector.broadcast %1076 : f32 to vector<32x32xf32>
    %1078 = arith.mulf %1077, %1047 : vector<32x32xf32>
    %1079 = arith.addf %1045, %1078 : vector<32x32xf32>
    %c3_138 = arith.constant 3 : index
    %c1_139 = arith.constant 1 : index
    %c0_140 = arith.constant 0 : index
    %1080 = vector.load %arg6[%c3_138, %c1_139, %c0_140] : memref<4x34x34xf32, #tpu.memory_space<vmem>>, vector<1x32x32xf32>
    %1081 = vector.shape_cast %1080 : vector<1x32x32xf32> to vector<32x32xf32>
    %c30 = arith.constant 30 : index
    %1082 = memref.load %arg2[%c30] : memref<288xf32, #tpu.memory_space<smem>>
    %1083 = vector.broadcast %1082 : f32 to vector<32x32xf32>
    %1084 = arith.mulf %1083, %1081 : vector<32x32xf32>
    %1085 = arith.addf %1051, %1084 : vector<32x32xf32>
    %c66 = arith.constant 66 : index
    %1086 = memref.load %arg2[%c66] : memref<288xf32, #tpu.memory_space<smem>>
    %1087 = vector.broadcast %1086 : f32 to vector<32x32xf32>
    %1088 = arith.mulf %1087, %1081 : vector<32x32xf32>
    %1089 = arith.addf %1055, %1088 : vector<32x32xf32>
    %c102 = arith.constant 102 : index
    %1090 = memref.load %arg2[%c102] : memref<288xf32, #tpu.memory_space<smem>>
    %1091 = vector.broadcast %1090 : f32 to vector<32x32xf32>
    %1092 = arith.mulf %1091, %1081 : vector<32x32xf32>
    %1093 = arith.addf %1059, %1092 : vector<32x32xf32>
    %c138 = arith.constant 138 : index
    %1094 = memref.load %arg2[%c138] : memref<288xf32, #tpu.memory_space<smem>>
    %1095 = vector.broadcast %1094 : f32 to vector<32x32xf32>
    %1096 = arith.mulf %1095, %1081 : vector<32x32xf32>
    %1097 = arith.addf %1063, %1096 : vector<32x32xf32>
    %c174 = arith.constant 174 : index
    %1098 = memref.load %arg2[%c174] : memref<288xf32, #tpu.memory_space<smem>>
    %1099 = vector.broadcast %1098 : f32 to vector<32x32xf32>
    %1100 = arith.mulf %1099, %1081 : vector<32x32xf32>
    %1101 = arith.addf %1067, %1100 : vector<32x32xf32>
    %c210 = arith.constant 210 : index
    %1102 = memref.load %arg2[%c210] : memref<288xf32, #tpu.memory_space<smem>>
    %1103 = vector.broadcast %1102 : f32 to vector<32x32xf32>
    %1104 = arith.mulf %1103, %1081 : vector<32x32xf32>
    %1105 = arith.addf %1071, %1104 : vector<32x32xf32>
    %c246 = arith.constant 246 : index
    %1106 = memref.load %arg2[%c246] : memref<288xf32, #tpu.memory_space<smem>>
    %1107 = vector.broadcast %1106 : f32 to vector<32x32xf32>
    %1108 = arith.mulf %1107, %1081 : vector<32x32xf32>
    %1109 = arith.addf %1075, %1108 : vector<32x32xf32>
    %c282 = arith.constant 282 : index
    %1110 = memref.load %arg2[%c282] : memref<288xf32, #tpu.memory_space<smem>>
    %1111 = vector.broadcast %1110 : f32 to vector<32x32xf32>
    %1112 = arith.mulf %1111, %1081 : vector<32x32xf32>
    %1113 = arith.addf %1079, %1112 : vector<32x32xf32>
    %c3_141 = arith.constant 3 : index
    %c1_142 = arith.constant 1 : index
    %c1_143 = arith.constant 1 : index
    %1114 = vector.load %arg6[%c3_141, %c1_142, %c1_143] : memref<4x34x34xf32, #tpu.memory_space<vmem>>, vector<1x32x32xf32>
    %1115 = vector.shape_cast %1114 : vector<1x32x32xf32> to vector<32x32xf32>
    %c31 = arith.constant 31 : index
    %1116 = memref.load %arg2[%c31] : memref<288xf32, #tpu.memory_space<smem>>
    %1117 = vector.broadcast %1116 : f32 to vector<32x32xf32>
    %1118 = arith.mulf %1117, %1115 : vector<32x32xf32>
    %1119 = arith.addf %1085, %1118 : vector<32x32xf32>
    %c67 = arith.constant 67 : index
    %1120 = memref.load %arg2[%c67] : memref<288xf32, #tpu.memory_space<smem>>
    %1121 = vector.broadcast %1120 : f32 to vector<32x32xf32>
    %1122 = arith.mulf %1121, %1115 : vector<32x32xf32>
    %1123 = arith.addf %1089, %1122 : vector<32x32xf32>
    %c103 = arith.constant 103 : index
    %1124 = memref.load %arg2[%c103] : memref<288xf32, #tpu.memory_space<smem>>
    %1125 = vector.broadcast %1124 : f32 to vector<32x32xf32>
    %1126 = arith.mulf %1125, %1115 : vector<32x32xf32>
    %1127 = arith.addf %1093, %1126 : vector<32x32xf32>
    %c139 = arith.constant 139 : index
    %1128 = memref.load %arg2[%c139] : memref<288xf32, #tpu.memory_space<smem>>
    %1129 = vector.broadcast %1128 : f32 to vector<32x32xf32>
    %1130 = arith.mulf %1129, %1115 : vector<32x32xf32>
    %1131 = arith.addf %1097, %1130 : vector<32x32xf32>
    %c175 = arith.constant 175 : index
    %1132 = memref.load %arg2[%c175] : memref<288xf32, #tpu.memory_space<smem>>
    %1133 = vector.broadcast %1132 : f32 to vector<32x32xf32>
    %1134 = arith.mulf %1133, %1115 : vector<32x32xf32>
    %1135 = arith.addf %1101, %1134 : vector<32x32xf32>
    %c211 = arith.constant 211 : index
    %1136 = memref.load %arg2[%c211] : memref<288xf32, #tpu.memory_space<smem>>
    %1137 = vector.broadcast %1136 : f32 to vector<32x32xf32>
    %1138 = arith.mulf %1137, %1115 : vector<32x32xf32>
    %1139 = arith.addf %1105, %1138 : vector<32x32xf32>
    %c247 = arith.constant 247 : index
    %1140 = memref.load %arg2[%c247] : memref<288xf32, #tpu.memory_space<smem>>
    %1141 = vector.broadcast %1140 : f32 to vector<32x32xf32>
    %1142 = arith.mulf %1141, %1115 : vector<32x32xf32>
    %1143 = arith.addf %1109, %1142 : vector<32x32xf32>
    %c283 = arith.constant 283 : index
    %1144 = memref.load %arg2[%c283] : memref<288xf32, #tpu.memory_space<smem>>
    %1145 = vector.broadcast %1144 : f32 to vector<32x32xf32>
    %1146 = arith.mulf %1145, %1115 : vector<32x32xf32>
    %1147 = arith.addf %1113, %1146 : vector<32x32xf32>
    %c3_144 = arith.constant 3 : index
    %c1_145 = arith.constant 1 : index
    %c2_146 = arith.constant 2 : index
    %1148 = vector.load %arg6[%c3_144, %c1_145, %c2_146] : memref<4x34x34xf32, #tpu.memory_space<vmem>>, vector<1x32x32xf32>
    %1149 = vector.shape_cast %1148 : vector<1x32x32xf32> to vector<32x32xf32>
    %c32 = arith.constant 32 : index
    %1150 = memref.load %arg2[%c32] : memref<288xf32, #tpu.memory_space<smem>>
    %1151 = vector.broadcast %1150 : f32 to vector<32x32xf32>
    %1152 = arith.mulf %1151, %1149 : vector<32x32xf32>
    %1153 = arith.addf %1119, %1152 : vector<32x32xf32>
    %c68 = arith.constant 68 : index
    %1154 = memref.load %arg2[%c68] : memref<288xf32, #tpu.memory_space<smem>>
    %1155 = vector.broadcast %1154 : f32 to vector<32x32xf32>
    %1156 = arith.mulf %1155, %1149 : vector<32x32xf32>
    %1157 = arith.addf %1123, %1156 : vector<32x32xf32>
    %c104 = arith.constant 104 : index
    %1158 = memref.load %arg2[%c104] : memref<288xf32, #tpu.memory_space<smem>>
    %1159 = vector.broadcast %1158 : f32 to vector<32x32xf32>
    %1160 = arith.mulf %1159, %1149 : vector<32x32xf32>
    %1161 = arith.addf %1127, %1160 : vector<32x32xf32>
    %c140 = arith.constant 140 : index
    %1162 = memref.load %arg2[%c140] : memref<288xf32, #tpu.memory_space<smem>>
    %1163 = vector.broadcast %1162 : f32 to vector<32x32xf32>
    %1164 = arith.mulf %1163, %1149 : vector<32x32xf32>
    %1165 = arith.addf %1131, %1164 : vector<32x32xf32>
    %c176 = arith.constant 176 : index
    %1166 = memref.load %arg2[%c176] : memref<288xf32, #tpu.memory_space<smem>>
    %1167 = vector.broadcast %1166 : f32 to vector<32x32xf32>
    %1168 = arith.mulf %1167, %1149 : vector<32x32xf32>
    %1169 = arith.addf %1135, %1168 : vector<32x32xf32>
    %c212 = arith.constant 212 : index
    %1170 = memref.load %arg2[%c212] : memref<288xf32, #tpu.memory_space<smem>>
    %1171 = vector.broadcast %1170 : f32 to vector<32x32xf32>
    %1172 = arith.mulf %1171, %1149 : vector<32x32xf32>
    %1173 = arith.addf %1139, %1172 : vector<32x32xf32>
    %c248 = arith.constant 248 : index
    %1174 = memref.load %arg2[%c248] : memref<288xf32, #tpu.memory_space<smem>>
    %1175 = vector.broadcast %1174 : f32 to vector<32x32xf32>
    %1176 = arith.mulf %1175, %1149 : vector<32x32xf32>
    %1177 = arith.addf %1143, %1176 : vector<32x32xf32>
    %c284 = arith.constant 284 : index
    %1178 = memref.load %arg2[%c284] : memref<288xf32, #tpu.memory_space<smem>>
    %1179 = vector.broadcast %1178 : f32 to vector<32x32xf32>
    %1180 = arith.mulf %1179, %1149 : vector<32x32xf32>
    %1181 = arith.addf %1147, %1180 : vector<32x32xf32>
    %c3_147 = arith.constant 3 : index
    %c2_148 = arith.constant 2 : index
    %c0_149 = arith.constant 0 : index
    %1182 = vector.load %arg6[%c3_147, %c2_148, %c0_149] : memref<4x34x34xf32, #tpu.memory_space<vmem>>, vector<1x32x32xf32>
    %1183 = vector.shape_cast %1182 : vector<1x32x32xf32> to vector<32x32xf32>
    %c33 = arith.constant 33 : index
    %1184 = memref.load %arg2[%c33] : memref<288xf32, #tpu.memory_space<smem>>
    %1185 = vector.broadcast %1184 : f32 to vector<32x32xf32>
    %1186 = arith.mulf %1185, %1183 : vector<32x32xf32>
    %1187 = arith.addf %1153, %1186 : vector<32x32xf32>
    %c69 = arith.constant 69 : index
    %1188 = memref.load %arg2[%c69] : memref<288xf32, #tpu.memory_space<smem>>
    %1189 = vector.broadcast %1188 : f32 to vector<32x32xf32>
    %1190 = arith.mulf %1189, %1183 : vector<32x32xf32>
    %1191 = arith.addf %1157, %1190 : vector<32x32xf32>
    %c105 = arith.constant 105 : index
    %1192 = memref.load %arg2[%c105] : memref<288xf32, #tpu.memory_space<smem>>
    %1193 = vector.broadcast %1192 : f32 to vector<32x32xf32>
    %1194 = arith.mulf %1193, %1183 : vector<32x32xf32>
    %1195 = arith.addf %1161, %1194 : vector<32x32xf32>
    %c141 = arith.constant 141 : index
    %1196 = memref.load %arg2[%c141] : memref<288xf32, #tpu.memory_space<smem>>
    %1197 = vector.broadcast %1196 : f32 to vector<32x32xf32>
    %1198 = arith.mulf %1197, %1183 : vector<32x32xf32>
    %1199 = arith.addf %1165, %1198 : vector<32x32xf32>
    %c177 = arith.constant 177 : index
    %1200 = memref.load %arg2[%c177] : memref<288xf32, #tpu.memory_space<smem>>
    %1201 = vector.broadcast %1200 : f32 to vector<32x32xf32>
    %1202 = arith.mulf %1201, %1183 : vector<32x32xf32>
    %1203 = arith.addf %1169, %1202 : vector<32x32xf32>
    %c213 = arith.constant 213 : index
    %1204 = memref.load %arg2[%c213] : memref<288xf32, #tpu.memory_space<smem>>
    %1205 = vector.broadcast %1204 : f32 to vector<32x32xf32>
    %1206 = arith.mulf %1205, %1183 : vector<32x32xf32>
    %1207 = arith.addf %1173, %1206 : vector<32x32xf32>
    %c249 = arith.constant 249 : index
    %1208 = memref.load %arg2[%c249] : memref<288xf32, #tpu.memory_space<smem>>
    %1209 = vector.broadcast %1208 : f32 to vector<32x32xf32>
    %1210 = arith.mulf %1209, %1183 : vector<32x32xf32>
    %1211 = arith.addf %1177, %1210 : vector<32x32xf32>
    %c285 = arith.constant 285 : index
    %1212 = memref.load %arg2[%c285] : memref<288xf32, #tpu.memory_space<smem>>
    %1213 = vector.broadcast %1212 : f32 to vector<32x32xf32>
    %1214 = arith.mulf %1213, %1183 : vector<32x32xf32>
    %1215 = arith.addf %1181, %1214 : vector<32x32xf32>
    %c3_150 = arith.constant 3 : index
    %c2_151 = arith.constant 2 : index
    %c1_152 = arith.constant 1 : index
    %1216 = vector.load %arg6[%c3_150, %c2_151, %c1_152] : memref<4x34x34xf32, #tpu.memory_space<vmem>>, vector<1x32x32xf32>
    %1217 = vector.shape_cast %1216 : vector<1x32x32xf32> to vector<32x32xf32>
    %c34 = arith.constant 34 : index
    %1218 = memref.load %arg2[%c34] : memref<288xf32, #tpu.memory_space<smem>>
    %1219 = vector.broadcast %1218 : f32 to vector<32x32xf32>
    %1220 = arith.mulf %1219, %1217 : vector<32x32xf32>
    %1221 = arith.addf %1187, %1220 : vector<32x32xf32>
    %c70 = arith.constant 70 : index
    %1222 = memref.load %arg2[%c70] : memref<288xf32, #tpu.memory_space<smem>>
    %1223 = vector.broadcast %1222 : f32 to vector<32x32xf32>
    %1224 = arith.mulf %1223, %1217 : vector<32x32xf32>
    %1225 = arith.addf %1191, %1224 : vector<32x32xf32>
    %c106 = arith.constant 106 : index
    %1226 = memref.load %arg2[%c106] : memref<288xf32, #tpu.memory_space<smem>>
    %1227 = vector.broadcast %1226 : f32 to vector<32x32xf32>
    %1228 = arith.mulf %1227, %1217 : vector<32x32xf32>
    %1229 = arith.addf %1195, %1228 : vector<32x32xf32>
    %c142 = arith.constant 142 : index
    %1230 = memref.load %arg2[%c142] : memref<288xf32, #tpu.memory_space<smem>>
    %1231 = vector.broadcast %1230 : f32 to vector<32x32xf32>
    %1232 = arith.mulf %1231, %1217 : vector<32x32xf32>
    %1233 = arith.addf %1199, %1232 : vector<32x32xf32>
    %c178 = arith.constant 178 : index
    %1234 = memref.load %arg2[%c178] : memref<288xf32, #tpu.memory_space<smem>>
    %1235 = vector.broadcast %1234 : f32 to vector<32x32xf32>
    %1236 = arith.mulf %1235, %1217 : vector<32x32xf32>
    %1237 = arith.addf %1203, %1236 : vector<32x32xf32>
    %c214 = arith.constant 214 : index
    %1238 = memref.load %arg2[%c214] : memref<288xf32, #tpu.memory_space<smem>>
    %1239 = vector.broadcast %1238 : f32 to vector<32x32xf32>
    %1240 = arith.mulf %1239, %1217 : vector<32x32xf32>
    %1241 = arith.addf %1207, %1240 : vector<32x32xf32>
    %c250 = arith.constant 250 : index
    %1242 = memref.load %arg2[%c250] : memref<288xf32, #tpu.memory_space<smem>>
    %1243 = vector.broadcast %1242 : f32 to vector<32x32xf32>
    %1244 = arith.mulf %1243, %1217 : vector<32x32xf32>
    %1245 = arith.addf %1211, %1244 : vector<32x32xf32>
    %c286 = arith.constant 286 : index
    %1246 = memref.load %arg2[%c286] : memref<288xf32, #tpu.memory_space<smem>>
    %1247 = vector.broadcast %1246 : f32 to vector<32x32xf32>
    %1248 = arith.mulf %1247, %1217 : vector<32x32xf32>
    %1249 = arith.addf %1215, %1248 : vector<32x32xf32>
    %c3_153 = arith.constant 3 : index
    %c2_154 = arith.constant 2 : index
    %c2_155 = arith.constant 2 : index
    %1250 = vector.load %arg6[%c3_153, %c2_154, %c2_155] : memref<4x34x34xf32, #tpu.memory_space<vmem>>, vector<1x32x32xf32>
    %1251 = vector.shape_cast %1250 : vector<1x32x32xf32> to vector<32x32xf32>
    %c35 = arith.constant 35 : index
    %1252 = memref.load %arg2[%c35] : memref<288xf32, #tpu.memory_space<smem>>
    %1253 = vector.broadcast %1252 : f32 to vector<32x32xf32>
    %1254 = arith.mulf %1253, %1251 : vector<32x32xf32>
    %1255 = arith.addf %1221, %1254 : vector<32x32xf32>
    %c71 = arith.constant 71 : index
    %1256 = memref.load %arg2[%c71] : memref<288xf32, #tpu.memory_space<smem>>
    %1257 = vector.broadcast %1256 : f32 to vector<32x32xf32>
    %1258 = arith.mulf %1257, %1251 : vector<32x32xf32>
    %1259 = arith.addf %1225, %1258 : vector<32x32xf32>
    %c107 = arith.constant 107 : index
    %1260 = memref.load %arg2[%c107] : memref<288xf32, #tpu.memory_space<smem>>
    %1261 = vector.broadcast %1260 : f32 to vector<32x32xf32>
    %1262 = arith.mulf %1261, %1251 : vector<32x32xf32>
    %1263 = arith.addf %1229, %1262 : vector<32x32xf32>
    %c143 = arith.constant 143 : index
    %1264 = memref.load %arg2[%c143] : memref<288xf32, #tpu.memory_space<smem>>
    %1265 = vector.broadcast %1264 : f32 to vector<32x32xf32>
    %1266 = arith.mulf %1265, %1251 : vector<32x32xf32>
    %1267 = arith.addf %1233, %1266 : vector<32x32xf32>
    %c179 = arith.constant 179 : index
    %1268 = memref.load %arg2[%c179] : memref<288xf32, #tpu.memory_space<smem>>
    %1269 = vector.broadcast %1268 : f32 to vector<32x32xf32>
    %1270 = arith.mulf %1269, %1251 : vector<32x32xf32>
    %1271 = arith.addf %1237, %1270 : vector<32x32xf32>
    %c215 = arith.constant 215 : index
    %1272 = memref.load %arg2[%c215] : memref<288xf32, #tpu.memory_space<smem>>
    %1273 = vector.broadcast %1272 : f32 to vector<32x32xf32>
    %1274 = arith.mulf %1273, %1251 : vector<32x32xf32>
    %1275 = arith.addf %1241, %1274 : vector<32x32xf32>
    %c251 = arith.constant 251 : index
    %1276 = memref.load %arg2[%c251] : memref<288xf32, #tpu.memory_space<smem>>
    %1277 = vector.broadcast %1276 : f32 to vector<32x32xf32>
    %1278 = arith.mulf %1277, %1251 : vector<32x32xf32>
    %1279 = arith.addf %1245, %1278 : vector<32x32xf32>
    %c287 = arith.constant 287 : index
    %1280 = memref.load %arg2[%c287] : memref<288xf32, #tpu.memory_space<smem>>
    %1281 = vector.broadcast %1280 : f32 to vector<32x32xf32>
    %1282 = arith.mulf %1281, %1251 : vector<32x32xf32>
    %1283 = arith.addf %1249, %1282 : vector<32x32xf32>
    %c0_156 = arith.constant 0 : index
    %c0_157 = arith.constant 0 : index
    %c0_158 = arith.constant 0 : index
    %c0_159 = arith.constant 0 : index
    %1284 = vector.load %arg4[%c0_156, %c0_157, %c0_158, %c0_159] : memref<1x8x32x32xf32, #tpu.memory_space<vmem>>, vector<1x1x32x32xf32>
    %1285 = vector.shape_cast %1284 : vector<1x1x32x32xf32> to vector<32x32xf32>
    %1286 = vector.shape_cast %1255 : vector<32x32xf32> to vector<1x1x32x32xf32>
    tpu.vector_store %arg4[%c0_156, %c0_157, %c0_158, %c0_159], %1286 {strides = array<i32>} : memref<1x8x32x32xf32, #tpu.memory_space<vmem>>, vector<1x1x32x32xf32>,
    %cst_160 = arith.constant dense<0.000000e+00> : vector<32xf32>
    %1287 = vector.multi_reduction <add>, %1255, %cst_160 [0] : vector<32x32xf32> to vector<32xf32>
    %1288 = vector.shape_cast %1287 : vector<32xf32> to vector<1x32xf32>
    %c0_161 = arith.constant 0 : index
    %c0_162 = arith.constant 0 : index
    %c0_163 = arith.constant 0 : index
    %1289 = vector.load %arg5[%c0_161, %c0_162, %c0_163] : memref<1x16x32xf32, #tpu.memory_space<vmem>>, vector<1x1x32xf32>
    %1290 = vector.shape_cast %1289 : vector<1x1x32xf32> to vector<1x32xf32>
    %1291 = vector.shape_cast %1288 : vector<1x32xf32> to vector<1x1x32xf32>
    tpu.vector_store %arg5[%c0_161, %c0_162, %c0_163], %1291 {strides = array<i32>} : memref<1x16x32xf32, #tpu.memory_space<vmem>>, vector<1x1x32xf32>,
    %1292 = arith.mulf %1255, %1255 : vector<32x32xf32>
    %cst_164 = arith.constant dense<0.000000e+00> : vector<32xf32>
    %1293 = vector.multi_reduction <add>, %1292, %cst_164 [0] : vector<32x32xf32> to vector<32xf32>
    %1294 = vector.shape_cast %1293 : vector<32xf32> to vector<1x32xf32>
    %c0_165 = arith.constant 0 : index
    %c8_166 = arith.constant 8 : index
    %c0_167 = arith.constant 0 : index
    %1295 = vector.load %arg5[%c0_165, %c8_166, %c0_167] : memref<1x16x32xf32, #tpu.memory_space<vmem>>, vector<1x1x32xf32>
    %1296 = vector.shape_cast %1295 : vector<1x1x32xf32> to vector<1x32xf32>
    %1297 = vector.shape_cast %1294 : vector<1x32xf32> to vector<1x1x32xf32>
    tpu.vector_store %arg5[%c0_165, %c8_166, %c0_167], %1297 {strides = array<i32>} : memref<1x16x32xf32, #tpu.memory_space<vmem>>, vector<1x1x32xf32>,
    %c0_168 = arith.constant 0 : index
    %c1_169 = arith.constant 1 : index
    %c0_170 = arith.constant 0 : index
    %c0_171 = arith.constant 0 : index
    %1298 = vector.load %arg4[%c0_168, %c1_169, %c0_170, %c0_171] : memref<1x8x32x32xf32, #tpu.memory_space<vmem>>, vector<1x1x32x32xf32>
    %1299 = vector.shape_cast %1298 : vector<1x1x32x32xf32> to vector<32x32xf32>
    %1300 = vector.shape_cast %1259 : vector<32x32xf32> to vector<1x1x32x32xf32>
    tpu.vector_store %arg4[%c0_168, %c1_169, %c0_170, %c0_171], %1300 {strides = array<i32>} : memref<1x8x32x32xf32, #tpu.memory_space<vmem>>, vector<1x1x32x32xf32>,
    %cst_172 = arith.constant dense<0.000000e+00> : vector<32xf32>
    %1301 = vector.multi_reduction <add>, %1259, %cst_172 [0] : vector<32x32xf32> to vector<32xf32>
    %1302 = vector.shape_cast %1301 : vector<32xf32> to vector<1x32xf32>
    %c0_173 = arith.constant 0 : index
    %c1_174 = arith.constant 1 : index
    %c0_175 = arith.constant 0 : index
    %1303 = vector.load %arg5[%c0_173, %c1_174, %c0_175] : memref<1x16x32xf32, #tpu.memory_space<vmem>>, vector<1x1x32xf32>
    %1304 = vector.shape_cast %1303 : vector<1x1x32xf32> to vector<1x32xf32>
    %1305 = vector.shape_cast %1302 : vector<1x32xf32> to vector<1x1x32xf32>
    tpu.vector_store %arg5[%c0_173, %c1_174, %c0_175], %1305 {strides = array<i32>} : memref<1x16x32xf32, #tpu.memory_space<vmem>>, vector<1x1x32xf32>,
    %1306 = arith.mulf %1259, %1259 : vector<32x32xf32>
    %cst_176 = arith.constant dense<0.000000e+00> : vector<32xf32>
    %1307 = vector.multi_reduction <add>, %1306, %cst_176 [0] : vector<32x32xf32> to vector<32xf32>
    %1308 = vector.shape_cast %1307 : vector<32xf32> to vector<1x32xf32>
    %c0_177 = arith.constant 0 : index
    %c9_178 = arith.constant 9 : index
    %c0_179 = arith.constant 0 : index
    %1309 = vector.load %arg5[%c0_177, %c9_178, %c0_179] : memref<1x16x32xf32, #tpu.memory_space<vmem>>, vector<1x1x32xf32>
    %1310 = vector.shape_cast %1309 : vector<1x1x32xf32> to vector<1x32xf32>
    %1311 = vector.shape_cast %1308 : vector<1x32xf32> to vector<1x1x32xf32>
    tpu.vector_store %arg5[%c0_177, %c9_178, %c0_179], %1311 {strides = array<i32>} : memref<1x16x32xf32, #tpu.memory_space<vmem>>, vector<1x1x32xf32>,
    %c0_180 = arith.constant 0 : index
    %c2_181 = arith.constant 2 : index
    %c0_182 = arith.constant 0 : index
    %c0_183 = arith.constant 0 : index
    %1312 = vector.load %arg4[%c0_180, %c2_181, %c0_182, %c0_183] : memref<1x8x32x32xf32, #tpu.memory_space<vmem>>, vector<1x1x32x32xf32>
    %1313 = vector.shape_cast %1312 : vector<1x1x32x32xf32> to vector<32x32xf32>
    %1314 = vector.shape_cast %1263 : vector<32x32xf32> to vector<1x1x32x32xf32>
    tpu.vector_store %arg4[%c0_180, %c2_181, %c0_182, %c0_183], %1314 {strides = array<i32>} : memref<1x8x32x32xf32, #tpu.memory_space<vmem>>, vector<1x1x32x32xf32>,
    %cst_184 = arith.constant dense<0.000000e+00> : vector<32xf32>
    %1315 = vector.multi_reduction <add>, %1263, %cst_184 [0] : vector<32x32xf32> to vector<32xf32>
    %1316 = vector.shape_cast %1315 : vector<32xf32> to vector<1x32xf32>
    %c0_185 = arith.constant 0 : index
    %c2_186 = arith.constant 2 : index
    %c0_187 = arith.constant 0 : index
    %1317 = vector.load %arg5[%c0_185, %c2_186, %c0_187] : memref<1x16x32xf32, #tpu.memory_space<vmem>>, vector<1x1x32xf32>
    %1318 = vector.shape_cast %1317 : vector<1x1x32xf32> to vector<1x32xf32>
    %1319 = vector.shape_cast %1316 : vector<1x32xf32> to vector<1x1x32xf32>
    tpu.vector_store %arg5[%c0_185, %c2_186, %c0_187], %1319 {strides = array<i32>} : memref<1x16x32xf32, #tpu.memory_space<vmem>>, vector<1x1x32xf32>,
    %1320 = arith.mulf %1263, %1263 : vector<32x32xf32>
    %cst_188 = arith.constant dense<0.000000e+00> : vector<32xf32>
    %1321 = vector.multi_reduction <add>, %1320, %cst_188 [0] : vector<32x32xf32> to vector<32xf32>
    %1322 = vector.shape_cast %1321 : vector<32xf32> to vector<1x32xf32>
    %c0_189 = arith.constant 0 : index
    %c10_190 = arith.constant 10 : index
    %c0_191 = arith.constant 0 : index
    %1323 = vector.load %arg5[%c0_189, %c10_190, %c0_191] : memref<1x16x32xf32, #tpu.memory_space<vmem>>, vector<1x1x32xf32>
    %1324 = vector.shape_cast %1323 : vector<1x1x32xf32> to vector<1x32xf32>
    %1325 = vector.shape_cast %1322 : vector<1x32xf32> to vector<1x1x32xf32>
    tpu.vector_store %arg5[%c0_189, %c10_190, %c0_191], %1325 {strides = array<i32>} : memref<1x16x32xf32, #tpu.memory_space<vmem>>, vector<1x1x32xf32>,
    %c0_192 = arith.constant 0 : index
    %c3_193 = arith.constant 3 : index
    %c0_194 = arith.constant 0 : index
    %c0_195 = arith.constant 0 : index
    %1326 = vector.load %arg4[%c0_192, %c3_193, %c0_194, %c0_195] : memref<1x8x32x32xf32, #tpu.memory_space<vmem>>, vector<1x1x32x32xf32>
    %1327 = vector.shape_cast %1326 : vector<1x1x32x32xf32> to vector<32x32xf32>
    %1328 = vector.shape_cast %1267 : vector<32x32xf32> to vector<1x1x32x32xf32>
    tpu.vector_store %arg4[%c0_192, %c3_193, %c0_194, %c0_195], %1328 {strides = array<i32>} : memref<1x8x32x32xf32, #tpu.memory_space<vmem>>, vector<1x1x32x32xf32>,
    %cst_196 = arith.constant dense<0.000000e+00> : vector<32xf32>
    %1329 = vector.multi_reduction <add>, %1267, %cst_196 [0] : vector<32x32xf32> to vector<32xf32>
    %1330 = vector.shape_cast %1329 : vector<32xf32> to vector<1x32xf32>
    %c0_197 = arith.constant 0 : index
    %c3_198 = arith.constant 3 : index
    %c0_199 = arith.constant 0 : index
    %1331 = vector.load %arg5[%c0_197, %c3_198, %c0_199] : memref<1x16x32xf32, #tpu.memory_space<vmem>>, vector<1x1x32xf32>
    %1332 = vector.shape_cast %1331 : vector<1x1x32xf32> to vector<1x32xf32>
    %1333 = vector.shape_cast %1330 : vector<1x32xf32> to vector<1x1x32xf32>
    tpu.vector_store %arg5[%c0_197, %c3_198, %c0_199], %1333 {strides = array<i32>} : memref<1x16x32xf32, #tpu.memory_space<vmem>>, vector<1x1x32xf32>,
    %1334 = arith.mulf %1267, %1267 : vector<32x32xf32>
    %cst_200 = arith.constant dense<0.000000e+00> : vector<32xf32>
    %1335 = vector.multi_reduction <add>, %1334, %cst_200 [0] : vector<32x32xf32> to vector<32xf32>
    %1336 = vector.shape_cast %1335 : vector<32xf32> to vector<1x32xf32>
    %c0_201 = arith.constant 0 : index
    %c11_202 = arith.constant 11 : index
    %c0_203 = arith.constant 0 : index
    %1337 = vector.load %arg5[%c0_201, %c11_202, %c0_203] : memref<1x16x32xf32, #tpu.memory_space<vmem>>, vector<1x1x32xf32>
    %1338 = vector.shape_cast %1337 : vector<1x1x32xf32> to vector<1x32xf32>
    %1339 = vector.shape_cast %1336 : vector<1x32xf32> to vector<1x1x32xf32>
    tpu.vector_store %arg5[%c0_201, %c11_202, %c0_203], %1339 {strides = array<i32>} : memref<1x16x32xf32, #tpu.memory_space<vmem>>, vector<1x1x32xf32>,
    %c0_204 = arith.constant 0 : index
    %c4_205 = arith.constant 4 : index
    %c0_206 = arith.constant 0 : index
    %c0_207 = arith.constant 0 : index
    %1340 = vector.load %arg4[%c0_204, %c4_205, %c0_206, %c0_207] : memref<1x8x32x32xf32, #tpu.memory_space<vmem>>, vector<1x1x32x32xf32>
    %1341 = vector.shape_cast %1340 : vector<1x1x32x32xf32> to vector<32x32xf32>
    %1342 = vector.shape_cast %1271 : vector<32x32xf32> to vector<1x1x32x32xf32>
    tpu.vector_store %arg4[%c0_204, %c4_205, %c0_206, %c0_207], %1342 {strides = array<i32>} : memref<1x8x32x32xf32, #tpu.memory_space<vmem>>, vector<1x1x32x32xf32>,
    %cst_208 = arith.constant dense<0.000000e+00> : vector<32xf32>
    %1343 = vector.multi_reduction <add>, %1271, %cst_208 [0] : vector<32x32xf32> to vector<32xf32>
    %1344 = vector.shape_cast %1343 : vector<32xf32> to vector<1x32xf32>
    %c0_209 = arith.constant 0 : index
    %c4_210 = arith.constant 4 : index
    %c0_211 = arith.constant 0 : index
    %1345 = vector.load %arg5[%c0_209, %c4_210, %c0_211] : memref<1x16x32xf32, #tpu.memory_space<vmem>>, vector<1x1x32xf32>
    %1346 = vector.shape_cast %1345 : vector<1x1x32xf32> to vector<1x32xf32>
    %1347 = vector.shape_cast %1344 : vector<1x32xf32> to vector<1x1x32xf32>
    tpu.vector_store %arg5[%c0_209, %c4_210, %c0_211], %1347 {strides = array<i32>} : memref<1x16x32xf32, #tpu.memory_space<vmem>>, vector<1x1x32xf32>,
    %1348 = arith.mulf %1271, %1271 : vector<32x32xf32>
    %cst_212 = arith.constant dense<0.000000e+00> : vector<32xf32>
    %1349 = vector.multi_reduction <add>, %1348, %cst_212 [0] : vector<32x32xf32> to vector<32xf32>
    %1350 = vector.shape_cast %1349 : vector<32xf32> to vector<1x32xf32>
    %c0_213 = arith.constant 0 : index
    %c12_214 = arith.constant 12 : index
    %c0_215 = arith.constant 0 : index
    %1351 = vector.load %arg5[%c0_213, %c12_214, %c0_215] : memref<1x16x32xf32, #tpu.memory_space<vmem>>, vector<1x1x32xf32>
    %1352 = vector.shape_cast %1351 : vector<1x1x32xf32> to vector<1x32xf32>
    %1353 = vector.shape_cast %1350 : vector<1x32xf32> to vector<1x1x32xf32>
    tpu.vector_store %arg5[%c0_213, %c12_214, %c0_215], %1353 {strides = array<i32>} : memref<1x16x32xf32, #tpu.memory_space<vmem>>, vector<1x1x32xf32>,
    %c0_216 = arith.constant 0 : index
    %c5_217 = arith.constant 5 : index
    %c0_218 = arith.constant 0 : index
    %c0_219 = arith.constant 0 : index
    %1354 = vector.load %arg4[%c0_216, %c5_217, %c0_218, %c0_219] : memref<1x8x32x32xf32, #tpu.memory_space<vmem>>, vector<1x1x32x32xf32>
    %1355 = vector.shape_cast %1354 : vector<1x1x32x32xf32> to vector<32x32xf32>
    %1356 = vector.shape_cast %1275 : vector<32x32xf32> to vector<1x1x32x32xf32>
    tpu.vector_store %arg4[%c0_216, %c5_217, %c0_218, %c0_219], %1356 {strides = array<i32>} : memref<1x8x32x32xf32, #tpu.memory_space<vmem>>, vector<1x1x32x32xf32>,
    %cst_220 = arith.constant dense<0.000000e+00> : vector<32xf32>
    %1357 = vector.multi_reduction <add>, %1275, %cst_220 [0] : vector<32x32xf32> to vector<32xf32>
    %1358 = vector.shape_cast %1357 : vector<32xf32> to vector<1x32xf32>
    %c0_221 = arith.constant 0 : index
    %c5_222 = arith.constant 5 : index
    %c0_223 = arith.constant 0 : index
    %1359 = vector.load %arg5[%c0_221, %c5_222, %c0_223] : memref<1x16x32xf32, #tpu.memory_space<vmem>>, vector<1x1x32xf32>
    %1360 = vector.shape_cast %1359 : vector<1x1x32xf32> to vector<1x32xf32>
    %1361 = vector.shape_cast %1358 : vector<1x32xf32> to vector<1x1x32xf32>
    tpu.vector_store %arg5[%c0_221, %c5_222, %c0_223], %1361 {strides = array<i32>} : memref<1x16x32xf32, #tpu.memory_space<vmem>>, vector<1x1x32xf32>,
    %1362 = arith.mulf %1275, %1275 : vector<32x32xf32>
    %cst_224 = arith.constant dense<0.000000e+00> : vector<32xf32>
    %1363 = vector.multi_reduction <add>, %1362, %cst_224 [0] : vector<32x32xf32> to vector<32xf32>
    %1364 = vector.shape_cast %1363 : vector<32xf32> to vector<1x32xf32>
    %c0_225 = arith.constant 0 : index
    %c13_226 = arith.constant 13 : index
    %c0_227 = arith.constant 0 : index
    %1365 = vector.load %arg5[%c0_225, %c13_226, %c0_227] : memref<1x16x32xf32, #tpu.memory_space<vmem>>, vector<1x1x32xf32>
    %1366 = vector.shape_cast %1365 : vector<1x1x32xf32> to vector<1x32xf32>
    %1367 = vector.shape_cast %1364 : vector<1x32xf32> to vector<1x1x32xf32>
    tpu.vector_store %arg5[%c0_225, %c13_226, %c0_227], %1367 {strides = array<i32>} : memref<1x16x32xf32, #tpu.memory_space<vmem>>, vector<1x1x32xf32>,
    %c0_228 = arith.constant 0 : index
    %c6_229 = arith.constant 6 : index
    %c0_230 = arith.constant 0 : index
    %c0_231 = arith.constant 0 : index
    %1368 = vector.load %arg4[%c0_228, %c6_229, %c0_230, %c0_231] : memref<1x8x32x32xf32, #tpu.memory_space<vmem>>, vector<1x1x32x32xf32>
    %1369 = vector.shape_cast %1368 : vector<1x1x32x32xf32> to vector<32x32xf32>
    %1370 = vector.shape_cast %1279 : vector<32x32xf32> to vector<1x1x32x32xf32>
    tpu.vector_store %arg4[%c0_228, %c6_229, %c0_230, %c0_231], %1370 {strides = array<i32>} : memref<1x8x32x32xf32, #tpu.memory_space<vmem>>, vector<1x1x32x32xf32>,
    %cst_232 = arith.constant dense<0.000000e+00> : vector<32xf32>
    %1371 = vector.multi_reduction <add>, %1279, %cst_232 [0] : vector<32x32xf32> to vector<32xf32>
    %1372 = vector.shape_cast %1371 : vector<32xf32> to vector<1x32xf32>
    %c0_233 = arith.constant 0 : index
    %c6_234 = arith.constant 6 : index
    %c0_235 = arith.constant 0 : index
    %1373 = vector.load %arg5[%c0_233, %c6_234, %c0_235] : memref<1x16x32xf32, #tpu.memory_space<vmem>>, vector<1x1x32xf32>
    %1374 = vector.shape_cast %1373 : vector<1x1x32xf32> to vector<1x32xf32>
    %1375 = vector.shape_cast %1372 : vector<1x32xf32> to vector<1x1x32xf32>
    tpu.vector_store %arg5[%c0_233, %c6_234, %c0_235], %1375 {strides = array<i32>} : memref<1x16x32xf32, #tpu.memory_space<vmem>>, vector<1x1x32xf32>,
    %1376 = arith.mulf %1279, %1279 : vector<32x32xf32>
    %cst_236 = arith.constant dense<0.000000e+00> : vector<32xf32>
    %1377 = vector.multi_reduction <add>, %1376, %cst_236 [0] : vector<32x32xf32> to vector<32xf32>
    %1378 = vector.shape_cast %1377 : vector<32xf32> to vector<1x32xf32>
    %c0_237 = arith.constant 0 : index
    %c14_238 = arith.constant 14 : index
    %c0_239 = arith.constant 0 : index
    %1379 = vector.load %arg5[%c0_237, %c14_238, %c0_239] : memref<1x16x32xf32, #tpu.memory_space<vmem>>, vector<1x1x32xf32>
    %1380 = vector.shape_cast %1379 : vector<1x1x32xf32> to vector<1x32xf32>
    %1381 = vector.shape_cast %1378 : vector<1x32xf32> to vector<1x1x32xf32>
    tpu.vector_store %arg5[%c0_237, %c14_238, %c0_239], %1381 {strides = array<i32>} : memref<1x16x32xf32, #tpu.memory_space<vmem>>, vector<1x1x32xf32>,
    %c0_240 = arith.constant 0 : index
    %c7_241 = arith.constant 7 : index
    %c0_242 = arith.constant 0 : index
    %c0_243 = arith.constant 0 : index
    %1382 = vector.load %arg4[%c0_240, %c7_241, %c0_242, %c0_243] : memref<1x8x32x32xf32, #tpu.memory_space<vmem>>, vector<1x1x32x32xf32>
    %1383 = vector.shape_cast %1382 : vector<1x1x32x32xf32> to vector<32x32xf32>
    %1384 = vector.shape_cast %1283 : vector<32x32xf32> to vector<1x1x32x32xf32>
    tpu.vector_store %arg4[%c0_240, %c7_241, %c0_242, %c0_243], %1384 {strides = array<i32>} : memref<1x8x32x32xf32, #tpu.memory_space<vmem>>, vector<1x1x32x32xf32>,
    %cst_244 = arith.constant dense<0.000000e+00> : vector<32xf32>
    %1385 = vector.multi_reduction <add>, %1283, %cst_244 [0] : vector<32x32xf32> to vector<32xf32>
    %1386 = vector.shape_cast %1385 : vector<32xf32> to vector<1x32xf32>
    %c0_245 = arith.constant 0 : index
    %c7_246 = arith.constant 7 : index
    %c0_247 = arith.constant 0 : index
    %1387 = vector.load %arg5[%c0_245, %c7_246, %c0_247] : memref<1x16x32xf32, #tpu.memory_space<vmem>>, vector<1x1x32xf32>
    %1388 = vector.shape_cast %1387 : vector<1x1x32xf32> to vector<1x32xf32>
    %1389 = vector.shape_cast %1386 : vector<1x32xf32> to vector<1x1x32xf32>
    tpu.vector_store %arg5[%c0_245, %c7_246, %c0_247], %1389 {strides = array<i32>} : memref<1x16x32xf32, #tpu.memory_space<vmem>>, vector<1x1x32xf32>,
    %1390 = arith.mulf %1283, %1283 : vector<32x32xf32>
    %cst_248 = arith.constant dense<0.000000e+00> : vector<32xf32>
    %1391 = vector.multi_reduction <add>, %1390, %cst_248 [0] : vector<32x32xf32> to vector<32xf32>
    %1392 = vector.shape_cast %1391 : vector<32xf32> to vector<1x32xf32>
    %c0_249 = arith.constant 0 : index
    %c15_250 = arith.constant 15 : index
    %c0_251 = arith.constant 0 : index
    %1393 = vector.load %arg5[%c0_249, %c15_250, %c0_251] : memref<1x16x32xf32, #tpu.memory_space<vmem>>, vector<1x1x32xf32>
    %1394 = vector.shape_cast %1393 : vector<1x1x32xf32> to vector<1x32xf32>
    %1395 = vector.shape_cast %1392 : vector<1x32xf32> to vector<1x1x32xf32>
    tpu.vector_store %arg5[%c0_249, %c15_250, %c0_251], %1395 {strides = array<i32>} : memref<1x16x32xf32, #tpu.memory_space<vmem>>, vector<1x1x32xf32>,
    return
  }
  func.func @transform_0(%arg0: i32) -> (i32, i32, i32, i32) {
    %c0_i32 = arith.constant 0 : i32
    %c0_i32_0 = arith.constant 0 : i32
    %c0_i32_1 = arith.constant 0 : i32
    %c0_i32_2 = arith.constant 0 : i32
    return %arg0, %c0_i32, %c0_i32_0, %c0_i32_1 : i32, i32, i32, i32
  }
  func.func @transform_1(%arg0: i32) -> i32 {
    %c0_i32 = arith.constant 0 : i32
    %c0_i32_0 = arith.constant 0 : i32
    return %c0_i32 : i32
  }
  func.func @transform_2(%arg0: i32) -> i32 {
    %c0_i32 = arith.constant 0 : i32
    %c0_i32_0 = arith.constant 0 : i32
    return %c0_i32 : i32
  }
  func.func @transform_3(%arg0: i32) -> (i32, i32, i32, i32) {
    %c0_i32 = arith.constant 0 : i32
    %c0_i32_0 = arith.constant 0 : i32
    %c0_i32_1 = arith.constant 0 : i32
    %c0_i32_2 = arith.constant 0 : i32
    return %arg0, %c0_i32, %c0_i32_0, %c0_i32_1 : i32, i32, i32, i32
  }
  func.func @transform_4(%arg0: i32) -> (i32, i32, i32) {
    %c0_i32 = arith.constant 0 : i32
    %c0_i32_0 = arith.constant 0 : i32
    %c0_i32_1 = arith.constant 0 : i32
    return %arg0, %c0_i32, %c0_i32_0 : i32, i32, i32
  }
}

</mosaic_0001>

<bundles_post_ra>
// kernel: tpu_custom_call.1
= control target key start
LH: loop header
LB: loop body
LE: loop exit
PB: predicated region body
PF: predicated region fallthrough
CT: control target
= control target key end

     0   :  { %10 = vsyncpa [#allocation4], 0  ;;  %s14403_s0 = inlined_call_operand.hbm [shape: f32[2,4,16,16], index: 0, kind: input, shape index: {}]   ;;  %s14404_s1 = inlined_call_operand.hbm [shape: f32[288], index: 1, kind: input, shape index: {}]   ;;  %s14405_s2 = inlined_call_operand.vmem [shape: f32[8], index: 2, kind: input, shape index: {}]   ;;  %s14406_s3 = inlined_call_operand.hbm [shape: f32[2,8,32,32], index: 3, kind: output, shape index: {0}]   ;;  %s14407_s4 = inlined_call_operand.hbm [shape: f32[2,16,32], index: 4, kind: output, shape index: {1}]  }
   0x1   :  { %12 = vsyncpa [#allocation4 + $0x1], 0 }
   0x2   :  { %13 = vsyncpa [#allocation6], 0 }
   0x3   :  { %14 = vsyncpa [#allocation7], 0 }
   0x4   :  { %15 = vsyncpa [#allocation5], 0 }
   0x5   :  { %17 = vsyncpa [#allocation5 + $0x1], 0 }
   0x6   :  { %18 = vsyncpa [#allocation12], 0 }
   0x7   :  { %20 = vsyncpa [#allocation12 + $0x1], 0  ;;  %s8426_s15 = smov 0   ;;  %s8428_s16 = smov 0  }
   0x8   :  { %s8430_s17 = smov 0   ;;  %s8432_s18 = smov 0  }
   0x9 LB: > { %s8447_s19 = sadd.s32 4294967295, %s8385_s18   ;;  %s7617_s20 = sadd.s32 4294967294, %s8385_s18   ;;  %s8385_s18 = sphi %s8432_s18, %s15125_s18   ;;  %s8381_s17 = sphi %s8430_s17, %s15124_s17   ;;  %s8377_s16 = sphi %s8428_s16, %s15123_s16   ;;  %s8373_s15 = sphi %s8426_s15, %s15122_s15  }
   0xa   : > { %s8451_s21 = sadd.s32 1, %s8385_s18   ;;  %s33_s22 = sadd.s32 1, %s8381_s17 }
   0xb   : > { %s30_s23 = ssub.s32 %s8385_s18, %s8451_s21  ;;  %p40_p0 = scmp.ne.s32.totalorder %s8381_s17, %s8377_s16 }
   0xc   : > { %p31_p1 = scmp.eq.s32.totalorder %s30_s23, 0  ;;  %p41_p2 = scmp.eq.s32.totalorder %s8385_s18, 0 }
   0xd   : > { %p46_p3 = scmp.ne.s32.totalorder %s8377_s16, %s8373_s15  ;;  %p14408_p4 = scmp.eq.s32.totalorder %s8447_s19, 0 }
   0xe   : > { %s8463_s24 = scalar_select %p31_p1, %s8381_s17, %s33_s22  }
   0xf   : > { %p8465_p5 = por %p41_p2, %p40_p0  ;;  %p8471_p6 = por %p14408_p4, %p46_p3 }
  0x10   : > { %p112_p7 = scmp.eq.s32.totalorder %s8447_s19, 1  ;;  %p118_p8 = scmp.eq.s32.totalorder %s7617_s20, 1 }
  0x11   : > { %s14557_s26 = scalar_select %p8471_p6, 1, 0 }
  0x12   : > { %p7618_p9 = scmp.ge.s32.totalorder %s8385_s18, 1  ;;  %p151_p10 = scmp.lt.s32.totalorder %s8385_s18, 3 }
  0x13   : > { %p8478_p11 = por %p112_p7, %p40_p0  ;;  %p8482_p12 = por %p118_p8, %p46_p3 }
  0x14   : > { %p8486_p13 = pnand %p7618_p9, %p151_p10  ;;  %p8178_p4 = scmp.lt.s32.totalorder %s8385_s18, 2 }
  0x15   : > { %s14558_s27 = scalar_select %p8478_p11, 1, 0 }
  0x16   : > { %s14559_s28 = scalar_select %p8482_p12, 1, 0 }
  0x17   : > { %s14560_s29 = scalar_select %p8486_p13, 1, 0 }
  0x18   : > { %p8158_p2 = pneg %p8486_p13  ;;  %s173_s6 = sshll.u32 %s14405_s2, 4  ;;  %s174_s6 = int_to_ptr.vmem [resolvable:$true] %s173_s6 }
  0x19   : > { %p14561_p0 = scmp.eq.s32.totalorder %s8447_s19, 0  ;;  %p8505_p3 = pnand %p8178_p4, %p8465_p5 }
  0x1a   : > { %s184_s9 = sand.u32 1, %s8381_s17   ;;  %s8387_s10 = smov [#allocation8]  }
  0x1b   : > { %p8499_p7 = pnand %p8158_p2, %p14561_p0  ;;  %s8240_s13 = scalar_lea.vmem %s174_s6, 16 }
  0x1c   : > { %p8241_p8 = scmp.ne.s32.totalorder %s174_s6, %s8240_s13  ;;  %p8248_p0 = scmp.lt.s32.totalorder %s174_s6, %s174_s6 }
  0x1d   : > { %8161 = dma.hbm_to_smem (!%p8499_p7), %s14404_s1, 48, %s8387_s10, [#allocation6]  }
  0x1e   : > { %p8242_p9 = pneg %p8499_p7  ;;  %p8249_p1 = scmp.lt.s32.totalorder %s8240_s13, %s8240_s13 }
  0x20   : > { %p8243_p10 = pnand %p8242_p9, %p8241_p8  ;;  %p8250_p4 = por %p8249_p1, %p8248_p0 }
  0x22   : > { %p8244_p2 = pneg %p8243_p10 }
  0x24   : > { %p8251_p5 = pnand %p8250_p4, %p8244_p2 }
  0x26   : > { %8254 = shalt.err (!%p8251_p5)
}
  0x27   : > { %s8388_s14 = smov [#allocation9]   ;;  %s7622_s20 = sshll.u32 %s184_s9, 6 }
  0x28   : > { %8164 = dma.vmem_to_smem (!%p8499_p7), %s174_s6, 16, %s8388_s14, [#allocation7]  }
  0x29   : > { %s8013_s22 = sshll.u32 %s8385_s18, 10  ;;  %s188_s5 = scalar_lea.vmem [#allocation3], %s7622_s20 }
  0x2a   : > { %s8523_s30 = scalar_lea.hbm %s14403_s0, %s8013_s22  ;;  %s195_s10 = sshll.u32 %s188_s5, 4  ;;  %s8525_s10 = int_to_ptr.vmem [resolvable:$true] %s195_s10 }
  0x2b   : > { %s8527_s11 = scalar_lea.sflag [#allocation4], %s184_s9  ;;  %s8255_s7 = scalar_lea.hbm %s8523_s30, 1024 }
  0x2c   : > { %p8256_p1 = scmp.ne.s32.totalorder %s8523_s30, %s8255_s7  ;;  %p8257_p7 = pneg %p8505_p3 }
  0x2d   : > { %s8260_s13 = scalar_lea.hbm %s14403_s0, 2048  ;;  %p8261_p10 = scmp.lt.s32.totalorder %s8523_s30, %s14403_s0 }
  0x2e   : > { %p8258_p8 = pnand %p8257_p7, %p8256_p1  ;;  %p8262_p2 = scmp.lt.s32.totalorder %s8260_s13, %s8255_s7 }
  0x30   : > { %p8259_p9 = pneg %p8258_p8  ;;  %p8263_p0 = por %p8262_p2, %p8261_p10 }
  0x32   : > { %p8264_p4 = pnand %p8263_p0, %p8259_p9 }
  0x34   : > { %8267 = shalt.err (!%p8264_p4)
}
  0x35   : > { %s8268_s9 = scalar_lea.vmem %s8525_s10, 1024  ;;  %s8389_s20 = smov [#allocation3]  }
  0x36   : > { %p8269_p5 = scmp.ne.s32.totalorder %s8525_s10, %s8268_s9  ;;  %s8273_s23 = sshll.u32 %s8389_s20, 4  ;;  %s8274_s23 = int_to_ptr.vmem [resolvable:$false] %s8273_s23 }
  0x37   : > { %s8275_s25 = scalar_lea.vmem %s8274_s23, 2048  ;;  %p8276_p8 = scmp.lt.s32.totalorder %s8525_s10, %s8274_s23 }
  0x38   : > { %p8271_p12 = pnand %p8269_p5, %p8257_p7  ;;  %p8277_p11 = scmp.lt.s32.totalorder %s8275_s25, %s8268_s9 }
  0x3a   : > { %p8272_p1 = pneg %p8271_p12  ;;  %p8278_p6 = por %p8277_p11, %p8276_p8 }
  0x3c   : > { %p8279_p13 = pnand %p8278_p6, %p8272_p1 }
  0x3e   : > { %8282 = shalt.err (!%p8279_p13)
}
  0x3f   : > { %s8390_s5 = smov 128   ;;  %s8391_s7 = smov 8  }
  0x40   : > { %8168 = dma.hbm_to_vmem [thread:$0]  (!%p8505_p3), %s8523_s30, 1024, %s8525_s10, %s8527_s11, %s8390_s5, %s8390_s5, %s8391_s7  }
  0x41   : > { %p14564_p7 = scmp.ne.s32.totalorder %s14560_s29, 0 }
  0x43   : > { %207 = sbr.rel (%p14564_p7) target bundleno = 2315 (0x90b), region = 32 }
  0x48   : > { %s8551_s6 = sand.u32 1, %s8377_s16   ;;  %p14565_p6 = scmp.ne.s32.totalorder %s14557_s26, 0 }
  0x49   : > { %s7626_s12 = sshll.u32 %s8551_s6, 6  ;;  %s210_s13 = scalar_lea.sflag [#allocation4], %s8551_s6 }
  0x4a   : > { %s8555_s14 = scalar_lea.vmem [#allocation3], %s7626_s12 }
  0x4b   : > { %8352 = dma.done.wait (%p14565_p6), %s210_s13, 1024  }
  0x4c   : > { %8354 = vsyncadd (%p14565_p6), %s210_s13, 4294966272  ;;  %p14566_p11 = scmp.eq.s32.totalorder %s8447_s19, 0 }
  0x4e   : > { %8356 = dma.done.wait (%p14566_p11), [#allocation6], 48   ;;  %p14567_p12 = pmov %p14566_p11 }
  0x4f   : > { %p14568_p13 = pmov %p14566_p11 }
  0x50   : > { %8358 = vsyncadd (%p14567_p12), [#allocation6], 4294967248 }
  0x51   : > { %8360 = dma.done.wait (%p14568_p13), [#allocation7], 16   ;;  %p14569_p3 = pmov %p14566_p11 }
  0x53   : > { %8362 = vsyncadd (%p14569_p3), [#allocation7], 4294967280 }
  0x54   : > { %226 = sfence }
  0x55   : > { %v305_v0 = vld [vmem:[%s8555_s14 + $0x8] sm:$0xff]  ;;  %v304_v1 = vld [vmem:[%s8555_s14] sm:$0xff]  ;;  %v252_v2 = vlaneseq  ;;  %v7648_v5 = vld [vmem:[%s8555_s14 + $0x18] sm:$0xff]  ;;  %vm306_vm0 = vcmask 130048   ;;  %v8392_v14 = vmov 0.0   ;;  %v8393_v26 = vmov 1.0  }
  0x56   : > { %8064 = vmatprep.subr.mxu0 %v305_v0  ;;  %v7647_v19 = vld [vmem:[%s8555_s14 + $0x10] sm:$0xff]  ;;  %v7660_v22 = vld [vmem:[%s8555_s14 + $0x28] sm:$0xff]  ;;  %v7659_v23 = vld [vmem:[%s8555_s14 + $0x20] sm:$0xff]  ;;  %vm282_vm7 = vcmask 277504   ;;  %vm287_vm8 = vcmask 271360   ;;  %s8394_s26 = smov 1  }
  0x57   : > { %8065 = vmatpush3.msra.mxu0 %v305_v0  ;;  %v253_v3 = vshrl.u32 %v252_v2, 7  ;;  %v258_v4 = vand.u32 127, %v252_v2  ;;  %v7672_v24 = vld [vmem:[%s8555_s14 + $0x38] sm:$0xff]  ;;  %v7671_v25 = vld [vmem:[%s8555_s14 + $0x30] sm:$0xff]  ;;  %284 = vst.msk [vmem:[#allocation2 + $0x8] sm:$0xff] %vm282_vm7, %v8392_v14  ;;  %285 = vst.msk [vmem:[#allocation2 + $0x10] sm:$0xff] %vm282_vm7, %v8392_v14 }
  0x58   : > { %8066 = vmatprep.subr.mxu0 %v304_v1  ;;  %283 = vst.msk [vmem:[#allocation2] sm:$0xff] %vm282_vm7, %v8392_v14  ;;  %286 = vst.msk [vmem:[#allocation2 + $0x18] sm:$0xff] %vm282_vm7, %v8392_v14  ;;  %vm517_vm9 = vcmask 269320   ;;  %s7721_s29 = sld [smem:[#allocation8 + $0x4]]  ;;  %s8395_s20 = smov 127   ;;  %vm7156_vm10 = vcmask 261120  }
  0x59   : > { %8067 = vmatpush3.msra.mxu0 %v304_v1  ;;  %v259_v6 = vshra.s32 %v253_v3, 1  ;;  %v254_v7 = vadd.s32 8, %v253_v3  ;;  %v275_v8 = vshra.s32 %v258_v4, 1  ;;  %v255_v9 = vadd.s32 16, %v253_v3  ;;  %289 = vst.msk [vmem:[#allocation2 + $0x28] sm:$0xff] %vm282_vm7, %v8392_v14  ;;  %290 = vst.msk [vmem:[#allocation2 + $0x30] sm:$0xff] %vm282_vm7, %v8392_v14 }
  0x5a   : > { %v256_v10 = vadd.s32 24, %v253_v3  ;;  %8084 = vmatprep.subr.mxu0 %v7648_v5  ;;  %291 = vst.msk [vmem:[#allocation2 + $0x38] sm:$0xff] %vm282_vm7, %v8392_v14  ;;  %292 = vst.msk [vmem:[#allocation2 + $0x40] sm:$0xff] %vm282_vm7, %v8392_v14  ;;  %s7722_s8 = sld [smem:[#allocation8 + $0x28]]  ;;  %vm7174_vm11 = vcmask 253952   ;;  %p15119_p10 = scmp.ne.s32.totalorder %s14558_s27, 0 }
  0x5b   : > { %vm263_vm1 = vcmp.eq.s32.totalorder %v259_v6, %v258_v4  ;;  %v260_v11 = vshra.s32 %v254_v7, 1  ;;  %vm8572_vm2 = vcmp.eq.s32.totalorder %v253_v3, %v275_v8  ;;  %vm8576_vm3 = vcmp.eq.s32.totalorder %v254_v7, %v275_v8  ;;  %294 = vst.msk [vmem:[#allocation2 + $0x50] sm:$0xff] %vm282_vm7, %v8392_v14  ;;  %295 = vst.msk [vmem:[#allocation2 + $0x58] sm:$0xff] %vm282_vm7, %v8392_v14  ;;  %s7697_s30 = sld [smem:[#allocation8 + $0x1]] }
  0x5c   : > { %v7631_v15 = vsel %vm263_vm1, 1.0, %v8392_v14  ;;  %v261_v16 = vshra.s32 %v255_v9, 1  ;;  %v262_v17 = vshra.s32 %v256_v10, 1  ;;  %8074 = vmatprep.subr.msk.mxu1 %vm8576_vm3, %v8393_v26  ;;  %296 = vst.msk [vmem:[#allocation2 + $0x60] sm:$0xff] %vm282_vm7, %v8392_v14  ;;  %297 = vst.msk [vmem:[#allocation2 + $0x68] sm:$0xff] %vm282_vm7, %v8392_v14  ;;  %s7723_s10 = sld [smem:[#allocation8 + $0x4c]] }
  0x5d   : > { %8068 = vmatprep.mubr.msk.f32.mxu0 %vm306_vm0, %v7631_v15  ;;  %vm264_vm4 = vcmp.eq.s32.totalorder %v260_v11, %v258_v4  ;;  %8075 = vmatpush3.msk.msra.mxu1 %vm8576_vm3, %v8393_v26  ;;  %299 = vst.msk [vmem:[#allocation2 + $0x78] sm:$0xff] %vm282_vm7, %v8392_v14  ;;  %300 = vst.msk [vmem:[#allocation2 + $0x80] sm:$0xff] %vm282_vm7, %v8392_v14  ;;  %s7698_s11 = sld [smem:[#allocation8 + $0x25]] }
  0x5e   : > { %v7632_v18 = vsel %vm264_vm4, 1.0, %v8392_v14  ;;  %vm265_vm5 = vcmp.eq.s32.totalorder %v261_v16, %v258_v4  ;;  %vm266_vm6 = vcmp.eq.s32.totalorder %v262_v17, %v258_v4  ;;  %8076 = vmatprep.subr.msk.mxu1 %vm8572_vm2, %v8393_v26  ;;  %301 = vst.msk [vmem:[#allocation2 + $0x88] sm:$0xff] %vm282_vm7, %v8392_v14  ;;  %302 = vst.msk [vmem:[#allocation2 + $0x90] sm:$0xff] %vm282_vm7, %v8392_v14  ;;  %v8708_v62 = vstv %s7721_s29  ;;  %s7724_s22 = sld [smem:[#allocation8 + $0x70]] }
  0x5f   : > { %8069 = vmatmul.mubr.msk.f32.vlgmr.msra.gmra.mxu0 %vm306_vm0, %v7632_v18  ;;  %v7633_v20 = vsel %vm265_vm5, 1.0, %v8392_v14  ;;  %v7634_v21 = vsel %vm266_vm6, 1.0, %v8392_v14  ;;  %8077 = vmatpush3.msk.msra.mxu1 %vm8572_vm2, %v8393_v26  ;;  %288 = vst.msk [vmem:[#allocation2 + $0x20] sm:$0x3] %vm287_vm8, %v8392_v14  ;;  %293 = vst.msk [vmem:[#allocation2 + $0x48] sm:$0x3] %vm287_vm8, %v8392_v14 }
  0x60   : > { %8071 = vmatprep.mubr.msk.f32.mxu0 %vm306_vm0, %v7633_v20  ;;  %8085 = vmatpush3.msra.mxu0 %v7648_v5  ;;  %298 = vst.msk [vmem:[#allocation2 + $0x70] sm:$0x3] %vm287_vm8, %v8392_v14  ;;  %303 = vst.msk [vmem:[#allocation2 + $0x98] sm:$0x3] %vm287_vm8, %v8392_v14  ;;  %v8715_v2 = vstv %s7722_s8  ;;  %s7699_s9 = sld [smem:[#allocation8 + $0x49]] }
  0x61   : > { %8086 = vmatprep.subr.mxu0 %v7647_v19  ;;  %8094 = vmatprep.subr.msk.mxu1 %vm8576_vm3, %v8393_v26  ;;  %14574 = vst [vmem:[#allocation18_spill] sm:$0xff] %v8708_v62  ;;  %14575 = vst [vmem:[#allocation19_spill] sm:$0xff] %v8715_v2  ;;  %v8717_v3 = vstv %s7697_s30  ;;  %s7725_s23 = sld [smem:[#allocation8 + $0x94]] }
  0x62   : > { %8087 = vmatpush3.msra.mxu0 %v7647_v19  ;;  %14576 = vst [vmem:[#allocation20_spill] sm:$0xff] %v8717_v3  ;;  %v8728_v9 = vstv %s7723_s10  ;;  %s7700_s25 = sld [smem:[#allocation8 + $0x6d]] }
  0x63   : > { %8072 = vmatmul.mubr.msk.f32.gmra.mxu0 %vm306_vm0, %v7634_v21  ;;  %8104 = vmatprep.subr.mxu0 %v7660_v22  ;;  %14577 = vst [vmem:[#allocation21_spill] sm:$0xff] %v8728_v9  ;;  %v8730_v10 = vstv %s7698_s11  ;;  %s7726_s5 = sld [smem:[#allocation8 + $0xb8]] }
  0x64   : > { %8088 = vmatprep.mubr.msk.f32.mxu0 %vm306_vm0, %v7631_v15  ;;  %14578 = vst [vmem:[#allocation22_spill] sm:$0xff] %v8730_v10  ;;  %s7701_s7 = sld [smem:[#allocation8 + $0x91]] }
  0x65   : > { %s7727_s12 = sld [smem:[#allocation8 + $0xdc]] }
  0x66   : > { %v8742_v16 = vstv %s7699_s9  ;;  %s7702_s13 = sld [smem:[#allocation8 + $0xb5]] }
  0x67   : > { %8089 = vmatmul.mubr.msk.f32.vlgmr.msra.gmra.mxu0 %vm306_vm0, %v7632_v18  ;;  %14580 = vst [vmem:[#allocation24_spill] sm:$0xff] %v8742_v16  ;;  %s7728_s14 = sld [smem:[#allocation8 + $0x100]] }
  0x68   : > { %8091 = vmatprep.mubr.msk.f32.mxu0 %vm306_vm0, %v7633_v20  ;;  %8105 = vmatpush3.msra.mxu0 %v7660_v22  ;;  %v8754_v22 = vstv %s7700_s25  ;;  %s7729_s29 = sld [smem:[#allocation8 + $0x5]]  ;;  %s8396_s25 = smov 126  }
  0x69   : > { %8106 = vmatprep.subr.mxu0 %v7659_v23  ;;  %14582 = vst [vmem:[#allocation26_spill] sm:$0xff] %v8754_v22  ;;  %s7704_s8 = sld [smem:[#allocation8 + $0xfd]] }
  0x6a   : > { %8107 = vmatpush3.msra.mxu0 %v7659_v23  ;;  %s7730_s30 = sld [smem:[#allocation8 + $0x29]] }
  0x6b   : > { %8092 = vmatmul.mubr.msk.f32.gmra.mxu0 %vm306_vm0, %v7634_v21  ;;  %8124 = vmatprep.subr.mxu0 %v7672_v24  ;;  %s7705_s10 = sld [smem:[#allocation8 + $0x2]] }
  0x6c   : > { %8108 = vmatprep.mubr.msk.f32.mxu0 %vm306_vm0, %v7631_v15  ;;  %s7731_s11 = sld [smem:[#allocation8 + $0x4d]] }
  0x6d   : > { %s7732_s9 = sld [smem:[#allocation8 + $0x71]] }
  0x6f   : > { %8109 = vmatmul.mubr.msk.f32.vlgmr.msra.gmra.mxu0 %vm306_vm0, %v7632_v18 }
  0x70   : > { %8111 = vmatprep.mubr.msk.f32.mxu0 %vm306_vm0, %v7633_v20  ;;  %8125 = vmatpush3.msra.mxu0 %v7672_v24 }
  0x71   : > { %8126 = vmatprep.subr.mxu0 %v7671_v25 }
  0x72   : > { %8127 = vmatpush3.msra.mxu0 %v7671_v25 }
  0x73   : > { %8112 = vmatmul.mubr.msk.f32.gmra.mxu0 %vm306_vm0, %v7634_v21 }
  0x74   : > { %8128 = vmatprep.mubr.msk.f32.mxu0 %vm306_vm0, %v7631_v15  ;;  %v8740_v15 = vstv %s7724_s22  ;;  %s7706_s22 = sld [smem:[#allocation8 + $0x26]] }
  0x75   : > { %14579 = vst [vmem:[#allocation23_spill] sm:$0xff] %v8740_v15 }
  0x77   : > { %8129 = vmatmul.mubr.msk.f32.vlgmr.msra.gmra.mxu0 %vm306_vm0, %v7632_v18 }
  0x78   : > { %8131 = vmatprep.mubr.msk.f32.mxu0 %vm306_vm0, %v7633_v20 }
  0x7b   : > { %8132 = vmatmul.mubr.msk.f32.gmra.mxu0 %vm306_vm0, %v7634_v21  ;;  %v8752_v21 = vstv %s7725_s23  ;;  %s7707_s23 = sld [smem:[#allocation8 + $0x4a]] }
  0x7c   : > { %14581 = vst [vmem:[#allocation25_spill] sm:$0xff] %v8752_v21 }
 0x11f   : > { %v8070_v27 = vpop.f32.mrf.mxu0 }
 0x121   : > { %v385_v28 = vpop.f32.mrf.mxu0 }
 0x122   : > { %8078 = vmatprep.mubr.msk.f32.mxu1 %vm306_vm0, %v385_v28  ;;  %v8766_v28 = vstv %s7701_s7  ;;  %s7708_s7 = sld [smem:[#allocation8 + $0x6e]] }
 0x123   : > { %v8073_v29 = vpop.f32.mrf.mxu0  ;;  %8079 = vmatmul.mubr.msk.f32.vlgmr.msra.gmra.mxu1 %vm306_vm0, %v8070_v27  ;;  %v8764_v27 = vstv %s7726_s5  ;;  %s7733_s5 = sld [smem:[#allocation8 + $0x95]] }
 0x124   : > { %8095 = vmatpush3.msk.msra.mxu1 %vm8576_vm3, %v8393_v26  ;;  %14583 = vst [vmem:[#allocation27_spill] sm:$0xff] %v8764_v27 }
 0x125   : > { %v395_v30 = vpop.f32.mrf.mxu0  ;;  %8096 = vmatprep.subr.msk.mxu1 %vm8572_vm2, %v8393_v26 }
 0x126   : > { %8081 = vmatprep.mubr.msk.f32.mxu1 %vm306_vm0, %v395_v30  ;;  %8097 = vmatpush3.msk.msra.mxu1 %vm8572_vm2, %v8393_v26 }
 0x127   : > { %8082 = vmatmul.mubr.msk.f32.gmra.mxu1 %vm306_vm0, %v8073_v29  ;;  %v8090_v31 = vpop.f32.mrf.mxu0  ;;  %8114 = vmatprep.subr.msk.mxu1 %vm8576_vm3, %v8393_v26 }
 0x129   : > { %v591_v32 = vpop.f32.mrf.mxu0 }
 0x12a   : > { %8098 = vmatprep.mubr.msk.f32.mxu1 %vm306_vm0, %v591_v32 }
 0x12b   : > { %v8093_v33 = vpop.f32.mrf.mxu0  ;;  %8099 = vmatmul.mubr.msk.f32.vlgmr.msra.gmra.mxu1 %vm306_vm0, %v8090_v31 }
 0x12c   : > { %8115 = vmatpush3.msk.msra.mxu1 %vm8576_vm3, %v8393_v26 }
 0x12d   : > { %v601_v34 = vpop.f32.mrf.mxu0  ;;  %8116 = vmatprep.subr.msk.mxu1 %vm8572_vm2, %v8393_v26 }
 0x12e   : > { %8101 = vmatprep.mubr.msk.f32.mxu1 %vm306_vm0, %v601_v34  ;;  %8117 = vmatpush3.msk.msra.mxu1 %vm8572_vm2, %v8393_v26  ;;  %v8778_v34 = vstv %s7702_s13  ;;  %s7709_s13 = sld [smem:[#allocation8 + $0x92]] }
 0x12f   : > { %8102 = vmatmul.mubr.msk.f32.gmra.mxu1 %vm306_vm0, %v8093_v33  ;;  %v8110_v35 = vpop.f32.mrf.mxu0  ;;  %8134 = vmatprep.subr.msk.mxu1 %vm8576_vm3, %v8393_v26  ;;  %v8776_v33 = vstv %s7727_s12  ;;  %s7734_s12 = sld [smem:[#allocation8 + $0xb9]] }
 0x130   : > { %14584 = vst [vmem:[#allocation28_spill] sm:$0xff] %v8776_v33 }
 0x131   : > { %v797_v36 = vpop.f32.mrf.mxu0 }
 0x132   : > { %8118 = vmatprep.mubr.msk.f32.mxu1 %vm306_vm0, %v797_v36 }
 0x133   : > { %v8113_v37 = vpop.f32.mrf.mxu0  ;;  %8119 = vmatmul.mubr.msk.f32.vlgmr.msra.gmra.mxu1 %vm306_vm0, %v8110_v35 }
 0x134   : > { %8135 = vmatpush3.msk.msra.mxu1 %vm8576_vm3, %v8393_v26 }
 0x135   : > { %v807_v38 = vpop.f32.mrf.mxu0  ;;  %8136 = vmatprep.subr.msk.mxu1 %vm8572_vm2, %v8393_v26 }
 0x136   : > { %8121 = vmatprep.mubr.msk.f32.mxu1 %vm306_vm0, %v807_v38  ;;  %8137 = vmatpush3.msk.msra.mxu1 %vm8572_vm2, %v8393_v26 }
 0x137   : > { %8122 = vmatmul.mubr.msk.f32.gmra.mxu1 %vm306_vm0, %v8113_v37  ;;  %v8130_v39 = vpop.f32.mrf.mxu0 }
 0x139   : > { %v1003_v40 = vpop.f32.mrf.mxu0 }
 0x13a   : > { %8138 = vmatprep.mubr.msk.f32.mxu1 %vm306_vm0, %v1003_v40 }
 0x13b   : > { %v8133_v41 = vpop.f32.mrf.mxu0  ;;  %8139 = vmatmul.mubr.msk.f32.vlgmr.msra.gmra.mxu1 %vm306_vm0, %v8130_v39  ;;  %v8788_v39 = vstv %s7728_s14  ;;  %s7735_s14 = sld [smem:[#allocation8 + $0xdd]] }
 0x13c   : > { %14585 = vst [vmem:[#allocation29_spill] sm:$0xff] %v8788_v39 }
 0x13d   : > { %v1013_v42 = vpop.f32.mrf.mxu0 }
 0x13e   : > { %8141 = vmatprep.mubr.msk.f32.mxu1 %vm306_vm0, %v1013_v42 }
 0x13f   : > { %8142 = vmatmul.mubr.msk.f32.gmra.mxu1 %vm306_vm0, %v8133_v41 }
 0x1e3   : > { %v8080_v43 = vpop.f32.mrf.mxu1 }
 0x1e4   : > { %507 = vrot.lane.b32.xlu0 %v8080_v43, %s8394_s26  ;;  %v8798_v43 = vstv %s7729_s29  ;;  %s7736_s29 = sld [smem:[#allocation8 + $0x101]] }
 0x1e5   : > { %v482_v44 = vpop.f32.mrf.mxu1  ;;  %14587 = vst [vmem:[#allocation31_spill] sm:$0xff] %v8798_v43 }
 0x1e7   : > { %v8083_v45 = vpop.f32.mrf.mxu1 }
 0x1e8   : > { %505 = vrot.lane.b32.xlu0 %v482_v44, %s8394_s26  ;;  %511 = vrot.lane.b32.xlu1 %v8083_v45, %s8394_s26  ;;  %v8800_v44 = vstv %s7704_s8  ;;  %s7711_s8 = sld [smem:[#allocation8 + $0xda]] }
 0x1e9   : > { %v492_v46 = vpop.f32.mrf.mxu1  ;;  %14588 = vst [vmem:[#allocation32_spill] sm:$0xff] %v8800_v44 }
 0x1eb   : > { %v8100_v47 = vpop.f32.mrf.mxu1 }
 0x1ec   : > { %509 = vrot.lane.b32.xlu1 %v492_v46, %s8394_s26 }
 0x1ed   : > { %v688_v48 = vpop.f32.mrf.mxu1 }
 0x1ee   : > { %711 = vrot.lane.b32.xlu0 %v688_v48, %s8394_s26  ;;  %v8810_v48 = vstv %s7705_s10  ;;  %s7745_s10 = sld [smem:[#allocation8 + $0x7]] }
 0x1ef   : > { %v8103_v49 = vpop.f32.mrf.mxu1  ;;  %14590 = vst [vmem:[#allocation34_spill] sm:$0xff] %v8810_v48 }
 0x1f0   : > { %713 = vrot.lane.b32.xlu1 %v8100_v47, %s8394_s26  ;;  %v8808_v47 = vstv %s7730_s30  ;;  %s7712_s30 = sld [smem:[#allocation8 + $0xfe]] }
 0x1f1   : > { %v698_v50 = vpop.f32.mrf.mxu1  ;;  %14589 = vst [vmem:[#allocation33_spill] sm:$0xff] %v8808_v47 }
 0x1f2   : > { %715 = vrot.lane.b32.xlu0 %v698_v50, %s8394_s26 }
 0x1f3   : > { %v8120_v51 = vpop.f32.mrf.mxu1 }
 0x1f4   : > { %717 = vrot.lane.b32.xlu1 %v8103_v49, %s8394_s26 }
 0x1f5   : > { %v894_v52 = vpop.f32.mrf.mxu1 }
 0x1f6   : > { %917 = vrot.lane.b32.xlu0 %v894_v52, %s8394_s26  ;;  %v8820_v52 = vstv %s7706_s22  ;;  %s7747_s22 = sld [smem:[#allocation8 + $0x4f]] }
 0x1f7   : > { %v8123_v53 = vpop.f32.mrf.mxu1  ;;  %14592 = vst [vmem:[#allocation36_spill] sm:$0xff] %v8820_v52 }
 0x1f8   : > { %919 = vrot.lane.b32.xlu1 %v8120_v51, %s8394_s26  ;;  %v8818_v51 = vstv %s7731_s11  ;;  %s7746_s11 = sld [smem:[#allocation8 + $0x2b]] }
 0x1f9   : > { %v904_v54 = vpop.f32.mrf.mxu1  ;;  %14591 = vst [vmem:[#allocation35_spill] sm:$0xff] %v8818_v51 }
 0x1fa   : > { %921 = vrot.lane.b32.xlu0 %v904_v54, %s8394_s26 }
 0x1fb   : > { %v8140_v55 = vpop.f32.mrf.mxu1 }
 0x1fc   : > { %923 = vrot.lane.b32.xlu1 %v8123_v53, %s8394_s26 }
 0x1fd   : > { %v1100_v56 = vpop.f32.mrf.mxu1 }
 0x1fe   : > { %1123 = vrot.lane.b32.xlu0 %v1100_v56, %s8394_s26  ;;  %v8830_v56 = vstv %s7707_s23  ;;  %s1160_s23 = sld [smem:[#allocation8]] }
 0x1ff   : > { %v8143_v57 = vpop.f32.mrf.mxu1  ;;  %14594 = vst [vmem:[#allocation38_spill] sm:$0xff] %v8830_v56 }
 0x200   : > { %1125 = vrot.lane.b32.xlu1 %v8140_v55, %s8394_s26  ;;  %v8828_v55 = vstv %s7732_s9  ;;  %s7748_s9 = sld [smem:[#allocation8 + $0x73]] }
 0x201   : > { %v1110_v58 = vpop.f32.mrf.mxu1  ;;  %14593 = vst [vmem:[#allocation37_spill] sm:$0xff] %v8828_v55 }
 0x202   : > { %1127 = vrot.lane.b32.xlu0 %v1110_v58, %s8394_s26 }
 0x204   : > { %1129 = vrot.lane.b32.xlu1 %v8143_v57, %s8394_s26  ;;  %s7703_s26 = sld [smem:[#allocation8 + $0xd9]] }
 0x20a   : > { %v8790_v40 = vstv %s7703_s26  ;;  %s7710_s26 = sld [smem:[#allocation8 + $0xb6]] }
 0x20b   : > { %14586 = vst [vmem:[#allocation30_spill] sm:$0xff] %v8790_v40 }
 0x256   : > { %v508_v59 = vpop.permute.xlu0 %507 }
 0x257   : > { %519 = vst.msk [vmem:[#allocation2 + $0x9] sm:$0xff] %vm517_vm9, %v508_v59  ;;  %v8838_v59 = vstv %s7733_s5  ;;  %s9020_s5 = sld [smem:[#allocation9]] }
 0x258   : > { %14595 = vst [vmem:[#allocation39_spill] sm:$0xff] %v8838_v59 }
 0x25a   : > { %v506_v60 = vpop.permute.xlu0 %505  ;;  %v512_v61 = vpop.permute.xlu1 %511 }
 0x25b   : > { %518 = vst.msk [vmem:[#allocation2 + $0x1] sm:$0xff] %vm517_vm9, %v506_v60  ;;  %521 = vst.msk [vmem:[#allocation2 + $0x19] sm:$0xff] %vm517_vm9, %v512_v61  ;;  %v8840_v60 = vstv %s7708_s7  ;;  %s7749_s7 = sld [smem:[#allocation8 + $0x97]] }
 0x25c   : > { %14596 = vst [vmem:[#allocation40_spill] sm:$0xff] %v8840_v60 }
 0x25e   : > { %v8710_v63 = vld [vmem:[#allocation2 + $0x9] sm:$0xff]  ;;  %v510_v0 = vpop.permute.xlu1 %509 }
 0x25f   : > { %520 = vst.msk [vmem:[#allocation2 + $0x11] sm:$0xff] %vm517_vm9, %v510_v0  ;;  %v1743_v1 = vmul.f32 %v8708_v62, %v8710_v63  ;;  %v1769_v7 = vmul.f32 %v8715_v2, %v8710_v63  ;;  %v1795_v13 = vmul.f32 %v8728_v9, %v8710_v63  ;;  %v1821_v19 = vmul.f32 %v8740_v15, %v8710_v63 }
 0x260   : > { %v712_v4 = vpop.permute.xlu0 %711  ;;  %v1847_v25 = vmul.f32 %v8752_v21, %v8710_v63  ;;  %v1873_v31 = vmul.f32 %v8764_v27, %v8710_v63  ;;  %v1899_v37 = vmul.f32 %v8776_v33, %v8710_v63  ;;  %v1925_v41 = vmul.f32 %v8788_v39, %v8710_v63 }
 0x261   : > { %1752 = vrot.lane.b32.xlu1 %v1743_v1, %s8395_s20  ;;  %724 = vst.msk [vmem:[#allocation2 + $0x29] sm:$0xff] %vm517_vm9, %v712_v4  ;;  %v1951_v45 = vmul.f32 %v8798_v43, %v8710_v63  ;;  %v1977_v49 = vmul.f32 %v8808_v47, %v8710_v63  ;;  %v2003_v53 = vmul.f32 %v8818_v51, %v8710_v63  ;;  %v8848_v1 = vstv %s7734_s12  ;;  %s7690_s12 = sld [smem:[#allocation8 + $0x24]] }
 0x262   : > { %v8721_v5 = vld [vmem:[#allocation2] sm:$0xff]  ;;  %v714_v6 = vpop.permute.xlu1 %713  ;;  %v2029_v57 = vmul.f32 %v8828_v55, %v8710_v63  ;;  %v2055_v61 = vmul.f32 %v8838_v59, %v8710_v63  ;;  %14597 = vst [vmem:[#allocation41_spill] sm:$0xff] %v8848_v1  ;;  %v8850_v4 = vstv %s7709_s13  ;;  %s9034_s13 = sld [smem:[#allocation9 + $0x1]] }
 0x263   : > { %v1242_v8 = vmul.f32 %v8717_v3, %v8721_v5  ;;  %725 = vst.msk [vmem:[#allocation2 + $0x31] sm:$0xff] %vm517_vm9, %v714_v6  ;;  %v1268_v14 = vmul.f32 %v8730_v10, %v8721_v5  ;;  %v1294_v20 = vmul.f32 %v8742_v16, %v8721_v5  ;;  %v1320_v26 = vmul.f32 %v8754_v22, %v8721_v5 }
 0x264   : > { %v716_v11 = vpop.permute.xlu0 %715  ;;  %v1346_v32 = vmul.f32 %v8766_v28, %v8721_v5  ;;  %v1372_v38 = vmul.f32 %v8778_v34, %v8721_v5  ;;  %v1398_v42 = vmul.f32 %v8790_v40, %v8721_v5  ;;  %v1424_v46 = vmul.f32 %v8800_v44, %v8721_v5  ;;  %14598 = vst [vmem:[#allocation42_spill] sm:$0xff] %v8850_v4 }
 0x265   : > { %1778 = vrot.lane.b32.xlu1 %v1769_v7, %s8395_s20  ;;  %1250 = vrot.lane.b32.xlu0 %v1242_v8, %s8395_s20  ;;  %726 = vst.msk [vmem:[#allocation2 + $0x39] sm:$0xff] %vm517_vm9, %v716_v11  ;;  %v1450_v50 = vmul.f32 %v8810_v48, %v8721_v5  ;;  %v1476_v54 = vmul.f32 %v8820_v52, %v8721_v5  ;;  %v8858_v8 = vstv %s7735_s14  ;;  %v8860_v11 = vstv %s7710_s26  ;;  %s7750_s14 = sld [smem:[#allocation8 + $0xbb]] }
 0x266   : > { %v718_v12 = vpop.permute.xlu1 %717  ;;  %v1502_v58 = vmul.f32 %v8830_v56, %v8721_v5  ;;  %v1528_v0 = vmul.f32 %v8840_v60, %v8721_v5  ;;  %v2081_v6 = vmul.f32 %v8848_v1, %v8710_v63  ;;  %v1554_v7 = vmul.f32 %v8850_v4, %v8721_v5  ;;  %14599 = vst [vmem:[#allocation43_spill] sm:$0xff] %v8858_v8  ;;  %s7691_s26 = sld [smem:[#allocation8 + $0x48]] }
 0x267   : > { %727 = vst.msk [vmem:[#allocation2 + $0x41] sm:$0xff] %vm517_vm9, %v718_v12  ;;  %14600 = vst [vmem:[#allocation44_spill] sm:$0xff] %v8860_v11  ;;  %v2107_v12 = vmul.f32 %v8858_v8, %v8710_v63 }
 0x268   : > { %v918_v17 = vpop.permute.xlu0 %917 }
 0x269   : > { %1804 = vrot.lane.b32.xlu1 %v1795_v13, %s8395_s20  ;;  %1276 = vrot.lane.b32.xlu0 %v1268_v14, %s8395_s20  ;;  %930 = vst.msk [vmem:[#allocation2 + $0x51] sm:$0xff] %vm517_vm9, %v918_v17  ;;  %v1580_v13 = vmul.f32 %v8860_v11, %v8721_v5  ;;  %v8868_v14 = vstv %s7736_s29  ;;  %v8870_v17 = vstv %s7711_s8  ;;  %s9050_s29 = sld [smem:[#allocation8 + $0xdf]] }
 0x26a   : > { %v920_v18 = vpop.permute.xlu1 %919  ;;  %14601 = vst [vmem:[#allocation45_spill] sm:$0xff] %v8868_v14  ;;  %14602 = vst [vmem:[#allocation46_spill] sm:$0xff] %v8870_v17  ;;  %s9060_s8 = sld [smem:[#allocation8 + $0x3]] }
 0x26b   : > { %931 = vst.msk [vmem:[#allocation2 + $0x59] sm:$0xff] %vm517_vm9, %v920_v18  ;;  %v2133_v18 = vmul.f32 %v8868_v14, %v8710_v63 }
 0x26c   : > { %v922_v23 = vpop.permute.xlu0 %921 }
 0x26d   : > { %1830 = vrot.lane.b32.xlu1 %v1821_v19, %s8395_s20  ;;  %1302 = vrot.lane.b32.xlu0 %v1294_v20, %s8395_s20  ;;  %932 = vst.msk [vmem:[#allocation2 + $0x61] sm:$0xff] %vm517_vm9, %v922_v23  ;;  %v1606_v19 = vmul.f32 %v8870_v17, %v8721_v5  ;;  %v8878_v20 = vld [vmem:[#allocation2 + $0x8] sm:$0xff]  ;;  %v8880_v23 = vstv %s7712_s30  ;;  %s9064_s30 = sld [smem:[#allocation9 + $0x2]] }
 0x26e   : > { %v924_v24 = vpop.permute.xlu1 %923  ;;  %14603 = vst [vmem:[#allocation47_spill] sm:$0xff] %v8880_v23 }
 0x26f   : > { %933 = vst.msk [vmem:[#allocation2 + $0x69] sm:$0xff] %vm517_vm9, %v924_v24  ;;  %v1243_v24 = vmul.f32 %v8717_v3, %v8878_v20 }
 0x270   : > { %v1124_v29 = vpop.permute.xlu0 %1123 }
 0x271   : > { %1856 = vrot.lane.b32.xlu1 %v1847_v25, %s8395_s20  ;;  %1328 = vrot.lane.b32.xlu0 %v1320_v26, %s8395_s20  ;;  %1136 = vst.msk [vmem:[#allocation2 + $0x79] sm:$0xff] %vm517_vm9, %v1124_v29  ;;  %v1632_v25 = vmul.f32 %v8880_v23, %v8721_v5  ;;  %v8888_v26 = vld [vmem:[#allocation2 + $0x1] sm:$0xff]  ;;  %v1269_v29 = vmul.f32 %v8730_v10, %v8878_v20 }
 0x272   : > { %v1126_v30 = vpop.permute.xlu1 %1125 }
 0x273   : > { %1137 = vst.msk [vmem:[#allocation2 + $0x81] sm:$0xff] %vm517_vm9, %v1126_v30  ;;  %v1742_v30 = vmul.f32 %v8708_v62, %v8888_v26 }
 0x274   : > { %v1128_v35 = vpop.permute.xlu0 %1127 }
 0x275   : > { %1882 = vrot.lane.b32.xlu1 %v1873_v31, %s8395_s20  ;;  %1354 = vrot.lane.b32.xlu0 %v1346_v32, %s8395_s20  ;;  %1138 = vst.msk [vmem:[#allocation2 + $0x89] sm:$0xff] %vm517_vm9, %v1128_v35  ;;  %v1295_v31 = vmul.f32 %v8742_v16, %v8878_v20  ;;  %v1768_v32 = vmul.f32 %v8715_v2, %v8888_v26 }
 0x276   : > { %v1130_v36 = vpop.permute.xlu1 %1129  ;;  %v1321_v35 = vmul.f32 %v8754_v22, %v8878_v20 }
 0x277   : > { %1139 = vst.msk [vmem:[#allocation2 + $0x91] sm:$0xff] %vm517_vm9, %v1130_v36  ;;  %v1794_v36 = vmul.f32 %v8728_v9, %v8888_v26 }
 0x279   : > { %1908 = vrot.lane.b32.xlu1 %v1899_v37, %s8395_s20  ;;  %1380 = vrot.lane.b32.xlu0 %v1372_v38, %s8395_s20  ;;  %v1347_v37 = vmul.f32 %v8766_v28, %v8878_v20  ;;  %v1820_v38 = vmul.f32 %v8740_v15, %v8888_v26 }
 0x27d   : > { %1934 = vrot.lane.b32.xlu1 %v1925_v41, %s8395_s20  ;;  %1406 = vrot.lane.b32.xlu0 %v1398_v42, %s8395_s20  ;;  %v1373_v41 = vmul.f32 %v8778_v34, %v8878_v20  ;;  %v1846_v42 = vmul.f32 %v8752_v21, %v8888_v26 }
 0x281   : > { %1960 = vrot.lane.b32.xlu1 %v1951_v45, %s8396_s25  ;;  %1432 = vrot.lane.b32.xlu0 %v1424_v46, %s8395_s20  ;;  %v1399_v45 = vmul.f32 %v8790_v40, %v8878_v20  ;;  %v1872_v46 = vmul.f32 %v8764_v27, %v8888_v26 }
 0x285   : > { %1986 = vrot.lane.b32.xlu1 %v1977_v49, %s8396_s25  ;;  %1458 = vrot.lane.b32.xlu0 %v1450_v50, %s8396_s25  ;;  %v1425_v49 = vmul.f32 %v8800_v44, %v8878_v20  ;;  %v1898_v50 = vmul.f32 %v8776_v33, %v8888_v26 }
 0x289   : > { %2012 = vrot.lane.b32.xlu1 %v2003_v53, %s8396_s25  ;;  %1484 = vrot.lane.b32.xlu0 %v1476_v54, %s8396_s25  ;;  %v1451_v53 = vmul.f32 %v8810_v48, %v8878_v20  ;;  %v1924_v54 = vmul.f32 %v8788_v39, %v8888_v26 }
 0x28d   : > { %2038 = vrot.lane.b32.xlu1 %v2029_v57, %s8396_s25  ;;  %1510 = vrot.lane.b32.xlu0 %v1502_v58, %s8396_s25  ;;  %v1477_v57 = vmul.f32 %v8820_v52, %v8878_v20  ;;  %v1950_v58 = vmul.f32 %v8798_v43, %v8888_v26 }
 0x291   : > { %2064 = vrot.lane.b32.xlu1 %v2055_v61, %s8396_s25  ;;  %1536 = vrot.lane.b32.xlu0 %v1528_v0, %s8396_s25  ;;  %v1503_v61 = vmul.f32 %v8830_v56, %v8878_v20  ;;  %v1976_v0 = vmul.f32 %v8808_v47, %v8888_v26 }
 0x295   : > { %2090 = vrot.lane.b32.xlu1 %v2081_v6, %s8396_s25  ;;  %1562 = vrot.lane.b32.xlu0 %v1554_v7, %s8396_s25  ;;  %v1529_v6 = vmul.f32 %v8840_v60, %v8878_v20  ;;  %v2002_v7 = vmul.f32 %v8818_v51, %v8888_v26  ;;  %v9130_v60 = vstv %s9064_s30  ;;  %s9176_s30 = sld [smem:[#allocation8 + $0x50]] }
 0x296   : > { %14624 = vst [vmem:[#allocation68_spill] sm:$0xff] %v9130_v60 }
 0x299   : > { %2116 = vrot.lane.b32.xlu1 %v2107_v12, %s8396_s25  ;;  %1588 = vrot.lane.b32.xlu0 %v1580_v13, %s8396_s25  ;;  %v1555_v12 = vmul.f32 %v8850_v4, %v8878_v20  ;;  %v2028_v13 = vmul.f32 %v8828_v55, %v8888_v26 }
 0x29d   : > { %2142 = vrot.lane.b32.xlu1 %v2133_v18, %s8396_s25  ;;  %1614 = vrot.lane.b32.xlu0 %v1606_v19, %s8396_s25  ;;  %v1581_v19 = vmul.f32 %v8860_v11, %v8878_v20 }
 0x2a1   : > { %1252 = vrot.lane.b32.xlu1 %v1243_v24, %s8395_s20  ;;  %1640 = vrot.lane.b32.xlu0 %v1632_v25, %s8396_s25  ;;  %v2054_v24 = vmul.f32 %v8838_v59, %v8888_v26 }
 0x2a5   : > { %1278 = vrot.lane.b32.xlu1 %v1269_v29, %s8395_s20  ;;  %1750 = vrot.lane.b32.xlu0 %v1742_v30, %s8395_s20  ;;  %v1607_v30 = vmul.f32 %v8870_v17, %v8878_v20  ;;  %v9099_v17 = vstv %s7691_s26  ;;  %s9156_s26 = sld [smem:[#allocation8 + $0x6f]] }
 0x2a6   : > { %14621 = vst [vmem:[#allocation65_spill] sm:$0xff] %v9099_v17 }
 0x2a9   : > { %1304 = vrot.lane.b32.xlu1 %v1295_v31, %s8395_s20  ;;  %1776 = vrot.lane.b32.xlu0 %v1768_v32, %s8395_s20  ;;  %v2080_v31 = vmul.f32 %v8848_v1, %v8888_v26 }
 0x2ab   : > { %v9226_v40 = vstv %s9156_s26  ;;  %s7759_s26 = sld [smem:[#allocation8 + $0xe0]] }
 0x2ac   : > { %14634 = vst [vmem:[#allocation78_spill] sm:$0xff] %v9226_v40 }
 0x2ad   : > { %1330 = vrot.lane.b32.xlu1 %v1321_v35, %s8395_s20  ;;  %1802 = vrot.lane.b32.xlu0 %v1794_v36, %s8395_s20  ;;  %v1633_v36 = vmul.f32 %v8880_v23, %v8878_v20  ;;  %v9097_v23 = vstv %s9034_s13  ;;  %s9135_s13 = sld [smem:[#allocation8 + $0xb4]] }
 0x2ae   : > { %14620 = vst [vmem:[#allocation64_spill] sm:$0xff] %v9097_v23 }
 0x2b1   : > { %1356 = vrot.lane.b32.xlu1 %v1347_v37, %s8395_s20  ;;  %1828 = vrot.lane.b32.xlu0 %v1820_v38, %s8395_s20  ;;  %v2106_v37 = vmul.f32 %v8858_v8, %v8888_v26  ;;  %v8990_v38 = vld [vmem:[#allocation2 + $0x19] sm:$0xff] }
 0x2b5   : > { %1382 = vrot.lane.b32.xlu1 %v1373_v41, %s8395_s20  ;;  %1854 = vrot.lane.b32.xlu0 %v1846_v42, %s8395_s20 }
 0x2b9   : > { %1408 = vrot.lane.b32.xlu1 %v1399_v45, %s8395_s20  ;;  %1880 = vrot.lane.b32.xlu0 %v1872_v46, %s8395_s20  ;;  %v1745_v45 = vmul.f32 %v8708_v62, %v8990_v38  ;;  %v2132_v46 = vmul.f32 %v8868_v14, %v8888_v26 }
 0x2bd   : > { %1434 = vrot.lane.b32.xlu1 %v1425_v49, %s8395_s20  ;;  %1906 = vrot.lane.b32.xlu0 %v1898_v50, %s8395_s20  ;;  %v9002_v49 = vld [vmem:[#allocation2 + $0x2] sm:$0xff]  ;;  %v9004_v50 = vstv %s7745_s10  ;;  %s9073_s10 = sld [smem:[#allocation8 + $0x6c]] }
 0x2be   : > { %14607 = vst [vmem:[#allocation51_spill] sm:$0xff] %v9004_v50 }
 0x2c1   : > { %1460 = vrot.lane.b32.xlu1 %v1451_v53, %s8396_s25  ;;  %1932 = vrot.lane.b32.xlu0 %v1924_v54, %s8395_s20 }
 0x2c5   : > { %1486 = vrot.lane.b32.xlu1 %v1477_v57, %s8396_s25  ;;  %1958 = vrot.lane.b32.xlu0 %v1950_v58, %s8396_s25  ;;  %v1771_v57 = vmul.f32 %v8715_v2, %v8990_v38  ;;  %v2242_v58 = vmul.f32 %v9004_v50, %v9002_v49 }
 0x2c9   : > { %1512 = vrot.lane.b32.xlu1 %v1503_v61, %s8396_s25  ;;  %1984 = vrot.lane.b32.xlu0 %v1976_v0, %s8396_s25  ;;  %v9016_v61 = vstv %s7746_s11  ;;  %s9077_s11 = sld [smem:[#allocation8 + $0x103]] }
 0x2ca   : > { %14609 = vst [vmem:[#allocation53_spill] sm:$0xff] %v9016_v61 }
 0x2cd   : > { %1538 = vrot.lane.b32.xlu1 %v1529_v6, %s8396_s25  ;;  %2010 = vrot.lane.b32.xlu0 %v2002_v7, %s8396_s25  ;;  %v1797_v7 = vmul.f32 %v8728_v9, %v8990_v38  ;;  %v1875_v9 = vmul.f32 %v8764_v27, %v8990_v38 }
 0x2d1   : > { %1564 = vrot.lane.b32.xlu1 %v1555_v12, %s8396_s25  ;;  %2036 = vrot.lane.b32.xlu0 %v2028_v13, %s8396_s25  ;;  %v2268_v12 = vmul.f32 %v9016_v61, %v9002_v49  ;;  %v9030_v13 = vstv %s7747_s22  ;;  %s9087_s22 = sld [smem:[#allocation8 + $0x27]] }
 0x2d2   : > { %14611 = vst [vmem:[#allocation55_spill] sm:$0xff] %v9030_v13 }
 0x2d3   : > { %v8964_v18 = vpop.permute.xlu1 %1752 }
 0x2d5   : > { %1590 = vrot.lane.b32.xlu1 %v1581_v19, %s8396_s25  ;;  %2062 = vrot.lane.b32.xlu0 %v2054_v24, %s8396_s25 }
 0x2d7   : > { %v8972_v25 = vpop.permute.xlu1 %1778  ;;  %v8974_v29 = vpop.permute.xlu0 %1250 }
 0x2d8   : > { %14604 = vst [vmem:[#allocation48_spill] sm:$0xff] %v8972_v25 }
 0x2d9   : > { %1616 = vrot.lane.b32.xlu1 %v1607_v30, %s8396_s25  ;;  %2088 = vrot.lane.b32.xlu0 %v2080_v31, %s8396_s25  ;;  %v1823_v30 = vmul.f32 %v8740_v15, %v8990_v38  ;;  %v2294_v31 = vmul.f32 %v9030_v13, %v9002_v49 }
 0x2db   : > { %v8982_v32 = vpop.permute.xlu1 %1804  ;;  %v8984_v35 = vpop.permute.xlu0 %1276 }
 0x2dc   : > { %14605 = vst [vmem:[#allocation49_spill] sm:$0xff] %v8982_v32 }
 0x2dd   : > { %1642 = vrot.lane.b32.xlu1 %v1633_v36, %s8396_s25  ;;  %2114 = vrot.lane.b32.xlu0 %v2106_v37, %s8396_s25  ;;  %v9044_v36 = vstv %s7748_s9  ;;  %v9046_v37 = vstv %s1160_s23  ;;  %s9092_s9 = sld [smem:[#allocation9 + $0x3]] }
 0x2de   : > { %14613 = vst [vmem:[#allocation57_spill] sm:$0xff] %v9044_v36  ;;  %14614 = vst [vmem:[#allocation58_spill] sm:$0xff] %v9046_v37  ;;  %s9101_s23 = sld [smem:[#allocation8 + $0x90]] }
 0x2df   : > { %v8994_v41 = vpop.permute.xlu1 %1830  ;;  %v8996_v42 = vpop.permute.xlu0 %1302 }
 0x2e0   : > { %14606 = vst [vmem:[#allocation50_spill] sm:$0xff] %v8994_v41 }
 0x2e1   : > { %1756 = vrot.lane.b32.xlu1 %v1745_v45, %s8395_s20  ;;  %2140 = vrot.lane.b32.xlu0 %v2132_v46, %s8396_s25 }
 0x2e3   : > { %v9008_v53 = vpop.permute.xlu1 %1856  ;;  %v9010_v54 = vpop.permute.xlu0 %1328 }
 0x2e4   : > { %14608 = vst [vmem:[#allocation52_spill] sm:$0xff] %v9008_v53  ;;  %v1927_v53 = vmul.f32 %v8788_v39, %v8990_v38  ;;  %v9166_v39 = vstv %s9092_s9  ;;  %v9169_v41 = vstv %s9101_s23  ;;  %s9212_s9 = sld [smem:[#allocation8 + $0x74]] }
 0x2e5   : > { %1782 = vrot.lane.b32.xlu1 %v1771_v57, %s8395_s20  ;;  %2250 = vrot.lane.b32.xlu0 %v2242_v58, %s8395_s20  ;;  %v1849_v57 = vmul.f32 %v8752_v21, %v8990_v38  ;;  %v2320_v58 = vmul.f32 %v9044_v36, %v9002_v49  ;;  %14627 = vst [vmem:[#allocation71_spill] sm:$0xff] %v9169_v41  ;;  %s9228_s23 = sld [smem:[#allocation8 + $0xb7]] }
 0x2e7   : > { %v9022_v0 = vpop.permute.xlu1 %1882  ;;  %v9024_v6 = vpop.permute.xlu0 %1354 }
 0x2e8   : > { %14610 = vst [vmem:[#allocation54_spill] sm:$0xff] %v9022_v0  ;;  %v9133_v0 = vstv %s9073_s10  ;;  %s9192_s10 = sld [smem:[#allocation8 + $0x93]] }
 0x2e9   : > { %1808 = vrot.lane.b32.xlu1 %v1797_v7, %s8395_s20  ;;  %2276 = vrot.lane.b32.xlu0 %v2268_v12, %s8395_s20  ;;  %v1162_v7 = vmul.f32 %v9046_v37, %v8721_v5  ;;  %v9066_v12 = vstv %s7749_s7  ;;  %s9120_s7 = sld [smem:[#allocation8 + $0x4b]]  ;;  %14625 = vst [vmem:[#allocation69_spill] sm:$0xff] %v9133_v0 }
 0x2ea   : > { %14616 = vst [vmem:[#allocation60_spill] sm:$0xff] %v9066_v12  ;;  %v2346_v2 = vmul.f32 %v9066_v12, %v9002_v49 }
 0x2eb   : > { %v9036_v19 = vpop.permute.xlu1 %1908  ;;  %v9038_v24 = vpop.permute.xlu0 %1380 }
 0x2ec   : > { %14612 = vst [vmem:[#allocation56_spill] sm:$0xff] %v9036_v19  ;;  %v9115_v19 = vstv %s9050_s29  ;;  %s9161_s29 = sld [smem:[#allocation9 + $0x5]] }
 0x2ed   : > { %1834 = vrot.lane.b32.xlu1 %v1823_v30, %s8395_s20  ;;  %2302 = vrot.lane.b32.xlu0 %v2294_v31, %s8395_s20  ;;  %v9069_v30 = vstv %s9020_s5  ;;  %v9071_v31 = vstv %s7690_s12  ;;  %s9106_s5 = sld [smem:[#allocation8 + $0x8]]  ;;  %v2398_v52 = vmul.f32 %v9115_v19, %v9002_v49 }
 0x2ee   : > { %14617 = vst [vmem:[#allocation61_spill] sm:$0xff] %v9069_v30  ;;  %14618 = vst [vmem:[#allocation62_spill] sm:$0xff] %v9071_v31  ;;  %v1166_v62 = vadd.f32 %v1162_v7, %v9069_v30  ;;  %s9125_s12 = sld [smem:[#allocation9 + $0x4]] }
 0x2ef   : > { %v9052_v45 = vpop.permute.xlu1 %1934  ;;  %v9054_v46 = vpop.permute.xlu0 %1406 }
 0x2f0   : > { %14615 = vst [vmem:[#allocation59_spill] sm:$0xff] %v9052_v45  ;;  %v1262_v7 = vadd.f32 %v8974_v29, %v1166_v62  ;;  %v1901_v45 = vmul.f32 %v8776_v33, %v8990_v38  ;;  %v1182_v62 = vmul.f32 %v9099_v17, %v8721_v5 }
 0x2f1   : > { %1860 = vrot.lane.b32.xlu1 %v1849_v57, %s8395_s20  ;;  %2328 = vrot.lane.b32.xlu0 %v2320_v58, %s8395_s20  ;;  %v1172_v57 = vmul.f32 %v9071_v31, %v8721_v5  ;;  %v9094_v58 = vstv %s7750_s14  ;;  %s9140_s14 = sld [smem:[#allocation8 + $0x2c]] }
 0x2f2   : > { %14619 = vst [vmem:[#allocation63_spill] sm:$0xff] %v9094_v58  ;;  %v2372_v4 = vmul.f32 %v9094_v58, %v9002_v49 }
 0x2f3   : > { %v9079_v21 = vpop.permute.xlu1 %1960  ;;  %v9081_v15 = vpop.permute.xlu0 %1432 }
 0x2f5   : > { %1886 = vrot.lane.b32.xlu1 %v1875_v9, %s8395_s20  ;;  %2354 = vrot.lane.b32.xlu0 %v2346_v2, %s8395_s20  ;;  %v9118_v9 = vstv %s9060_s8  ;;  %v1176_v2 = vadd.f32 %v1172_v57, %v9097_v23  ;;  %s9171_s8 = sld [smem:[#allocation8 + $0xd8]] }
 0x2f6   : > { %14623 = vst [vmem:[#allocation67_spill] sm:$0xff] %v9118_v9  ;;  %v1662_v33 = vmul.f32 %v9118_v9, %v8888_v26 }
 0x2f7   : > { %v9108_v27 = vpop.permute.xlu1 %1986  ;;  %v1459_v11 = vpop.permute.xlu0 %1458  ;;  %v1288_v57 = vadd.f32 %v8984_v35, %v1176_v2  ;;  %v1186_v35 = vadd.f32 %v1182_v62, %v9130_v60 }
 0x2f8   : > { %14622 = vst [vmem:[#allocation66_spill] sm:$0xff] %v9108_v27  ;;  %v1470_v29 = vadd.f32 %v1459_v11, %v1262_v7  ;;  %v1979_v27 = vmul.f32 %v8808_v47, %v8990_v38 }
 0x2f9   : > { %1912 = vrot.lane.b32.xlu1 %v1901_v45, %s8395_s20  ;;  %2380 = vrot.lane.b32.xlu0 %v2372_v4, %s8395_s20  ;;  %v9151_v45 = vstv %s9077_s11  ;;  %v9154_v4 = vstv %s9087_s22  ;;  %v1314_v62 = vadd.f32 %v8996_v42, %v1186_v35  ;;  %v1202_v35 = vmul.f32 %v9169_v41, %v8721_v5  ;;  %s9197_s11 = sld [smem:[#allocation9 + $0x6]] }
 0x2fa   : > { %v9142_v11 = vadd.f32 %v1662_v33, %v1470_v29  ;;  %v1192_v33 = vmul.f32 %v9133_v0, %v8721_v5  ;;  %v1672_v29 = vmul.f32 %v9154_v4, %v8888_v26  ;;  %v2424_v32 = vmul.f32 %v9151_v45, %v9002_v49  ;;  %s9207_s22 = sld [smem:[#allocation8 + $0xfc]] }
 0x2fb   : > { %v9144_v7 = vpop.permute.xlu1 %2012  ;;  %v1485_v56 = vpop.permute.xlu0 %1484  ;;  %v9239_v47 = vstv %s9171_s8  ;;  %s7737_s8 = sld [smem:[#allocation8 + $0x6]] }
 0x2fc   : > { %14626 = vst [vmem:[#allocation70_spill] sm:$0xff] %v9144_v7  ;;  %v1496_v2 = vadd.f32 %v1485_v56, %v1288_v57  ;;  %v1953_v7 = vmul.f32 %v8798_v43, %v8990_v38  ;;  %v1196_v42 = vadd.f32 %v1192_v33, %v9166_v39  ;;  %v9202_v43 = vstv %s9125_s12  ;;  %14636 = vst [vmem:[#allocation80_spill] sm:$0xff] %v9239_v47  ;;  %s9265_s12 = sld [smem:[#allocation8 + $0x98]] }
 0x2fd   : > { %1938 = vrot.lane.b32.xlu1 %v1927_v53, %s8395_s20  ;;  %2406 = vrot.lane.b32.xlu0 %v2398_v52, %s8395_s20  ;;  %v9187_v53 = vstv %s9106_s5  ;;  %v9190_v52 = vstv %s9120_s7  ;;  %s9241_s5 = sld [smem:[#allocation9 + $0x7]] }
 0x2fe   : > { %v9178_v56 = vadd.f32 %v1672_v29, %v1496_v2  ;;  %14629 = vst [vmem:[#allocation73_spill] sm:$0xff] %v9187_v53  ;;  %v1682_v29 = vmul.f32 %v9190_v52, %v8888_v26  ;;  %v1340_v33 = vadd.f32 %v9010_v54, %v1196_v42  ;;  %v2450_v25 = vmul.f32 %v9187_v53, %v9002_v49  ;;  %s9260_s7 = sld [smem:[#allocation8 + $0xdb]] }
 0x2ff   : > { %v9180_v57 = vpop.permute.xlu1 %2038  ;;  %v1511_v48 = vpop.permute.xlu0 %1510  ;;  %v2005_v53 = vmul.f32 %v8818_v51, %v8990_v38 }
 0x300   : > { %14628 = vst [vmem:[#allocation72_spill] sm:$0xff] %v9180_v57  ;;  %v1522_v2 = vadd.f32 %v1511_v48, %v1314_v62  ;;  %v9205_v57 = vstv %s9135_s13  ;;  %v9273_v51 = vstv %s9207_s22  ;;  %s7720_s13 = sld [smem:[#allocation8 + $0xff]] }
 0x301   : > { %14630 = vst [vmem:[#allocation74_spill] sm:$0xff] %v9205_v57  ;;  %1964 = vrot.lane.b32.xlu1 %v1953_v7, %s8396_s25  ;;  %2432 = vrot.lane.b32.xlu0 %v2424_v32, %s8395_s20  ;;  %v9223_v7 = vstv %s9140_s14  ;;  %v1206_v32 = vadd.f32 %v1202_v35, %v9202_v43  ;;  %v1212_v54 = vmul.f32 %v9205_v57, %v8721_v5  ;;  %14641 = vst [vmem:[#allocation85_spill] sm:$0xff] %v9273_v51  ;;  %s7758_s14 = sld [smem:[#allocation8 + $0xbc]] }
 0x302   : > { %v9214_v48 = vadd.f32 %v1682_v29, %v1522_v2  ;;  %14633 = vst [vmem:[#allocation77_spill] sm:$0xff] %v9223_v7  ;;  %v1692_v2 = vmul.f32 %v9226_v40, %v8888_v26  ;;  %v9236_v29 = vstv %s9161_s29  ;;  %v2476_v40 = vmul.f32 %v9223_v7, %v9002_v49  ;;  %s7760_s29 = sld [smem:[#allocation8 + $0x104]] }
 0x303   : > { %v9216_v62 = vpop.permute.xlu1 %2064  ;;  %v1537_v44 = vpop.permute.xlu0 %1536  ;;  %14635 = vst [vmem:[#allocation79_spill] sm:$0xff] %v9236_v29  ;;  %v1366_v35 = vadd.f32 %v9024_v6, %v1206_v32  ;;  %v1222_v6 = vmul.f32 %v9239_v47, %v8721_v5  ;;  %v9290_v47 = vstv %s9228_s23  ;;  %s9478_s22 = sld [smem:[#allocation8 + $0x96]] }
 0x304   : > { %14631 = vst [vmem:[#allocation75_spill] sm:$0xff] %v9214_v48  ;;  %14632 = vst [vmem:[#allocation76_spill] sm:$0xff] %v9216_v62  ;;  %v1548_v42 = vadd.f32 %v1537_v44, %v1340_v33  ;;  %v9255_v48 = vstv %s9176_s30  ;;  %s7738_s30 = sld [smem:[#allocation8 + $0x2a]] }
 0x305   : > { %1990 = vrot.lane.b32.xlu1 %v1979_v27, %s8396_s25  ;;  %2458 = vrot.lane.b32.xlu0 %v2450_v25, %s8396_s25  ;;  %14639 = vst [vmem:[#allocation83_spill] sm:$0xff] %v9255_v48  ;;  %v9258_v27 = vstv %s9192_s10  ;;  %v1216_v25 = vadd.f32 %v1212_v54, %v9236_v29  ;;  %14643 = vst [vmem:[#allocation87_spill] sm:$0xff] %v9290_v47  ;;  %s9426_s10 = sld [smem:[#allocation8 + $0x4e]] }
 0x306   : > { %v9246_v62 = vadd.f32 %v1692_v2, %v1548_v42  ;;  %14640 = vst [vmem:[#allocation84_spill] sm:$0xff] %v9258_v27  ;;  %v1702_v42 = vmul.f32 %v9258_v27, %v8888_v26  ;;  %v9270_v2 = vstv %s9197_s11  ;;  %v2502_v27 = vmul.f32 %v9255_v48, %v9002_v49  ;;  %s9451_s11 = sld [smem:[#allocation8 + $0x72]] }
 0x307   : > { %v9248_v44 = vpop.permute.xlu1 %2090  ;;  %v1563_v33 = vpop.permute.xlu0 %1562  ;;  %v1392_v54 = vadd.f32 %v9038_v24, %v1216_v25  ;;  %v1232_v24 = vmul.f32 %v9273_v51, %v8721_v5  ;;  %v1712_v25 = vmul.f32 %v9290_v47, %v8888_v26  ;;  %v2057_v5 = vmul.f32 %v8838_v59, %v8990_v38  ;;  %s9536_s23 = sld [smem:[#allocation8 + $0xde]] }
 0x308   : > { %14637 = vst [vmem:[#allocation81_spill] sm:$0xff] %v9246_v62  ;;  %14638 = vst [vmem:[#allocation82_spill] sm:$0xff] %v9248_v44  ;;  %v1574_v32 = vadd.f32 %v1563_v33, %v1366_v35  ;;  %v2031_v33 = vmul.f32 %v8828_v55, %v8990_v38  ;;  %v9287_v62 = vstv %s9212_s9  ;;  %v9316_v47 = vstv %s9265_s12  ;;  %s9508_s9 = sld [smem:[#allocation8 + $0xba]] }
 0x309   : > { %2016 = vrot.lane.b32.xlu1 %v2005_v53, %s8396_s25  ;;  %2484 = vrot.lane.b32.xlu0 %v2476_v40, %s8396_s25  ;;  %v1226_v40 = vadd.f32 %v1222_v6, %v9270_v2  ;;  %s7762_s12 = sld [smem:[#allocation8 + $0x2d]] }
 0x30a   : > { %v9278_v44 = vadd.f32 %v1702_v42, %v1574_v32  ;;  %v9298_v32 = vstv %s9241_s5  ;;  %s9589_s5 = sld [smem:[#allocation8 + $0x102]] }
 0x30b   : > { %v9280_v7 = vpop.permute.xlu1 %2116  ;;  %v1589_v35 = vpop.permute.xlu0 %1588  ;;  %v1418_v42 = vadd.f32 %v9054_v46, %v1226_v40  ;;  %v1236_v48 = vadd.f32 %v1232_v24, %v9298_v32  ;;  %v2554_v24 = vmul.f32 %v9316_v47, %v9002_v49 }
 0x30c   : > { %14642 = vst [vmem:[#allocation86_spill] sm:$0xff] %v9280_v7  ;;  %v1600_v53 = vadd.f32 %v1589_v35, %v1392_v54  ;;  %v2528_v54 = vmul.f32 %v9287_v62, %v9002_v49  ;;  %v9312_v35 = vstv %s9260_s7  ;;  %s7761_s7 = sld [smem:[#allocation8 + $0x9]] }
 0x30d   : > { %2042 = vrot.lane.b32.xlu1 %v2031_v33, %s8396_s25  ;;  %2510 = vrot.lane.b32.xlu0 %v2502_v27, %s8396_s25  ;;  %v1722_v46 = vmul.f32 %v9312_v35, %v8888_v26  ;;  %v1444_v27 = vadd.f32 %v9081_v15, %v1236_v48 }
 0x30e   : > { %v9303_v55 = vadd.f32 %v1712_v25, %v1600_v53 }
 0x30f   : > { %v9305_v6 = vpop.permute.xlu1 %2142  ;;  %v1615_v7 = vpop.permute.xlu0 %1614 }
 0x310   : > { %14644 = vst [vmem:[#allocation88_spill] sm:$0xff] %v9305_v6  ;;  %v1626_v33 = vadd.f32 %v1615_v7, %v1418_v42  ;;  %v2083_v7 = vmul.f32 %v8848_v1, %v8990_v38  ;;  %v9331_v42 = vstv %s7720_s13  ;;  %v9333_v6 = vstv %s7758_s14  ;;  %s7763_s13 = sld [smem:[#allocation8 + $0x51]] }
 0x311   : > { %2068 = vrot.lane.b32.xlu1 %v2057_v5, %s8396_s25  ;;  %2536 = vrot.lane.b32.xlu0 %v2528_v54, %s8396_s25  ;;  %v1732_v15 = vmul.f32 %v9331_v42, %v8888_v26  ;;  %s7764_s14 = sld [smem:[#allocation8 + $0x75]] }
 0x312   : > { %v9323_v40 = vadd.f32 %v1722_v46, %v1626_v33  ;;  %v2109_v33 = vmul.f32 %v8858_v8, %v8990_v38  ;;  %v2580_v46 = vmul.f32 %v9333_v6, %v9002_v49 }
 0x313   : > { %v9325_v53 = vpop.permute.xlu1 %1252  ;;  %v1641_v25 = vpop.permute.xlu0 %1640 }
 0x314   : > { %v1652_v59 = vadd.f32 %v1641_v25, %v1444_v27  ;;  %v9349_v27 = vstv %s7759_s26  ;;  %v2135_v25 = vmul.f32 %v8868_v14, %v8990_v38  ;;  %v9375_v14 = vld [vmem:[#allocation2 + $0x10] sm:$0xff]  ;;  %s7765_s26 = sld [smem:[#allocation8 + $0x99]] }
 0x315   : > { %2094 = vrot.lane.b32.xlu1 %v2083_v7, %s8396_s25  ;;  %2562 = vrot.lane.b32.xlu0 %v2554_v24, %s8396_s25  ;;  %14645 = vst [vmem:[#allocation89_spill] sm:$0xff] %v9349_v27  ;;  %v2606_v7 = vmul.f32 %v9349_v27, %v9002_v49  ;;  %v9361_v24 = vld [vmem:[#allocation2 + $0x1a] sm:$0xff]  ;;  %v1244_v27 = vmul.f32 %v8717_v3, %v9375_v14 }
 0x316   : > { %v9339_v48 = vadd.f32 %v1732_v15, %v1652_v59  ;;  %v9363_v15 = vstv %s7760_s29  ;;  %v2245_v8 = vmul.f32 %v9004_v50, %v9361_v24  ;;  %s7766_s29 = sld [smem:[#allocation8 + $0xbd]] }
 0x317   : > { %v9341_v5 = vpop.permute.xlu1 %1278  ;;  %v9343_v54 = vpop.permute.xlu0 %1750  ;;  %14646 = vst [vmem:[#allocation90_spill] sm:$0xff] %v9363_v15  ;;  %v2632_v38 = vmul.f32 %v9363_v15, %v9002_v49 }
 0x319   : > { %2120 = vrot.lane.b32.xlu1 %v2109_v33, %s8396_s25  ;;  %2588 = vrot.lane.b32.xlu0 %v2580_v46, %s8396_s25 }
 0x31b   : > { %v9353_v26 = vpop.permute.xlu1 %1304  ;;  %v9355_v59 = vpop.permute.xlu0 %1776 }
 0x31d   : > { %2146 = vrot.lane.b32.xlu1 %v2135_v25, %s8396_s25  ;;  %2614 = vrot.lane.b32.xlu0 %v2606_v7, %s8396_s25  ;;  %v2271_v7 = vmul.f32 %v9016_v61, %v9361_v24 }
 0x31f   : > { %v9367_v33 = vpop.permute.xlu1 %1330  ;;  %v9369_v46 = vpop.permute.xlu0 %1802 }
 0x321   : > { %2256 = vrot.lane.b32.xlu1 %v2245_v8, %s8395_s20  ;;  %2640 = vrot.lane.b32.xlu0 %v2632_v38, %s8396_s25  ;;  %v2297_v8 = vmul.f32 %v9030_v13, %v9361_v24  ;;  %v1270_v38 = vmul.f32 %v8730_v10, %v9375_v14  ;;  %v1163_v13 = vmul.f32 %v9046_v37, %v8878_v20 }
 0x322   : > { %v2349_v10 = vmul.f32 %v9066_v12, %v9361_v24  ;;  %v1173_v37 = vmul.f32 %v9071_v31, %v8878_v20  ;;  %v1193_v12 = vmul.f32 %v9133_v0, %v8878_v20  ;;  %v9447_v31 = vstv %s7737_s8  ;;  %s7767_s8 = sld [smem:[#allocation8 + $0xe1]] }
 0x323   : > { %v9379_v1 = vpop.permute.xlu1 %1356  ;;  %v9381_v25 = vpop.permute.xlu0 %1828  ;;  %14647 = vst [vmem:[#allocation91_spill] sm:$0xff] %v9447_v31 }
 0x325   : > { %2282 = vrot.lane.b32.xlu1 %v2271_v7, %s8395_s20  ;;  %1254 = vrot.lane.b32.xlu0 %v1244_v27, %s8395_s20  ;;  %v2323_v27 = vmul.f32 %v9044_v36, %v9361_v24  ;;  %v1296_v7 = vmul.f32 %v8742_v16, %v9375_v14  ;;  %v1322_v36 = vmul.f32 %v8754_v22, %v9375_v14 }
 0x326   : > { %v1167_v16 = vadd.f32 %v1163_v13, %v9069_v30  ;;  %v1203_v13 = vmul.f32 %v9169_v41, %v8878_v20  ;;  %v1213_v41 = vmul.f32 %v9205_v57, %v8878_v20 }
 0x327   : > { %v9389_v50 = vpop.permute.xlu1 %1382  ;;  %v9391_v15 = vpop.permute.xlu0 %1854 }
 0x329   : > { %2308 = vrot.lane.b32.xlu1 %v2297_v8, %s8395_s20  ;;  %1280 = vrot.lane.b32.xlu0 %v1270_v38, %s8395_s20 }
 0x32b   : > { %v9399_v61 = vpop.permute.xlu1 %1408  ;;  %v9401_v3 = vpop.permute.xlu0 %1880 }
 0x32d   : > { %2334 = vrot.lane.b32.xlu1 %v2323_v27, %s8395_s20  ;;  %1306 = vrot.lane.b32.xlu0 %v1296_v7, %s8395_s20  ;;  %v1183_v27 = vmul.f32 %v9099_v17, %v8878_v20  ;;  %v1263_v7 = vadd.f32 %v9325_v53, %v1167_v16  ;;  %v2375_v17 = vmul.f32 %v9094_v58, %v9361_v24  ;;  %v9449_v58 = vstv %s7738_s30  ;;  %s7768_s30 = sld [smem:[#allocation8 + $0x105]] }
 0x32e   : > { %v1663_v16 = vmul.f32 %v9118_v9, %v8710_v63  ;;  %14648 = vst [vmem:[#allocation92_spill] sm:$0xff] %v9449_v58 }
 0x32f   : > { %v9411_v8 = vpop.permute.xlu1 %1434  ;;  %v9413_v38 = vpop.permute.xlu0 %1906  ;;  %v1187_v0 = vadd.f32 %v1183_v27, %v9130_v60  ;;  %v1197_v27 = vadd.f32 %v1193_v12, %v9166_v39  ;;  %v2162_v12 = vmul.f32 %v9447_v31, %v9002_v49 }
 0x331   : > { %2360 = vrot.lane.b32.xlu1 %v2349_v10, %s8395_s20  ;;  %1332 = vrot.lane.b32.xlu0 %v1322_v36, %s8395_s20  ;;  %v1348_v10 = vmul.f32 %v8766_v28, %v9375_v14  ;;  %v1177_v36 = vadd.f32 %v1173_v37, %v9097_v23  ;;  %v9453_v37 = vld [vmem:[#allocation2 + $0xa] sm:$0xff]  ;;  %v2401_v23 = vmul.f32 %v9115_v19, %v9361_v24 }
 0x333   : > { %v1461_v30 = vpop.permute.xlu1 %1460  ;;  %v9433_v22 = vpop.permute.xlu0 %1932  ;;  %v1289_v9 = vadd.f32 %v9341_v5, %v1177_v36  ;;  %v1374_v5 = vmul.f32 %v8778_v34, %v9375_v14 }
 0x334   : > { %v1471_v53 = vadd.f32 %v1461_v30, %v1263_v7  ;;  %v1762_v30 = vadd.f32 %v9343_v54, %v9142_v11 }
 0x335   : > { %2386 = vrot.lane.b32.xlu1 %v2375_v17, %s8395_s20  ;;  %1358 = vrot.lane.b32.xlu0 %v1348_v10, %s8395_s20  ;;  %v1207_v17 = vadd.f32 %v1203_v13, %v9202_v43  ;;  %v1673_v10 = vmul.f32 %v9154_v4, %v8710_v63  ;;  %v1315_v13 = vadd.f32 %v9353_v26, %v1187_v0  ;;  %v9476_v63 = vstv %s9426_s10  ;;  %v9487_v0 = vld [vmem:[#allocation2 + $0x9] sm:$0xff]  ;;  %s7769_s10 = sld [smem:[#allocation8 + $0xa]] }
 0x336   : > { %v1667_v7 = vadd.f32 %v1663_v16, %v1471_v53  ;;  %v9471_v16 = vadd.f32 %v1213_v41, %v9236_v29  ;;  %14649 = vst [vmem:[#allocation93_spill] sm:$0xff] %v9476_v63  ;;  %v9506_v29 = vstv %s9451_s11  ;;  %s7770_s11 = sld [smem:[#allocation8 + $0x2e]] }
 0x337   : > { %v1487_v57 = vpop.permute.xlu1 %1486  ;;  %v1959_v60 = vpop.permute.xlu0 %1958 }
 0x338   : > { %v1763_v36 = vadd.f32 %v8964_v18, %v1667_v7  ;;  %v1497_v11 = vadd.f32 %v1487_v57, %v1289_v9  ;;  %v1970_v54 = vadd.f32 %v1959_v60, %v1762_v30  ;;  %v2163_v18 = vmul.f32 %v9447_v31, %v9453_v37  ;;  %v14650_v7 = vld [vmem:[#allocation30_spill] sm:$0xff] }
 0x339   : > { %2412 = vrot.lane.b32.xlu1 %v2401_v23, %s8395_s20  ;;  %1384 = vrot.lane.b32.xlu0 %v1374_v5, %s8395_s20  ;;  %v1788_v60 = vadd.f32 %v9355_v59, %v9178_v56  ;;  %v1683_v23 = vmul.f32 %v9487_v0, %v9190_v52  ;;  %v2427_v30 = vmul.f32 %v9151_v45, %v9361_v24  ;;  %v14651_v59 = vld [vmem:[#allocation48_spill] sm:$0xff] }
 0x33a   : > { %v1677_v9 = vadd.f32 %v1673_v10, %v1497_v11  ;;  %v9484_v57 = vadd.f32 %v2162_v12, %v1970_v54  ;;  %v1971_v41 = vadd.f32 %v9079_v21, %v1763_v36  ;;  %v1400_v5 = vmul.f32 %v14650_v7, %v9375_v14  ;;  %v14653_v12 = vld [vmem:[#allocation80_spill] sm:$0xff]  ;;  %14654 = vst [vmem:[#allocation48_spill] sm:$0xff] %v9506_v29 }
 0x33b   : > { %v1513_v26 = vpop.permute.xlu1 %1512  ;;  %v1985_v53 = vpop.permute.xlu0 %1984  ;;  %v2172_v56 = vmul.f32 %v9449_v58, %v9002_v49  ;;  %v1341_v54 = vadd.f32 %v9367_v33, %v1197_v27  ;;  %v1223_v31 = vmul.f32 %v14653_v12, %v8878_v20  ;;  %v14656_v33 = vld [vmem:[#allocation66_spill] sm:$0xff]  ;;  %v14659_v12 = vld [vmem:[#allocation32_spill] sm:$0xff] }
 0x33c   : > { %v1789_v10 = vadd.f32 %v14651_v59, %v1677_v9  ;;  %v1523_v21 = vadd.f32 %v1513_v26, %v1315_v13  ;;  %v1996_v36 = vadd.f32 %v1985_v53, %v1788_v60  ;;  %v9498_v11 = vadd.f32 %v2163_v18, %v1971_v41  ;;  %v14655_v13 = vld [vmem:[#allocation75_spill] sm:$0xff]  ;;  %v14657_v26 = vld [vmem:[#allocation78_spill] sm:$0xff]  ;;  %v14658_v59 = vld [vmem:[#allocation73_spill] sm:$0xff] }
 0x33d   : > { %2438 = vrot.lane.b32.xlu1 %v2427_v30, %s8395_s20  ;;  %1410 = vrot.lane.b32.xlu0 %v1400_v5, %s8395_s20  ;;  %v2173_v9 = vmul.f32 %v9449_v58, %v9453_v37  ;;  %v1814_v18 = vadd.f32 %v9369_v46, %v14655_v13  ;;  %v1693_v53 = vmul.f32 %v9487_v0, %v14657_v26  ;;  %v9534_v26 = vstv %s9478_s22  ;;  %s7771_s22 = sld [smem:[#allocation8 + $0x52]] }
 0x33e   : > { %14652 = vst [vmem:[#allocation30_spill] sm:$0xff] %v9498_v11  ;;  %v1687_v60 = vadd.f32 %v1683_v23, %v1523_v21  ;;  %v9514_v41 = vadd.f32 %v2172_v56, %v1996_v36  ;;  %v1997_v27 = vadd.f32 %v14656_v33, %v1789_v10  ;;  %v2453_v11 = vmul.f32 %v14658_v59, %v9361_v24  ;;  %v14660_v23 = vld [vmem:[#allocation49_spill] sm:$0xff] }
 0x33f   : > { %v1539_v30 = vpop.permute.xlu1 %1538  ;;  %v2011_v5 = vpop.permute.xlu0 %2010  ;;  %v1426_v58 = vmul.f32 %v14659_v12, %v9375_v14  ;;  %v2182_v46 = vmul.f32 %v9476_v63, %v9002_v49  ;;  %v1367_v10 = vadd.f32 %v9379_v1, %v1207_v17  ;;  %v1233_v33 = vmul.f32 %v9273_v51, %v8878_v20  ;;  %14662 = vst [vmem:[#allocation66_spill] sm:$0xff] %v9534_v26  ;;  %v14664_v1 = vld [vmem:[#allocation70_spill] sm:$0xff]  ;;  %v14665_v17 = vld [vmem:[#allocation84_spill] sm:$0xff] }
 0x340   : > { %v1815_v56 = vadd.f32 %v14660_v23, %v1687_v60  ;;  %v1549_v21 = vadd.f32 %v1539_v30, %v1341_v54  ;;  %v2022_v36 = vadd.f32 %v2011_v5, %v1814_v18  ;;  %v9526_v13 = vadd.f32 %v2173_v9, %v1997_v27  ;;  %v14663_v54 = vld [vmem:[#allocation81_spill] sm:$0xff] }
 0x341   : > { %2464 = vrot.lane.b32.xlu1 %v2453_v11, %s8396_s25  ;;  %1436 = vrot.lane.b32.xlu0 %v1426_v58, %s8395_s20  ;;  %v2183_v60 = vmul.f32 %v9476_v63, %v9453_v37  ;;  %v1840_v9 = vadd.f32 %v9381_v25, %v14663_v54  ;;  %v1703_v11 = vmul.f32 %v9487_v0, %v14665_v17  ;;  %v14666_v5 = vld [vmem:[#allocation77_spill] sm:$0xff]  ;;  %v9562_v51 = vstv %s9508_s9  ;;  %s7772_s9 = sld [smem:[#allocation8 + $0x76]] }
 0x342   : > { %14661 = vst [vmem:[#allocation75_spill] sm:$0xff] %v9526_v13  ;;  %v1697_v18 = vadd.f32 %v1693_v53, %v1549_v21  ;;  %v9542_v27 = vadd.f32 %v2182_v46, %v2022_v36  ;;  %v2023_v20 = vadd.f32 %v14664_v1, %v1815_v56  ;;  %v2479_v23 = vmul.f32 %v14666_v5, %v9361_v24  ;;  %v14667_v13 = vld [vmem:[#allocation34_spill] sm:$0xff] }
 0x343   : > { %v1565_v58 = vpop.permute.xlu1 %1564  ;;  %v2037_v30 = vpop.permute.xlu0 %2036  ;;  %v1452_v63 = vmul.f32 %v14667_v13, %v9375_v14  ;;  %v2192_v25 = vmul.f32 %v9506_v29, %v9002_v49  ;;  %v14668_v53 = vld [vmem:[#allocation50_spill] sm:$0xff]  ;;  %v1393_v56 = vadd.f32 %v9389_v50, %v9471_v16  ;;  %v1227_v1 = vadd.f32 %v1223_v31, %v9270_v2  ;;  %14670 = vst [vmem:[#allocation32_spill] sm:$0xff] %v9562_v51  ;;  %v14672_v16 = vld [vmem:[#allocation87_spill] sm:$0xff] }
 0x344   : > { %v1841_v46 = vadd.f32 %v14668_v53, %v1697_v18  ;;  %v1575_v21 = vadd.f32 %v1565_v58, %v1367_v10  ;;  %v2048_v36 = vadd.f32 %v2037_v30, %v1840_v9  ;;  %v9554_v54 = vadd.f32 %v2183_v60, %v2023_v20  ;;  %v14671_v18 = vld [vmem:[#allocation72_spill] sm:$0xff] }
 0x345   : > { %2490 = vrot.lane.b32.xlu1 %v2479_v23, %s8396_s25  ;;  %1462 = vrot.lane.b32.xlu0 %v1452_v63, %s8396_s25  ;;  %v2193_v17 = vmul.f32 %v9506_v29, %v9453_v37  ;;  %v1866_v10 = vadd.f32 %v9391_v15, %v9278_v44  ;;  %v1713_v31 = vmul.f32 %v9487_v0, %v14672_v16  ;;  %v14673_v63 = vld [vmem:[#allocation83_spill] sm:$0xff]  ;;  %v14674_v23 = vld [vmem:[#allocation36_spill] sm:$0xff] }
 0x346   : > { %14669 = vst [vmem:[#allocation73_spill] sm:$0xff] %v9554_v54  ;;  %v1707_v9 = vadd.f32 %v1703_v11, %v1575_v21  ;;  %v9568_v60 = vadd.f32 %v2192_v25, %v2048_v36  ;;  %v2049_v50 = vadd.f32 %v14671_v18, %v1841_v46  ;;  %v2505_v30 = vmul.f32 %v14673_v63, %v9361_v24  ;;  %v14675_v15 = vld [vmem:[#allocation52_spill] sm:$0xff] }
 0x347   : > { %v1591_v20 = vpop.permute.xlu1 %1590  ;;  %v2063_v58 = vpop.permute.xlu0 %2062  ;;  %v1478_v53 = vmul.f32 %v14674_v23, %v9375_v14  ;;  %v2202_v44 = vmul.f32 %v9534_v26, %v9002_v49  ;;  %v1419_v46 = vadd.f32 %v9399_v61, %v1227_v1  ;;  %v1237_v18 = vadd.f32 %v1233_v33, %v9298_v32  ;;  %v14678_v61 = vld [vmem:[#allocation76_spill] sm:$0xff] }
 0x348   : > { %v1867_v11 = vadd.f32 %v14675_v15, %v1707_v9  ;;  %v1601_v25 = vadd.f32 %v1591_v20, %v1393_v56  ;;  %v2074_v21 = vadd.f32 %v2063_v58, %v1866_v10  ;;  %v9580_v36 = vadd.f32 %v2193_v17, %v2049_v50  ;;  %v14679_v58 = vld [vmem:[#allocation38_spill] sm:$0xff] }
 0x349   : > { %2516 = vrot.lane.b32.xlu1 %v2505_v30, %s8396_s25  ;;  %1488 = vrot.lane.b32.xlu0 %v1478_v53, %s8396_s25  ;;  %v9587_v54 = vstv %s9536_s23  ;;  %v2203_v29 = vmul.f32 %v9534_v26, %v9453_v37  ;;  %v1892_v56 = vadd.f32 %v9401_v3, %v9303_v55  ;;  %v1723_v33 = vmul.f32 %v9487_v0, %v9312_v35  ;;  %v14680_v3 = vld [vmem:[#allocation54_spill] sm:$0xff]  ;;  %s7773_s23 = sld [smem:[#allocation8 + $0x9a]] }
 0x34a   : > { %14676 = vst [vmem:[#allocation49_spill] sm:$0xff] %v9580_v36  ;;  %14677 = vst [vmem:[#allocation81_spill] sm:$0xff] %v9587_v54  ;;  %v1717_v17 = vadd.f32 %v1713_v31, %v1601_v25  ;;  %v9595_v10 = vadd.f32 %v2202_v44, %v2074_v21  ;;  %v2075_v1 = vadd.f32 %v14678_v61, %v1867_v11 }
 0x34b   : > { %v1617_v9 = vpop.permute.xlu1 %1616  ;;  %v2089_v50 = vpop.permute.xlu0 %2088  ;;  %v2531_v20 = vmul.f32 %v9287_v62, %v9361_v24  ;;  %v1504_v30 = vmul.f32 %v14679_v58, %v9375_v14  ;;  %v2212_v53 = vmul.f32 %v9562_v51, %v9002_v49  ;;  %v1445_v11 = vadd.f32 %v9411_v8, %v1237_v18 }
 0x34c   : > { %v1893_v55 = vadd.f32 %v14680_v3, %v1717_v17  ;;  %v1627_v31 = vadd.f32 %v1617_v9, %v1419_v46  ;;  %v2100_v44 = vadd.f32 %v2089_v50, %v1892_v56  ;;  %v9607_v15 = vadd.f32 %v2203_v29, %v2075_v1  ;;  %v14682_v46 = vld [vmem:[#allocation82_spill] sm:$0xff]  ;;  %v14683_v1 = vld [vmem:[#allocation40_spill] sm:$0xff] }
 0x34d   : > { %2542 = vrot.lane.b32.xlu1 %v2531_v20, %s8396_s25  ;;  %1514 = vrot.lane.b32.xlu0 %v1504_v30, %s8396_s25  ;;  %v2213_v25 = vmul.f32 %v9562_v51, %v9453_v37  ;;  %v1918_v21 = vadd.f32 %v9413_v38, %v9323_v40  ;;  %v1733_v29 = vmul.f32 %v9487_v0, %v9331_v42  ;;  %v14684_v38 = vld [vmem:[#allocation56_spill] sm:$0xff]  ;;  %v9633_v0 = vstv %s9589_s5  ;;  %s10115_s5 = sld [smem:[#allocation8 + $0xbe]] }
 0x34e   : > { %14681 = vst [vmem:[#allocation70_spill] sm:$0xff] %v9607_v15  ;;  %v1727_v61 = vadd.f32 %v1723_v33, %v1627_v31  ;;  %v9616_v36 = vadd.f32 %v2212_v53, %v2100_v44  ;;  %v2101_v56 = vadd.f32 %v14682_v46, %v1893_v55  ;;  %v2557_v17 = vmul.f32 %v9316_v47, %v9361_v24  ;;  %v14687_v44 = vld [vmem:[#allocation86_spill] sm:$0xff] }
 0x34f   : > { %v1643_v8 = vpop.permute.xlu1 %1642  ;;  %v2115_v18 = vpop.permute.xlu0 %2114  ;;  %v1530_v9 = vmul.f32 %v14683_v1, %v9375_v14  ;;  %v2222_v40 = vmul.f32 %v9587_v54, %v9002_v49  ;;  %14686 = vst [vmem:[#allocation34_spill] sm:$0xff] %v9633_v0  ;;  %v2223_v53 = vmul.f32 %v9587_v54, %v9453_v37  ;;  %v1944_v3 = vadd.f32 %v9433_v22, %v9339_v48  ;;  %v14688_v46 = vld [vmem:[#allocation42_spill] sm:$0xff] }
 0x350   : > { %v1919_v33 = vadd.f32 %v14684_v38, %v1727_v61  ;;  %v1653_v50 = vadd.f32 %v1643_v8, %v1445_v11  ;;  %v2126_v20 = vadd.f32 %v2115_v18, %v1918_v21  ;;  %v9628_v30 = vadd.f32 %v2213_v25, %v2101_v56  ;;  %v14689_v8 = vld [vmem:[#allocation59_spill] sm:$0xff] }
 0x351   : > { %2568 = vrot.lane.b32.xlu1 %v2557_v17, %s8396_s25  ;;  %1540 = vrot.lane.b32.xlu0 %v1530_v9, %s8396_s25  ;;  %v2583_v61 = vmul.f32 %v9333_v6, %v9361_v24  ;;  %v1556_v56 = vmul.f32 %v14688_v46, %v9375_v14  ;;  %v2232_v22 = vmul.f32 %v9633_v0, %v9002_v49  ;;  %v14691_v9 = vld [vmem:[#allocation88_spill] sm:$0xff] }
 0x352   : > { %14685 = vst [vmem:[#allocation77_spill] sm:$0xff] %v9628_v30  ;;  %v1737_v55 = vadd.f32 %v1733_v29, %v1653_v50  ;;  %v9639_v31 = vadd.f32 %v2222_v40, %v2126_v20  ;;  %v2127_v11 = vadd.f32 %v14687_v44, %v1919_v33  ;;  %v2233_v38 = vmul.f32 %v9633_v0, %v9453_v37  ;;  %v14692_v20 = vld [vmem:[#allocation89_spill] sm:$0xff]  ;;  %v14693_v49 = vld [vmem:[#allocation44_spill] sm:$0xff]  ;;  %v14706_v0 = vld [vmem:[#allocation19_spill] sm:$0xff] }
 0x353   : > { %v9642_v21 = vpop.permute.xlu1 %1756  ;;  %v2141_v25 = vpop.permute.xlu0 %2140 }
 0x354   : > { %v1945_v18 = vadd.f32 %v14689_v8, %v1737_v55  ;;  %v2152_v17 = vadd.f32 %v2141_v25, %v1944_v3  ;;  %v9651_v48 = vadd.f32 %v2223_v53, %v2127_v11  ;;  %v2609_v3 = vmul.f32 %v14692_v20, %v9361_v24  ;;  %v14696_v25 = vld [vmem:[#allocation90_spill] sm:$0xff] }
 0x355   : > { %2594 = vrot.lane.b32.xlu1 %v2583_v61, %s8396_s25  ;;  %1566 = vrot.lane.b32.xlu0 %v1556_v56, %s8396_s25  ;;  %v1582_v53 = vmul.f32 %v14693_v49, %v9375_v14  ;;  %v2635_v61 = vmul.f32 %v14696_v25, %v9361_v24  ;;  %v14697_v56 = vld [vmem:[#allocation46_spill] sm:$0xff]  ;;  %v9688_v24 = vld [vmem:[#allocation2 + $0x11] sm:$0xff] }
 0x356   : > { %14690 = vst [vmem:[#allocation50_spill] sm:$0xff] %v9651_v48  ;;  %v9655_v29 = vadd.f32 %v2232_v22, %v2152_v17  ;;  %v2153_v40 = vadd.f32 %v14691_v9, %v1945_v18  ;;  %v1608_v8 = vmul.f32 %v14697_v56, %v9375_v14  ;;  %v9676_v18 = vld [vmem:[#allocation2 + $0x18] sm:$0xff]  ;;  %v14699_v9 = vld [vmem:[#allocation20_spill] sm:$0xff]  ;;  %v14703_v48 = vld [vmem:[#allocation18_spill] sm:$0xff]  ;;  %v1770_v54 = vmul.f32 %v14706_v0, %v9688_v24 }
 0x357   : > { %v9660_v33 = vpop.permute.xlu1 %1782  ;;  %v2251_v50 = vpop.permute.xlu0 %2250  ;;  %v1744_v30 = vmul.f32 %v14703_v48, %v9688_v24 }
 0x358   : > { %v9666_v55 = vadd.f32 %v2233_v38, %v2153_v40  ;;  %v1245_v40 = vmul.f32 %v14699_v9, %v9676_v18  ;;  %v14700_v38 = vld [vmem:[#allocation47_spill] sm:$0xff] }
 0x359   : > { %2620 = vrot.lane.b32.xlu1 %v2609_v3, %s8396_s25  ;;  %1592 = vrot.lane.b32.xlu0 %v1582_v53, %s8396_s25  ;;  %v1634_v3 = vmul.f32 %v14700_v38, %v9375_v14 }
 0x35a   : > { %14694 = vst [vmem:[#allocation72_spill] sm:$0xff] %v9666_v55 }
 0x35b   : > { %v9670_v44 = vpop.permute.xlu1 %1808  ;;  %v2277_v11 = vpop.permute.xlu0 %2276 }
 0x35c   : > { %14695 = vst [vmem:[#allocation87_spill] sm:$0xff] %v9670_v44 }
 0x35d   : > { %2646 = vrot.lane.b32.xlu1 %v2635_v61, %s8396_s25  ;;  %1618 = vrot.lane.b32.xlu0 %v1608_v8, %s8396_s25  ;;  %v14702_v8 = vld [vmem:[#allocation22_spill] sm:$0xff] }
 0x35e   : > { %v1271_v55 = vmul.f32 %v14702_v8, %v9676_v18 }
 0x35f   : > { %v9680_v17 = vpop.permute.xlu1 %1834  ;;  %v9682_v22 = vpop.permute.xlu0 %2302 }
 0x360   : > { %14698 = vst [vmem:[#allocation83_spill] sm:$0xff] %v9680_v17  ;;  %v14714_v17 = vld [vmem:[#allocation27_spill] sm:$0xff] }
 0x361   : > { %1256 = vrot.lane.b32.xlu1 %v1245_v40, %s8395_s20  ;;  %1644 = vrot.lane.b32.xlu0 %v1634_v3, %s8396_s25  ;;  %v14705_v40 = vld [vmem:[#allocation24_spill] sm:$0xff] }
 0x362   : > { %v1297_v3 = vmul.f32 %v14705_v40, %v9676_v18 }
 0x363   : > { %v9692_v53 = vpop.permute.xlu1 %1860  ;;  %v9694_v61 = vpop.permute.xlu0 %2328 }
 0x364   : > { %14701 = vst [vmem:[#allocation36_spill] sm:$0xff] %v9692_v53  ;;  %v9740_v53 = vld [vmem:[#allocation2 + $0x28] sm:$0xff] }
 0x365   : > { %1282 = vrot.lane.b32.xlu1 %v1271_v55, %s8395_s20  ;;  %1754 = vrot.lane.b32.xlu0 %v1744_v30, %s8395_s20  ;;  %v14708_v30 = vld [vmem:[#allocation26_spill] sm:$0xff] }
 0x366   : > { %v1323_v55 = vmul.f32 %v14708_v30, %v9676_v18 }
 0x367   : > { %v9702_v9 = vpop.permute.xlu1 %1886  ;;  %v9704_v15 = vpop.permute.xlu0 %2354 }
 0x368   : > { %14704 = vst [vmem:[#allocation52_spill] sm:$0xff] %v9702_v9  ;;  %v14709_v9 = vld [vmem:[#allocation21_spill] sm:$0xff] }
 0x369   : > { %1308 = vrot.lane.b32.xlu1 %v1297_v3, %s8395_s20  ;;  %1780 = vrot.lane.b32.xlu0 %v1770_v54, %s8395_s20  ;;  %v1796_v51 = vmul.f32 %v14709_v9, %v9688_v24  ;;  %v1349_v54 = vmul.f32 %v8766_v28, %v9676_v18  ;;  %v14711_v3 = vld [vmem:[#allocation23_spill] sm:$0xff]  ;;  %v9744_v28 = vstv %s7761_s7  ;;  %s10119_s7 = sld [smem:[#allocation8 + $0xe2]] }
 0x36a   : > { %14713 = vst [vmem:[#allocation54_spill] sm:$0xff] %v9744_v28 }
 0x36b   : > { %v9712_v8 = vpop.permute.xlu1 %1912  ;;  %v9714_v48 = vpop.permute.xlu0 %2380 }
 0x36c   : > { %14707 = vst [vmem:[#allocation76_spill] sm:$0xff] %v9712_v8  ;;  %v1822_v8 = vmul.f32 %v14711_v3, %v9688_v24 }
 0x36d   : > { %1334 = vrot.lane.b32.xlu1 %v1323_v55, %s8395_s20  ;;  %1806 = vrot.lane.b32.xlu0 %v1796_v51, %s8395_s20  ;;  %v1375_v51 = vmul.f32 %v8778_v34, %v9676_v18  ;;  %v14712_v55 = vld [vmem:[#allocation25_spill] sm:$0xff]  ;;  %v1401_v34 = vmul.f32 %v14650_v7, %v9676_v18 }
 0x36f   : > { %v9722_v0 = vpop.permute.xlu1 %1938  ;;  %v9724_v40 = vpop.permute.xlu0 %2406 }
 0x370   : > { %14710 = vst [vmem:[#allocation38_spill] sm:$0xff] %v9722_v0  ;;  %v1848_v0 = vmul.f32 %v14712_v55, %v9688_v24  ;;  %v1874_v55 = vmul.f32 %v14714_v17, %v9688_v24  ;;  %v1427_v17 = vmul.f32 %v14659_v12, %v9676_v18 }
 0x371   : > { %1360 = vrot.lane.b32.xlu1 %v1349_v54, %s8395_s20  ;;  %1832 = vrot.lane.b32.xlu0 %v1822_v8, %s8395_s20  ;;  %v2262_v8 = vadd.f32 %v2251_v50, %v9484_v57  ;;  %v2288_v57 = vadd.f32 %v2277_v11, %v9514_v41  ;;  %v9772_v41 = vstv %s7763_s13  ;;  %s7777_s13 = sld [smem:[#allocation8 + $0xb]] }
 0x372   : > { %14718 = vst [vmem:[#allocation56_spill] sm:$0xff] %v9772_v41 }
 0x373   : > { %v9732_v9 = vpop.permute.xlu1 %1964  ;;  %v9734_v30 = vpop.permute.xlu0 %2432 }
 0x375   : > { %1386 = vrot.lane.b32.xlu1 %v1375_v51, %s8395_s20  ;;  %1858 = vrot.lane.b32.xlu0 %v1848_v0, %s8395_s20  ;;  %v2662_v51 = vmul.f32 %v9744_v28, %v9740_v53  ;;  %v9757_v0 = vstv %s7762_s12  ;;  %s7776_s12 = sld [smem:[#allocation8 + $0x106]] }
 0x376   : > { %14715 = vst [vmem:[#allocation82_spill] sm:$0xff] %v9757_v0 }
 0x377   : > { %v9747_v54 = vpop.permute.xlu1 %1990  ;;  %v2459_v3 = vpop.permute.xlu0 %2458 }
 0x378   : > { %v2470_v26 = vadd.f32 %v2459_v3, %v2262_v8  ;;  %v14717_v8 = vld [vmem:[#allocation28_spill] sm:$0xff] }
 0x379   : > { %1412 = vrot.lane.b32.xlu1 %v1401_v34, %s8395_s20  ;;  %1884 = vrot.lane.b32.xlu0 %v1874_v55, %s8395_s20  ;;  %v1900_v3 = vmul.f32 %v14717_v8, %v9688_v24  ;;  %v2672_v34 = vmul.f32 %v9757_v0, %v9740_v53  ;;  %v2682_v8 = vmul.f32 %v9772_v41, %v9740_v53 }
 0x37a   : > { %v9760_v50 = vadd.f32 %v2662_v51, %v2470_v26  ;;  %v2314_v26 = vadd.f32 %v9682_v22, %v9542_v27  ;;  %v1453_v51 = vmul.f32 %v14667_v13, %v9676_v18  ;;  %v9788_v27 = vstv %s7764_s14  ;;  %s7778_s14 = sld [smem:[#allocation8 + $0x2f]] }
 0x37b   : > { %v9762_v44 = vpop.permute.xlu1 %2016  ;;  %v2485_v7 = vpop.permute.xlu0 %2484  ;;  %14722 = vst [vmem:[#allocation59_spill] sm:$0xff] %v9788_v27  ;;  %v2340_v22 = vadd.f32 %v9694_v61, %v9568_v60  ;;  %v9804_v60 = vstv %s7765_s26  ;;  %v2366_v61 = vadd.f32 %v9704_v15, %v9595_v10  ;;  %v9820_v10 = vstv %s7766_s29  ;;  %s10135_s26 = sld [smem:[#allocation8 + $0x53]] }
 0x37c   : > { %14716 = vst [vmem:[#allocation40_spill] sm:$0xff] %v9760_v50  ;;  %v2496_v28 = vadd.f32 %v2485_v7, %v2288_v57  ;;  %v14721_v57 = vld [vmem:[#allocation29_spill] sm:$0xff]  ;;  %14726 = vst [vmem:[#allocation44_spill] sm:$0xff] %v9804_v60  ;;  %v2392_v15 = vadd.f32 %v9714_v48, %v9616_v36  ;;  %v9836_v36 = vstv %s7767_s8  ;;  %v2418_v48 = vadd.f32 %v9724_v40, %v9639_v31  ;;  %s10166_s29 = sld [smem:[#allocation8 + $0x77]] }
 0x37d   : > { %1438 = vrot.lane.b32.xlu1 %v1427_v17, %s8395_s20  ;;  %1910 = vrot.lane.b32.xlu0 %v1900_v3, %s8395_s20  ;;  %v1926_v7 = vmul.f32 %v14721_v57, %v9688_v24  ;;  %v2692_v57 = vmul.f32 %v9788_v27, %v9740_v53  ;;  %14730 = vst [vmem:[#allocation20_spill] sm:$0xff] %v9820_v10  ;;  %14734 = vst [vmem:[#allocation18_spill] sm:$0xff] %v9836_v36  ;;  %v9852_v31 = vstv %s7768_s30  ;;  %s10208_s8 = sld [smem:[#allocation8 + $0x9b]] }
 0x37e   : > { %v9776_v11 = vadd.f32 %v2672_v34, %v2496_v28  ;;  %v1479_v34 = vmul.f32 %v14674_v23, %v9676_v18  ;;  %14738 = vst [vmem:[#allocation26_spill] sm:$0xff] %v9852_v31  ;;  %v2444_v40 = vadd.f32 %v9734_v30, %v9655_v29  ;;  %s10356_s30 = sld [smem:[#allocation8 + $0xbf]] }
 0x37f   : > { %v9778_v12 = vpop.permute.xlu1 %2042  ;;  %v2511_v55 = vpop.permute.xlu0 %2510 }
 0x380   : > { %14719 = vst [vmem:[#allocation86_spill] sm:$0xff] %v9776_v11  ;;  %14720 = vst [vmem:[#allocation42_spill] sm:$0xff] %v9778_v12  ;;  %v2522_v17 = vadd.f32 %v2511_v55, %v2314_v26  ;;  %v14725_v26 = vld [vmem:[#allocation31_spill] sm:$0xff] }
 0x381   : > { %1464 = vrot.lane.b32.xlu1 %v1453_v51, %s8396_s25  ;;  %1936 = vrot.lane.b32.xlu0 %v1926_v7, %s8395_s20  ;;  %v1952_v55 = vmul.f32 %v14725_v26, %v9688_v24  ;;  %v2702_v26 = vmul.f32 %v9804_v60, %v9740_v53  ;;  %v2399_v60 = vmul.f32 %v9115_v19, %v9453_v37 }
 0x382   : > { %v9792_v28 = vadd.f32 %v2682_v8, %v2522_v17  ;;  %v1505_v8 = vmul.f32 %v14679_v58, %v9676_v18 }
 0x383   : > { %v9794_v13 = vpop.permute.xlu1 %2068  ;;  %v2537_v3 = vpop.permute.xlu0 %2536 }
 0x384   : > { %14723 = vst [vmem:[#allocation88_spill] sm:$0xff] %v9792_v28  ;;  %14724 = vst [vmem:[#allocation89_spill] sm:$0xff] %v9794_v13  ;;  %v2548_v51 = vadd.f32 %v2537_v3, %v2340_v22  ;;  %v14729_v22 = vld [vmem:[#allocation33_spill] sm:$0xff] }
 0x385   : > { %1490 = vrot.lane.b32.xlu1 %v1479_v34, %s8396_s25  ;;  %1962 = vrot.lane.b32.xlu0 %v1952_v55, %s8396_s25  ;;  %v1978_v3 = vmul.f32 %v14729_v22, %v9688_v24  ;;  %v2712_v22 = vmul.f32 %v9820_v10, %v9740_v53 }
 0x386   : > { %v9808_v7 = vadd.f32 %v2692_v57, %v2548_v51  ;;  %v1531_v57 = vmul.f32 %v14683_v1, %v9676_v18 }
 0x387   : > { %v9810_v23 = vpop.permute.xlu1 %2094  ;;  %v2563_v17 = vpop.permute.xlu0 %2562 }
 0x388   : > { %14727 = vst [vmem:[#allocation90_spill] sm:$0xff] %v9808_v7  ;;  %14728 = vst [vmem:[#allocation46_spill] sm:$0xff] %v9810_v23  ;;  %v2574_v34 = vadd.f32 %v2563_v17, %v2366_v61  ;;  %v14733_v61 = vld [vmem:[#allocation35_spill] sm:$0xff] }
 0x389   : > { %1516 = vrot.lane.b32.xlu1 %v1505_v8, %s8396_s25  ;;  %1988 = vrot.lane.b32.xlu0 %v1978_v3, %s8396_s25  ;;  %v2004_v17 = vmul.f32 %v14733_v61, %v9688_v24 }
 0x38a   : > { %v9824_v55 = vadd.f32 %v2702_v26, %v2574_v34  ;;  %v1557_v26 = vmul.f32 %v14688_v46, %v9676_v18 }
 0x38b   : > { %v9826_v58 = vpop.permute.xlu1 %2120  ;;  %v2589_v51 = vpop.permute.xlu0 %2588 }
 0x38c   : > { %14731 = vst [vmem:[#allocation47_spill] sm:$0xff] %v9824_v55  ;;  %14732 = vst [vmem:[#allocation22_spill] sm:$0xff] %v9826_v58  ;;  %v2600_v8 = vadd.f32 %v2589_v51, %v2392_v15  ;;  %v14737_v15 = vld [vmem:[#allocation37_spill] sm:$0xff] }
 0x38d   : > { %1542 = vrot.lane.b32.xlu1 %v1531_v57, %s8396_s25  ;;  %2014 = vrot.lane.b32.xlu0 %v2004_v17, %s8396_s25  ;;  %v2030_v51 = vmul.f32 %v14737_v15, %v9688_v24  ;;  %v2722_v57 = vmul.f32 %v9836_v36, %v9740_v53 }
 0x38e   : > { %v9840_v3 = vadd.f32 %v2712_v22, %v2600_v8  ;;  %v1583_v22 = vmul.f32 %v14693_v49, %v9676_v18  ;;  %v14743_v49 = vld [vmem:[#allocation41_spill] sm:$0xff] }
 0x38f   : > { %v9842_v34 = vpop.permute.xlu1 %2146  ;;  %v2615_v1 = vpop.permute.xlu0 %2614 }
 0x390   : > { %14735 = vst [vmem:[#allocation24_spill] sm:$0xff] %v9840_v3  ;;  %14736 = vst [vmem:[#allocation19_spill] sm:$0xff] %v9842_v34  ;;  %v2626_v61 = vadd.f32 %v2615_v1, %v2418_v48  ;;  %v14740_v48 = vld [vmem:[#allocation39_spill] sm:$0xff]  ;;  %v14759_v34 = vld [vmem:[#allocation61_spill] sm:$0xff] }
 0x391   : > { %1568 = vrot.lane.b32.xlu1 %v1557_v26, %s8396_s25  ;;  %2040 = vrot.lane.b32.xlu0 %v2030_v51, %s8396_s25  ;;  %v2056_v1 = vmul.f32 %v14740_v48, %v9688_v24  ;;  %v2732_v26 = vmul.f32 %v9852_v31, %v9740_v53  ;;  %v14745_v48 = vld [vmem:[#allocation43_spill] sm:$0xff]  ;;  %v14757_v31 = vld [vmem:[#allocation58_spill] sm:$0xff] }
 0x392   : > { %v9856_v17 = vadd.f32 %v2722_v57, %v2626_v61  ;;  %v1609_v61 = vmul.f32 %v14697_v56, %v9676_v18  ;;  %v2082_v57 = vmul.f32 %v14743_v49, %v9688_v24  ;;  %v14748_v49 = vld [vmem:[#allocation45_spill] sm:$0xff]  ;;  %v1164_v36 = vmul.f32 %v14757_v31, %v9375_v14 }
 0x393   : > { %v9858_v8 = vpop.permute.xlu1 %2256  ;;  %v2641_v46 = vpop.permute.xlu0 %2640 }
 0x394   : > { %14739 = vst [vmem:[#allocation21_spill] sm:$0xff] %v9856_v17  ;;  %v2652_v15 = vadd.f32 %v2641_v46, %v2444_v40  ;;  %v1168_v10 = vadd.f32 %v1164_v36, %v14759_v34  ;;  %v14763_v36 = vld [vmem:[#allocation65_spill] sm:$0xff] }
 0x395   : > { %1594 = vrot.lane.b32.xlu1 %v1583_v22, %s8396_s25  ;;  %2066 = vrot.lane.b32.xlu0 %v2056_v1, %s8396_s25  ;;  %v1635_v22 = vmul.f32 %v14700_v38, %v9676_v18  ;;  %v2108_v1 = vmul.f32 %v14745_v48, %v9688_v24  ;;  %v14750_v48 = vld [vmem:[#allocation53_spill] sm:$0xff]  ;;  %v1184_v27 = vmul.f32 %v14763_v36, %v9375_v14 }
 0x396   : > { %v9868_v29 = vadd.f32 %v2732_v26, %v2652_v15  ;;  %v14747_v26 = vld [vmem:[#allocation51_spill] sm:$0xff] }
 0x397   : > { %v9870_v30 = vpop.permute.xlu1 %2282  ;;  %v1255_v51 = vpop.permute.xlu0 %1254 }
 0x398   : > { %14741 = vst [vmem:[#allocation23_spill] sm:$0xff] %v9868_v29  ;;  %14742 = vst [vmem:[#allocation25_spill] sm:$0xff] %v9870_v30  ;;  %v9892_v29 = vld [vmem:[#allocation2 + $0x12] sm:$0xff] }
 0x399   : > { %1620 = vrot.lane.b32.xlu1 %v1609_v61, %s8396_s25  ;;  %2092 = vrot.lane.b32.xlu0 %v2082_v57, %s8396_s25  ;;  %v2243_v61 = vmul.f32 %v14747_v26, %v9453_v37  ;;  %v2134_v57 = vmul.f32 %v14748_v49, %v9688_v24  ;;  %v2244_v17 = vmul.f32 %v14747_v26, %v9892_v29 }
 0x39a   : > { %v2270_v55 = vmul.f32 %v14750_v48, %v9892_v29 }
 0x39b   : > { %v9878_v40 = vpop.permute.xlu1 %2308  ;;  %v1281_v46 = vpop.permute.xlu0 %1280 }
 0x39c   : > { %14744 = vst [vmem:[#allocation27_spill] sm:$0xff] %v9878_v40  ;;  %v14767_v40 = vld [vmem:[#allocation69_spill] sm:$0xff] }
 0x39d   : > { %1646 = vrot.lane.b32.xlu1 %v1635_v22, %s8396_s25  ;;  %2118 = vrot.lane.b32.xlu0 %v2108_v1, %s8396_s25  ;;  %v2269_v1 = vmul.f32 %v14750_v48, %v9453_v37  ;;  %v1194_v12 = vmul.f32 %v14767_v40, %v9375_v14 }
 0x39f   : > { %v9886_v56 = vpop.permute.xlu1 %2334  ;;  %v1307_v15 = vpop.permute.xlu0 %1306 }
 0x3a0   : > { %14746 = vst [vmem:[#allocation28_spill] sm:$0xff] %v9886_v56 }
 0x3a1   : > { %2252 = vrot.lane.b32.xlu1 %v2243_v61, %s8395_s20  ;;  %2144 = vrot.lane.b32.xlu0 %v2134_v57, %s8396_s25  ;;  %v14752_v61 = vld [vmem:[#allocation55_spill] sm:$0xff] }
 0x3a2   : > { %v2295_v57 = vmul.f32 %v14752_v61, %v9453_v37  ;;  %v2296_v28 = vmul.f32 %v14752_v61, %v9892_v29 }
 0x3a3   : > { %v9896_v38 = vpop.permute.xlu1 %2360  ;;  %v9898_v22 = vpop.permute.xlu0 %1332 }
 0x3a4   : > { %14749 = vst [vmem:[#allocation29_spill] sm:$0xff] %v9896_v38 }
 0x3a5   : > { %2278 = vrot.lane.b32.xlu1 %v2269_v1, %s8395_s20  ;;  %2254 = vrot.lane.b32.xlu0 %v2244_v17, %s8395_s20  ;;  %v14754_v17 = vld [vmem:[#allocation57_spill] sm:$0xff] }
 0x3a6   : > { %v2321_v1 = vmul.f32 %v14754_v17, %v9453_v37  ;;  %v2322_v50 = vmul.f32 %v14754_v17, %v9892_v29  ;;  %v14760_v17 = vld [vmem:[#allocation62_spill] sm:$0xff] }
 0x3a7   : > { %v9906_v49 = vpop.permute.xlu1 %2386  ;;  %v9908_v3 = vpop.permute.xlu0 %1358 }
 0x3a8   : > { %14751 = vst [vmem:[#allocation31_spill] sm:$0xff] %v9906_v49  ;;  %v1174_v49 = vmul.f32 %v14760_v17, %v9375_v14 }
 0x3a9   : > { %2304 = vrot.lane.b32.xlu1 %v2295_v57, %s8395_s20  ;;  %2280 = vrot.lane.b32.xlu0 %v2270_v55, %s8395_s20  ;;  %v14756_v55 = vld [vmem:[#allocation60_spill] sm:$0xff] }
 0x3aa   : > { %v2347_v57 = vmul.f32 %v14756_v55, %v9453_v37 }
 0x3ab   : > { %v9916_v7 = vpop.permute.xlu1 %2412  ;;  %v9918_v26 = vpop.permute.xlu0 %1384 }
 0x3ac   : > { %14753 = vst [vmem:[#allocation33_spill] sm:$0xff] %v9916_v7  ;;  %v2348_v7 = vmul.f32 %v14756_v55, %v9892_v29  ;;  %v14762_v55 = vld [vmem:[#allocation64_spill] sm:$0xff] }
 0x3ad   : > { %2330 = vrot.lane.b32.xlu1 %v2321_v1, %s8395_s20  ;;  %2306 = vrot.lane.b32.xlu0 %v2296_v28, %s8395_s20  ;;  %v14758_v1 = vld [vmem:[#allocation63_spill] sm:$0xff]  ;;  %v1178_v23 = vadd.f32 %v1174_v49, %v14762_v55  ;;  %v2425_v49 = vmul.f32 %v9151_v45, %v9453_v37 }
 0x3ae   : > { %v2374_v38 = vmul.f32 %v14758_v1, %v9892_v29 }
 0x3af   : > { %v9926_v11 = vpop.permute.xlu1 %2438  ;;  %v9928_v48 = vpop.permute.xlu0 %1410 }
 0x3b0   : > { %14755 = vst [vmem:[#allocation35_spill] sm:$0xff] %v9926_v11  ;;  %v2373_v11 = vmul.f32 %v14758_v1, %v9453_v37  ;;  %v2400_v1 = vmul.f32 %v9115_v19, %v9892_v29  ;;  %v2451_v19 = vmul.f32 %v14658_v59, %v9453_v37 }
 0x3b1   : > { %2356 = vrot.lane.b32.xlu1 %v2347_v57, %s8395_s20  ;;  %2332 = vrot.lane.b32.xlu0 %v2322_v50, %s8395_s20  ;;  %v1264_v50 = vadd.f32 %v1255_v51, %v1168_v10 }
 0x3b3   : > { %v9938_v61 = vpop.permute.xlu1 %2464  ;;  %v9940_v28 = vpop.permute.xlu0 %1436 }
 0x3b5   : > { %2382 = vrot.lane.b32.xlu1 %v2373_v11, %s8395_s20  ;;  %2358 = vrot.lane.b32.xlu0 %v2348_v7, %s8395_s20  ;;  %v14764_v11 = vld [vmem:[#allocation67_spill] sm:$0xff]  ;;  %v1290_v7 = vadd.f32 %v1281_v46, %v1178_v23  ;;  %v1674_v23 = vmul.f32 %v9154_v4, %v9688_v24 }
 0x3b6   : > { %v1664_v13 = vmul.f32 %v14764_v11, %v9688_v24 }
 0x3b7   : > { %v9951_v57 = vpop.permute.xlu1 %2490  ;;  %v1463_v58 = vpop.permute.xlu0 %1462 }
 0x3b8   : > { %14761 = vst [vmem:[#allocation37_spill] sm:$0xff] %v9951_v57  ;;  %v1472_v56 = vadd.f32 %v1463_v58, %v1264_v50  ;;  %v14766_v58 = vld [vmem:[#allocation68_spill] sm:$0xff] }
 0x3b9   : > { %2408 = vrot.lane.b32.xlu1 %v2399_v60, %s8395_s20  ;;  %2384 = vrot.lane.b32.xlu0 %v2374_v38, %s8395_s20  ;;  %v1188_v50 = vadd.f32 %v1184_v27, %v14766_v58  ;;  %v2426_v27 = vmul.f32 %v9151_v45, %v9892_v29  ;;  %v14775_v57 = vld [vmem:[#allocation80_spill] sm:$0xff] }
 0x3ba   : > { %v9964_v10 = vadd.f32 %v1664_v13, %v1472_v56 }
 0x3bb   : > { %v9966_v51 = vpop.permute.xlu1 %2516  ;;  %v1489_v41 = vpop.permute.xlu0 %1488  ;;  %v1316_v13 = vadd.f32 %v1307_v15, %v1188_v50  ;;  %v1684_v15 = vmul.f32 %v9190_v52, %v9688_v24 }
 0x3bc   : > { %14765 = vst [vmem:[#allocation39_spill] sm:$0xff] %v9966_v51  ;;  %v1498_v60 = vadd.f32 %v1489_v41, %v1290_v7  ;;  %v1198_v41 = vadd.f32 %v1194_v12, %v9166_v39  ;;  %v14769_v7 = vld [vmem:[#allocation71_spill] sm:$0xff]  ;;  %v2477_v12 = vmul.f32 %v14666_v5, %v9453_v37 }
 0x3bd   : > { %2434 = vrot.lane.b32.xlu1 %v2425_v49, %s8395_s20  ;;  %2410 = vrot.lane.b32.xlu0 %v2400_v1, %s8395_s20  ;;  %v1204_v51 = vmul.f32 %v14769_v7, %v9375_v14 }
 0x3be   : > { %v9979_v46 = vadd.f32 %v1674_v23, %v1498_v60  ;;  %v1342_v1 = vadd.f32 %v9898_v22, %v1198_v41  ;;  %v2452_v23 = vmul.f32 %v14658_v59, %v9892_v29 }
 0x3bf   : > { %v9981_v56 = vpop.permute.xlu1 %2542  ;;  %v1515_v38 = vpop.permute.xlu0 %1514 }
 0x3c0   : > { %14768 = vst [vmem:[#allocation41_spill] sm:$0xff] %v9981_v56  ;;  %v1524_v49 = vadd.f32 %v1515_v38, %v1316_v13  ;;  %v1208_v13 = vadd.f32 %v1204_v51, %v9202_v43  ;;  %v14771_v38 = vld [vmem:[#allocation74_spill] sm:$0xff]  ;;  %v2503_v51 = vmul.f32 %v14673_v63, %v9453_v37 }
 0x3c1   : > { %2460 = vrot.lane.b32.xlu1 %v2451_v19, %s8396_s25  ;;  %2436 = vrot.lane.b32.xlu0 %v2426_v27, %s8395_s20  ;;  %v1214_v19 = vmul.f32 %v14771_v38, %v9375_v14  ;;  %v14772_v27 = vld [vmem:[#allocation78_spill] sm:$0xff] }
 0x3c2   : > { %v9995_v50 = vadd.f32 %v1684_v15, %v1524_v49  ;;  %v1694_v22 = vmul.f32 %v14772_v27, %v9688_v24  ;;  %v1368_v41 = vadd.f32 %v9908_v3, %v1208_v13 }
 0x3c3   : > { %v9997_v60 = vpop.permute.xlu1 %2568  ;;  %v1541_v45 = vpop.permute.xlu0 %1540 }
 0x3c4   : > { %14770 = vst [vmem:[#allocation43_spill] sm:$0xff] %v9997_v60  ;;  %v1550_v56 = vadd.f32 %v1541_v45, %v1342_v1  ;;  %v2478_v1 = vmul.f32 %v14666_v5, %v9892_v29  ;;  %v14774_v45 = vld [vmem:[#allocation79_spill] sm:$0xff] }
 0x3c5   : > { %2486 = vrot.lane.b32.xlu1 %v2477_v12, %s8396_s25  ;;  %2462 = vrot.lane.b32.xlu0 %v2452_v23, %s8396_s25  ;;  %v1218_v60 = vadd.f32 %v1214_v19, %v14774_v45  ;;  %v1224_v12 = vmul.f32 %v14775_v57, %v9375_v14  ;;  %v14776_v23 = vld [vmem:[#allocation84_spill] sm:$0xff]  ;;  %v2529_v19 = vmul.f32 %v9287_v62, %v9453_v37 }
 0x3c6   : > { %v10011_v49 = vadd.f32 %v1694_v22, %v1550_v56  ;;  %v1704_v3 = vmul.f32 %v14776_v23, %v9688_v24 }
 0x3c7   : > { %v10013_v15 = vpop.permute.xlu1 %2594  ;;  %v1567_v59 = vpop.permute.xlu0 %1566  ;;  %v1394_v56 = vadd.f32 %v9918_v26, %v1218_v60  ;;  %v1714_v26 = vmul.f32 %v14672_v16, %v9688_v24 }
 0x3c8   : > { %14773 = vst [vmem:[#allocation51_spill] sm:$0xff] %v10013_v15  ;;  %v1576_v0 = vadd.f32 %v1567_v59, %v1368_v41  ;;  %v2504_v41 = vmul.f32 %v14673_v63, %v9892_v29  ;;  %v1228_v59 = vadd.f32 %v1224_v12, %v9270_v2  ;;  %v14778_v15 = vld [vmem:[#allocation85_spill] sm:$0xff]  ;;  %v2555_v12 = vmul.f32 %v9316_v47, %v9453_v37 }
 0x3c9   : > { %2512 = vrot.lane.b32.xlu1 %v2503_v51, %s8396_s25  ;;  %2488 = vrot.lane.b32.xlu0 %v2478_v1, %s8396_s25  ;;  %v1234_v51 = vmul.f32 %v14778_v15, %v9375_v14  ;;  %v2530_v14 = vmul.f32 %v9287_v62, %v9892_v29  ;;  %v2581_v62 = vmul.f32 %v9333_v6, %v9453_v37 }
 0x3ca   : > { %v10027_v13 = vadd.f32 %v1704_v3, %v1576_v0  ;;  %v1420_v0 = vadd.f32 %v9928_v48, %v1228_v59  ;;  %v2556_v59 = vmul.f32 %v9316_v47, %v9892_v29  ;;  %v2582_v47 = vmul.f32 %v9333_v6, %v9892_v29 }
 0x3cb   : > { %v10029_v22 = vpop.permute.xlu1 %2620  ;;  %v1593_v5 = vpop.permute.xlu0 %1592  ;;  %v1238_v3 = vadd.f32 %v1234_v51, %v9298_v32 }
 0x3cc   : > { %14777 = vst [vmem:[#allocation45_spill] sm:$0xff] %v10029_v22  ;;  %v1602_v30 = vadd.f32 %v1593_v5, %v1394_v56  ;;  %v1724_v5 = vmul.f32 %v9312_v35, %v9688_v24  ;;  %v1185_v22 = vmul.f32 %v14763_v36, %v9676_v18  ;;  %v10171_v36 = vstv %s10119_s7  ;;  %s7796_s7 = sld [smem:[#allocation8 + $0x79]] }
 0x3cd   : > { %2538 = vrot.lane.b32.xlu1 %v2529_v19, %s8396_s25  ;;  %2514 = vrot.lane.b32.xlu0 %v2504_v41, %s8396_s25  ;;  %14791 = vst [vmem:[#allocation69_spill] sm:$0xff] %v10171_v36 }
 0x3ce   : > { %v10043_v60 = vadd.f32 %v1714_v26, %v1602_v30  ;;  %v1446_v30 = vadd.f32 %v9940_v28, %v1238_v3  ;;  %v1734_v26 = vmul.f32 %v9331_v42, %v9688_v24  ;;  %v2633_v3 = vmul.f32 %v14696_v25, %v9453_v37 }
 0x3cf   : > { %v10045_v1 = vpop.permute.xlu1 %2646  ;;  %v1619_v63 = vpop.permute.xlu0 %1618 }
 0x3d0   : > { %14779 = vst [vmem:[#allocation53_spill] sm:$0xff] %v10043_v60  ;;  %14780 = vst [vmem:[#allocation55_spill] sm:$0xff] %v10045_v1  ;;  %v1628_v56 = vadd.f32 %v1619_v63, %v1420_v0 }
 0x3d1   : > { %2564 = vrot.lane.b32.xlu1 %v2555_v12, %s8396_s25  ;;  %2540 = vrot.lane.b32.xlu0 %v2530_v14, %s8396_s25  ;;  %v2607_v12 = vmul.f32 %v14692_v20, %v9453_v37  ;;  %v2634_v37 = vmul.f32 %v14696_v25, %v9892_v29  ;;  %v10117_v25 = vstv %s7771_s22  ;;  %s7793_s22 = sld [smem:[#allocation8 + $0xd]] }
 0x3d2   : > { %v10057_v48 = vadd.f32 %v1724_v5, %v1628_v56  ;;  %v2608_v56 = vmul.f32 %v14692_v20, %v9892_v29  ;;  %v10089_v5 = vld [vmem:[#allocation2 + $0x30] sm:$0xff]  ;;  %v10103_v20 = vstv %s7770_s11  ;;  %14785 = vst [vmem:[#allocation61_spill] sm:$0xff] %v10117_v25  ;;  %v2794_v1 = vmul.f32 %v10117_v25, %v9740_v53  ;;  %s10424_s11 = sld [smem:[#allocation8 + $0x107]] }
 0x3d3   : > { %v10059_v19 = vpop.permute.xlu1 %1256  ;;  %v1645_v41 = vpop.permute.xlu0 %1644  ;;  %14784 = vst [vmem:[#allocation63_spill] sm:$0xff] %v10103_v20 }
 0x3d4   : > { %14781 = vst [vmem:[#allocation57_spill] sm:$0xff] %v10057_v48  ;;  %v1654_v51 = vadd.f32 %v1645_v41, %v1446_v30  ;;  %v10091_v30 = vstv %s7769_s10  ;;  %v1215_v48 = vmul.f32 %v14771_v38, %v9676_v18  ;;  %s10390_s10 = sld [smem:[#allocation8 + $0xe3]] }
 0x3d5   : > { %2590 = vrot.lane.b32.xlu1 %v2581_v62, %s8396_s25  ;;  %2566 = vrot.lane.b32.xlu0 %v2556_v59, %s8396_s25  ;;  %14783 = vst [vmem:[#allocation58_spill] sm:$0xff] %v10091_v30  ;;  %v2743_v62 = vmul.f32 %v10091_v30, %v10089_v5 }
 0x3d6   : > { %v10069_v28 = vadd.f32 %v1734_v26, %v1654_v51  ;;  %v2769_v26 = vmul.f32 %v10103_v20, %v10089_v5 }
 0x3d7   : > { %v10071_v0 = vpop.permute.xlu1 %1282  ;;  %v10073_v63 = vpop.permute.xlu0 %1754 }
 0x3d8   : > { %14782 = vst [vmem:[#allocation60_spill] sm:$0xff] %v10069_v28  ;;  %v1205_v28 = vmul.f32 %v14769_v7, %v9676_v18  ;;  %v10173_v7 = vstv %s7776_s12  ;;  %s7786_s12 = sld [smem:[#allocation8 + $0x30]] }
 0x3d9   : > { %2616 = vrot.lane.b32.xlu1 %v2607_v12, %s8396_s25  ;;  %2592 = vrot.lane.b32.xlu0 %v2582_v47, %s8396_s25  ;;  %v2742_v12 = vmul.f32 %v10091_v30, %v9740_v53  ;;  %14792 = vst [vmem:[#allocation71_spill] sm:$0xff] %v10173_v7 }
 0x3db   : > { %v10081_v24 = vpop.permute.xlu1 %1308  ;;  %v10083_v14 = vpop.permute.xlu0 %1780 }
 0x3dd   : > { %2642 = vrot.lane.b32.xlu1 %v2633_v3, %s8396_s25  ;;  %2618 = vrot.lane.b32.xlu0 %v2608_v56, %s8396_s25  ;;  %v2795_v56 = vmul.f32 %v10117_v25, %v10089_v5  ;;  %v1225_v25 = vmul.f32 %v14775_v57, %v9676_v18 }
 0x3df   : > { %v10095_v6 = vpop.permute.xlu1 %1334  ;;  %v10097_v41 = vpop.permute.xlu0 %1806 }
 0x3e1   : > { %2752 = vrot.lane.b32.xlu1 %v2743_v62, %s8395_s20  ;;  %2644 = vrot.lane.b32.xlu0 %v2634_v37, %s8396_s25  ;;  %v2768_v62 = vmul.f32 %v10103_v20, %v9740_v53  ;;  %v10131_v37 = vstv %s7772_s9  ;;  %s7794_s9 = sld [smem:[#allocation8 + $0x31]] }
 0x3e2   : > { %14787 = vst [vmem:[#allocation64_spill] sm:$0xff] %v10131_v37  ;;  %v2821_v20 = vmul.f32 %v10131_v37, %v10089_v5  ;;  %v2820_v60 = vmul.f32 %v10131_v37, %v9740_v53  ;;  %v8226_v37 = vld [vmem:[#allocation2 + $0x19] sm:$0xff] }
 0x3e3   : > { %v10107_v59 = vpop.permute.xlu1 %1360  ;;  %v10109_v51 = vpop.permute.xlu0 %1832 }
 0x3e5   : > { %2778 = vrot.lane.b32.xlu1 %v2769_v26, %s8395_s20  ;;  %2750 = vrot.lane.b32.xlu0 %v2742_v12, %s8395_s20  ;;  %v1165_v26 = vmul.f32 %v14757_v31, %v9676_v18  ;;  %v1195_v31 = vmul.f32 %v14767_v40, %v9676_v18  ;;  %v1235_v40 = vmul.f32 %v14778_v15, %v9676_v18 }
 0x3e7   : > { %v10123_v47 = vpop.permute.xlu1 %1386  ;;  %v10125_v3 = vpop.permute.xlu0 %1858  ;;  %v1169_v38 = vadd.f32 %v1165_v26, %v14759_v34  ;;  %v10194_v34 = vadd.f32 %v1205_v28, %v9202_v43  ;;  %v10197_v26 = vadd.f32 %v1215_v48, %v14774_v45  ;;  %v10212_v43 = vadd.f32 %v1235_v40, %v9298_v32 }
 0x3e8   : > { %14786 = vst [vmem:[#allocation62_spill] sm:$0xff] %v10125_v3  ;;  %v10191_v3 = vadd.f32 %v1195_v31, %v9166_v39  ;;  %v2899_v48 = vmul.f32 %v10171_v36, %v10089_v5  ;;  %v1685_v32 = vmul.f32 %v8226_v37, %v9190_v52  ;;  %v10231_v31 = vmul.f32 %v8226_v37, %v14772_v27 }
 0x3e9   : > { %2804 = vrot.lane.b32.xlu1 %v2795_v56, %s8395_s20  ;;  %2776 = vrot.lane.b32.xlu0 %v2768_v62, %s8395_s20  ;;  %v10147_v56 = vstv %s7773_s23  ;;  %v1175_v62 = vmul.f32 %v14760_v17, %v9676_v18  ;;  %v10164_v17 = vstv %s10115_s5  ;;  %v1265_v39 = vadd.f32 %v10059_v19, %v1169_v38  ;;  %s7795_s23 = sld [smem:[#allocation8 + $0x55]] }
 0x3ea   : > { %14790 = vst [vmem:[#allocation68_spill] sm:$0xff] %v10164_v17  ;;  %v10186_v18 = vstv %s7778_s14  ;;  %v2846_v45 = vmul.f32 %v10147_v56, %v9740_v53  ;;  %v2872_v19 = vmul.f32 %v10164_v17, %v9740_v53  ;;  %v2924_v52 = vmul.f32 %v10173_v7, %v9740_v53  ;;  %s7785_s5 = sld [smem:[#allocation8 + $0xc]] }
 0x3eb   : > { %v10139_v12 = vpop.permute.xlu1 %1412  ;;  %v10141_v30 = vpop.permute.xlu0 %1884  ;;  %14795 = vst [vmem:[#allocation79_spill] sm:$0xff] %v10186_v18  ;;  %v1179_v15 = vadd.f32 %v1175_v62, %v14762_v55  ;;  %v1665_v55 = vmul.f32 %v8226_v37, %v14764_v11  ;;  %v1675_v11 = vmul.f32 %v8226_v37, %v9154_v4  ;;  %v2898_v62 = vmul.f32 %v10171_v36, %v9740_v53  ;;  %s10781_s14 = sld [smem:[#allocation8 + $0x9d]] }
 0x3ec   : > { %14788 = vst [vmem:[#allocation65_spill] sm:$0xff] %v10139_v12  ;;  %14789 = vst [vmem:[#allocation67_spill] sm:$0xff] %v10141_v30  ;;  %v10175_v30 = vstv %s7777_s13  ;;  %v1189_v12 = vadd.f32 %v1185_v22, %v14766_v58  ;;  %v10206_v58 = vstv %s10135_s26  ;;  %v10240_v40 = vmul.f32 %v8226_v37, %v14776_v23  ;;  %s7787_s13 = sld [smem:[#allocation8 + $0x54]] }
 0x3ed   : > { %2830 = vrot.lane.b32.xlu1 %v2821_v20, %s8395_s20  ;;  %2802 = vrot.lane.b32.xlu0 %v2794_v1, %s8395_s20  ;;  %14793 = vst [vmem:[#allocation74_spill] sm:$0xff] %v10175_v30  ;;  %v2847_v1 = vmul.f32 %v10147_v56, %v10089_v5  ;;  %v2951_v4 = vmul.f32 %v10175_v30, %v10089_v5  ;;  %v10243_v38 = vstv %s10166_s29  ;;  %s10789_s26 = sld [smem:[#allocation8 + $0x78]] }
 0x3ee   : > { %v1764_v27 = vadd.f32 %v10073_v63, %v9964_v10  ;;  %v10257_v23 = vmul.f32 %v8226_v37, %v14672_v16  ;;  %v10265_v10 = vmul.f32 %v10186_v18, %v9740_v53  ;;  %v10274_v16 = vmul.f32 %v8226_v37, %v9312_v35  ;;  %s10807_s29 = sld [smem:[#allocation8 + $0x9c]] }
 0x3ef   : > { %v10178_v57 = vpop.permute.xlu1 %1438  ;;  %v10180_v20 = vpop.permute.xlu0 %1910  ;;  %v10290_v35 = vmul.f32 %v10243_v38, %v10089_v5 }
 0x3f0   : > { %14794 = vst [vmem:[#allocation78_spill] sm:$0xff] %v10180_v20  ;;  %v10200_v20 = vadd.f32 %v1225_v25, %v9270_v2  ;;  %v2873_v2 = vmul.f32 %v10164_v17, %v10089_v5  ;;  %v2925_v25 = vmul.f32 %v10173_v7, %v10089_v5  ;;  %v10254_v7 = vmul.f32 %v10175_v30, %v9740_v53 }
 0x3f1   : > { %2856 = vrot.lane.b32.xlu1 %v2847_v1, %s8395_s20  ;;  %2828 = vrot.lane.b32.xlu0 %v2820_v60, %s8395_s20  ;;  %v1291_v1 = vadd.f32 %v10071_v0, %v1179_v15  ;;  %v10261_v0 = vmul.f32 %v10206_v58, %v10089_v5  ;;  %v1317_v30 = vadd.f32 %v10081_v24, %v1189_v12  ;;  %v10277_v17 = vstv %s10208_s8  ;;  %s10820_s8 = sld [smem:[#allocation8 + $0xc1]] }
 0x3f3   : > { %v1465_v22 = vpop.permute.xlu1 %1464  ;;  %v10218_v60 = vpop.permute.xlu0 %1936 }
 0x3f4   : > { %v1473_v28 = vadd.f32 %v1465_v22, %v1265_v39 }
 0x3f5   : > { %2882 = vrot.lane.b32.xlu1 %v2873_v2, %s8395_s20  ;;  %2854 = vrot.lane.b32.xlu0 %v2846_v45, %s8395_s20  ;;  %v10250_v2 = vmul.f32 %v10186_v18, %v10089_v5  ;;  %v10279_v18 = vld [vmem:[#allocation2 + $0x1a] sm:$0xff] }
 0x3f6   : > { %v1669_v39 = vadd.f32 %v1665_v55, %v1473_v28  ;;  %v14796_v28 = vld [vmem:[#allocation91_spill] sm:$0xff] }
 0x3f7   : > { %v1491_v45 = vpop.permute.xlu1 %1490  ;;  %v1963_v22 = vpop.permute.xlu0 %1962  ;;  %v2164_v36 = vmul.f32 %v14796_v28, %v9892_v29 }
 0x3f8   : > { %v1765_v63 = vadd.f32 %v9642_v21, %v1669_v39  ;;  %v1499_v15 = vadd.f32 %v1491_v45, %v1291_v1  ;;  %v1972_v55 = vadd.f32 %v1963_v22, %v1764_v27  ;;  %v2165_v21 = vmul.f32 %v10279_v18, %v14796_v28 }
 0x3f9   : > { %2908 = vrot.lane.b32.xlu1 %v2899_v48, %s8395_s20  ;;  %2880 = vrot.lane.b32.xlu0 %v2872_v19, %s8395_s20  ;;  %v1790_v1 = vadd.f32 %v10083_v14, %v9979_v46  ;;  %v10294_v39 = vmul.f32 %v10206_v58, %v9740_v53  ;;  %v10297_v45 = vmul.f32 %v8226_v37, %v9331_v42  ;;  %v14797_v46 = vld [vmem:[#allocation92_spill] sm:$0xff] }
 0x3fa   : > { %v1973_v27 = vadd.f32 %v9732_v9, %v1765_v63  ;;  %v1679_v24 = vadd.f32 %v1675_v11, %v1499_v15  ;;  %v10286_v12 = vadd.f32 %v2164_v36, %v1972_v55  ;;  %v2174_v14 = vmul.f32 %v14797_v46, %v9892_v29  ;;  %v10301_v9 = vld [vmem:[#allocation2 + $0x40] sm:$0xff] }
 0x3fb   : > { %v1517_v48 = vpop.permute.xlu1 %1516  ;;  %v1989_v19 = vpop.permute.xlu0 %1988  ;;  %v1343_v15 = vadd.f32 %v10095_v6, %v10191_v3  ;;  %v1816_v55 = vadd.f32 %v10097_v41, %v9995_v50  ;;  %v10312_v42 = vmul.f32 %v10277_v17, %v10089_v5  ;;  %v14798_v3 = vld [vmem:[#allocation93_spill] sm:$0xff]  ;;  %v14799_v41 = vld [vmem:[#allocation54_spill] sm:$0xff] }
 0x3fc   : > { %v1791_v36 = vadd.f32 %v9660_v33, %v1679_v24  ;;  %v1525_v11 = vadd.f32 %v1517_v48, %v1317_v30  ;;  %v1998_v22 = vadd.f32 %v1989_v19, %v1790_v1  ;;  %v2169_v63 = vadd.f32 %v2165_v21, %v1973_v27 }
 0x3fd   : > { %2934 = vrot.lane.b32.xlu1 %v2925_v25, %s8395_s20  ;;  %2906 = vrot.lane.b32.xlu0 %v2898_v62, %s8395_s20  ;;  %v2184_v50 = vmul.f32 %v14798_v3, %v9892_v29  ;;  %v2665_v25 = vmul.f32 %v14799_v41, %v10301_v9  ;;  %v2175_v62 = vmul.f32 %v10279_v18, %v14797_v46 }
 0x3fe   : > { %v1999_v37 = vadd.f32 %v9747_v54, %v1791_v36  ;;  %v1689_v33 = vadd.f32 %v1685_v32, %v1525_v11  ;;  %v10315_v30 = vadd.f32 %v2174_v14, %v1998_v22  ;;  %v2265_v28 = vadd.f32 %v9858_v8, %v2169_v63  ;;  %v14800_v54 = vld [vmem:[#allocation87_spill] sm:$0xff] }
 0x3ff   : > { %v1543_v21 = vpop.permute.xlu1 %1542  ;;  %v2015_v6 = vpop.permute.xlu0 %2014  ;;  %v2185_v1 = vmul.f32 %v10279_v18, %v14798_v3  ;;  %v1369_v48 = vadd.f32 %v10107_v59, %v10194_v34  ;;  %v1842_v19 = vadd.f32 %v10109_v51, %v10011_v49  ;;  %v14801_v59 = vld [vmem:[#allocation48_spill] sm:$0xff]  ;;  %v14802_v49 = vld [vmem:[#allocation66_spill] sm:$0xff] }
 0x400   : > { %v1817_v32 = vadd.f32 %v14800_v54, %v1689_v33  ;;  %v1551_v27 = vadd.f32 %v1543_v21, %v1343_v15  ;;  %v2024_v24 = vadd.f32 %v2015_v6, %v1816_v55  ;;  %v2473_v8 = vadd.f32 %v9938_v61, %v2265_v28  ;;  %v14806_v6 = vld [vmem:[#allocation62_spill] sm:$0xff] }
 0x401   : > { %2960 = vrot.lane.b32.xlu1 %v2951_v4, %s8396_s25  ;;  %2932 = vrot.lane.b32.xlu0 %v2924_v52, %s8395_s20  ;;  %v2179_v46 = vadd.f32 %v2175_v62, %v1999_v37  ;;  %v2194_v34 = vmul.f32 %v14801_v59, %v9892_v29  ;;  %v2204_v51 = vmul.f32 %v14802_v49, %v9892_v29  ;;  %v14803_v4 = vld [vmem:[#allocation25_spill] sm:$0xff]  ;;  %v14804_v52 = vld [vmem:[#allocation82_spill] sm:$0xff] }
 0x402   : > { %v2025_v14 = vadd.f32 %v9762_v44, %v1817_v32  ;;  %v1699_v36 = vadd.f32 %v10231_v31, %v1551_v27  ;;  %v10336_v11 = vadd.f32 %v2184_v50, %v2024_v24  ;;  %v10338_v22 = vadd.f32 %v2665_v25, %v2473_v8  ;;  %v14805_v44 = vld [vmem:[#allocation83_spill] sm:$0xff]  ;;  %v14807_v50 = vld [vmem:[#allocation37_spill] sm:$0xff]  ;;  %v14808_v62 = vld [vmem:[#allocation42_spill] sm:$0xff] }
 0x403   : > { %v1569_v61 = vpop.permute.xlu1 %1568  ;;  %v2041_v63 = vpop.permute.xlu0 %2040  ;;  %v2291_v15 = vadd.f32 %v14803_v4, %v2179_v46  ;;  %v2675_v55 = vmul.f32 %v14804_v52, %v10301_v9  ;;  %v1395_v21 = vadd.f32 %v10123_v47, %v10197_v26  ;;  %v1868_v3 = vadd.f32 %v14806_v6, %v10027_v13  ;;  %v14809_v47 = vld [vmem:[#allocation27_spill] sm:$0xff]  ;;  %v14814_v4 = vld [vmem:[#allocation53_spill] sm:$0xff]  ;;  %v14818_v6 = vld [vmem:[#allocation28_spill] sm:$0xff] }
 0x404   : > { %v1843_v37 = vadd.f32 %v14805_v44, %v1699_v36  ;;  %v1577_v31 = vadd.f32 %v1569_v61, %v1369_v48  ;;  %v2050_v33 = vadd.f32 %v2041_v63, %v1842_v19  ;;  %v2189_v28 = vadd.f32 %v2185_v1, %v2025_v14  ;;  %v14811_v19 = vld [vmem:[#allocation36_spill] sm:$0xff]  ;;  %v14812_v36 = vld [vmem:[#allocation39_spill] sm:$0xff]  ;;  %v14813_v63 = vld [vmem:[#allocation65_spill] sm:$0xff] }
 0x405   : > { %2986 = vrot.lane.b32.xlu1 %v10250_v2, %s8396_s25  ;;  %2958 = vrot.lane.b32.xlu0 %v10254_v7, %s8396_s25  ;;  %v2499_v25 = vadd.f32 %v14807_v50, %v2291_v15  ;;  %v14810_v2 = vld [vmem:[#allocation56_spill] sm:$0xff]  ;;  %v2195_v7 = vmul.f32 %v10279_v18, %v14801_v59  ;;  %v2205_v48 = vmul.f32 %v10279_v18, %v14802_v49  ;;  %v14815_v15 = vld [vmem:[#allocation67_spill] sm:$0xff]  ;;  %v14816_v49 = vld [vmem:[#allocation89_spill] sm:$0xff] }
 0x406   : > { %v2051_v54 = vadd.f32 %v14808_v62, %v1843_v37  ;;  %v1709_v1 = vadd.f32 %v10240_v40, %v1577_v31  ;;  %v10361_v32 = vadd.f32 %v2194_v34, %v2050_v33  ;;  %v2317_v26 = vadd.f32 %v14809_v47, %v2189_v28  ;;  %v14819_v50 = vld [vmem:[#allocation59_spill] sm:$0xff] }
 0x407   : > { %v1595_v27 = vpop.permute.xlu1 %1594  ;;  %v2067_v13 = vpop.permute.xlu0 %2066  ;;  %v10364_v24 = vadd.f32 %v2675_v55, %v2499_v25  ;;  %v2685_v8 = vmul.f32 %v14810_v2, %v10301_v9  ;;  %v1421_v34 = vadd.f32 %v14813_v63, %v10200_v20  ;;  %v1894_v55 = vadd.f32 %v14815_v15, %v14814_v4  ;;  %v14826_v63 = vld [vmem:[#allocation81_spill] sm:$0xff] }
 0x408   : > { %v1869_v46 = vadd.f32 %v14811_v19, %v1709_v1  ;;  %v1603_v40 = vadd.f32 %v1595_v27, %v1395_v21  ;;  %v2076_v14 = vadd.f32 %v2067_v13, %v1868_v3  ;;  %v2525_v61 = vadd.f32 %v14812_v36, %v2317_v26  ;;  %v14821_v26 = vld [vmem:[#allocation57_spill] sm:$0xff]  ;;  %v14822_v27 = vld [vmem:[#allocation78_spill] sm:$0xff] }
 0x409   : > { %3012 = vrot.lane.b32.xlu1 %v10261_v0, %s8396_s25  ;;  %2984 = vrot.lane.b32.xlu0 %v10265_v10, %s8396_s25  ;;  %v2199_v59 = vadd.f32 %v2195_v7, %v2051_v54  ;;  %v3028_v21 = vmul.f32 %v10243_v38, %v9740_v53  ;;  %v14817_v0 = vld [vmem:[#allocation32_spill] sm:$0xff]  ;;  %v1447_v47 = vadd.f32 %v10178_v57, %v10212_v43  ;;  %v14823_v7 = vld [vmem:[#allocation41_spill] sm:$0xff] }
 0x40a   : > { %v2077_v44 = vadd.f32 %v14816_v49, %v1869_v46  ;;  %v1719_v37 = vadd.f32 %v10257_v23, %v1603_v40  ;;  %v10384_v31 = vadd.f32 %v2204_v51, %v2076_v14  ;;  %v10386_v33 = vadd.f32 %v2685_v8, %v2525_v61  ;;  %v14820_v51 = vld [vmem:[#allocation52_spill] sm:$0xff]  ;;  %v14824_v46 = vld [vmem:[#allocation46_spill] sm:$0xff]  ;;  %v14825_v57 = vld [vmem:[#allocation29_spill] sm:$0xff] }
 0x40b   : > { %v1621_v20 = vpop.permute.xlu1 %1620  ;;  %v2093_v28 = vpop.permute.xlu0 %2092  ;;  %v2214_v10 = vmul.f32 %v14817_v0, %v9892_v29  ;;  %v2343_v3 = vadd.f32 %v14818_v6, %v2199_v59  ;;  %v2695_v23 = vmul.f32 %v14819_v50, %v10301_v9  ;;  %v1920_v13 = vadd.f32 %v14822_v27, %v14821_v26  ;;  %v14831_v6 = vld [vmem:[#allocation22_spill] sm:$0xff] }
 0x40c   : > { %v1895_v25 = vadd.f32 %v14820_v51, %v1719_v37  ;;  %v1629_v62 = vadd.f32 %v1621_v20, %v1421_v34  ;;  %v2102_v54 = vadd.f32 %v2093_v28, %v1894_v55  ;;  %v2209_v1 = vadd.f32 %v2205_v48, %v2077_v44  ;;  %v14828_v55 = vld [vmem:[#allocation76_spill] sm:$0xff]  ;;  %v14829_v44 = vld [vmem:[#allocation43_spill] sm:$0xff]  ;;  %v14833_v26 = vld [vmem:[#allocation38_spill] sm:$0xff] }
 0x40d   : > { %3038 = vrot.lane.b32.xlu1 %v10290_v35, %s8396_s25  ;;  %3010 = vrot.lane.b32.xlu0 %v10294_v39, %s8396_s25  ;;  %v10407_v8 = vstv %s10356_s30  ;;  %v2551_v19 = vadd.f32 %v14823_v7, %v2343_v3  ;;  %v2224_v35 = vmul.f32 %v14826_v63, %v9892_v29  ;;  %v14827_v39 = vld [vmem:[#allocation44_spill] sm:$0xff]  ;;  %v2215_v15 = vmul.f32 %v10279_v18, %v14817_v0  ;;  %s10831_s30 = sld [smem:[#allocation8 + $0xc0]] }
 0x40e   : > { %v2103_v40 = vadd.f32 %v14824_v46, %v1895_v25  ;;  %v1729_v48 = vadd.f32 %v10274_v16, %v1629_v62  ;;  %v10412_v14 = vadd.f32 %v2214_v10, %v2102_v54  ;;  %v2369_v43 = vadd.f32 %v14825_v57, %v2209_v1  ;;  %v14830_v20 = vld [vmem:[#allocation60_spill] sm:$0xff]  ;;  %v14832_v1 = vld [vmem:[#allocation31_spill] sm:$0xff] }
 0x40f   : > { %v1647_v36 = vpop.permute.xlu1 %1646  ;;  %v2119_v61 = vpop.permute.xlu0 %2118  ;;  %v10417_v34 = vadd.f32 %v2695_v23, %v2551_v19  ;;  %v2705_v4 = vmul.f32 %v14827_v39, %v10301_v9  ;;  %v1946_v28 = vadd.f32 %v10218_v60, %v14830_v20  ;;  %v2225_v0 = vmul.f32 %v10279_v18, %v14826_v63  ;;  %v14835_v46 = vld [vmem:[#allocation51_spill] sm:$0xff]  ;;  %v14838_v63 = vld [vmem:[#allocation33_spill] sm:$0xff]  ;;  %v14840_v20 = vld [vmem:[#allocation18_spill] sm:$0xff] }
 0x410   : > { %v1921_v59 = vadd.f32 %v14828_v55, %v1729_v48  ;;  %v1655_v16 = vadd.f32 %v1647_v36, %v1447_v47  ;;  %v2128_v49 = vadd.f32 %v2119_v61, %v1920_v13  ;;  %v2577_v37 = vadd.f32 %v14829_v44, %v2369_v43  ;;  %v14834_v13 = vld [vmem:[#allocation34_spill] sm:$0xff]  ;;  %v14836_v48 = vld [vmem:[#allocation20_spill] sm:$0xff]  ;;  %v14837_v43 = vld [vmem:[#allocation19_spill] sm:$0xff] }
 0x411   : > { %3064 = vrot.lane.b32.xlu1 %v10312_v42, %s8396_s25  ;;  %3036 = vrot.lane.b32.xlu0 %v3028_v21, %s8396_s25  ;;  %v2219_v10 = vadd.f32 %v2215_v15, %v2103_v40  ;;  %v3081_v42 = vmul.f32 %v10407_v8, %v10089_v5  ;;  %v3054_v21 = vmul.f32 %v10277_v17, %v9740_v53  ;;  %v10447_v54 = vstv %s10390_s10  ;;  %v14839_v44 = vld [vmem:[#allocation45_spill] sm:$0xff]  ;;  %s10852_s10 = sld [smem:[#allocation8 + $0xe4]] }
 0x412   : > { %v2129_v3 = vadd.f32 %v14831_v6, %v1921_v59  ;;  %v1739_v23 = vadd.f32 %v10297_v45, %v1655_v16  ;;  %v10436_v51 = vadd.f32 %v2224_v35, %v2128_v49  ;;  %v10438_v25 = vadd.f32 %v2705_v4, %v2577_v37 }
 0x413   : > { %v10440_v62 = vpop.permute.xlu1 %2252  ;;  %v2145_v60 = vpop.permute.xlu0 %2144  ;;  %v2395_v47 = vadd.f32 %v14832_v1, %v2219_v10  ;;  %v2234_v7 = vmul.f32 %v14834_v13, %v9892_v29  ;;  %v2715_v57 = vmul.f32 %v14836_v48, %v10301_v9  ;;  %v2235_v4 = vmul.f32 %v10279_v18, %v14834_v13 }
 0x414   : > { %v1947_v27 = vadd.f32 %v14833_v26, %v1739_v23  ;;  %v2154_v45 = vadd.f32 %v2145_v60, %v1946_v28  ;;  %v2229_v19 = vadd.f32 %v2225_v0, %v2129_v3  ;;  %v3107_v55 = vmul.f32 %v10447_v54, %v10089_v5  ;;  %v14841_v0 = vld [vmem:[#allocation35_spill] sm:$0xff] }
 0x415   : > { %3090 = vrot.lane.b32.xlu1 %v3081_v42, %s8396_s25  ;;  %3062 = vrot.lane.b32.xlu0 %v3054_v21, %s8396_s25  ;;  %v2603_v40 = vadd.f32 %v14835_v46, %v2395_v47  ;;  %v3080_v59 = vmul.f32 %v10407_v8, %v9740_v53  ;;  %v10475_v49 = vstv %s10424_s11  ;;  %v2725_v28 = vmul.f32 %v14840_v20, %v10301_v9  ;;  %v8228_v60 = vld [vmem:[#allocation2 + $0x28] sm:$0xff]  ;;  %v14843_v47 = vld [vmem:[#allocation26_spill] sm:$0xff]  ;;  %s10865_s11 = sld [smem:[#allocation8 + $0xe5]] }
 0x416   : > { %v2155_v36 = vadd.f32 %v14837_v43, %v1947_v27  ;;  %v10459_v61 = vadd.f32 %v2234_v7, %v2154_v45  ;;  %v2421_v35 = vadd.f32 %v14838_v63, %v2229_v19  ;;  %v3133_v23 = vmul.f32 %v10475_v49, %v10089_v5  ;;  %v14842_v21 = vld [vmem:[#allocation55_spill] sm:$0xff]  ;;  %v14844_v7 = vld [vmem:[#allocation58_spill] sm:$0xff] }
 0x417   : > { %v10464_v29 = vpop.permute.xlu1 %2278  ;;  %v10466_v15 = vpop.permute.xlu0 %2254  ;;  %v10472_v16 = vadd.f32 %v2715_v57, %v2603_v40  ;;  %v3106_v42 = vmul.f32 %v8228_v60, %v10447_v54  ;;  %v2735_v26 = vmul.f32 %v14843_v47, %v10301_v9  ;;  %v2745_v19 = vmul.f32 %v14844_v7, %v10301_v9  ;;  %v10506_v40 = vld [vmem:[#allocation2 + $0x38] sm:$0xff] }
 0x418   : > { %v2629_v37 = vadd.f32 %v14839_v44, %v2421_v35  ;;  %v2239_v18 = vadd.f32 %v2235_v4, %v2155_v36  ;;  %v3132_v46 = vmul.f32 %v8228_v60, %v10475_v49  ;;  %v14845_v36 = vld [vmem:[#allocation63_spill] sm:$0xff]  ;;  %v2744_v35 = vmul.f32 %v14844_v7, %v10506_v40 }
 0x419   : > { %3116 = vrot.lane.b32.xlu1 %v3107_v55, %s8396_s25  ;;  %3088 = vrot.lane.b32.xlu0 %v3080_v59, %s8396_s25  ;;  %v2771_v63 = vmul.f32 %v14845_v36, %v10301_v9  ;;  %v14846_v59 = vld [vmem:[#allocation61_spill] sm:$0xff] }
 0x41a   : > { %v10482_v10 = vadd.f32 %v2725_v28, %v2629_v37  ;;  %v2447_v6 = vadd.f32 %v14841_v0, %v2239_v18  ;;  %v2797_v44 = vmul.f32 %v14846_v59, %v10301_v9  ;;  %v2770_v37 = vmul.f32 %v14845_v36, %v10506_v40  ;;  %v14847_v0 = vld [vmem:[#allocation64_spill] sm:$0xff] }
 0x41b   : > { %v10485_v3 = vpop.permute.xlu1 %2304  ;;  %v10487_v53 = vpop.permute.xlu0 %2280  ;;  %v14849_v36 = vld [vmem:[#allocation68_spill] sm:$0xff] }
 0x41c   : > { %v2655_v1 = vadd.f32 %v14842_v21, %v2447_v6  ;;  %v2823_v6 = vmul.f32 %v14847_v0, %v10301_v9  ;;  %v2849_v21 = vmul.f32 %v10147_v56, %v10301_v9 }
 0x41d   : > { %3142 = vrot.lane.b32.xlu1 %v3133_v23, %s8396_s25  ;;  %3114 = vrot.lane.b32.xlu0 %v3106_v42, %s8396_s25  ;;  %v2796_v23 = vmul.f32 %v14846_v59, %v10506_v40 }
 0x41e   : > { %v10497_v27 = vadd.f32 %v2735_v26, %v2655_v1  ;;  %v2822_v1 = vmul.f32 %v14847_v0, %v10506_v40  ;;  %v14848_v26 = vld [vmem:[#allocation30_spill] sm:$0xff]  ;;  %v2264_v0 = vadd.f32 %v10466_v15, %v10286_v12  ;;  %v14852_v12 = vld [vmem:[#allocation73_spill] sm:$0xff] }
 0x41f   : > { %v10499_v45 = vpop.permute.xlu1 %2330  ;;  %v10501_v13 = vpop.permute.xlu0 %2306  ;;  %v2263_v7 = vadd.f32 %v10440_v62, %v14848_v26  ;;  %v2874_v26 = vmul.f32 %v14849_v36, %v10506_v40  ;;  %v2315_v15 = vadd.f32 %v10485_v3, %v14852_v12  ;;  %v2683_v3 = vmul.f32 %v14810_v2, %v10089_v5 }
 0x421   : > { %2756 = vrot.lane.b32.xlu1 %v2745_v19, %s8395_s20  ;;  %3140 = vrot.lane.b32.xlu0 %v3132_v46, %s8396_s25 }
 0x423   : > { %v10510_v57 = vpop.permute.xlu1 %2356  ;;  %v10512_v43 = vpop.permute.xlu0 %2332 }
 0x425   : > { %2782 = vrot.lane.b32.xlu1 %v2771_v63, %s8395_s20  ;;  %2754 = vrot.lane.b32.xlu0 %v2744_v35, %s8395_s20  ;;  %v2875_v63 = vmul.f32 %v14849_v36, %v10301_v9  ;;  %v2848_v35 = vmul.f32 %v10147_v56, %v10506_v40  ;;  %v14851_v56 = vld [vmem:[#allocation69_spill] sm:$0xff] }
 0x427   : > { %v10520_v4 = vpop.permute.xlu1 %2382  ;;  %v10522_v55 = vpop.permute.xlu0 %2358 }
 0x429   : > { %2808 = vrot.lane.b32.xlu1 %v2797_v44, %s8395_s20  ;;  %2780 = vrot.lane.b32.xlu0 %v2770_v37, %s8395_s20  ;;  %v2663_v44 = vmul.f32 %v14799_v41, %v10089_v5  ;;  %v14850_v37 = vld [vmem:[#allocation75_spill] sm:$0xff] }
 0x42a   : > { %v2289_v62 = vadd.f32 %v10464_v29, %v14850_v37  ;;  %v2664_v29 = vmul.f32 %v14799_v41, %v10506_v40  ;;  %v2900_v41 = vmul.f32 %v14851_v56, %v10506_v40 }
 0x42b   : > { %v10530_v28 = vpop.permute.xlu1 %2408  ;;  %v10532_v18 = vpop.permute.xlu0 %2384 }
 0x42d   : > { %2834 = vrot.lane.b32.xlu1 %v2823_v6, %s8395_s20  ;;  %2806 = vrot.lane.b32.xlu0 %v2796_v23, %s8395_s20 }
 0x42f   : > { %v10540_v60 = vpop.permute.xlu1 %2434  ;;  %v10542_v42 = vpop.permute.xlu0 %2410 }
 0x431   : > { %2860 = vrot.lane.b32.xlu1 %v2849_v21, %s8395_s20  ;;  %2832 = vrot.lane.b32.xlu0 %v2822_v1, %s8395_s20  ;;  %v2901_v1 = vmul.f32 %v14851_v56, %v10301_v9 }
 0x433   : > { %v2461_v19 = vpop.permute.xlu1 %2460  ;;  %v10552_v46 = vpop.permute.xlu0 %2436 }
 0x434   : > { %v2471_v59 = vadd.f32 %v2461_v19, %v2263_v7 }
 0x435   : > { %2886 = vrot.lane.b32.xlu1 %v2875_v63, %s8395_s20  ;;  %2858 = vrot.lane.b32.xlu0 %v2848_v35, %s8395_s20  ;;  %v2673_v63 = vmul.f32 %v14804_v52, %v10089_v5  ;;  %v2290_v35 = vadd.f32 %v10487_v53, %v10315_v30  ;;  %v2674_v30 = vmul.f32 %v14804_v52, %v10506_v40  ;;  %v14854_v53 = vld [vmem:[#allocation49_spill] sm:$0xff] }
 0x436   : > { %v10566_v6 = vadd.f32 %v2663_v44, %v2471_v59 }
 0x437   : > { %v2487_v23 = vpop.permute.xlu1 %2486  ;;  %v2463_v21 = vpop.permute.xlu0 %2462 }
 0x438   : > { %v2497_v7 = vadd.f32 %v2487_v23, %v2289_v62  ;;  %v2472_v19 = vadd.f32 %v2463_v21, %v2264_v0  ;;  %v14853_v62 = vld [vmem:[#allocation71_spill] sm:$0xff] }
 0x439   : > { %2912 = vrot.lane.b32.xlu1 %v2901_v1, %s8395_s20  ;;  %2884 = vrot.lane.b32.xlu0 %v2874_v26, %s8395_s20  ;;  %v2927_v0 = vmul.f32 %v14853_v62, %v10301_v9  ;;  %v2341_v1 = vadd.f32 %v10499_v45, %v14854_v53  ;;  %v2316_v26 = vadd.f32 %v10501_v13, %v10336_v11  ;;  %v14856_v13 = vld [vmem:[#allocation70_spill] sm:$0xff] }
 0x43a   : > { %v10582_v59 = vadd.f32 %v2673_v63, %v2497_v7  ;;  %v10584_v36 = vadd.f32 %v2664_v29, %v2472_v19  ;;  %v14855_v29 = vld [vmem:[#allocation74_spill] sm:$0xff]  ;;  %v2926_v52 = vmul.f32 %v14853_v62, %v10506_v40  ;;  %v2693_v45 = vmul.f32 %v14819_v50, %v10089_v5 }
 0x43b   : > { %v2513_v44 = vpop.permute.xlu1 %2512  ;;  %v2489_v37 = vpop.permute.xlu0 %2488  ;;  %v2953_v12 = vmul.f32 %v14855_v29, %v10301_v9  ;;  %v2684_v11 = vmul.f32 %v14810_v2, %v10506_v40  ;;  %v2952_v2 = vmul.f32 %v14855_v29, %v10506_v40 }
 0x43c   : > { %v2523_v23 = vadd.f32 %v2513_v44, %v2315_v15  ;;  %v2498_v21 = vadd.f32 %v2489_v37, %v2290_v35  ;;  %v2367_v44 = vadd.f32 %v10510_v57, %v14856_v13  ;;  %v2342_v37 = vadd.f32 %v10512_v43, %v10361_v32  ;;  %v14858_v43 = vld [vmem:[#allocation77_spill] sm:$0xff] }
 0x43d   : > { %2938 = vrot.lane.b32.xlu1 %v2927_v0, %s8395_s20  ;;  %2910 = vrot.lane.b32.xlu0 %v2900_v41, %s8395_s20  ;;  %v2703_v57 = vmul.f32 %v14827_v39, %v10089_v5  ;;  %v2694_v32 = vmul.f32 %v14819_v50, %v10506_v40 }
 0x43e   : > { %v10600_v7 = vadd.f32 %v2683_v3, %v2523_v23  ;;  %v10602_v56 = vadd.f32 %v2674_v30, %v2498_v21  ;;  %v14857_v21 = vld [vmem:[#allocation79_spill] sm:$0xff] }
 0x43f   : > { %v2539_v19 = vpop.permute.xlu1 %2538  ;;  %v2515_v63 = vpop.permute.xlu0 %2514  ;;  %v2979_v3 = vmul.f32 %v14857_v21, %v10301_v9  ;;  %v2978_v50 = vmul.f32 %v14857_v21, %v10506_v40 }
 0x440   : > { %v2549_v15 = vadd.f32 %v2539_v19, %v2341_v1  ;;  %v2524_v35 = vadd.f32 %v2515_v63, %v2316_v26  ;;  %v2393_v1 = vadd.f32 %v10520_v4, %v14858_v43  ;;  %v2368_v26 = vadd.f32 %v10522_v55, %v10384_v31  ;;  %v14859_v55 = vld [vmem:[#allocation50_spill] sm:$0xff] }
 0x441   : > { %2964 = vrot.lane.b32.xlu1 %v2953_v12, %s8396_s25  ;;  %2936 = vrot.lane.b32.xlu0 %v2926_v52, %s8395_s20  ;;  %v3005_v52 = vmul.f32 %v10206_v58, %v10301_v9  ;;  %v2713_v4 = vmul.f32 %v14836_v48, %v10089_v5  ;;  %v2704_v31 = vmul.f32 %v14827_v39, %v10506_v40 }
 0x442   : > { %v10618_v0 = vadd.f32 %v2693_v45, %v2549_v15  ;;  %v10620_v62 = vadd.f32 %v2684_v11, %v2524_v35  ;;  %v2419_v45 = vadd.f32 %v10530_v28, %v14859_v55  ;;  %v2394_v11 = vadd.f32 %v10532_v18, %v10412_v14  ;;  %v14860_v18 = vld [vmem:[#allocation72_spill] sm:$0xff] }
 0x443   : > { %v2565_v41 = vpop.permute.xlu1 %2564  ;;  %v2541_v23 = vpop.permute.xlu0 %2540  ;;  %v3004_v39 = vmul.f32 %v10206_v58, %v10506_v40  ;;  %v2723_v28 = vmul.f32 %v14840_v20, %v10089_v5  ;;  %v2714_v14 = vmul.f32 %v14836_v48, %v10506_v40  ;;  %v3057_v43 = vmul.f32 %v10277_v17, %v10301_v9 }
 0x444   : > { %v2575_v30 = vadd.f32 %v2565_v41, %v2367_v44  ;;  %v2550_v53 = vadd.f32 %v2541_v23, %v2342_v37  ;;  %v3031_v23 = vmul.f32 %v10243_v38, %v10301_v9  ;;  %v3030_v48 = vmul.f32 %v10243_v38, %v10506_v40 }
 0x445   : > { %2990 = vrot.lane.b32.xlu1 %v2979_v3, %s8396_s25  ;;  %2962 = vrot.lane.b32.xlu0 %v2952_v2, %s8396_s25  ;;  %v2445_v2 = vadd.f32 %v10540_v60, %v14860_v18  ;;  %v2733_v60 = vmul.f32 %v14843_v47, %v10089_v5  ;;  %v3083_v5 = vmul.f32 %v10407_v8, %v10301_v9  ;;  %v10745_v18 = vld [vmem:[#allocation2 + $0x39] sm:$0xff] }
 0x446   : > { %v10636_v19 = vadd.f32 %v2703_v57, %v2575_v30  ;;  %v10638_v63 = vadd.f32 %v2694_v32, %v2550_v53  ;;  %v2420_v30 = vadd.f32 %v10542_v42, %v10436_v51  ;;  %v2724_v51 = vmul.f32 %v14840_v20, %v10506_v40 }
 0x447   : > { %v2591_v29 = vpop.permute.xlu1 %2590  ;;  %v2567_v12 = vpop.permute.xlu0 %2566  ;;  %v2446_v42 = vadd.f32 %v10552_v46, %v10459_v61  ;;  %v3056_v20 = vmul.f32 %v10277_v17, %v10506_v40  ;;  %v3082_v17 = vmul.f32 %v10407_v8, %v10506_v40  ;;  %v3135_v55 = vmul.f32 %v10475_v49, %v10301_v9 }
 0x448   : > { %v2601_v15 = vadd.f32 %v2591_v29, %v2393_v1  ;;  %v2576_v35 = vadd.f32 %v2567_v12, %v2368_v26 }
 0x449   : > { %3016 = vrot.lane.b32.xlu1 %v3005_v52, %s8396_s25  ;;  %2988 = vrot.lane.b32.xlu0 %v2978_v50, %s8396_s25 }
 0x44a   : > { %v10654_v13 = vadd.f32 %v2713_v4, %v2601_v15  ;;  %v10656_v44 = vadd.f32 %v2704_v31, %v2576_v35  ;;  %v2734_v15 = vmul.f32 %v14843_v47, %v10506_v40  ;;  %v3109_v4 = vmul.f32 %v10447_v54, %v10301_v9 }
 0x44b   : > { %v2617_v37 = vpop.permute.xlu1 %2616  ;;  %v2593_v41 = vpop.permute.xlu0 %2592  ;;  %v3134_v9 = vmul.f32 %v10475_v49, %v10506_v40 }
 0x44c   : > { %v2627_v21 = vadd.f32 %v2617_v37, %v2419_v45  ;;  %v2602_v3 = vadd.f32 %v2593_v41, %v2394_v11  ;;  %v3108_v45 = vmul.f32 %v10447_v54, %v10506_v40  ;;  %v10722_v11 = vld [vmem:[#allocation2 + $0x31] sm:$0xff]  ;;  %v3241_v37 = vstv %s7793_s22  ;;  %v10735_v54 = vld [vmem:[#allocation2 + $0x41] sm:$0xff]  ;;  %s10876_s22 = sld [smem:[#allocation8 + $0x108]] }
 0x44d   : > { %3042 = vrot.lane.b32.xlu1 %v3031_v23, %s8396_s25  ;;  %3014 = vrot.lane.b32.xlu0 %v3004_v39, %s8396_s25  ;;  %v3243_v23 = vmul.f32 %v3241_v37, %v10722_v11  ;;  %v10733_v39 = vld [vmem:[#allocation2 + $0x29] sm:$0xff] }
 0x44e   : > { %v10672_v53 = vadd.f32 %v2723_v28, %v2627_v21  ;;  %v10674_v58 = vadd.f32 %v2714_v14, %v2602_v3  ;;  %v3245_v28 = vmul.f32 %v3241_v37, %v10735_v54  ;;  %v3242_v14 = vmul.f32 %v3241_v37, %v10733_v39 }
 0x44f   : > { %v2643_v57 = vpop.permute.xlu1 %2642  ;;  %v2619_v32 = vpop.permute.xlu0 %2618 }
 0x450   : > { %v2653_v1 = vadd.f32 %v2643_v57, %v2445_v2  ;;  %v2628_v26 = vadd.f32 %v2619_v32, %v2420_v30  ;;  %v3267_v2 = vstv %s7794_s9  ;;  %v3244_v57 = vmul.f32 %v3241_v37, %v10745_v18  ;;  %s7800_s9 = sld [smem:[#allocation8 + $0x109]] }
 0x451   : > { %3068 = vrot.lane.b32.xlu1 %v3057_v43, %s8396_s25  ;;  %3040 = vrot.lane.b32.xlu0 %v3030_v48, %s8396_s25  ;;  %v3269_v30 = vmul.f32 %v3267_v2, %v10722_v11  ;;  %v3271_v48 = vmul.f32 %v3267_v2, %v10735_v54 }
 0x452   : > { %v10688_v29 = vadd.f32 %v2733_v60, %v2653_v1  ;;  %v10690_v12 = vadd.f32 %v2724_v51, %v2628_v26  ;;  %v3268_v1 = vmul.f32 %v3267_v2, %v10733_v39  ;;  %v3293_v26 = vstv %s7795_s23  ;;  %s7801_s23 = sld [smem:[#allocation8 + $0xe]] }
 0x453   : > { %v10692_v38 = vpop.permute.xlu1 %2752  ;;  %v2645_v52 = vpop.permute.xlu0 %2644 }
 0x454   : > { %v2654_v50 = vadd.f32 %v2645_v52, %v2446_v42  ;;  %v3295_v42 = vmul.f32 %v3293_v26, %v10722_v11  ;;  %v3270_v52 = vmul.f32 %v3267_v2, %v10745_v18 }
 0x455   : > { %3094 = vrot.lane.b32.xlu1 %v3083_v5, %s8396_s25  ;;  %3066 = vrot.lane.b32.xlu0 %v3056_v20, %s8396_s25  ;;  %v10773_v5 = vstv %s7785_s5  ;;  %v2763_v20 = vadd.f32 %v10692_v38, %v10566_v6  ;;  %v14861_v38 = vld [vmem:[#allocation40_spill] sm:$0xff]  ;;  %s7802_s5 = sld [smem:[#allocation8 + $0x32]] }
 0x456   : > { %v10702_v61 = vadd.f32 %v2734_v15, %v2654_v50  ;;  %v3163_v37 = vmul.f32 %v10773_v5, %v10722_v11 }
 0x457   : > { %v10704_v46 = vpop.permute.xlu1 %2778  ;;  %v10706_v35 = vpop.permute.xlu0 %2750 }
 0x458   : > { %v2789_v6 = vadd.f32 %v10704_v46, %v10582_v59  ;;  %v10805_v46 = vstv %s7787_s13  ;;  %s7805_s13 = sld [smem:[#allocation8 + $0x9e]] }
 0x459   : > { %3120 = vrot.lane.b32.xlu1 %v3109_v4, %s8396_s25  ;;  %3092 = vrot.lane.b32.xlu0 %v3082_v17, %s8396_s25  ;;  %v3297_v4 = vmul.f32 %v3293_v26, %v10735_v54  ;;  %v3294_v17 = vmul.f32 %v3293_v26, %v10733_v39 }
 0x45b   : > { %v10714_v47 = vpop.permute.xlu1 %2804  ;;  %v10716_v31 = vpop.permute.xlu0 %2776 }
 0x45d   : > { %3146 = vrot.lane.b32.xlu1 %v3135_v55, %s8396_s25  ;;  %3118 = vrot.lane.b32.xlu0 %v3108_v45, %s8396_s25  ;;  %v3319_v45 = vstv %s7796_s7  ;;  %s7803_s7 = sld [smem:[#allocation8 + $0x56]] }
 0x45f   : > { %v10726_v8 = vpop.permute.xlu1 %2830  ;;  %v10728_v41 = vpop.permute.xlu0 %2802 }
 0x461   : > { %3252 = vrot.lane.b32.xlu1 %v3243_v23, %s8395_s20  ;;  %3144 = vrot.lane.b32.xlu0 %v3134_v9, %s8396_s25  ;;  %v10787_v23 = vstv %s7786_s12  ;;  %v2762_v9 = vadd.f32 %v10706_v35, %v14861_v38  ;;  %v2815_v35 = vadd.f32 %v10714_v47, %v10600_v7  ;;  %v3183_v47 = vmul.f32 %v10805_v46, %v10722_v11  ;;  %s7804_s12 = sld [smem:[#allocation8 + $0x7a]] }
 0x462   : > { %v3173_v59 = vmul.f32 %v10787_v23, %v10722_v11  ;;  %v3172_v7 = vmul.f32 %v10787_v23, %v10733_v39 }
 0x463   : > { %v10739_v21 = vpop.permute.xlu1 %2856  ;;  %v10741_v3 = vpop.permute.xlu0 %2828 }
 0x465   : > { %3256 = vrot.lane.b32.xlu1 %v3245_v28, %s8395_s20  ;;  %3250 = vrot.lane.b32.xlu0 %v3242_v14, %s8395_s20 }
 0x467   : > { %v10749_v49 = vpop.permute.xlu1 %2882  ;;  %v10751_v40 = vpop.permute.xlu0 %2854 }
 0x469   : > { %3278 = vrot.lane.b32.xlu1 %v3269_v30, %s8395_s20  ;;  %3254 = vrot.lane.b32.xlu0 %v3244_v57, %s8395_s20  ;;  %v3321_v30 = vmul.f32 %v3319_v45, %v10722_v11  ;;  %v3296_v57 = vmul.f32 %v3293_v26, %v10745_v18  ;;  %v14862_v26 = vld [vmem:[#allocation86_spill] sm:$0xff] }
 0x46b   : > { %v10757_v32 = vpop.permute.xlu1 %2908  ;;  %v10759_v43 = vpop.permute.xlu0 %2880 }
 0x46d   : > { %3282 = vrot.lane.b32.xlu1 %v3271_v48, %s8395_s20  ;;  %3276 = vrot.lane.b32.xlu0 %v3268_v1, %s8395_s20 }
 0x46f   : > { %v10765_v60 = vpop.permute.xlu1 %2934  ;;  %v10767_v51 = vpop.permute.xlu0 %2906 }
 0x471   : > { %3304 = vrot.lane.b32.xlu1 %v3295_v42, %s8395_s20  ;;  %3280 = vrot.lane.b32.xlu0 %v3270_v52, %s8395_s20  ;;  %v3162_v42 = vmul.f32 %v10773_v5, %v10733_v39  ;;  %v2788_v52 = vadd.f32 %v10716_v31, %v14862_v26  ;;  %v10829_v31 = vstv %s10789_s26  ;;  %s7807_s26 = sld [smem:[#allocation8 + $0xe6]] }
 0x473   : > { %v2961_v50 = vpop.permute.xlu1 %2960  ;;  %v10777_v15 = vpop.permute.xlu0 %2932 }
 0x474   : > { %v2971_v55 = vadd.f32 %v2961_v50, %v2763_v20 }
 0x475   : > { %3308 = vrot.lane.b32.xlu1 %v3297_v4, %s8395_s20  ;;  %3302 = vrot.lane.b32.xlu0 %v3294_v17, %s8395_s20 }
 0x476   : > { %v10795_v28 = vadd.f32 %v3163_v37, %v2971_v55  ;;  %v3323_v55 = vmul.f32 %v3319_v45, %v10735_v54  ;;  %v3320_v37 = vmul.f32 %v3319_v45, %v10733_v39 }
 0x477   : > { %v2987_v14 = vpop.permute.xlu1 %2986  ;;  %v2959_v2 = vpop.permute.xlu0 %2958 }
 0x478   : > { %v2997_v48 = vadd.f32 %v2987_v14, %v2789_v6  ;;  %v2970_v1 = vadd.f32 %v2959_v2, %v2762_v9  ;;  %v3345_v6 = vstv %s10781_s14  ;;  %v2841_v14 = vadd.f32 %v10726_v8, %v10618_v0  ;;  %v14863_v2 = vld [vmem:[#allocation88_spill] sm:$0xff]  ;;  %s7806_s14 = sld [smem:[#allocation8 + $0xc2]] }
 0x479   : > { %3330 = vrot.lane.b32.xlu1 %v3321_v30, %s8395_s20  ;;  %3306 = vrot.lane.b32.xlu0 %v3296_v57, %s8395_s20  ;;  %v2814_v30 = vadd.f32 %v10728_v41, %v14863_v2  ;;  %v3193_v0 = vmul.f32 %v10829_v31, %v10722_v11  ;;  %v10850_v8 = vstv %s10807_s29  ;;  %v2867_v41 = vadd.f32 %v10739_v21, %v10636_v19  ;;  %s7808_s29 = sld [smem:[#allocation8 + $0x10a]] }
 0x47a   : > { %v10813_v20 = vadd.f32 %v3162_v42, %v2970_v1  ;;  %v10815_v50 = vadd.f32 %v3173_v59, %v2997_v48  ;;  %v3347_v59 = vmul.f32 %v3345_v6, %v10722_v11  ;;  %v3192_v19 = vmul.f32 %v10829_v31, %v10733_v39 }
 0x47b   : > { %v3013_v4 = vpop.permute.xlu1 %3012  ;;  %v2985_v17 = vpop.permute.xlu0 %2984  ;;  %v3203_v21 = vmul.f32 %v10850_v8, %v10722_v11 }
 0x47c   : > { %v3023_v38 = vadd.f32 %v3013_v4, %v2815_v35  ;;  %v2996_v9 = vadd.f32 %v2985_v17, %v2788_v52  ;;  %v3322_v35 = vmul.f32 %v3319_v45, %v10745_v18  ;;  %v3182_v4 = vmul.f32 %v10805_v46, %v10733_v39  ;;  %v14864_v45 = vld [vmem:[#allocation90_spill] sm:$0xff] }
 0x47d   : > { %3334 = vrot.lane.b32.xlu1 %v3323_v55, %s8395_s20  ;;  %3328 = vrot.lane.b32.xlu0 %v3320_v37, %s8395_s20  ;;  %v2840_v17 = vadd.f32 %v10741_v3, %v14864_v45  ;;  %v10874_v3 = vstv %s10831_s30  ;;  %s7818_s30 = sld [smem:[#allocation8 + $0x34]] }
 0x47e   : > { %v10837_v57 = vadd.f32 %v3172_v7, %v2996_v9  ;;  %v10839_v48 = vadd.f32 %v3183_v47, %v3023_v38  ;;  %v3349_v7 = vmul.f32 %v3345_v6, %v10735_v54  ;;  %v3346_v47 = vmul.f32 %v3345_v6, %v10733_v39 }
 0x47f   : > { %v3039_v1 = vpop.permute.xlu1 %3038  ;;  %v3011_v42 = vpop.permute.xlu0 %3010 }
 0x480   : > { %v3049_v26 = vadd.f32 %v3039_v1, %v2841_v14  ;;  %v3022_v52 = vadd.f32 %v3011_v42, %v2814_v30  ;;  %v3371_v14 = vstv %s10820_s8  ;;  %v2893_v1 = vadd.f32 %v10749_v49, %v10654_v13  ;;  %v14866_v42 = vld [vmem:[#allocation47_spill] sm:$0xff]  ;;  %s7817_s8 = sld [smem:[#allocation8 + $0x10]] }
 0x481   : > { %3356 = vrot.lane.b32.xlu1 %v3347_v59, %s8395_s20  ;;  %3332 = vrot.lane.b32.xlu0 %v3322_v35, %s8395_s20  ;;  %v2866_v59 = vadd.f32 %v10751_v40, %v14866_v42  ;;  %v3213_v13 = vmul.f32 %v10874_v3, %v10722_v11  ;;  %v10895_v49 = vstv %s10852_s10  ;;  %v2919_v40 = vadd.f32 %v10757_v32, %v10672_v53  ;;  %s7819_s10 = sld [smem:[#allocation8 + $0x58]] }
 0x482   : > { %v10858_v55 = vadd.f32 %v3182_v4, %v3022_v52  ;;  %v10860_v37 = vadd.f32 %v3193_v0, %v3049_v26  ;;  %v3373_v0 = vmul.f32 %v3371_v14, %v10722_v11  ;;  %v3212_v53 = vmul.f32 %v10874_v3, %v10733_v39 }
 0x483   : > { %v3065_v38 = vpop.permute.xlu1 %3064  ;;  %v3037_v9 = vpop.permute.xlu0 %3036  ;;  %v3223_v32 = vmul.f32 %v10895_v49, %v10722_v11 }
 0x484   : > { %14865 = vst [vmem:[#allocation80_spill] sm:$0xff] %v10860_v37  ;;  %v3075_v2 = vadd.f32 %v3065_v38, %v2867_v41  ;;  %v3048_v30 = vadd.f32 %v3037_v9, %v2840_v17  ;;  %v3348_v41 = vmul.f32 %v3345_v6, %v10745_v18  ;;  %v3202_v38 = vmul.f32 %v10850_v8, %v10733_v39  ;;  %v14869_v9 = vld [vmem:[#allocation24_spill] sm:$0xff] }
 0x485   : > { %3360 = vrot.lane.b32.xlu1 %v3349_v7, %s8395_s20  ;;  %3354 = vrot.lane.b32.xlu0 %v3346_v47, %s8395_s20  ;;  %v2892_v6 = vadd.f32 %v10759_v43, %v14869_v9  ;;  %v10915_v43 = vstv %s10876_s22  ;;  %v3164_v37 = vmul.f32 %v10773_v5, %v10745_v18  ;;  %s7821_s22 = sld [smem:[#allocation8 + $0xa0]] }
 0x486   : > { %v10882_v35 = vadd.f32 %v3192_v19, %v3048_v30  ;;  %v10884_v26 = vadd.f32 %v3203_v21, %v3075_v2  ;;  %v3375_v19 = vmul.f32 %v3371_v14, %v10735_v54  ;;  %v3372_v21 = vmul.f32 %v3371_v14, %v10733_v39 }
 0x487   : > { %v3091_v52 = vpop.permute.xlu1 %3090  ;;  %v3063_v4 = vpop.permute.xlu0 %3062 }
 0x488   : > { %14867 = vst [vmem:[#allocation84_spill] sm:$0xff] %v10882_v35  ;;  %14868 = vst [vmem:[#allocation85_spill] sm:$0xff] %v10884_v26  ;;  %v3101_v45 = vadd.f32 %v3091_v52, %v2893_v1  ;;  %v3074_v17 = vadd.f32 %v3063_v4, %v2866_v59  ;;  %v3397_v1 = vstv %s10865_s11  ;;  %v2945_v52 = vadd.f32 %v10765_v60, %v10688_v29  ;;  %v14872_v4 = vld [vmem:[#allocation21_spill] sm:$0xff]  ;;  %v14875_v60 = vld [vmem:[#allocation23_spill] sm:$0xff]  ;;  %s7820_s11 = sld [smem:[#allocation8 + $0x7c]] }
 0x489   : > { %3382 = vrot.lane.b32.xlu1 %v3373_v0, %s8395_s20  ;;  %3358 = vrot.lane.b32.xlu0 %v3348_v41, %s8395_s20  ;;  %v2918_v0 = vadd.f32 %v10767_v51, %v14872_v4  ;;  %v3233_v29 = vmul.f32 %v10915_v43, %v10722_v11  ;;  %v2944_v51 = vadd.f32 %v10777_v15, %v14875_v60 }
 0x48a   : > { %v10901_v7 = vadd.f32 %v3202_v38, %v3074_v17  ;;  %v10903_v47 = vadd.f32 %v3213_v13, %v3101_v45  ;;  %v3399_v13 = vmul.f32 %v3397_v1, %v10722_v11 }
 0x48b   : > { %v3117_v2 = vpop.permute.xlu1 %3116  ;;  %v3089_v30 = vpop.permute.xlu0 %3088 }
 0x48c   : > { %14870 = vst [vmem:[#allocation91_spill] sm:$0xff] %v10901_v7  ;;  %14871 = vst [vmem:[#allocation92_spill] sm:$0xff] %v10903_v47  ;;  %v3127_v42 = vadd.f32 %v3117_v2, %v2919_v40  ;;  %v3100_v59 = vadd.f32 %v3089_v30, %v2892_v6  ;;  %v3374_v40 = vmul.f32 %v3371_v14, %v10745_v18  ;;  %v3527_v47 = vstv %s7804_s12  ;;  %s7810_s12 = sld [smem:[#allocation8 + $0x33]] }
 0x48d   : > { %3386 = vrot.lane.b32.xlu1 %v3375_v19, %s8395_s20  ;;  %3380 = vrot.lane.b32.xlu0 %v3372_v21, %s8395_s20  ;;  %v3222_v2 = vmul.f32 %v10895_v49, %v10733_v39  ;;  %v3165_v7 = vmul.f32 %v10773_v5, %v10735_v54  ;;  %v3529_v26 = vmul.f32 %v3527_v47, %v10722_v11 }
 0x48e   : > { %v10921_v41 = vadd.f32 %v3212_v53, %v3100_v59  ;;  %v10923_v45 = vadd.f32 %v3223_v32, %v3127_v42  ;;  %v3401_v42 = vmul.f32 %v3397_v1, %v10735_v54  ;;  %v3398_v59 = vmul.f32 %v3397_v1, %v10733_v39 }
 0x48f   : > { %v3143_v17 = vpop.permute.xlu1 %3142  ;;  %v3115_v38 = vpop.permute.xlu0 %3114  ;;  %v3423_v32 = vstv %s7800_s9  ;;  %v3531_v5 = vmul.f32 %v3527_v47, %v10735_v54  ;;  %s7822_s9 = sld [smem:[#allocation8 + $0xc4]] }
 0x490   : > { %14873 = vst [vmem:[#allocation93_spill] sm:$0xff] %v10921_v41  ;;  %14874 = vst [vmem:[#allocation54_spill] sm:$0xff] %v10923_v45  ;;  %v3153_v9 = vadd.f32 %v3143_v17, %v2945_v52  ;;  %v3126_v6 = vadd.f32 %v3115_v38, %v2918_v0  ;;  %v3232_v52 = vmul.f32 %v10915_v43, %v10733_v39 }
 0x491   : > { %3408 = vrot.lane.b32.xlu1 %v3399_v13, %s8395_s20  ;;  %3384 = vrot.lane.b32.xlu0 %v3374_v40, %s8395_s20  ;;  %v3425_v17 = vmul.f32 %v3423_v32, %v10722_v11  ;;  %v3400_v38 = vmul.f32 %v3397_v1, %v10745_v18 }
 0x492   : > { %v10935_v30 = vadd.f32 %v3222_v2, %v3126_v6  ;;  %v10937_v19 = vadd.f32 %v3233_v29, %v3153_v9  ;;  %v3427_v9 = vmul.f32 %v3423_v32, %v10735_v54  ;;  %v3424_v6 = vmul.f32 %v3423_v32, %v10733_v39 }
 0x493   : > { %v2757_v14 = vpop.permute.xlu1 %2756  ;;  %v3141_v21 = vpop.permute.xlu0 %3140  ;;  %v3449_v2 = vstv %s7801_s23  ;;  %s7823_s23 = sld [smem:[#allocation8 + $0xe8]] }
 0x494   : > { %14876 = vst [vmem:[#allocation87_spill] sm:$0xff] %v10935_v30  ;;  %14877 = vst [vmem:[#allocation48_spill] sm:$0xff] %v10937_v19  ;;  %v3152_v53 = vadd.f32 %v3141_v21, %v2944_v51  ;;  %v3451_v60 = vmul.f32 %v3449_v2, %v10722_v11  ;;  %v3426_v51 = vmul.f32 %v3423_v32, %v10745_v18 }
 0x495   : > { %3412 = vrot.lane.b32.xlu1 %v3401_v42, %s8395_s20  ;;  %3406 = vrot.lane.b32.xlu0 %v3398_v59, %s8395_s20  ;;  %v3453_v59 = vmul.f32 %v3449_v2, %v10735_v54  ;;  %v2765_v19 = vadd.f32 %v2757_v14, %v10338_v22 }
 0x496   : > { %v10945_v15 = vadd.f32 %v3232_v52, %v3152_v53  ;;  %v3450_v53 = vmul.f32 %v3449_v2, %v10733_v39  ;;  %v3475_v52 = vstv %s7802_s5  ;;  %s7809_s5 = sld [smem:[#allocation8 + $0xf]] }
 0x497   : > { %v2783_v4 = vpop.permute.xlu1 %2782  ;;  %v2755_v0 = vpop.permute.xlu0 %2754 }
 0x498   : > { %14878 = vst [vmem:[#allocation66_spill] sm:$0xff] %v10945_v15  ;;  %v2764_v22 = vadd.f32 %v2755_v0, %v10584_v36 }
 0x499   : > { %3434 = vrot.lane.b32.xlu1 %v3425_v17, %s8395_s20  ;;  %3410 = vrot.lane.b32.xlu0 %v3400_v38, %s8395_s20  ;;  %v3477_v38 = vmul.f32 %v3475_v52, %v10722_v11 }
 0x49b   : > { %v10951_v13 = vpop.permute.xlu1 %2808  ;;  %v10953_v40 = vpop.permute.xlu0 %2780 }
 0x49c   : > { %v2790_v36 = vadd.f32 %v10953_v40, %v10602_v56  ;;  %v3185_v56 = vmul.f32 %v10805_v46, %v10735_v54 }
 0x49d   : > { %3438 = vrot.lane.b32.xlu1 %v3427_v9, %s8395_s20  ;;  %3432 = vrot.lane.b32.xlu0 %v3424_v6, %s8395_s20  ;;  %v3452_v9 = vmul.f32 %v3449_v2, %v10745_v18 }
 0x49f   : > { %v10959_v29 = vpop.permute.xlu1 %2834  ;;  %v10961_v1 = vpop.permute.xlu0 %2806 }
 0x4a1   : > { %3460 = vrot.lane.b32.xlu1 %v3451_v60, %s8396_s25  ;;  %3436 = vrot.lane.b32.xlu0 %v3426_v51, %s8395_s20  ;;  %v3479_v51 = vmul.f32 %v3475_v52, %v10735_v54 }
 0x4a3   : > { %v10967_v21 = vpop.permute.xlu1 %2860  ;;  %v10969_v42 = vpop.permute.xlu0 %2832 }
 0x4a5   : > { %3464 = vrot.lane.b32.xlu1 %v3453_v59, %s8396_s25  ;;  %3458 = vrot.lane.b32.xlu0 %v3450_v53, %s8396_s25  ;;  %v3476_v59 = vmul.f32 %v3475_v52, %v10733_v39  ;;  %v3501_v53 = vstv %s7803_s7  ;;  %s7824_s7 = sld [smem:[#allocation8 + $0x10c]] }
 0x4a7   : > { %v10975_v17 = vpop.permute.xlu1 %2886  ;;  %v10977_v32 = vpop.permute.xlu0 %2858 }
 0x4a9   : > { %3486 = vrot.lane.b32.xlu1 %v3477_v38, %s8396_s25  ;;  %3462 = vrot.lane.b32.xlu0 %v3452_v9, %s8396_s25  ;;  %v3503_v38 = vmul.f32 %v3501_v53, %v10722_v11  ;;  %v3478_v9 = vmul.f32 %v3475_v52, %v10745_v18  ;;  %v2791_v52 = vadd.f32 %v2783_v4, %v10364_v24 }
 0x4aa   : > { %v2817_v24 = vadd.f32 %v10951_v13, %v10386_v33  ;;  %v3174_v33 = vmul.f32 %v10787_v23, %v10745_v18 }
 0x4ab   : > { %v10983_v6 = vpop.permute.xlu1 %2912  ;;  %v10985_v60 = vpop.permute.xlu0 %2884 }
 0x4ad   : > { %3490 = vrot.lane.b32.xlu1 %v3479_v51, %s8396_s25  ;;  %3484 = vrot.lane.b32.xlu0 %v3476_v59, %s8396_s25  ;;  %v3505_v51 = vmul.f32 %v3501_v53, %v10735_v54  ;;  %v3502_v59 = vmul.f32 %v3501_v53, %v10733_v39 }
 0x4af   : > { %v10991_v15 = vpop.permute.xlu1 %2938  ;;  %v10993_v2 = vpop.permute.xlu0 %2910 }
 0x4b1   : > { %3512 = vrot.lane.b32.xlu1 %v3503_v38, %s8396_s25  ;;  %3488 = vrot.lane.b32.xlu0 %v3478_v9, %s8396_s25 }
 0x4b3   : > { %v2965_v30 = vpop.permute.xlu1 %2964  ;;  %v11000_v45 = vpop.permute.xlu0 %2936 }
 0x4b4   : > { %v2973_v41 = vadd.f32 %v2965_v30, %v2765_v19  ;;  %v3504_v30 = vmul.f32 %v3501_v53, %v10745_v18  ;;  %v3528_v53 = vmul.f32 %v3527_v47, %v10733_v39 }
 0x4b5   : > { %3516 = vrot.lane.b32.xlu1 %v3505_v51, %s8396_s25  ;;  %3510 = vrot.lane.b32.xlu0 %v3502_v59, %s8396_s25  ;;  %v3175_v51 = vmul.f32 %v10787_v23, %v10735_v54  ;;  %v3553_v59 = vstv %s7805_s13  ;;  %s7825_s13 = sld [smem:[#allocation8 + $0x11]] }
 0x4b6   : > { %v11010_v14 = vadd.f32 %v3165_v7, %v2973_v41  ;;  %v3555_v23 = vmul.f32 %v3553_v59, %v10722_v11 }
 0x4b7   : > { %v2991_v38 = vpop.permute.xlu1 %2990  ;;  %v2963_v9 = vpop.permute.xlu0 %2962 }
 0x4b8   : > { %v2999_v19 = vadd.f32 %v2991_v38, %v2791_v52  ;;  %v2972_v35 = vadd.f32 %v2963_v9, %v2764_v22  ;;  %v3530_v9 = vmul.f32 %v3527_v47, %v10745_v18 }
 0x4b9   : > { %3538 = vrot.lane.b32.xlu1 %v3529_v26, %s8396_s25  ;;  %3514 = vrot.lane.b32.xlu0 %v3504_v30, %s8396_s25 }
 0x4ba   : > { %v11024_v7 = vadd.f32 %v3164_v37, %v2972_v35  ;;  %v11026_v41 = vadd.f32 %v3175_v51, %v2999_v19  ;;  %v2843_v37 = vadd.f32 %v10959_v29, %v10417_v34  ;;  %v2816_v35 = vadd.f32 %v10961_v1, %v10620_v62 }
 0x4bb   : > { %v3017_v4 = vpop.permute.xlu1 %3016  ;;  %v2989_v0 = vpop.permute.xlu0 %2988  ;;  %v3184_v51 = vmul.f32 %v10805_v46, %v10745_v18  ;;  %v3195_v34 = vmul.f32 %v10829_v31, %v10735_v54  ;;  %v2869_v62 = vadd.f32 %v10967_v21, %v10438_v25  ;;  %v2842_v29 = vadd.f32 %v10969_v42, %v10638_v63 }
 0x4bc   : > { %v3025_v26 = vadd.f32 %v3017_v4, %v2817_v24  ;;  %v2998_v52 = vadd.f32 %v2989_v0, %v2790_v36  ;;  %v3557_v46 = vmul.f32 %v3553_v59, %v10735_v54  ;;  %v3554_v4 = vmul.f32 %v3553_v59, %v10733_v39 }
 0x4bd   : > { %3542 = vrot.lane.b32.xlu1 %v3531_v5, %s8396_s25  ;;  %3536 = vrot.lane.b32.xlu0 %v3528_v53, %s8396_s25  ;;  %v3579_v0 = vstv %s7806_s14  ;;  %v3194_v25 = vmul.f32 %v10829_v31, %v10745_v18  ;;  %v3205_v63 = vmul.f32 %v10850_v8, %v10735_v54  ;;  %v2895_v21 = vadd.f32 %v10975_v17, %v10472_v16  ;;  %s11281_s14 = sld [smem:[#allocation8 + $0x57]] }
 0x4be   : > { %v11040_v13 = vadd.f32 %v3174_v33, %v2998_v52  ;;  %v11042_v40 = vadd.f32 %v3185_v56, %v3025_v26  ;;  %v2868_v42 = vadd.f32 %v10977_v32, %v10656_v44  ;;  %v3581_v31 = vmul.f32 %v3579_v0, %v10722_v11 }
 0x4bf   : > { %v3043_v22 = vpop.permute.xlu1 %3042  ;;  %v3015_v38 = vpop.permute.xlu0 %3014  ;;  %v3215_v16 = vmul.f32 %v10874_v3, %v10735_v54  ;;  %v2921_v44 = vadd.f32 %v10983_v6, %v10482_v10  ;;  %v2894_v17 = vadd.f32 %v10985_v60, %v10674_v58  ;;  %v3214_v10 = vmul.f32 %v10874_v3, %v10745_v18 }
 0x4c0   : > { %v3051_v30 = vadd.f32 %v3043_v22, %v2843_v37  ;;  %v3024_v19 = vadd.f32 %v3015_v38, %v2816_v35  ;;  %v3556_v37 = vmul.f32 %v3553_v59, %v10745_v18  ;;  %v3204_v38 = vmul.f32 %v10850_v8, %v10745_v18 }
 0x4c1   : > { %3564 = vrot.lane.b32.xlu1 %v3555_v23, %s8396_s25  ;;  %3540 = vrot.lane.b32.xlu0 %v3530_v9, %s8396_s25  ;;  %v3583_v8 = vmul.f32 %v3579_v0, %v10735_v54  ;;  %v3225_v58 = vmul.f32 %v10895_v49, %v10735_v54  ;;  %v2947_v6 = vadd.f32 %v10991_v15, %v10497_v27 }
 0x4c2   : > { %v11056_v1 = vadd.f32 %v3184_v51, %v3024_v19  ;;  %v11058_v47 = vadd.f32 %v3195_v34, %v3051_v30  ;;  %v3580_v30 = vmul.f32 %v3579_v0, %v10733_v39  ;;  %v3605_v19 = vstv %s7807_s26  ;;  %s11293_s26 = sld [smem:[#allocation8 + $0x35]] }
 0x4c3   : > { %v3069_v24 = vpop.permute.xlu1 %3068  ;;  %v3041_v36 = vpop.permute.xlu0 %3040  ;;  %v2920_v60 = vadd.f32 %v10993_v2, %v10690_v12  ;;  %v3607_v3 = vmul.f32 %v3605_v19, %v10722_v11  ;;  %v3235_v27 = vmul.f32 %v10915_v43, %v10735_v54  ;;  %v2946_v12 = vadd.f32 %v11000_v45, %v10702_v61 }
 0x4c4   : > { %v3077_v5 = vadd.f32 %v3069_v24, %v2869_v62  ;;  %v3050_v53 = vadd.f32 %v3041_v36, %v2842_v29 }
 0x4c5   : > { %3568 = vrot.lane.b32.xlu1 %v3557_v46, %s8396_s25  ;;  %3562 = vrot.lane.b32.xlu0 %v3554_v4, %s8396_s25  ;;  %v3582_v46 = vmul.f32 %v3579_v0, %v10745_v18 }
 0x4c6   : > { %v11072_v26 = vadd.f32 %v3194_v25, %v3050_v53  ;;  %v11074_v52 = vadd.f32 %v3205_v63, %v3077_v5  ;;  %v3224_v53 = vmul.f32 %v10895_v49, %v10745_v18  ;;  %v3609_v63 = vmul.f32 %v3605_v19, %v10735_v54 }
 0x4c7   : > { %v3095_v33 = vpop.permute.xlu1 %3094  ;;  %v3067_v56 = vpop.permute.xlu0 %3066  ;;  %v3606_v49 = vmul.f32 %v3605_v19, %v10733_v39 }
 0x4c8   : > { %v3103_v35 = vadd.f32 %v3095_v33, %v2895_v21  ;;  %v3076_v22 = vadd.f32 %v3067_v56, %v2868_v42  ;;  %v3631_v42 = vstv %s7808_s29  ;;  %v3234_v33 = vmul.f32 %v10915_v43, %v10745_v18  ;;  %s11314_s29 = sld [smem:[#allocation8 + $0x7b]] }
 0x4c9   : > { %3590 = vrot.lane.b32.xlu1 %v3581_v31, %s8396_s25  ;;  %3566 = vrot.lane.b32.xlu0 %v3556_v37, %s8396_s25  ;;  %v3633_v31 = vmul.f32 %v3631_v42, %v10722_v11  ;;  %v3608_v37 = vmul.f32 %v3605_v19, %v10745_v18 }
 0x4ca   : > { %v11088_v32 = vadd.f32 %v3204_v38, %v3076_v22  ;;  %v11090_v59 = vadd.f32 %v3215_v16, %v3103_v35  ;;  %v3635_v22 = vmul.f32 %v3631_v42, %v10735_v54  ;;  %v3632_v38 = vmul.f32 %v3631_v42, %v10733_v39  ;;  %v11146_v16 = vld [vmem:[#allocation2 + $0x32] sm:$0xff]  ;;  %v11158_v54 = vld [vmem:[#allocation2 + $0x42] sm:$0xff] }
 0x4cb   : > { %v3121_v23 = vpop.permute.xlu1 %3120  ;;  %v3093_v9 = vpop.permute.xlu0 %3092 }
 0x4cc   : > { %v3129_v51 = vadd.f32 %v3121_v23, %v2921_v44  ;;  %v3102_v34 = vadd.f32 %v3093_v9, %v2894_v17  ;;  %v3741_v44 = vstv %s7817_s8  ;;  %v3634_v9 = vmul.f32 %v3631_v42, %v10745_v18  ;;  %s11327_s8 = sld [smem:[#allocation8 + $0x59]] }
 0x4cd   : > { %3594 = vrot.lane.b32.xlu1 %v3583_v8, %s8396_s25  ;;  %3588 = vrot.lane.b32.xlu0 %v3580_v30, %s8396_s25  ;;  %v3743_v23 = vmul.f32 %v3741_v44, %v11146_v16  ;;  %v11156_v8 = vld [vmem:[#allocation2 + $0x2a] sm:$0xff]  ;;  %v3745_v19 = vmul.f32 %v3741_v44, %v11158_v54  ;;  %v3819_v42 = vstv %s7820_s11  ;;  %s11382_s11 = sld [smem:[#allocation8 + $0xc3]] }
 0x4ce   : > { %v11104_v62 = vadd.f32 %v3214_v10, %v3102_v34  ;;  %v11106_v29 = vadd.f32 %v3225_v58, %v3129_v51  ;;  %v3742_v51 = vmul.f32 %v3741_v44, %v11156_v8  ;;  %v11168_v34 = vld [vmem:[#allocation2 + $0x3a] sm:$0xff]  ;;  %v3767_v10 = vstv %s7818_s30  ;;  %s11348_s30 = sld [smem:[#allocation8 + $0x9f]] }
 0x4cf   : > { %v3147_v24 = vpop.permute.xlu1 %3146  ;;  %v3119_v36 = vpop.permute.xlu0 %3118 }
 0x4d0   : > { %v3155_v4 = vadd.f32 %v3147_v24, %v2947_v6  ;;  %v3128_v5 = vadd.f32 %v3119_v36, %v2920_v60  ;;  %v3769_v6 = vmul.f32 %v3767_v10, %v11146_v16  ;;  %v3744_v60 = vmul.f32 %v3741_v44, %v11168_v34 }
 0x4d1   : > { %3616 = vrot.lane.b32.xlu1 %v3607_v3, %s8396_s25  ;;  %3592 = vrot.lane.b32.xlu0 %v3582_v46, %s8396_s25  ;;  %v3771_v3 = vmul.f32 %v3767_v10, %v11158_v54  ;;  %v3768_v46 = vmul.f32 %v3767_v10, %v11156_v8 }
 0x4d2   : > { %v11118_v15 = vadd.f32 %v3224_v53, %v3128_v5  ;;  %v11120_v2 = vadd.f32 %v3235_v27, %v3155_v4  ;;  %v3793_v4 = vstv %s7819_s10  ;;  %s11361_s10 = sld [smem:[#allocation8 + $0x7d]] }
 0x4d3   : > { %v11122_v0 = vpop.permute.xlu1 %3252  ;;  %v3145_v25 = vpop.permute.xlu0 %3144  ;;  %v3795_v27 = vmul.f32 %v3793_v4, %v11146_v16 }
 0x4d4   : > { %14879 = vst [vmem:[#allocation25_spill] sm:$0xff] %v11118_v15  ;;  %14880 = vst [vmem:[#allocation82_spill] sm:$0xff] %v11120_v2  ;;  %v3154_v21 = vadd.f32 %v3145_v25, %v2946_v12  ;;  %v3770_v12 = vmul.f32 %v3767_v10, %v11168_v34 }
 0x4d5   : > { %3620 = vrot.lane.b32.xlu1 %v3609_v63, %s8396_s25  ;;  %3614 = vrot.lane.b32.xlu0 %v3606_v49, %s8396_s25  ;;  %v3797_v49 = vmul.f32 %v3793_v4, %v11158_v54 }
 0x4d6   : > { %v11130_v61 = vadd.f32 %v3234_v33, %v3154_v21  ;;  %v3794_v21 = vmul.f32 %v3793_v4, %v11156_v8 }
 0x4d7   : > { %v11132_v45 = vpop.permute.xlu1 %3256  ;;  %v11134_v56 = vpop.permute.xlu0 %3250 }
 0x4d8   : > { %14881 = vst [vmem:[#allocation83_spill] sm:$0xff] %v11130_v61  ;;  %v3263_v61 = vadd.f32 %v11122_v0, %v10795_v28  ;;  %v3262_v28 = vadd.f32 %v11134_v56, %v10813_v20 }
 0x4d9   : > { %3642 = vrot.lane.b32.xlu1 %v3633_v31, %s8396_s25  ;;  %3618 = vrot.lane.b32.xlu0 %v3608_v37, %s8396_s25  ;;  %v3821_v37 = vmul.f32 %v3819_v42, %v11146_v16 }
 0x4db   : > { %v11140_v35 = vpop.permute.xlu1 %3278  ;;  %v11142_v43 = vpop.permute.xlu0 %3254 }
 0x4dc   : > { %v3289_v20 = vadd.f32 %v11140_v35, %v10815_v50 }
 0x4dd   : > { %3646 = vrot.lane.b32.xlu1 %v3635_v22, %s8396_s25  ;;  %3640 = vrot.lane.b32.xlu0 %v3632_v38, %s8396_s25  ;;  %v3796_v22 = vmul.f32 %v3793_v4, %v11168_v34 }
 0x4df   : > { %v11150_v11 = vpop.permute.xlu1 %3282  ;;  %v11152_v17 = vpop.permute.xlu0 %3276 }
 0x4e1   : > { %3752 = vrot.lane.b32.xlu1 %v3743_v23, %s8395_s20  ;;  %3644 = vrot.lane.b32.xlu0 %v3634_v9, %s8396_s25  ;;  %v3823_v23 = vmul.f32 %v3819_v42, %v11158_v54  ;;  %v3820_v9 = vmul.f32 %v3819_v42, %v11156_v8 }
 0x4e3   : > { %v11162_v39 = vpop.permute.xlu1 %3304  ;;  %v11164_v30 = vpop.permute.xlu0 %3280 }
 0x4e5   : > { %3756 = vrot.lane.b32.xlu1 %v3745_v19, %s8395_s20  ;;  %3750 = vrot.lane.b32.xlu0 %v3742_v51, %s8395_s20  ;;  %v3845_v19 = vstv %s7821_s22  ;;  %s11395_s22 = sld [smem:[#allocation8 + $0xa1]] }
 0x4e6   : > { %v3849_v4 = vmul.f32 %v3845_v19, %v11158_v54 }
 0x4e7   : > { %v11172_v18 = vpop.permute.xlu1 %3308  ;;  %v11174_v58 = vpop.permute.xlu0 %3302 }
 0x4e9   : > { %3778 = vrot.lane.b32.xlu1 %v3769_v6, %s8395_s20  ;;  %3754 = vrot.lane.b32.xlu0 %v3744_v60, %s8395_s20  ;;  %v3847_v6 = vmul.f32 %v3845_v19, %v11146_v16  ;;  %v3822_v60 = vmul.f32 %v3819_v42, %v11168_v34 }
 0x4eb   : > { %v11180_v24 = vpop.permute.xlu1 %3330  ;;  %v11182_v36 = vpop.permute.xlu0 %3306 }
 0x4ed   : > { %3782 = vrot.lane.b32.xlu1 %v3771_v3, %s8395_s20  ;;  %3776 = vrot.lane.b32.xlu0 %v3768_v46, %s8395_s20 }
 0x4ef   : > { %v11188_v5 = vpop.permute.xlu1 %3334  ;;  %v11190_v53 = vpop.permute.xlu0 %3328 }
 0x4f1   : > { %3804 = vrot.lane.b32.xlu1 %v3795_v27, %s8395_s20  ;;  %3780 = vrot.lane.b32.xlu0 %v3770_v12, %s8395_s20  ;;  %v3846_v27 = vmul.f32 %v3845_v19, %v11156_v8  ;;  %v3871_v12 = vstv %s7822_s9  ;;  %s11416_s9 = sld [smem:[#allocation8 + $0xe7]] }
 0x4f2   : > { %v3873_v42 = vmul.f32 %v3871_v12, %v11146_v16 }
 0x4f3   : > { %v11196_v25 = vpop.permute.xlu1 %3356  ;;  %v11198_v63 = vpop.permute.xlu0 %3332 }
 0x4f5   : > { %3808 = vrot.lane.b32.xlu1 %v3797_v49, %s8395_s20  ;;  %3802 = vrot.lane.b32.xlu0 %v3794_v21, %s8395_s20 }
 0x4f7   : > { %v11204_v33 = vpop.permute.xlu1 %3360  ;;  %v11206_v31 = vpop.permute.xlu0 %3354 }
 0x4f9   : > { %3830 = vrot.lane.b32.xlu1 %v3821_v37, %s8395_s20  ;;  %3806 = vrot.lane.b32.xlu0 %v3796_v22, %s8395_s20  ;;  %v3848_v37 = vmul.f32 %v3845_v19, %v11168_v34 }
 0x4fb   : > { %v11212_v38 = vpop.permute.xlu1 %3382  ;;  %v11214_v44 = vpop.permute.xlu0 %3358 }
 0x4fd   : > { %3834 = vrot.lane.b32.xlu1 %v3823_v23, %s8395_s20  ;;  %3828 = vrot.lane.b32.xlu0 %v3820_v9, %s8395_s20  ;;  %v3875_v9 = vmul.f32 %v3871_v12, %v11158_v54 }
 0x4ff   : > { %v11220_v51 = vpop.permute.xlu1 %3386  ;;  %v11222_v10 = vpop.permute.xlu0 %3380 }
 0x501   : > { %3856 = vrot.lane.b32.xlu1 %v3847_v6, %s8395_s20  ;;  %3832 = vrot.lane.b32.xlu0 %v3822_v60, %s8395_s20  ;;  %v3872_v6 = vmul.f32 %v3871_v12, %v11156_v8  ;;  %v3897_v60 = vstv %s7823_s23  ;;  %s11429_s23 = sld [smem:[#allocation8 + $0xc5]] }
 0x503   : > { %v11228_v3 = vpop.permute.xlu1 %3408  ;;  %v11230_v46 = vpop.permute.xlu0 %3384 }
 0x505   : > { %3860 = vrot.lane.b32.xlu1 %v3849_v4, %s8395_s20  ;;  %3854 = vrot.lane.b32.xlu0 %v3846_v27, %s8395_s20  ;;  %v3899_v27 = vmul.f32 %v3897_v60, %v11146_v16 }
 0x507   : > { %v11236_v49 = vpop.permute.xlu1 %3412  ;;  %v11238_v21 = vpop.permute.xlu0 %3406 }
 0x509   : > { %3882 = vrot.lane.b32.xlu1 %v3873_v42, %s8395_s20  ;;  %3858 = vrot.lane.b32.xlu0 %v3848_v37, %s8395_s20  ;;  %v3874_v42 = vmul.f32 %v3871_v12, %v11168_v34  ;;  %v3661_v37 = vstv %s7809_s5  ;;  %s11450_s5 = sld [smem:[#allocation8 + $0x10b]] }
 0x50a   : > { %v3663_v12 = vmul.f32 %v3661_v37, %v11146_v16  ;;  %v3664_v35 = vmul.f32 %v3661_v37, %v11168_v34 }
 0x50b   : > { %v11244_v22 = vpop.permute.xlu1 %3434  ;;  %v11246_v23 = vpop.permute.xlu0 %3410 }
 0x50c   : > { %14882 = vst [vmem:[#allocation62_spill] sm:$0xff] %v11244_v22  ;;  %14883 = vst [vmem:[#allocation37_spill] sm:$0xff] %v11246_v23  ;;  %v3923_v23 = vstv %s7824_s7  ;;  %s7831_s7 = sld [smem:[#allocation8 + $0xe9]] }
 0x50d   : > { %3886 = vrot.lane.b32.xlu1 %v3875_v9, %s8395_s20  ;;  %3880 = vrot.lane.b32.xlu0 %v3872_v6, %s8395_s20  ;;  %v3901_v6 = vmul.f32 %v3897_v60, %v11158_v54  ;;  %v3925_v15 = vmul.f32 %v3923_v23, %v11146_v16 }
 0x50f   : > { %v11252_v19 = vpop.permute.xlu1 %3438  ;;  %v11254_v4 = vpop.permute.xlu0 %3432 }
 0x510   : > { %14884 = vst [vmem:[#allocation42_spill] sm:$0xff] %v11252_v19  ;;  %14885 = vst [vmem:[#allocation27_spill] sm:$0xff] %v11254_v4  ;;  %v3898_v4 = vmul.f32 %v3897_v60, %v11156_v8 }
 0x511   : > { %3908 = vrot.lane.b32.xlu1 %v3899_v27, %s8395_s20  ;;  %3884 = vrot.lane.b32.xlu0 %v3874_v42, %s8395_s20  ;;  %v3265_v27 = vadd.f32 %v11132_v45, %v11010_v14  ;;  %v3671_v14 = vstv %s7810_s12  ;;  %v3264_v45 = vadd.f32 %v11142_v43, %v11024_v7  ;;  %v3291_v7 = vadd.f32 %v11150_v11, %v11026_v41  ;;  %s7832_s12 = sld [smem:[#allocation8 + $0x10d]] }
 0x512   : > { %v3673_v50 = vmul.f32 %v3671_v14, %v11146_v16  ;;  %v3288_v43 = vadd.f32 %v11152_v17, %v10837_v57  ;;  %v3672_v41 = vmul.f32 %v3671_v14, %v11156_v8  ;;  %v3681_v57 = vstv %s11281_s14  ;;  %s7842_s14 = sld [smem:[#allocation8 + $0x37]] }
 0x513   : > { %v3461_v9 = vpop.permute.xlu1 %3460  ;;  %v11262_v2 = vpop.permute.xlu0 %3436  ;;  %v3315_v11 = vadd.f32 %v11162_v39, %v10839_v48  ;;  %v3290_v17 = vadd.f32 %v11164_v30, %v11040_v13  ;;  %v3683_v48 = vmul.f32 %v3681_v57, %v11146_v16  ;;  %v3674_v39 = vmul.f32 %v3671_v14, %v11168_v34 }
 0x514   : > { %14886 = vst [vmem:[#allocation56_spill] sm:$0xff] %v11262_v2  ;;  %v3471_v19 = vadd.f32 %v3461_v9, %v3263_v61  ;;  %v3900_v61 = vmul.f32 %v3897_v60, %v11168_v34  ;;  %v3317_v13 = vadd.f32 %v11172_v18, %v11042_v40  ;;  %v3314_v30 = vadd.f32 %v11174_v58, %v10858_v55  ;;  %v14887_v18 = vld [vmem:[#allocation80_spill] sm:$0xff] }
 0x515   : > { %3912 = vrot.lane.b32.xlu1 %v3901_v6, %s8395_s20  ;;  %3906 = vrot.lane.b32.xlu0 %v3898_v4, %s8395_s20  ;;  %v3665_v6 = vmul.f32 %v3661_v37, %v11158_v54  ;;  %v3662_v4 = vmul.f32 %v3661_v37, %v11156_v8  ;;  %v3926_v37 = vmul.f32 %v3923_v23, %v11168_v34  ;;  %v3691_v55 = vstv %s11314_s29  ;;  %s7844_s29 = sld [smem:[#allocation8 + $0x7f]] }
 0x516   : > { %v11273_v0 = vadd.f32 %v3663_v12, %v3471_v19  ;;  %v3927_v12 = vmul.f32 %v3923_v23, %v11158_v54  ;;  %v3682_v40 = vmul.f32 %v3681_v57, %v11156_v8  ;;  %v3341_v58 = vadd.f32 %v11180_v24, %v14887_v18 }
 0x517   : > { %v3465_v42 = vpop.permute.xlu1 %3464  ;;  %v3459_v2 = vpop.permute.xlu0 %3458  ;;  %v3693_v24 = vmul.f32 %v3691_v55, %v11146_v16 }
 0x518   : > { %v3473_v9 = vadd.f32 %v3465_v42, %v3265_v27  ;;  %v3470_v22 = vadd.f32 %v3459_v2, %v3262_v28  ;;  %v3949_v27 = vstv %s7825_s13  ;;  %s7841_s13 = sld [smem:[#allocation8 + $0x13]] }
 0x519   : > { %3934 = vrot.lane.b32.xlu1 %v3925_v15, %s8395_s20  ;;  %3910 = vrot.lane.b32.xlu0 %v3900_v61, %s8395_s20  ;;  %v3924_v15 = vmul.f32 %v3923_v23, %v11156_v8 }
 0x51a   : > { %v11287_v56 = vadd.f32 %v3665_v6, %v3473_v9  ;;  %v11289_v2 = vadd.f32 %v3662_v4, %v3470_v22  ;;  %v3951_v4 = vmul.f32 %v3949_v27, %v11146_v16 }
 0x51b   : > { %v3487_v60 = vpop.permute.xlu1 %3486  ;;  %v3463_v19 = vpop.permute.xlu0 %3462 }
 0x51c   : > { %v3497_v28 = vadd.f32 %v3487_v60, %v3289_v20  ;;  %v3472_v42 = vadd.f32 %v3463_v19, %v3264_v45  ;;  %v3675_v60 = vmul.f32 %v3671_v14, %v11158_v54  ;;  %v3952_v14 = vmul.f32 %v3949_v27, %v11168_v34 }
 0x51d   : > { %3938 = vrot.lane.b32.xlu1 %v3927_v12, %s8395_s20  ;;  %3932 = vrot.lane.b32.xlu0 %v3924_v15, %s8395_s20 }
 0x51e   : > { %v11303_v22 = vadd.f32 %v3673_v50, %v3497_v28  ;;  %v11305_v61 = vadd.f32 %v3664_v35, %v3472_v42  ;;  %v3953_v28 = vmul.f32 %v3949_v27, %v11158_v54  ;;  %v3950_v42 = vmul.f32 %v3949_v27, %v11156_v8 }
 0x51f   : > { %v3491_v9 = vpop.permute.xlu1 %3490  ;;  %v3485_v6 = vpop.permute.xlu0 %3484  ;;  %v3975_v50 = vstv %s11293_s26  ;;  %v3316_v27 = vadd.f32 %v11182_v36, %v11056_v1  ;;  %v3343_v1 = vadd.f32 %v11188_v5, %v11058_v47  ;;  %v14888_v36 = vld [vmem:[#allocation84_spill] sm:$0xff]  ;;  %v3692_v47 = vmul.f32 %v3691_v55, %v11156_v8  ;;  %s7843_s26 = sld [smem:[#allocation8 + $0x5b]] }
 0x520   : > { %v3499_v20 = vadd.f32 %v3491_v9, %v3291_v7  ;;  %v3496_v45 = vadd.f32 %v3485_v6, %v3288_v43  ;;  %v3701_v5 = vstv %s11348_s30  ;;  %s7846_s30 = sld [smem:[#allocation8 + $0xc7]] }
 0x521   : > { %3960 = vrot.lane.b32.xlu1 %v3951_v4, %s8396_s25  ;;  %3936 = vrot.lane.b32.xlu0 %v3926_v37, %s8395_s20  ;;  %v3977_v37 = vmul.f32 %v3975_v50, %v11146_v16 }
 0x522   : > { %v11320_v23 = vadd.f32 %v3675_v60, %v3499_v20  ;;  %v11322_v19 = vadd.f32 %v3672_v41, %v3496_v45  ;;  %v3685_v60 = vmul.f32 %v3681_v57, %v11158_v54 }
 0x523   : > { %v3513_v12 = vpop.permute.xlu1 %3512  ;;  %v3489_v15 = vpop.permute.xlu0 %3488 }
 0x524   : > { %v3523_v35 = vadd.f32 %v3513_v12, %v3315_v11  ;;  %v3498_v7 = vadd.f32 %v3489_v15, %v3290_v17  ;;  %v3979_v15 = vmul.f32 %v3975_v50, %v11158_v54 }
 0x525   : > { %3964 = vrot.lane.b32.xlu1 %v3953_v28, %s8396_s25  ;;  %3958 = vrot.lane.b32.xlu0 %v3950_v42, %s8396_s25  ;;  %v3976_v28 = vmul.f32 %v3975_v50, %v11156_v8  ;;  %v4001_v42 = vstv %s11327_s8  ;;  %s7845_s8 = sld [smem:[#allocation8 + $0xa3]] }
 0x526   : > { %v11337_v43 = vadd.f32 %v3683_v48, %v3523_v35  ;;  %v11339_v9 = vadd.f32 %v3674_v39, %v3498_v7  ;;  %v3684_v48 = vmul.f32 %v3681_v57, %v11168_v34  ;;  %v3340_v39 = vadd.f32 %v11190_v53, %v14888_v36  ;;  %v14889_v53 = vld [vmem:[#allocation85_spill] sm:$0xff] }
 0x527   : > { %v3517_v6 = vpop.permute.xlu1 %3516  ;;  %v3511_v4 = vpop.permute.xlu0 %3510  ;;  %v3978_v57 = vmul.f32 %v3975_v50, %v11168_v34  ;;  %v3342_v50 = vadd.f32 %v11198_v63, %v11072_v26  ;;  %v3369_v26 = vadd.f32 %v11204_v33, %v11074_v52  ;;  %v14890_v63 = vld [vmem:[#allocation91_spill] sm:$0xff]  ;;  %v3702_v52 = vmul.f32 %v3701_v5, %v11156_v8 }
 0x528   : > { %v3525_v20 = vadd.f32 %v3517_v6, %v3317_v13  ;;  %v3522_v45 = vadd.f32 %v3511_v4, %v3314_v30  ;;  %v3711_v33 = vstv %s11382_s11  ;;  %s7833_s11 = sld [smem:[#allocation8 + $0x12]] }
 0x529   : > { %3986 = vrot.lane.b32.xlu1 %v3977_v37, %s8396_s25  ;;  %3962 = vrot.lane.b32.xlu0 %v3952_v14, %s8396_s25  ;;  %v4003_v37 = vmul.f32 %v4001_v42, %v11146_v16 }
 0x52a   : > { %v11354_v41 = vadd.f32 %v3685_v60, %v3525_v20  ;;  %v11356_v11 = vadd.f32 %v3682_v40, %v3522_v45  ;;  %v3695_v45 = vmul.f32 %v3691_v55, %v11158_v54  ;;  %v3367_v60 = vadd.f32 %v11196_v25, %v14889_v53 }
 0x52b   : > { %v3539_v17 = vpop.permute.xlu1 %3538  ;;  %v3515_v12 = vpop.permute.xlu0 %3514  ;;  %v3703_v25 = vmul.f32 %v3701_v5, %v11146_v16 }
 0x52c   : > { %v3549_v35 = vadd.f32 %v3539_v17, %v3341_v58  ;;  %v3524_v7 = vadd.f32 %v3515_v12, %v3316_v27  ;;  %v4005_v17 = vmul.f32 %v4001_v42, %v11158_v54  ;;  %v4002_v12 = vmul.f32 %v4001_v42, %v11156_v8 }
 0x52d   : > { %3990 = vrot.lane.b32.xlu1 %v3979_v15, %s8396_s25  ;;  %3984 = vrot.lane.b32.xlu0 %v3976_v28, %s8396_s25  ;;  %v4027_v15 = vstv %s11361_s10  ;;  %s7847_s10 = sld [smem:[#allocation8 + $0xeb]] }
 0x52e   : > { %v11371_v13 = vadd.f32 %v3693_v24, %v3549_v35  ;;  %v11373_v30 = vadd.f32 %v3684_v48, %v3524_v7  ;;  %v3694_v7 = vmul.f32 %v3691_v55, %v11168_v34  ;;  %v3366_v24 = vadd.f32 %v11206_v31, %v14890_v63  ;;  %v14891_v31 = vld [vmem:[#allocation92_spill] sm:$0xff] }
 0x52f   : > { %v3543_v6 = vpop.permute.xlu1 %3542  ;;  %v3537_v4 = vpop.permute.xlu0 %3536  ;;  %v4004_v55 = vmul.f32 %v4001_v42, %v11168_v34  ;;  %v3368_v42 = vadd.f32 %v11214_v44, %v11088_v32  ;;  %v3395_v32 = vadd.f32 %v11220_v51, %v11090_v59  ;;  %v14892_v44 = vld [vmem:[#allocation93_spill] sm:$0xff]  ;;  %v3712_v59 = vmul.f32 %v3711_v33, %v11156_v8 }
 0x530   : > { %v3551_v14 = vadd.f32 %v3543_v6, %v3343_v1  ;;  %v3548_v20 = vadd.f32 %v3537_v4, %v3340_v39  ;;  %v4029_v6 = vmul.f32 %v4027_v15, %v11146_v16  ;;  %v3721_v51 = vstv %s11416_s9  ;;  %s7834_s9 = sld [smem:[#allocation8 + $0x36]] }
 0x531   : > { %4012 = vrot.lane.b32.xlu1 %v4003_v37, %s8396_s25  ;;  %3988 = vrot.lane.b32.xlu0 %v3978_v57, %s8396_s25  ;;  %v3705_v57 = vmul.f32 %v3701_v5, %v11158_v54 }
 0x532   : > { %v11388_v40 = vadd.f32 %v3695_v45, %v3551_v14  ;;  %v11390_v18 = vadd.f32 %v3692_v47, %v3548_v20  ;;  %v3393_v14 = vadd.f32 %v11212_v38, %v14891_v31  ;;  %v3713_v38 = vmul.f32 %v3711_v33, %v11146_v16 }
 0x533   : > { %v3565_v58 = vpop.permute.xlu1 %3564  ;;  %v3541_v27 = vpop.permute.xlu0 %3540 }
 0x534   : > { %v3575_v28 = vadd.f32 %v3565_v58, %v3367_v60  ;;  %v3550_v35 = vadd.f32 %v3541_v27, %v3342_v50  ;;  %v4031_v60 = vmul.f32 %v4027_v15, %v11158_v54  ;;  %v4028_v50 = vmul.f32 %v4027_v15, %v11156_v8 }
 0x535   : > { %4016 = vrot.lane.b32.xlu1 %v4005_v17, %s8396_s25  ;;  %4010 = vrot.lane.b32.xlu0 %v4002_v12, %s8396_s25  ;;  %v4053_v58 = vstv %s11395_s22  ;;  %v3704_v12 = vmul.f32 %v3701_v5, %v11168_v34  ;;  %v4030_v5 = vmul.f32 %v4027_v15, %v11168_v34  ;;  %v3394_v15 = vadd.f32 %v11230_v46, %v11104_v62  ;;  %v14894_v46 = vld [vmem:[#allocation87_spill] sm:$0xff]  ;;  %s7848_s22 = sld [smem:[#allocation8 + $0x10f]] }
 0x536   : > { %v11405_v48 = vadd.f32 %v3703_v25, %v3575_v28  ;;  %v11407_v1 = vadd.f32 %v3694_v7, %v3550_v35  ;;  %v3392_v28 = vadd.f32 %v11222_v10, %v14892_v44  ;;  %v4055_v63 = vmul.f32 %v4053_v58, %v11146_v16  ;;  %v14893_v10 = vld [vmem:[#allocation54_spill] sm:$0xff] }
 0x537   : > { %v3569_v36 = vpop.permute.xlu1 %3568  ;;  %v3563_v39 = vpop.permute.xlu0 %3562  ;;  %v4054_v31 = vmul.f32 %v4053_v58, %v11156_v8  ;;  %v3421_v62 = vadd.f32 %v11236_v49, %v11106_v29  ;;  %v3731_v29 = vstv %s11450_s5  ;;  %v14897_v49 = vld [vmem:[#allocation48_spill] sm:$0xff]  ;;  %s11674_s5 = sld [smem:[#allocation8 + $0x5a]] }
 0x538   : > { %v3577_v4 = vadd.f32 %v3569_v36, %v3369_v26  ;;  %v3574_v37 = vadd.f32 %v3563_v39, %v3366_v24  ;;  %v3715_v39 = vmul.f32 %v3711_v33, %v11158_v54 }
 0x539   : > { %4038 = vrot.lane.b32.xlu1 %v4029_v6, %s8396_s25  ;;  %4014 = vrot.lane.b32.xlu0 %v4004_v55, %s8396_s25  ;;  %v3419_v6 = vadd.f32 %v11228_v3, %v14893_v10  ;;  %v3714_v3 = vmul.f32 %v3711_v33, %v11168_v34  ;;  %v4056_v33 = vmul.f32 %v4053_v58, %v11168_v34 }
 0x53a   : > { %v11422_v20 = vadd.f32 %v3705_v57, %v3577_v4  ;;  %v11424_v45 = vadd.f32 %v3702_v52, %v3574_v37  ;;  %v4057_v52 = vmul.f32 %v4053_v58, %v11158_v54 }
 0x53b   : > { %v3591_v47 = vpop.permute.xlu1 %3590  ;;  %v3567_v53 = vpop.permute.xlu0 %3566 }
 0x53c   : > { %v3601_v27 = vadd.f32 %v3591_v47, %v3393_v14  ;;  %v3576_v17 = vadd.f32 %v3567_v53, %v3368_v42  ;;  %v4079_v14 = vstv %s11429_s23  ;;  %v3723_v53 = vmul.f32 %v3721_v51, %v11146_v16  ;;  %s7849_s23 = sld [smem:[#allocation8 + $0x14]] }
 0x53d   : > { %4042 = vrot.lane.b32.xlu1 %v4031_v60, %s8396_s25  ;;  %4036 = vrot.lane.b32.xlu0 %v4028_v50, %s8396_s25  ;;  %v3418_v60 = vadd.f32 %v11238_v21, %v14894_v46  ;;  %v14898_v21 = vld [vmem:[#allocation62_spill] sm:$0xff]  ;;  %v4083_v10 = vmul.f32 %v4079_v14, %v11158_v54 }
 0x53e   : > { %v11439_v35 = vadd.f32 %v3713_v38, %v3601_v27  ;;  %v11441_v25 = vadd.f32 %v3704_v12, %v3576_v17  ;;  %v4081_v12 = vmul.f32 %v4079_v14, %v11146_v16 }
 0x53f   : > { %v3595_v7 = vpop.permute.xlu1 %3594  ;;  %v3589_v26 = vpop.permute.xlu0 %3588 }
 0x540   : > { %v3603_v24 = vadd.f32 %v3595_v7, %v3395_v32  ;;  %v3600_v36 = vadd.f32 %v3589_v26, %v3392_v28  ;;  %v3725_v28 = vmul.f32 %v3721_v51, %v11158_v54  ;;  %v3722_v7 = vmul.f32 %v3721_v51, %v11156_v8 }
 0x541   : > { %4064 = vrot.lane.b32.xlu1 %v4055_v63, %s8396_s25  ;;  %4040 = vrot.lane.b32.xlu0 %v4030_v5, %s8396_s25  ;;  %v3445_v26 = vadd.f32 %v14898_v21, %v14897_v49  ;;  %v14899_v63 = vld [vmem:[#allocation25_spill] sm:$0xff]  ;;  %v14909_v49 = vld [vmem:[#allocation83_spill] sm:$0xff]  ;;  %v14910_v21 = vld [vmem:[#allocation56_spill] sm:$0xff] }
 0x542   : > { %v11456_v55 = vadd.f32 %v3715_v39, %v3603_v24  ;;  %v11458_v4 = vadd.f32 %v3712_v59, %v3600_v36  ;;  %v14900_v5 = vld [vmem:[#allocation37_spill] sm:$0xff] }
 0x543   : > { %v3617_v37 = vpop.permute.xlu1 %3616  ;;  %v3593_v57 = vpop.permute.xlu0 %3592  ;;  %v3420_v24 = vadd.f32 %v14900_v5, %v14899_v63 }
 0x544   : > { %v3627_v42 = vadd.f32 %v3617_v37, %v3419_v6  ;;  %v3602_v47 = vadd.f32 %v3593_v57, %v3394_v15  ;;  %v4080_v6 = vmul.f32 %v4079_v14, %v11156_v8  ;;  %v4105_v15 = vstv %s7831_s7  ;;  %s11686_s7 = sld [smem:[#allocation8 + $0x38]] }
 0x545   : > { %4068 = vrot.lane.b32.xlu1 %v4057_v52, %s8396_s25  ;;  %4062 = vrot.lane.b32.xlu0 %v4054_v31, %s8396_s25  ;;  %v3733_v52 = vmul.f32 %v3731_v29, %v11146_v16  ;;  %v3724_v31 = vmul.f32 %v3721_v51, %v11168_v34  ;;  %v4082_v51 = vmul.f32 %v4079_v14, %v11168_v34 }
 0x546   : > { %v11471_v50 = vadd.f32 %v3723_v53, %v3627_v42  ;;  %v11473_v27 = vadd.f32 %v3714_v3, %v3602_v47  ;;  %v14903_v42 = vld [vmem:[#allocation82_spill] sm:$0xff] }
 0x547   : > { %v3621_v17 = vpop.permute.xlu1 %3620  ;;  %v3615_v38 = vpop.permute.xlu0 %3614  ;;  %v14904_v47 = vld [vmem:[#allocation42_spill] sm:$0xff] }
 0x548   : > { %14895 = vst [vmem:[#allocation36_spill] sm:$0xff] %v11471_v50  ;;  %14896 = vst [vmem:[#allocation39_spill] sm:$0xff] %v11473_v27  ;;  %v3629_v32 = vadd.f32 %v3621_v17, %v3421_v62  ;;  %v3626_v44 = vadd.f32 %v3615_v38, %v3418_v60  ;;  %v3447_v53 = vadd.f32 %v14904_v47, %v14903_v42  ;;  %v14905_v3 = vld [vmem:[#allocation66_spill] sm:$0xff]  ;;  %v14906_v62 = vld [vmem:[#allocation27_spill] sm:$0xff]  ;;  %v4423_v27 = vstv %s7848_s22  ;;  %s7855_s22 = sld [smem:[#allocation8 + $0xec]] }
 0x549   : > { %4090 = vrot.lane.b32.xlu1 %v4081_v12, %s8396_s25  ;;  %4066 = vrot.lane.b32.xlu0 %v4056_v33, %s8396_s25  ;;  %v3444_v46 = vadd.f32 %v14906_v62, %v14905_v3  ;;  %v4107_v33 = vmul.f32 %v4105_v15, %v11146_v16  ;;  %v4108_v47 = vmul.f32 %v4105_v15, %v11168_v34 }
 0x54a   : > { %v11486_v36 = vadd.f32 %v3725_v28, %v3629_v32  ;;  %v11488_v58 = vadd.f32 %v3722_v7, %v3626_v44  ;;  %v3735_v28 = vmul.f32 %v3731_v29, %v11158_v54  ;;  %v3732_v7 = vmul.f32 %v3731_v29, %v11156_v8 }
 0x54b   : > { %v3643_v39 = vpop.permute.xlu1 %3642  ;;  %v3619_v59 = vpop.permute.xlu0 %3618 }
 0x54c   : > { %14901 = vst [vmem:[#allocation65_spill] sm:$0xff] %v11486_v36  ;;  %14902 = vst [vmem:[#allocation53_spill] sm:$0xff] %v11488_v58  ;;  %v3653_v37 = vadd.f32 %v3643_v39, %v3445_v26  ;;  %v3628_v57 = vadd.f32 %v3619_v59, %v3420_v24  ;;  %v3446_v26 = vadd.f32 %v14910_v21, %v14909_v49  ;;  %v4267_v49 = vstv %s7842_s14  ;;  %s11741_s14 = sld [smem:[#allocation8 + $0xa2]] }
 0x54d   : > { %4094 = vrot.lane.b32.xlu1 %v4083_v10, %s8396_s25  ;;  %4088 = vrot.lane.b32.xlu0 %v4080_v6, %s8396_s25  ;;  %v4109_v39 = vmul.f32 %v4105_v15, %v11158_v54  ;;  %v4106_v59 = vmul.f32 %v4105_v15, %v11156_v8  ;;  %v4131_v6 = vstv %s7832_s12  ;;  %s11707_s12 = sld [smem:[#allocation8 + $0x7e]] }
 0x54e   : > { %v11500_v60 = vadd.f32 %v3733_v52, %v3653_v37  ;;  %v11502_v17 = vadd.f32 %v3724_v31, %v3628_v57  ;;  %v3734_v37 = vmul.f32 %v3731_v29, %v11168_v34  ;;  %v4133_v42 = vmul.f32 %v4131_v6, %v11146_v16 }
 0x54f   : > { %v3647_v38 = vpop.permute.xlu1 %3646  ;;  %v3641_v12 = vpop.permute.xlu0 %3640  ;;  %v4135_v3 = vmul.f32 %v4131_v6, %v11158_v54  ;;  %v4132_v62 = vmul.f32 %v4131_v6, %v11156_v8  ;;  %v11551_v54 = vld [vmem:[#allocation2 + $0x68] sm:$0xff] }
 0x550   : > { %14907 = vst [vmem:[#allocation67_spill] sm:$0xff] %v11500_v60  ;;  %14908 = vst [vmem:[#allocation89_spill] sm:$0xff] %v11502_v17  ;;  %v3655_v32 = vadd.f32 %v3647_v38, %v3447_v53  ;;  %v3652_v44 = vadd.f32 %v3641_v12, %v3444_v46  ;;  %v11539_v46 = vld [vmem:[#allocation2 + $0x58] sm:$0xff]  ;;  %v4241_v38 = vstv %s7841_s13  ;;  %v4371_v17 = vstv %s7846_s30  ;;  %s11720_s13 = sld [smem:[#allocation8 + $0x5c]] }
 0x551   : > { %4116 = vrot.lane.b32.xlu1 %v4107_v33, %s8396_s25  ;;  %4092 = vrot.lane.b32.xlu0 %v4082_v51, %s8396_s25  ;;  %v4243_v12 = vmul.f32 %v4241_v38, %v11539_v46  ;;  %v4134_v33 = vmul.f32 %v4131_v6, %v11168_v34  ;;  %v11549_v51 = vld [vmem:[#allocation2 + $0x50] sm:$0xff]  ;;  %s11809_s30 = sld [smem:[#allocation8 + $0xea]] }
 0x552   : > { %v11512_v63 = vadd.f32 %v3735_v28, %v3655_v32  ;;  %v11514_v5 = vadd.f32 %v3732_v7, %v3652_v44  ;;  %v4245_v44 = vmul.f32 %v4241_v38, %v11551_v54  ;;  %v4242_v28 = vmul.f32 %v4241_v38, %v11549_v51  ;;  %v11561_v7 = vld [vmem:[#allocation2 + $0x60] sm:$0xff] }
 0x553   : > { %v11516_v24 = vpop.permute.xlu1 %3752  ;;  %v3645_v14 = vpop.permute.xlu0 %3644  ;;  %v4268_v6 = vmul.f32 %v4267_v49, %v11549_v51 }
 0x554   : > { %14911 = vst [vmem:[#allocation32_spill] sm:$0xff] %v11512_v63  ;;  %14912 = vst [vmem:[#allocation28_spill] sm:$0xff] %v11514_v5  ;;  %v3654_v10 = vadd.f32 %v3645_v14, %v3446_v26  ;;  %v4269_v26 = vmul.f32 %v4267_v49, %v11539_v46  ;;  %v4244_v14 = vmul.f32 %v4241_v38, %v11561_v7 }
 0x555   : > { %4120 = vrot.lane.b32.xlu1 %v4109_v39, %s8396_s25  ;;  %4114 = vrot.lane.b32.xlu0 %v4106_v59, %s8396_s25 }
 0x556   : > { %v11523_v57 = vadd.f32 %v3734_v37, %v3654_v10  ;;  %v4271_v10 = vmul.f32 %v4267_v49, %v11551_v54  ;;  %v4293_v37 = vstv %s7843_s26  ;;  %s11754_s26 = sld [smem:[#allocation8 + $0x80]] }
 0x557   : > { %v11525_v52 = vpop.permute.xlu1 %3756  ;;  %v11527_v31 = vpop.permute.xlu0 %3750 }
 0x558   : > { %14913 = vst [vmem:[#allocation59_spill] sm:$0xff] %v11523_v57 }
 0x559   : > { %4142 = vrot.lane.b32.xlu1 %v4133_v42, %s8396_s25  ;;  %4118 = vrot.lane.b32.xlu0 %v4108_v47, %s8396_s25 }
 0x55b   : > { %v11533_v53 = vpop.permute.xlu1 %3778  ;;  %v11535_v29 = vpop.permute.xlu0 %3754 }
 0x55d   : > { %4146 = vrot.lane.b32.xlu1 %v4135_v3, %s8396_s25  ;;  %4140 = vrot.lane.b32.xlu0 %v4132_v62, %s8396_s25  ;;  %v4295_v3 = vmul.f32 %v4293_v37, %v11539_v46  ;;  %v4270_v62 = vmul.f32 %v4267_v49, %v11561_v7 }
 0x55f   : > { %v11543_v16 = vpop.permute.xlu1 %3782  ;;  %v11545_v15 = vpop.permute.xlu0 %3776 }
 0x561   : > { %4252 = vrot.lane.b32.xlu1 %v4243_v12, %s8395_s20  ;;  %4144 = vrot.lane.b32.xlu0 %v4134_v33, %s8396_s25  ;;  %v4297_v33 = vmul.f32 %v4293_v37, %v11551_v54 }
 0x563   : > { %v11555_v8 = vpop.permute.xlu1 %3804  ;;  %v11557_v32 = vpop.permute.xlu0 %3780 }
 0x565   : > { %4256 = vrot.lane.b32.xlu1 %v4245_v44, %s8395_s20  ;;  %4250 = vrot.lane.b32.xlu0 %v4242_v28, %s8395_s20  ;;  %v4294_v44 = vmul.f32 %v4293_v37, %v11549_v51  ;;  %v4319_v28 = vstv %s7844_s29  ;;  %s11775_s29 = sld [smem:[#allocation8 + $0xc6]] }
 0x567   : > { %v11565_v34 = vpop.permute.xlu1 %3808  ;;  %v11567_v21 = vpop.permute.xlu0 %3802 }
 0x569   : > { %4278 = vrot.lane.b32.xlu1 %v4269_v26, %s8395_s20  ;;  %4254 = vrot.lane.b32.xlu0 %v4244_v14, %s8395_s20  ;;  %v4321_v14 = vmul.f32 %v4319_v28, %v11539_v46 }
 0x56b   : > { %v11573_v39 = vpop.permute.xlu1 %3830  ;;  %v11575_v59 = vpop.permute.xlu0 %3806 }
 0x56d   : > { %4282 = vrot.lane.b32.xlu1 %v4271_v10, %s8395_s20  ;;  %4276 = vrot.lane.b32.xlu0 %v4268_v6, %s8395_s20  ;;  %v4296_v10 = vmul.f32 %v4293_v37, %v11561_v7 }
 0x56f   : > { %v11581_v42 = vpop.permute.xlu1 %3834  ;;  %v11583_v47 = vpop.permute.xlu0 %3828 }
 0x571   : > { %4304 = vrot.lane.b32.xlu1 %v4295_v3, %s8395_s20  ;;  %4280 = vrot.lane.b32.xlu0 %v4270_v62, %s8395_s20  ;;  %v4323_v62 = vmul.f32 %v4319_v28, %v11551_v54 }
 0x573   : > { %v11589_v38 = vpop.permute.xlu1 %3856  ;;  %v11591_v12 = vpop.permute.xlu0 %3832 }
 0x575   : > { %4308 = vrot.lane.b32.xlu1 %v4297_v33, %s8395_s20  ;;  %4302 = vrot.lane.b32.xlu0 %v4294_v44, %s8395_s20  ;;  %v4320_v33 = vmul.f32 %v4319_v28, %v11549_v51  ;;  %v4345_v44 = vstv %s7845_s8  ;;  %s11788_s8 = sld [smem:[#allocation8 + $0xa4]] }
 0x577   : > { %v11597_v26 = vpop.permute.xlu1 %3860  ;;  %v11599_v49 = vpop.permute.xlu0 %3854 }
 0x579   : > { %4330 = vrot.lane.b32.xlu1 %v4321_v14, %s8395_s20  ;;  %4306 = vrot.lane.b32.xlu0 %v4296_v10, %s8395_s20  ;;  %v4347_v14 = vmul.f32 %v4345_v44, %v11539_v46  ;;  %v4322_v10 = vmul.f32 %v4319_v28, %v11561_v7 }
 0x57b   : > { %v11605_v6 = vpop.permute.xlu1 %3882  ;;  %v11607_v3 = vpop.permute.xlu0 %3858 }
 0x57d   : > { %4334 = vrot.lane.b32.xlu1 %v4323_v62, %s8395_s20  ;;  %4328 = vrot.lane.b32.xlu0 %v4320_v33, %s8395_s20  ;;  %v4349_v62 = vmul.f32 %v4345_v44, %v11551_v54  ;;  %v4346_v33 = vmul.f32 %v4345_v44, %v11549_v51 }
 0x57f   : > { %v11613_v57 = vpop.permute.xlu1 %3886  ;;  %v11615_v37 = vpop.permute.xlu0 %3880 }
 0x581   : > { %4356 = vrot.lane.b32.xlu1 %v4347_v14, %s8395_s20  ;;  %4332 = vrot.lane.b32.xlu0 %v4322_v10, %s8395_s20  ;;  %v4373_v14 = vmul.f32 %v4371_v17, %v11539_v46  ;;  %v4348_v10 = vmul.f32 %v4345_v44, %v11561_v7 }
 0x583   : > { %v11621_v5 = vpop.permute.xlu1 %3908  ;;  %v11623_v63 = vpop.permute.xlu0 %3884 }
 0x584   : > { %14914 = vst [vmem:[#allocation52_spill] sm:$0xff] %v11621_v5  ;;  %14915 = vst [vmem:[#allocation57_spill] sm:$0xff] %v11623_v63  ;;  %v4425_v5 = vmul.f32 %v4423_v27, %v11539_v46 }
 0x585   : > { %4360 = vrot.lane.b32.xlu1 %v4349_v62, %s8395_s20  ;;  %4354 = vrot.lane.b32.xlu0 %v4346_v33, %s8395_s20  ;;  %v4375_v62 = vmul.f32 %v4371_v17, %v11551_v54  ;;  %v4372_v33 = vmul.f32 %v4371_v17, %v11549_v51 }
 0x587   : > { %v11629_v60 = vpop.permute.xlu1 %3912  ;;  %v11631_v28 = vpop.permute.xlu0 %3906 }
 0x588   : > { %14916 = vst [vmem:[#allocation78_spill] sm:$0xff] %v11629_v60  ;;  %14917 = vst [vmem:[#allocation41_spill] sm:$0xff] %v11631_v28  ;;  %v4397_v60 = vstv %s7847_s10  ;;  %v3763_v28 = vadd.f32 %v11516_v24, %v11273_v0  ;;  %v3762_v0 = vadd.f32 %v11527_v31, %v11289_v2  ;;  %v3789_v2 = vadd.f32 %v11533_v53, %v11303_v22  ;;  %s11822_s10 = sld [smem:[#allocation8 + $0xc8]] }
 0x589   : > { %4382 = vrot.lane.b32.xlu1 %v4373_v14, %s8395_s20  ;;  %4358 = vrot.lane.b32.xlu0 %v4348_v10, %s8395_s20  ;;  %v4399_v10 = vmul.f32 %v4397_v60, %v11539_v46 }
 0x58b   : > { %v11637_v58 = vpop.permute.xlu1 %3934  ;;  %v11639_v36 = vpop.permute.xlu0 %3910 }
 0x58c   : > { %14918 = vst [vmem:[#allocation46_spill] sm:$0xff] %v11637_v58  ;;  %14919 = vst [vmem:[#allocation29_spill] sm:$0xff] %v11639_v36  ;;  %v4374_v58 = vmul.f32 %v4371_v17, %v11561_v7  ;;  %v4161_v36 = vstv %s7833_s11  ;;  %s11843_s11 = sld [smem:[#allocation8 + $0x10e]] }
 0x58d   : > { %4386 = vrot.lane.b32.xlu1 %v4375_v62, %s8395_s20  ;;  %4380 = vrot.lane.b32.xlu0 %v4372_v33, %s8395_s20  ;;  %v4401_v33 = vmul.f32 %v4397_v60, %v11551_v54  ;;  %v4163_v17 = vmul.f32 %v4161_v36, %v11539_v46  ;;  %v4164_v53 = vmul.f32 %v4161_v36, %v11561_v7 }
 0x58f   : > { %v11645_v44 = vpop.permute.xlu1 %3938  ;;  %v11647_v14 = vpop.permute.xlu0 %3932 }
 0x590   : > { %14920 = vst [vmem:[#allocation81_spill] sm:$0xff] %v11645_v44  ;;  %14921 = vst [vmem:[#allocation44_spill] sm:$0xff] %v11647_v14  ;;  %v4398_v14 = vmul.f32 %v4397_v60, %v11549_v51 }
 0x591   : > { %4408 = vrot.lane.b32.xlu1 %v4399_v10, %s8395_s20  ;;  %4384 = vrot.lane.b32.xlu0 %v4374_v58, %s8395_s20  ;;  %v3765_v58 = vadd.f32 %v11525_v52, %v11287_v56  ;;  %v4171_v56 = vstv %s7834_s9  ;;  %v3764_v52 = vadd.f32 %v11535_v29, %v11305_v61  ;;  %v3791_v61 = vadd.f32 %v11543_v16, %v11320_v23  ;;  %s7856_s9 = sld [smem:[#allocation8 + $0x110]] }
 0x592   : > { %v4173_v22 = vmul.f32 %v4171_v56, %v11539_v46  ;;  %v4172_v23 = vmul.f32 %v4171_v56, %v11549_v51  ;;  %v3815_v16 = vadd.f32 %v11555_v8, %v11337_v43  ;;  %v4174_v8 = vmul.f32 %v4171_v56, %v11561_v7 }
 0x593   : > { %v3961_v62 = vpop.permute.xlu1 %3960  ;;  %v11655_v63 = vpop.permute.xlu0 %3936 }
 0x594   : > { %14922 = vst [vmem:[#allocation76_spill] sm:$0xff] %v11655_v63  ;;  %v3971_v44 = vadd.f32 %v3961_v62, %v3763_v28  ;;  %v4400_v28 = vmul.f32 %v4397_v60, %v11561_v7 }
 0x595   : > { %4412 = vrot.lane.b32.xlu1 %v4401_v33, %s8395_s20  ;;  %4406 = vrot.lane.b32.xlu0 %v4398_v14, %s8395_s20  ;;  %v4165_v33 = vmul.f32 %v4161_v36, %v11551_v54  ;;  %v4162_v14 = vmul.f32 %v4161_v36, %v11549_v51  ;;  %v4426_v36 = vmul.f32 %v4423_v27, %v11561_v7 }
 0x596   : > { %v11666_v24 = vadd.f32 %v4163_v17, %v3971_v44  ;;  %v4427_v17 = vmul.f32 %v4423_v27, %v11551_v54 }
 0x597   : > { %v3965_v10 = vpop.permute.xlu1 %3964  ;;  %v3959_v63 = vpop.permute.xlu0 %3958 }
 0x598   : > { %v3973_v62 = vadd.f32 %v3965_v10, %v3765_v58  ;;  %v3970_v50 = vadd.f32 %v3959_v63, %v3762_v0  ;;  %v4449_v58 = vstv %s7849_s23  ;;  %s7865_s23 = sld [smem:[#allocation8 + $0x16]] }
 0x599   : > { %4434 = vrot.lane.b32.xlu1 %v4425_v5, %s8395_s20  ;;  %4410 = vrot.lane.b32.xlu0 %v4400_v28, %s8395_s20  ;;  %v4424_v5 = vmul.f32 %v4423_v27, %v11549_v51  ;;  %v3790_v27 = vadd.f32 %v11557_v32, %v11339_v9  ;;  %v3817_v9 = vadd.f32 %v11565_v34, %v11354_v41 }
 0x59a   : > { %v11680_v60 = vadd.f32 %v4165_v33, %v3973_v62  ;;  %v11682_v63 = vadd.f32 %v4162_v14, %v3970_v50  ;;  %v3788_v50 = vadd.f32 %v11545_v15, %v11322_v19  ;;  %v4451_v14 = vmul.f32 %v4449_v58, %v11539_v46 }
 0x59b   : > { %v3987_v31 = vpop.permute.xlu1 %3986  ;;  %v3963_v44 = vpop.permute.xlu0 %3962  ;;  %v4181_v19 = vstv %s11674_s5  ;;  %v3814_v32 = vadd.f32 %v11567_v21, %v11356_v11  ;;  %v4191_v11 = vstv %s11707_s12  ;;  %v3841_v34 = vadd.f32 %v11573_v39, %v11371_v13  ;;  %s7866_s5 = sld [smem:[#allocation8 + $0x3a]] }
 0x59c   : > { %v3997_v0 = vadd.f32 %v3987_v31, %v3789_v2  ;;  %v3972_v10 = vadd.f32 %v3963_v44, %v3764_v52  ;;  %v4175_v31 = vmul.f32 %v4171_v56, %v11551_v54  ;;  %v4183_v43 = vmul.f32 %v4181_v19, %v11539_v46  ;;  %s7868_s12 = sld [smem:[#allocation8 + $0x82]] }
 0x59d   : > { %4438 = vrot.lane.b32.xlu1 %v4427_v17, %s8395_s20  ;;  %4432 = vrot.lane.b32.xlu0 %v4424_v5, %s8395_s20  ;;  %v4452_v56 = vmul.f32 %v4449_v58, %v11561_v7  ;;  %v4182_v41 = vmul.f32 %v4181_v19, %v11549_v51  ;;  %v3816_v21 = vadd.f32 %v11575_v59, %v11373_v30 }
 0x59e   : > { %v11696_v29 = vadd.f32 %v4173_v22, %v3997_v0  ;;  %v11698_v28 = vadd.f32 %v4164_v53, %v3972_v10  ;;  %v4453_v0 = vmul.f32 %v4449_v58, %v11551_v54  ;;  %v4450_v10 = vmul.f32 %v4449_v58, %v11549_v51 }
 0x59f   : > { %v3991_v62 = vpop.permute.xlu1 %3990  ;;  %v3985_v33 = vpop.permute.xlu0 %3984  ;;  %v4475_v22 = vstv %s11686_s7  ;;  %v4193_v13 = vmul.f32 %v4191_v11, %v11539_v46  ;;  %v4184_v39 = vmul.f32 %v4181_v19, %v11561_v7  ;;  %v3843_v30 = vadd.f32 %v11581_v42, %v11388_v40  ;;  %s7867_s7 = sld [smem:[#allocation8 + $0x5e]] }
 0x5a0   : > { %v3999_v2 = vadd.f32 %v3991_v62, %v3791_v61  ;;  %v3996_v52 = vadd.f32 %v3985_v33, %v3788_v50  ;;  %v3840_v59 = vadd.f32 %v11583_v47, %v11390_v18  ;;  %v4192_v40 = vmul.f32 %v4191_v11, %v11549_v51 }
 0x5a1   : > { %4460 = vrot.lane.b32.xlu1 %v4451_v14, %s8396_s25  ;;  %4436 = vrot.lane.b32.xlu0 %v4426_v36, %s8395_s20  ;;  %v4477_v36 = vmul.f32 %v4475_v22, %v11539_v46  ;;  %v4201_v18 = vstv %s11741_s14  ;;  %v3867_v42 = vadd.f32 %v11589_v38, %v11405_v48  ;;  %v3842_v47 = vadd.f32 %v11591_v12, %v11407_v1  ;;  %s7870_s14 = sld [smem:[#allocation8 + $0xca]] }
 0x5a2   : > { %v11713_v15 = vadd.f32 %v4175_v31, %v3999_v2  ;;  %v11715_v44 = vadd.f32 %v4172_v23, %v3996_v52  ;;  %v4185_v31 = vmul.f32 %v4181_v19, %v11551_v54  ;;  %v4478_v19 = vmul.f32 %v4475_v22, %v11561_v7 }
 0x5a3   : > { %v4013_v17 = vpop.permute.xlu1 %4012  ;;  %v3989_v5 = vpop.permute.xlu0 %3988  ;;  %v4203_v48 = vmul.f32 %v4201_v18, %v11539_v46  ;;  %v4194_v38 = vmul.f32 %v4191_v11, %v11561_v7  ;;  %v3869_v1 = vadd.f32 %v11597_v26, %v11422_v20  ;;  %v3866_v12 = vadd.f32 %v11599_v49, %v11424_v45 }
 0x5a4   : > { %v4023_v53 = vadd.f32 %v4013_v17, %v3815_v16  ;;  %v3998_v61 = vadd.f32 %v3989_v5, %v3790_v27  ;;  %v4479_v17 = vmul.f32 %v4475_v22, %v11551_v54  ;;  %v4476_v5 = vmul.f32 %v4475_v22, %v11549_v51 }
 0x5a5   : > { %4464 = vrot.lane.b32.xlu1 %v4453_v0, %s8396_s25  ;;  %4458 = vrot.lane.b32.xlu0 %v4450_v10, %s8396_s25  ;;  %v4501_v0 = vstv %s11720_s13  ;;  %v4202_v20 = vmul.f32 %v4201_v18, %v11549_v51  ;;  %v4211_v45 = vstv %s11775_s29  ;;  %v3893_v26 = vadd.f32 %v11605_v6, %v11439_v35  ;;  %s7869_s13 = sld [smem:[#allocation8 + $0xa6]] }
 0x5a6   : > { %v11730_v50 = vadd.f32 %v4183_v43, %v4023_v53  ;;  %v11732_v62 = vadd.f32 %v4174_v8, %v3998_v61  ;;  %v3868_v49 = vadd.f32 %v11607_v3, %v11441_v25  ;;  %v4213_v35 = vmul.f32 %v4211_v45, %v11539_v46  ;;  %s7857_s29 = sld [smem:[#allocation8 + $0x15]] }
 0x5a7   : > { %v4017_v33 = vpop.permute.xlu1 %4016  ;;  %v4011_v14 = vpop.permute.xlu0 %4010  ;;  %v4204_v6 = vmul.f32 %v4201_v18, %v11561_v7  ;;  %v3895_v25 = vadd.f32 %v11613_v57, %v11456_v55  ;;  %v3892_v3 = vadd.f32 %v11615_v37, %v11458_v4  ;;  %v4212_v55 = vmul.f32 %v4211_v45, %v11549_v51  ;;  %v14923_v57 = vld [vmem:[#allocation36_spill] sm:$0xff] }
 0x5a8   : > { %v4025_v2 = vadd.f32 %v4017_v33, %v3817_v9  ;;  %v4022_v52 = vadd.f32 %v4011_v14, %v3814_v32  ;;  %v4503_v32 = vmul.f32 %v4501_v0, %v11539_v46  ;;  %v4221_v4 = vstv %s11809_s30  ;;  %v14924_v37 = vld [vmem:[#allocation52_spill] sm:$0xff]  ;;  %s7858_s30 = sld [smem:[#allocation8 + $0x39]] }
 0x5a9   : > { %4486 = vrot.lane.b32.xlu1 %v4477_v36, %s8396_s25  ;;  %4462 = vrot.lane.b32.xlu0 %v4452_v56, %s8396_s25  ;;  %v4195_v36 = vmul.f32 %v4191_v11, %v11551_v54  ;;  %v4504_v11 = vmul.f32 %v4501_v0, %v11561_v7 }
 0x5aa   : > { %v11747_v58 = vadd.f32 %v4185_v31, %v4025_v2  ;;  %v11749_v23 = vadd.f32 %v4182_v41, %v4022_v52  ;;  %v4505_v31 = vmul.f32 %v4501_v0, %v11551_v54  ;;  %v4502_v41 = vmul.f32 %v4501_v0, %v11549_v51 }
 0x5ab   : > { %v4039_v16 = vpop.permute.xlu1 %4038  ;;  %v4015_v27 = vpop.permute.xlu0 %4014 }
 0x5ac   : > { %v4049_v10 = vadd.f32 %v4039_v16, %v3841_v34  ;;  %v4024_v53 = vadd.f32 %v4015_v27, %v3816_v21  ;;  %v4527_v34 = vstv %s11754_s26  ;;  %s7871_s26 = sld [smem:[#allocation8 + $0xee]] }
 0x5ad   : > { %4490 = vrot.lane.b32.xlu1 %v4479_v17, %s8396_s25  ;;  %4484 = vrot.lane.b32.xlu0 %v4476_v5, %s8396_s25 }
 0x5ae   : > { %v11764_v61 = vadd.f32 %v4193_v13, %v4049_v10  ;;  %v11766_v43 = vadd.f32 %v4184_v39, %v4024_v53  ;;  %v4529_v53 = vmul.f32 %v4527_v34, %v11539_v46 }
 0x5af   : > { %v4043_v8 = vpop.permute.xlu1 %4042  ;;  %v4037_v9 = vpop.permute.xlu0 %4036 }
 0x5b0   : > { %v4051_v33 = vadd.f32 %v4043_v8, %v3843_v30  ;;  %v4048_v14 = vadd.f32 %v4037_v9, %v3840_v59  ;;  %v4205_v30 = vmul.f32 %v4201_v18, %v11551_v54  ;;  %v4530_v18 = vmul.f32 %v4527_v34, %v11561_v7 }
 0x5b1   : > { %4512 = vrot.lane.b32.xlu1 %v4503_v32, %s8396_s25  ;;  %4488 = vrot.lane.b32.xlu0 %v4478_v19, %s8396_s25  ;;  %v4531_v32 = vmul.f32 %v4527_v34, %v11551_v54  ;;  %v4528_v19 = vmul.f32 %v4527_v34, %v11549_v51 }
 0x5b2   : > { %v11781_v22 = vadd.f32 %v4195_v36, %v4051_v33  ;;  %v11783_v56 = vadd.f32 %v4192_v40, %v4048_v14  ;;  %v4553_v33 = vstv %s11788_s8  ;;  %s7872_s8 = sld [smem:[#allocation8 + $0x112]] }
 0x5b3   : > { %v4065_v2 = vpop.permute.xlu1 %4064  ;;  %v4041_v52 = vpop.permute.xlu0 %4040 }
 0x5b4   : > { %v4075_v21 = vadd.f32 %v4065_v2, %v3867_v42  ;;  %v4050_v16 = vadd.f32 %v4041_v52, %v3842_v47  ;;  %v4555_v52 = vmul.f32 %v4553_v33, %v11539_v46 }
 0x5b5   : > { %4516 = vrot.lane.b32.xlu1 %v4505_v31, %s8396_s25  ;;  %4510 = vrot.lane.b32.xlu0 %v4502_v41, %s8396_s25 }
 0x5b6   : > { %v11798_v27 = vadd.f32 %v4203_v48, %v4075_v21  ;;  %v11800_v17 = vadd.f32 %v4194_v38, %v4050_v16  ;;  %v4215_v21 = vmul.f32 %v4211_v45, %v11551_v54  ;;  %v3919_v16 = vadd.f32 %v14924_v37, %v14923_v57  ;;  %v14925_v48 = vld [vmem:[#allocation39_spill] sm:$0xff]  ;;  %v14926_v38 = vld [vmem:[#allocation57_spill] sm:$0xff] }
 0x5b7   : > { %v4069_v5 = vpop.permute.xlu1 %4068  ;;  %v4063_v10 = vpop.permute.xlu0 %4062  ;;  %v3894_v34 = vadd.f32 %v14926_v38, %v14925_v48  ;;  %v14935_v57 = vld [vmem:[#allocation89_spill] sm:$0xff] }
 0x5b8   : > { %v4077_v13 = vadd.f32 %v4069_v5, %v3869_v1  ;;  %v4074_v39 = vadd.f32 %v4063_v10, %v3866_v12  ;;  %v14936_v37 = vld [vmem:[#allocation29_spill] sm:$0xff] }
 0x5b9   : > { %4538 = vrot.lane.b32.xlu1 %v4529_v53, %s8396_s25  ;;  %4514 = vrot.lane.b32.xlu0 %v4504_v11, %s8396_s25  ;;  %v4557_v53 = vmul.f32 %v4553_v33, %v11551_v54  ;;  %v4554_v11 = vmul.f32 %v4553_v33, %v11549_v51 }
 0x5ba   : > { %v11815_v0 = vadd.f32 %v4205_v30, %v4077_v13  ;;  %v11817_v59 = vadd.f32 %v4202_v20, %v4074_v39  ;;  %v4579_v13 = vstv %s11822_s10  ;;  %v4223_v20 = vmul.f32 %v4221_v4, %v11539_v46  ;;  %s7873_s10 = sld [smem:[#allocation8 + $0x17]] }
 0x5bb   : > { %v4091_v8 = vpop.permute.xlu1 %4090  ;;  %v4067_v9 = vpop.permute.xlu0 %4066 }
 0x5bc   : > { %v4101_v14 = vadd.f32 %v4091_v8, %v3893_v26  ;;  %v4076_v36 = vadd.f32 %v4067_v9, %v3868_v49  ;;  %v4214_v26 = vmul.f32 %v4211_v45, %v11561_v7  ;;  %v14927_v49 = vld [vmem:[#allocation65_spill] sm:$0xff]  ;;  %v14928_v8 = vld [vmem:[#allocation78_spill] sm:$0xff]  ;;  %v4556_v45 = vmul.f32 %v4553_v33, %v11561_v7 }
 0x5bd   : > { %4542 = vrot.lane.b32.xlu1 %v4531_v32, %s8396_s25  ;;  %4536 = vrot.lane.b32.xlu0 %v4528_v19, %s8396_s25  ;;  %v3921_v9 = vadd.f32 %v14928_v8, %v14927_v49  ;;  %v14929_v32 = vld [vmem:[#allocation53_spill] sm:$0xff] }
 0x5be   : > { %v11832_v40 = vadd.f32 %v4213_v35, %v4101_v14  ;;  %v11834_v42 = vadd.f32 %v4204_v6, %v4076_v36  ;;  %v14930_v19 = vld [vmem:[#allocation41_spill] sm:$0xff] }
 0x5bf   : > { %v4095_v47 = vpop.permute.xlu1 %4094  ;;  %v4089_v2 = vpop.permute.xlu0 %4088  ;;  %v3918_v14 = vadd.f32 %v14930_v19, %v14929_v32  ;;  %v14940_v49 = vld [vmem:[#allocation81_spill] sm:$0xff]  ;;  %v14942_v32 = vld [vmem:[#allocation44_spill] sm:$0xff] }
 0x5c0   : > { %v4103_v31 = vadd.f32 %v4095_v47, %v3895_v25  ;;  %v4100_v41 = vadd.f32 %v4089_v2, %v3892_v3  ;;  %v4581_v3 = vmul.f32 %v4579_v13, %v11539_v46 }
 0x5c1   : > { %4564 = vrot.lane.b32.xlu1 %v4555_v52, %s8396_s25  ;;  %4540 = vrot.lane.b32.xlu0 %v4530_v18, %s8396_s25  ;;  %v4225_v52 = vmul.f32 %v4221_v4, %v11551_v54  ;;  %v4222_v18 = vmul.f32 %v4221_v4, %v11549_v51 }
 0x5c2   : > { %v11849_v1 = vadd.f32 %v4215_v21, %v4103_v31  ;;  %v11851_v12 = vadd.f32 %v4212_v55, %v4100_v41  ;;  %v4231_v31 = vstv %s11843_s11  ;;  %v14933_v41 = vld [vmem:[#allocation67_spill] sm:$0xff]  ;;  %v14934_v21 = vld [vmem:[#allocation46_spill] sm:$0xff]  ;;  %s12067_s11 = sld [smem:[#allocation8 + $0x5d]] }
 0x5c3   : > { %v4117_v5 = vpop.permute.xlu1 %4116  ;;  %v4093_v10 = vpop.permute.xlu0 %4092  ;;  %v3945_v55 = vadd.f32 %v14934_v21, %v14933_v41  ;;  %v14945_v41 = vld [vmem:[#allocation59_spill] sm:$0xff]  ;;  %v14946_v21 = vld [vmem:[#allocation76_spill] sm:$0xff] }
 0x5c4   : > { %v4127_v39 = vadd.f32 %v4117_v5, %v3919_v16  ;;  %v4102_v30 = vadd.f32 %v4093_v10, %v3894_v34  ;;  %v3920_v16 = vadd.f32 %v14936_v37, %v14935_v57  ;;  %v4583_v5 = vmul.f32 %v4579_v13, %v11551_v54 }
 0x5c5   : > { %4568 = vrot.lane.b32.xlu1 %v4557_v53, %s8396_s25  ;;  %4562 = vrot.lane.b32.xlu0 %v4554_v11, %s8396_s25  ;;  %v4580_v10 = vmul.f32 %v4579_v13, %v11549_v51  ;;  %v4605_v53 = vstv %s7855_s22  ;;  %s12079_s22 = sld [smem:[#allocation8 + $0x3b]] }
 0x5c6   : > { %v11864_v36 = vadd.f32 %v4223_v20, %v4127_v39  ;;  %v11866_v35 = vadd.f32 %v4214_v26, %v4102_v30  ;;  %v4233_v30 = vmul.f32 %v4231_v31, %v11539_v46  ;;  %v4224_v20 = vmul.f32 %v4221_v4, %v11561_v7  ;;  %v14939_v26 = vld [vmem:[#allocation32_spill] sm:$0xff] }
 0x5c7   : > { %v4121_v6 = vpop.permute.xlu1 %4120  ;;  %v4115_v25 = vpop.permute.xlu0 %4114  ;;  %v3947_v8 = vadd.f32 %v14940_v49, %v14939_v26  ;;  %v4582_v4 = vmul.f32 %v4579_v13, %v11561_v7  ;;  %v4608_v49 = vmul.f32 %v4605_v53, %v11561_v7 }
 0x5c8   : > { %14931 = vst [vmem:[#allocation43_spill] sm:$0xff] %v11864_v36  ;;  %14932 = vst [vmem:[#allocation60_spill] sm:$0xff] %v11866_v35  ;;  %v4129_v47 = vadd.f32 %v4121_v6, %v3921_v9  ;;  %v4126_v2 = vadd.f32 %v4115_v25, %v3918_v14  ;;  %v14941_v9 = vld [vmem:[#allocation28_spill] sm:$0xff]  ;;  %v4923_v35 = vstv %s7872_s8  ;;  %s7879_s8 = sld [smem:[#allocation8 + $0xef]] }
 0x5c9   : > { %4590 = vrot.lane.b32.xlu1 %v4581_v3, %s8396_s25  ;;  %4566 = vrot.lane.b32.xlu0 %v4556_v45, %s8396_s25  ;;  %v3944_v19 = vadd.f32 %v14942_v32, %v14941_v9  ;;  %v4607_v45 = vmul.f32 %v4605_v53, %v11539_v46 }
 0x5ca   : > { %v11879_v48 = vadd.f32 %v4225_v52, %v4129_v47  ;;  %v11881_v33 = vadd.f32 %v4222_v18, %v4126_v2  ;;  %v4235_v52 = vmul.f32 %v4231_v31, %v11551_v54  ;;  %v4232_v18 = vmul.f32 %v4231_v31, %v11549_v51 }
 0x5cb   : > { %v4143_v38 = vpop.permute.xlu1 %4142  ;;  %v4119_v34 = vpop.permute.xlu0 %4118 }
 0x5cc   : > { %14937 = vst [vmem:[#allocation22_spill] sm:$0xff] %v11879_v48  ;;  %14938 = vst [vmem:[#allocation31_spill] sm:$0xff] %v11881_v33  ;;  %v4153_v11 = vadd.f32 %v4143_v38, %v3945_v55  ;;  %v4128_v39 = vadd.f32 %v4119_v34, %v3920_v16  ;;  %v3946_v55 = vadd.f32 %v14946_v21, %v14945_v41  ;;  %v4767_v41 = vstv %s7866_s5  ;;  %s12134_s5 = sld [smem:[#allocation8 + $0xa5]] }
 0x5cd   : > { %4594 = vrot.lane.b32.xlu1 %v4583_v5, %s8396_s25  ;;  %4588 = vrot.lane.b32.xlu0 %v4580_v10, %s8396_s25  ;;  %v4609_v38 = vmul.f32 %v4605_v53, %v11551_v54  ;;  %v4606_v34 = vmul.f32 %v4605_v53, %v11549_v51  ;;  %v4631_v10 = vstv %s7856_s9  ;;  %s12100_s9 = sld [smem:[#allocation8 + $0x81]] }
 0x5ce   : > { %v11893_v14 = vadd.f32 %v4233_v30, %v4153_v11  ;;  %v11895_v6 = vadd.f32 %v4224_v20, %v4128_v39  ;;  %v4234_v11 = vmul.f32 %v4231_v31, %v11561_v7  ;;  %v4633_v26 = vmul.f32 %v4631_v10, %v11539_v46 }
 0x5cf   : > { %v4147_v25 = vpop.permute.xlu1 %4146  ;;  %v4141_v3 = vpop.permute.xlu0 %4140  ;;  %v4635_v9 = vmul.f32 %v4631_v10, %v11551_v54  ;;  %v4632_v32 = vmul.f32 %v4631_v10, %v11549_v51  ;;  %v11944_v54 = vld [vmem:[#allocation2 + $0x69] sm:$0xff] }
 0x5d0   : > { %14943 = vst [vmem:[#allocation38_spill] sm:$0xff] %v11893_v14  ;;  %14944 = vst [vmem:[#allocation34_spill] sm:$0xff] %v11895_v6  ;;  %v4155_v47 = vadd.f32 %v4147_v25, %v3947_v8  ;;  %v4152_v2 = vadd.f32 %v4141_v3, %v3944_v19  ;;  %v11932_v19 = vld [vmem:[#allocation2 + $0x59] sm:$0xff]  ;;  %v4741_v25 = vstv %s7865_s23  ;;  %v4871_v6 = vstv %s7870_s14  ;;  %s12113_s23 = sld [smem:[#allocation8 + $0x5f]] }
 0x5d1   : > { %4616 = vrot.lane.b32.xlu1 %v4607_v45, %s8396_s25  ;;  %4592 = vrot.lane.b32.xlu0 %v4582_v4, %s8396_s25  ;;  %v4743_v3 = vmul.f32 %v4741_v25, %v11932_v19  ;;  %v4634_v45 = vmul.f32 %v4631_v10, %v11561_v7  ;;  %v11942_v4 = vld [vmem:[#allocation2 + $0x51] sm:$0xff]  ;;  %s12202_s14 = sld [smem:[#allocation8 + $0xed]] }
 0x5d2   : > { %v11905_v57 = vadd.f32 %v4235_v52, %v4155_v47  ;;  %v11907_v37 = vadd.f32 %v4232_v18, %v4152_v2  ;;  %v4745_v2 = vmul.f32 %v4741_v25, %v11944_v54  ;;  %v4742_v52 = vmul.f32 %v4741_v25, %v11942_v4  ;;  %v11954_v18 = vld [vmem:[#allocation2 + $0x61] sm:$0xff] }
 0x5d3   : > { %v11909_v16 = vpop.permute.xlu1 %4252  ;;  %v4145_v13 = vpop.permute.xlu0 %4144  ;;  %v4768_v10 = vmul.f32 %v4767_v41, %v11942_v4 }
 0x5d4   : > { %14947 = vst [vmem:[#allocation51_spill] sm:$0xff] %v11905_v57  ;;  %14948 = vst [vmem:[#allocation20_spill] sm:$0xff] %v11907_v37  ;;  %v4154_v5 = vadd.f32 %v4145_v13, %v3946_v55  ;;  %v4769_v55 = vmul.f32 %v4767_v41, %v11932_v19  ;;  %v4744_v13 = vmul.f32 %v4741_v25, %v11954_v18 }
 0x5d5   : > { %4620 = vrot.lane.b32.xlu1 %v4609_v38, %s8396_s25  ;;  %4614 = vrot.lane.b32.xlu0 %v4606_v34, %s8396_s25 }
 0x5d6   : > { %v11916_v39 = vadd.f32 %v4234_v11, %v4154_v5  ;;  %v4771_v5 = vmul.f32 %v4767_v41, %v11944_v54  ;;  %v4793_v11 = vstv %s7867_s7  ;;  %s12147_s7 = sld [smem:[#allocation8 + $0x83]] }
 0x5d7   : > { %v11918_v30 = vpop.permute.xlu1 %4256  ;;  %v11920_v20 = vpop.permute.xlu0 %4250 }
 0x5d8   : > { %14949 = vst [vmem:[#allocation19_spill] sm:$0xff] %v11916_v39 }
 0x5d9   : > { %4642 = vrot.lane.b32.xlu1 %v4633_v26, %s8396_s25  ;;  %4618 = vrot.lane.b32.xlu0 %v4608_v49, %s8396_s25 }
 0x5db   : > { %v11926_v8 = vpop.permute.xlu1 %4278  ;;  %v11928_v31 = vpop.permute.xlu0 %4254 }
 0x5dd   : > { %4646 = vrot.lane.b32.xlu1 %v4635_v9, %s8396_s25  ;;  %4640 = vrot.lane.b32.xlu0 %v4632_v32, %s8396_s25  ;;  %v4795_v9 = vmul.f32 %v4793_v11, %v11932_v19  ;;  %v4770_v32 = vmul.f32 %v4767_v41, %v11954_v18 }
 0x5df   : > { %v11936_v46 = vpop.permute.xlu1 %4282  ;;  %v11938_v53 = vpop.permute.xlu0 %4276 }
 0x5e1   : > { %4752 = vrot.lane.b32.xlu1 %v4743_v3, %s8395_s20  ;;  %4644 = vrot.lane.b32.xlu0 %v4634_v45, %s8396_s25  ;;  %v4797_v45 = vmul.f32 %v4793_v11, %v11944_v54 }
 0x5e3   : > { %v11948_v51 = vpop.permute.xlu1 %4304  ;;  %v11950_v47 = vpop.permute.xlu0 %4280 }
 0x5e5   : > { %4756 = vrot.lane.b32.xlu1 %v4745_v2, %s8395_s20  ;;  %4750 = vrot.lane.b32.xlu0 %v4742_v52, %s8395_s20  ;;  %v4794_v2 = vmul.f32 %v4793_v11, %v11942_v4  ;;  %v4819_v52 = vstv %s7868_s12  ;;  %s12168_s12 = sld [smem:[#allocation8 + $0xc9]] }
 0x5e7   : > { %v11958_v7 = vpop.permute.xlu1 %4308  ;;  %v11960_v21 = vpop.permute.xlu0 %4302 }
 0x5e9   : > { %4778 = vrot.lane.b32.xlu1 %v4769_v55, %s8395_s20  ;;  %4754 = vrot.lane.b32.xlu0 %v4744_v13, %s8395_s20  ;;  %v4821_v13 = vmul.f32 %v4819_v52, %v11932_v19 }
 0x5eb   : > { %v11966_v38 = vpop.permute.xlu1 %4330  ;;  %v11968_v34 = vpop.permute.xlu0 %4306 }
 0x5ed   : > { %4782 = vrot.lane.b32.xlu1 %v4771_v5, %s8395_s20  ;;  %4776 = vrot.lane.b32.xlu0 %v4768_v10, %s8395_s20  ;;  %v4796_v5 = vmul.f32 %v4793_v11, %v11954_v18 }
 0x5ef   : > { %v11974_v26 = vpop.permute.xlu1 %4334  ;;  %v11976_v49 = vpop.permute.xlu0 %4328 }
 0x5f1   : > { %4804 = vrot.lane.b32.xlu1 %v4795_v9, %s8395_s20  ;;  %4780 = vrot.lane.b32.xlu0 %v4770_v32, %s8395_s20  ;;  %v4823_v32 = vmul.f32 %v4819_v52, %v11944_v54 }
 0x5f3   : > { %v11982_v25 = vpop.permute.xlu1 %4356  ;;  %v11984_v3 = vpop.permute.xlu0 %4332 }
 0x5f5   : > { %4808 = vrot.lane.b32.xlu1 %v4797_v45, %s8395_s20  ;;  %4802 = vrot.lane.b32.xlu0 %v4794_v2, %s8395_s20  ;;  %v4820_v45 = vmul.f32 %v4819_v52, %v11942_v4  ;;  %v4845_v2 = vstv %s7869_s13  ;;  %s12181_s13 = sld [smem:[#allocation8 + $0xa7]] }
 0x5f7   : > { %v11990_v55 = vpop.permute.xlu1 %4360  ;;  %v11992_v41 = vpop.permute.xlu0 %4354 }
 0x5f9   : > { %4830 = vrot.lane.b32.xlu1 %v4821_v13, %s8395_s20  ;;  %4806 = vrot.lane.b32.xlu0 %v4796_v5, %s8395_s20  ;;  %v4847_v13 = vmul.f32 %v4845_v2, %v11932_v19  ;;  %v4822_v5 = vmul.f32 %v4819_v52, %v11954_v18 }
 0x5fb   : > { %v11998_v10 = vpop.permute.xlu1 %4382  ;;  %v12000_v9 = vpop.permute.xlu0 %4358 }
 0x5fd   : > { %4834 = vrot.lane.b32.xlu1 %v4823_v32, %s8395_s20  ;;  %4828 = vrot.lane.b32.xlu0 %v4820_v45, %s8395_s20  ;;  %v4849_v32 = vmul.f32 %v4845_v2, %v11944_v54  ;;  %v4846_v45 = vmul.f32 %v4845_v2, %v11942_v4 }
 0x5ff   : > { %v12006_v39 = vpop.permute.xlu1 %4386  ;;  %v12008_v11 = vpop.permute.xlu0 %4380 }
 0x601   : > { %4856 = vrot.lane.b32.xlu1 %v4847_v13, %s8395_s20  ;;  %4832 = vrot.lane.b32.xlu0 %v4822_v5, %s8395_s20  ;;  %v4873_v13 = vmul.f32 %v4871_v6, %v11932_v19  ;;  %v4848_v5 = vmul.f32 %v4845_v2, %v11954_v18 }
 0x603   : > { %v12014_v37 = vpop.permute.xlu1 %4408  ;;  %v12016_v57 = vpop.permute.xlu0 %4384 }
 0x604   : > { %14950 = vst [vmem:[#allocation33_spill] sm:$0xff] %v12014_v37  ;;  %14951 = vst [vmem:[#allocation45_spill] sm:$0xff] %v12016_v57  ;;  %v4925_v37 = vmul.f32 %v4923_v35, %v11932_v19 }
 0x605   : > { %4860 = vrot.lane.b32.xlu1 %v4849_v32, %s8395_s20  ;;  %4854 = vrot.lane.b32.xlu0 %v4846_v45, %s8395_s20  ;;  %v4875_v32 = vmul.f32 %v4871_v6, %v11944_v54  ;;  %v4872_v45 = vmul.f32 %v4871_v6, %v11942_v4 }
 0x607   : > { %v12022_v14 = vpop.permute.xlu1 %4412  ;;  %v12024_v52 = vpop.permute.xlu0 %4406 }
 0x608   : > { %14952 = vst [vmem:[#allocation18_spill] sm:$0xff] %v12022_v14  ;;  %14953 = vst [vmem:[#allocation35_spill] sm:$0xff] %v12024_v52  ;;  %v4897_v14 = vstv %s7871_s26  ;;  %v4263_v52 = vadd.f32 %v11909_v16, %v11666_v24  ;;  %v4262_v24 = vadd.f32 %v11920_v20, %v11682_v63  ;;  %v4289_v63 = vadd.f32 %v11926_v8, %v11696_v29  ;;  %s12215_s26 = sld [smem:[#allocation8 + $0xcb]] }
 0x609   : > { %4882 = vrot.lane.b32.xlu1 %v4873_v13, %s8395_s20  ;;  %4858 = vrot.lane.b32.xlu0 %v4848_v5, %s8395_s20  ;;  %v4899_v5 = vmul.f32 %v4897_v14, %v11932_v19 }
 0x60b   : > { %v12030_v33 = vpop.permute.xlu1 %4434  ;;  %v12032_v48 = vpop.permute.xlu0 %4410 }
 0x60c   : > { %14954 = vst [vmem:[#allocation55_spill] sm:$0xff] %v12030_v33  ;;  %14955 = vst [vmem:[#allocation26_spill] sm:$0xff] %v12032_v48  ;;  %v4874_v33 = vmul.f32 %v4871_v6, %v11954_v18  ;;  %v4661_v48 = vstv %s7857_s29  ;;  %s12236_s29 = sld [smem:[#allocation8 + $0x111]] }
 0x60d   : > { %4886 = vrot.lane.b32.xlu1 %v4875_v32, %s8395_s20  ;;  %4880 = vrot.lane.b32.xlu0 %v4872_v45, %s8395_s20  ;;  %v4901_v45 = vmul.f32 %v4897_v14, %v11944_v54  ;;  %v4663_v6 = vmul.f32 %v4661_v48, %v11932_v19  ;;  %v4664_v8 = vmul.f32 %v4661_v48, %v11954_v18 }
 0x60f   : > { %v12038_v2 = vpop.permute.xlu1 %4438  ;;  %v12040_v13 = vpop.permute.xlu0 %4432 }
 0x610   : > { %14956 = vst [vmem:[#allocation58_spill] sm:$0xff] %v12038_v2  ;;  %14957 = vst [vmem:[#allocation63_spill] sm:$0xff] %v12040_v13  ;;  %v4898_v13 = vmul.f32 %v4897_v14, %v11942_v4 }
 0x611   : > { %4908 = vrot.lane.b32.xlu1 %v4899_v5, %s8395_s20  ;;  %4884 = vrot.lane.b32.xlu0 %v4874_v33, %s8395_s20  ;;  %v4265_v33 = vadd.f32 %v11918_v30, %v11680_v60  ;;  %v4671_v60 = vstv %s7858_s30  ;;  %v4264_v30 = vadd.f32 %v11928_v31, %v11698_v28  ;;  %v4291_v28 = vadd.f32 %v11936_v46, %v11713_v15  ;;  %s7880_s30 = sld [smem:[#allocation8 + $0x113]] }
 0x612   : > { %v4673_v29 = vmul.f32 %v4671_v60, %v11932_v19  ;;  %v4672_v15 = vmul.f32 %v4671_v60, %v11942_v4  ;;  %v4315_v46 = vadd.f32 %v11948_v51, %v11730_v50  ;;  %v4674_v51 = vmul.f32 %v4671_v60, %v11954_v18 }
 0x613   : > { %v4461_v32 = vpop.permute.xlu1 %4460  ;;  %v12048_v57 = vpop.permute.xlu0 %4436 }
 0x614   : > { %14958 = vst [vmem:[#allocation61_spill] sm:$0xff] %v12048_v57  ;;  %v4471_v2 = vadd.f32 %v4461_v32, %v4263_v52  ;;  %v4900_v52 = vmul.f32 %v4897_v14, %v11954_v18 }
 0x615   : > { %4912 = vrot.lane.b32.xlu1 %v4901_v45, %s8395_s20  ;;  %4906 = vrot.lane.b32.xlu0 %v4898_v13, %s8395_s20  ;;  %v4665_v45 = vmul.f32 %v4661_v48, %v11944_v54  ;;  %v4662_v13 = vmul.f32 %v4661_v48, %v11942_v4  ;;  %v4926_v48 = vmul.f32 %v4923_v35, %v11954_v18 }
 0x616   : > { %v12059_v16 = vadd.f32 %v4663_v6, %v4471_v2  ;;  %v4927_v6 = vmul.f32 %v4923_v35, %v11944_v54 }
 0x617   : > { %v4465_v5 = vpop.permute.xlu1 %4464  ;;  %v4459_v57 = vpop.permute.xlu0 %4458 }
 0x618   : > { %v4473_v32 = vadd.f32 %v4465_v5, %v4265_v33  ;;  %v4470_v36 = vadd.f32 %v4459_v57, %v4262_v24  ;;  %v4949_v33 = vstv %s7873_s10  ;;  %s7889_s10 = sld [smem:[#allocation8 + $0x19]] }
 0x619   : > { %4934 = vrot.lane.b32.xlu1 %v4925_v37, %s8395_s20  ;;  %4910 = vrot.lane.b32.xlu0 %v4900_v52, %s8395_s20  ;;  %v4924_v37 = vmul.f32 %v4923_v35, %v11942_v4  ;;  %v4290_v35 = vadd.f32 %v11950_v47, %v11732_v62  ;;  %v4317_v62 = vadd.f32 %v11958_v7, %v11747_v58 }
 0x61a   : > { %v12073_v14 = vadd.f32 %v4665_v45, %v4473_v32  ;;  %v12075_v57 = vadd.f32 %v4662_v13, %v4470_v36  ;;  %v4288_v36 = vadd.f32 %v11938_v53, %v11715_v44  ;;  %v4951_v13 = vmul.f32 %v4949_v33, %v11932_v19 }
 0x61b   : > { %v4487_v20 = vpop.permute.xlu1 %4486  ;;  %v4463_v2 = vpop.permute.xlu0 %4462  ;;  %v4681_v44 = vstv %s12067_s11  ;;  %v4314_v47 = vadd.f32 %v11960_v21, %v11749_v23  ;;  %v4691_v23 = vstv %s12100_s9  ;;  %v4341_v7 = vadd.f32 %v11966_v38, %v11764_v61  ;;  %s7890_s11 = sld [smem:[#allocation8 + $0x3d]] }
 0x61c   : > { %v4497_v24 = vadd.f32 %v4487_v20, %v4289_v63  ;;  %v4472_v5 = vadd.f32 %v4463_v2, %v4264_v30  ;;  %v4675_v20 = vmul.f32 %v4671_v60, %v11944_v54  ;;  %v4683_v50 = vmul.f32 %v4681_v44, %v11932_v19  ;;  %s7892_s9 = sld [smem:[#allocation8 + $0x85]] }
 0x61d   : > { %4938 = vrot.lane.b32.xlu1 %v4927_v6, %s8395_s20  ;;  %4932 = vrot.lane.b32.xlu0 %v4924_v37, %s8395_s20  ;;  %v4952_v60 = vmul.f32 %v4949_v33, %v11954_v18  ;;  %v4682_v58 = vmul.f32 %v4681_v44, %v11942_v4  ;;  %v4316_v21 = vadd.f32 %v11968_v34, %v11766_v43 }
 0x61e   : > { %v12089_v31 = vadd.f32 %v4673_v29, %v4497_v24  ;;  %v12091_v52 = vadd.f32 %v4664_v8, %v4472_v5  ;;  %v4953_v24 = vmul.f32 %v4949_v33, %v11944_v54  ;;  %v4950_v5 = vmul.f32 %v4949_v33, %v11942_v4 }
 0x61f   : > { %v4491_v32 = vpop.permute.xlu1 %4490  ;;  %v4485_v45 = vpop.permute.xlu0 %4484  ;;  %v4975_v29 = vstv %s12079_s22  ;;  %v4693_v61 = vmul.f32 %v4691_v23, %v11932_v19  ;;  %v4684_v38 = vmul.f32 %v4681_v44, %v11954_v18  ;;  %v4343_v43 = vadd.f32 %v11974_v26, %v11781_v22  ;;  %s7891_s22 = sld [smem:[#allocation8 + $0x61]] }
 0x620   : > { %v4499_v63 = vadd.f32 %v4491_v32, %v4291_v28  ;;  %v4496_v30 = vadd.f32 %v4485_v45, %v4288_v36  ;;  %v4340_v34 = vadd.f32 %v11976_v49, %v11783_v56  ;;  %v4692_v22 = vmul.f32 %v4691_v23, %v11942_v4 }
 0x621   : > { %4960 = vrot.lane.b32.xlu1 %v4951_v13, %s8396_s25  ;;  %4936 = vrot.lane.b32.xlu0 %v4926_v48, %s8395_s20  ;;  %v4977_v48 = vmul.f32 %v4975_v29, %v11932_v19  ;;  %v4701_v56 = vstv %s12134_s5  ;;  %v4367_v26 = vadd.f32 %v11982_v25, %v11798_v27  ;;  %v4342_v49 = vadd.f32 %v11984_v3, %v11800_v17  ;;  %s7894_s5 = sld [smem:[#allocation8 + $0xcd]] }
 0x622   : > { %v12106_v53 = vadd.f32 %v4675_v20, %v4499_v63  ;;  %v12108_v2 = vadd.f32 %v4672_v15, %v4496_v30  ;;  %v4685_v20 = vmul.f32 %v4681_v44, %v11944_v54  ;;  %v4978_v44 = vmul.f32 %v4975_v29, %v11954_v18 }
 0x623   : > { %v4513_v6 = vpop.permute.xlu1 %4512  ;;  %v4489_v37 = vpop.permute.xlu0 %4488  ;;  %v4703_v27 = vmul.f32 %v4701_v56, %v11932_v19  ;;  %v4694_v25 = vmul.f32 %v4691_v23, %v11954_v18  ;;  %v4369_v17 = vadd.f32 %v11990_v55, %v11815_v0  ;;  %v4366_v3 = vadd.f32 %v11992_v41, %v11817_v59 }
 0x624   : > { %v4523_v8 = vadd.f32 %v4513_v6, %v4315_v46  ;;  %v4498_v28 = vadd.f32 %v4489_v37, %v4290_v35  ;;  %v4979_v6 = vmul.f32 %v4975_v29, %v11944_v54  ;;  %v4976_v37 = vmul.f32 %v4975_v29, %v11942_v4 }
 0x625   : > { %4964 = vrot.lane.b32.xlu1 %v4953_v24, %s8396_s25  ;;  %4958 = vrot.lane.b32.xlu0 %v4950_v5, %s8396_s25  ;;  %v5001_v24 = vstv %s12113_s23  ;;  %v4702_v0 = vmul.f32 %v4701_v56, %v11942_v4  ;;  %v4711_v59 = vstv %s12168_s12  ;;  %v4393_v55 = vadd.f32 %v11998_v10, %v11832_v40  ;;  %s7893_s23 = sld [smem:[#allocation8 + $0xa9]] }
 0x626   : > { %v12123_v36 = vadd.f32 %v4683_v50, %v4523_v8  ;;  %v12125_v32 = vadd.f32 %v4674_v51, %v4498_v28  ;;  %v4368_v41 = vadd.f32 %v12000_v9, %v11834_v42  ;;  %v4713_v40 = vmul.f32 %v4711_v59, %v11932_v19  ;;  %s7881_s12 = sld [smem:[#allocation8 + $0x18]] }
 0x627   : > { %v4517_v45 = vpop.permute.xlu1 %4516  ;;  %v4511_v13 = vpop.permute.xlu0 %4510  ;;  %v4704_v10 = vmul.f32 %v4701_v56, %v11954_v18  ;;  %v4395_v42 = vadd.f32 %v12006_v39, %v11849_v1  ;;  %v4392_v9 = vadd.f32 %v12008_v11, %v11851_v12  ;;  %v4712_v1 = vmul.f32 %v4711_v59, %v11942_v4  ;;  %v14959_v39 = vld [vmem:[#allocation43_spill] sm:$0xff]  ;;  %v14960_v11 = vld [vmem:[#allocation33_spill] sm:$0xff] }
 0x628   : > { %v4525_v63 = vadd.f32 %v4517_v45, %v4317_v62  ;;  %v4522_v30 = vadd.f32 %v4511_v13, %v4314_v47  ;;  %v5003_v47 = vmul.f32 %v5001_v24, %v11932_v19  ;;  %v4721_v12 = vstv %s12202_s14  ;;  %s7882_s14 = sld [smem:[#allocation8 + $0x3c]] }
 0x629   : > { %4986 = vrot.lane.b32.xlu1 %v4977_v48, %s8396_s25  ;;  %4962 = vrot.lane.b32.xlu0 %v4952_v60, %s8396_s25  ;;  %v4695_v48 = vmul.f32 %v4691_v23, %v11944_v54  ;;  %v5004_v23 = vmul.f32 %v5001_v24, %v11954_v18 }
 0x62a   : > { %v12140_v33 = vadd.f32 %v4685_v20, %v4525_v63  ;;  %v12142_v15 = vadd.f32 %v4682_v58, %v4522_v30  ;;  %v5005_v20 = vmul.f32 %v5001_v24, %v11944_v54  ;;  %v5002_v58 = vmul.f32 %v5001_v24, %v11942_v4 }
 0x62b   : > { %v4539_v46 = vpop.permute.xlu1 %4538  ;;  %v4515_v35 = vpop.permute.xlu0 %4514 }
 0x62c   : > { %v4549_v5 = vadd.f32 %v4539_v46, %v4341_v7  ;;  %v4524_v8 = vadd.f32 %v4515_v35, %v4316_v21  ;;  %v5027_v7 = vstv %s12147_s7  ;;  %s7895_s7 = sld [smem:[#allocation8 + $0xf1]] }
 0x62d   : > { %4990 = vrot.lane.b32.xlu1 %v4979_v6, %s8396_s25  ;;  %4984 = vrot.lane.b32.xlu0 %v4976_v37, %s8396_s25 }
 0x62e   : > { %v12157_v28 = vadd.f32 %v4693_v61, %v4549_v5  ;;  %v12159_v50 = vadd.f32 %v4684_v38, %v4524_v8  ;;  %v5029_v8 = vmul.f32 %v5027_v7, %v11932_v19 }
 0x62f   : > { %v4543_v51 = vpop.permute.xlu1 %4542  ;;  %v4537_v62 = vpop.permute.xlu0 %4536 }
 0x630   : > { %v4551_v45 = vadd.f32 %v4543_v51, %v4343_v43  ;;  %v4548_v13 = vadd.f32 %v4537_v62, %v4340_v34  ;;  %v4705_v43 = vmul.f32 %v4701_v56, %v11944_v54  ;;  %v5030_v56 = vmul.f32 %v5027_v7, %v11954_v18 }
 0x631   : > { %5012 = vrot.lane.b32.xlu1 %v5003_v47, %s8396_s25  ;;  %4988 = vrot.lane.b32.xlu0 %v4978_v44, %s8396_s25  ;;  %v5031_v47 = vmul.f32 %v5027_v7, %v11944_v54  ;;  %v5028_v44 = vmul.f32 %v5027_v7, %v11942_v4 }
 0x632   : > { %v12174_v29 = vadd.f32 %v4695_v48, %v4551_v45  ;;  %v12176_v60 = vadd.f32 %v4692_v22, %v4548_v13  ;;  %v5053_v45 = vstv %s12181_s13  ;;  %s7896_s13 = sld [smem:[#allocation8 + $0x115]] }
 0x633   : > { %v4565_v63 = vpop.permute.xlu1 %4564  ;;  %v4541_v30 = vpop.permute.xlu0 %4540 }
 0x634   : > { %v4575_v21 = vadd.f32 %v4565_v63, %v4367_v26  ;;  %v4550_v46 = vadd.f32 %v4541_v30, %v4342_v49  ;;  %v5055_v30 = vmul.f32 %v5053_v45, %v11932_v19 }
 0x635   : > { %5016 = vrot.lane.b32.xlu1 %v5005_v20, %s8396_s25  ;;  %5010 = vrot.lane.b32.xlu0 %v5002_v58, %s8396_s25 }
 0x636   : > { %v12191_v35 = vadd.f32 %v4703_v27, %v4575_v21  ;;  %v12193_v6 = vadd.f32 %v4694_v25, %v4550_v46  ;;  %v4715_v21 = vmul.f32 %v4711_v59, %v11944_v54  ;;  %v4419_v46 = vadd.f32 %v14960_v11, %v14959_v39  ;;  %v14961_v27 = vld [vmem:[#allocation60_spill] sm:$0xff]  ;;  %v14962_v25 = vld [vmem:[#allocation45_spill] sm:$0xff]  ;;  %v14971_v39 = vld [vmem:[#allocation34_spill] sm:$0xff] }
 0x637   : > { %v4569_v37 = vpop.permute.xlu1 %4568  ;;  %v4563_v5 = vpop.permute.xlu0 %4562  ;;  %v4394_v7 = vadd.f32 %v14962_v25, %v14961_v27  ;;  %v14972_v11 = vld [vmem:[#allocation26_spill] sm:$0xff] }
 0x638   : > { %v4577_v61 = vadd.f32 %v4569_v37, %v4369_v17  ;;  %v4574_v38 = vadd.f32 %v4563_v5, %v4366_v3 }
 0x639   : > { %5038 = vrot.lane.b32.xlu1 %v5029_v8, %s8396_s25  ;;  %5014 = vrot.lane.b32.xlu0 %v5004_v23, %s8396_s25  ;;  %v5057_v8 = vmul.f32 %v5053_v45, %v11944_v54  ;;  %v5054_v23 = vmul.f32 %v5053_v45, %v11942_v4 }
 0x63a   : > { %v12208_v24 = vadd.f32 %v4705_v43, %v4577_v61  ;;  %v12210_v34 = vadd.f32 %v4702_v0, %v4574_v38  ;;  %v5079_v61 = vstv %s12215_s26  ;;  %v4723_v0 = vmul.f32 %v4721_v12, %v11932_v19  ;;  %s7897_s26 = sld [smem:[#allocation8 + $0x1a]] }
 0x63b   : > { %v4591_v51 = vpop.permute.xlu1 %4590  ;;  %v4567_v62 = vpop.permute.xlu0 %4566 }
 0x63c   : > { %v4601_v13 = vadd.f32 %v4591_v51, %v4393_v55  ;;  %v4576_v48 = vadd.f32 %v4567_v62, %v4368_v41  ;;  %v4714_v55 = vmul.f32 %v4711_v59, %v11954_v18  ;;  %v14963_v41 = vld [vmem:[#allocation22_spill] sm:$0xff]  ;;  %v5056_v59 = vmul.f32 %v5053_v45, %v11954_v18 }
 0x63d   : > { %5042 = vrot.lane.b32.xlu1 %v5031_v47, %s8396_s25  ;;  %5036 = vrot.lane.b32.xlu0 %v5028_v44, %s8396_s25  ;;  %v14964_v51 = vld [vmem:[#allocation18_spill] sm:$0xff]  ;;  %v14965_v47 = vld [vmem:[#allocation31_spill] sm:$0xff] }
 0x63e   : > { %v12225_v22 = vadd.f32 %v4713_v40, %v4601_v13  ;;  %v12227_v26 = vadd.f32 %v4704_v10, %v4576_v48  ;;  %v4421_v62 = vadd.f32 %v14964_v51, %v14963_v41  ;;  %v14966_v44 = vld [vmem:[#allocation35_spill] sm:$0xff]  ;;  %v14976_v41 = vld [vmem:[#allocation58_spill] sm:$0xff] }
 0x63f   : > { %v4595_v49 = vpop.permute.xlu1 %4594  ;;  %v4589_v63 = vpop.permute.xlu0 %4588  ;;  %v4418_v13 = vadd.f32 %v14966_v44, %v14965_v47  ;;  %v14978_v47 = vld [vmem:[#allocation63_spill] sm:$0xff] }
 0x640   : > { %v4603_v20 = vadd.f32 %v4595_v49, %v4395_v42  ;;  %v4600_v58 = vadd.f32 %v4589_v63, %v4392_v9  ;;  %v5081_v9 = vmul.f32 %v5079_v61, %v11932_v19 }
 0x641   : > { %5064 = vrot.lane.b32.xlu1 %v5055_v30, %s8396_s25  ;;  %5040 = vrot.lane.b32.xlu0 %v5030_v56, %s8396_s25  ;;  %v4725_v30 = vmul.f32 %v4721_v12, %v11944_v54  ;;  %v4722_v56 = vmul.f32 %v4721_v12, %v11942_v4 }
 0x642   : > { %v12242_v17 = vadd.f32 %v4715_v21, %v4603_v20  ;;  %v12244_v3 = vadd.f32 %v4712_v1, %v4600_v58  ;;  %v4731_v20 = vstv %s12236_s29  ;;  %v14969_v58 = vld [vmem:[#allocation38_spill] sm:$0xff]  ;;  %v14970_v21 = vld [vmem:[#allocation55_spill] sm:$0xff]  ;;  %s12460_s29 = sld [smem:[#allocation8 + $0x60]] }
 0x643   : > { %v4617_v37 = vpop.permute.xlu1 %4616  ;;  %v4593_v5 = vpop.permute.xlu0 %4592  ;;  %v4445_v1 = vadd.f32 %v14970_v21, %v14969_v58  ;;  %v14981_v58 = vld [vmem:[#allocation19_spill] sm:$0xff]  ;;  %v14982_v21 = vld [vmem:[#allocation61_spill] sm:$0xff] }
 0x644   : > { %v4627_v38 = vadd.f32 %v4617_v37, %v4419_v46  ;;  %v4602_v43 = vadd.f32 %v4593_v5, %v4394_v7  ;;  %v4420_v46 = vadd.f32 %v14972_v11, %v14971_v39  ;;  %v5083_v37 = vmul.f32 %v5079_v61, %v11944_v54 }
 0x645   : > { %5068 = vrot.lane.b32.xlu1 %v5057_v8, %s8396_s25  ;;  %5062 = vrot.lane.b32.xlu0 %v5054_v23, %s8396_s25  ;;  %v5080_v5 = vmul.f32 %v5079_v61, %v11942_v4  ;;  %v5105_v8 = vstv %s7879_s8  ;;  %s12472_s8 = sld [smem:[#allocation8 + $0x3e]] }
 0x646   : > { %v12257_v48 = vadd.f32 %v4723_v0, %v4627_v38  ;;  %v12259_v40 = vadd.f32 %v4714_v55, %v4602_v43  ;;  %v4733_v43 = vmul.f32 %v4731_v20, %v11932_v19  ;;  %v4724_v0 = vmul.f32 %v4721_v12, %v11954_v18  ;;  %v14975_v55 = vld [vmem:[#allocation51_spill] sm:$0xff] }
 0x647   : > { %v4621_v10 = vpop.permute.xlu1 %4620  ;;  %v4615_v42 = vpop.permute.xlu0 %4614  ;;  %v4447_v51 = vadd.f32 %v14976_v41, %v14975_v55  ;;  %v5082_v12 = vmul.f32 %v5079_v61, %v11954_v18  ;;  %v5108_v41 = vmul.f32 %v5105_v8, %v11954_v18 }
 0x648   : > { %14967 = vst [vmem:[#allocation64_spill] sm:$0xff] %v12257_v48  ;;  %14968 = vst [vmem:[#allocation30_spill] sm:$0xff] %v12259_v40  ;;  %v4629_v49 = vadd.f32 %v4621_v10, %v4421_v62  ;;  %v4626_v63 = vadd.f32 %v4615_v42, %v4418_v13  ;;  %v14977_v62 = vld [vmem:[#allocation20_spill] sm:$0xff]  ;;  %v5423_v40 = vstv %s7896_s13  ;;  %s7903_s13 = sld [smem:[#allocation8 + $0xf2]] }
 0x649   : > { %5090 = vrot.lane.b32.xlu1 %v5081_v9, %s8396_s25  ;;  %5066 = vrot.lane.b32.xlu0 %v5056_v59, %s8396_s25  ;;  %v4444_v44 = vadd.f32 %v14978_v47, %v14977_v62  ;;  %v5107_v59 = vmul.f32 %v5105_v8, %v11932_v19 }
 0x64a   : > { %v12272_v27 = vadd.f32 %v4725_v30, %v4629_v49  ;;  %v12274_v45 = vadd.f32 %v4722_v56, %v4626_v63  ;;  %v4735_v30 = vmul.f32 %v4731_v20, %v11944_v54  ;;  %v4732_v56 = vmul.f32 %v4731_v20, %v11942_v4 }
 0x64b   : > { %v4643_v25 = vpop.permute.xlu1 %4642  ;;  %v4619_v7 = vpop.permute.xlu0 %4618 }
 0x64c   : > { %14973 = vst [vmem:[#allocation68_spill] sm:$0xff] %v12272_v27  ;;  %14974 = vst [vmem:[#allocation75_spill] sm:$0xff] %v12274_v45  ;;  %v4653_v23 = vadd.f32 %v4643_v25, %v4445_v1  ;;  %v4628_v38 = vadd.f32 %v4619_v7, %v4420_v46  ;;  %v4446_v1 = vadd.f32 %v14982_v21, %v14981_v58  ;;  %v5267_v58 = vstv %s7890_s11  ;;  %s12527_s11 = sld [smem:[#allocation8 + $0xa8]] }
 0x64d   : > { %5094 = vrot.lane.b32.xlu1 %v5083_v37, %s8396_s25  ;;  %5088 = vrot.lane.b32.xlu0 %v5080_v5, %s8396_s25  ;;  %v5109_v25 = vmul.f32 %v5105_v8, %v11944_v54  ;;  %v5106_v7 = vmul.f32 %v5105_v8, %v11942_v4  ;;  %v5131_v5 = vstv %s7880_s30  ;;  %s12493_s30 = sld [smem:[#allocation8 + $0x84]] }
 0x64e   : > { %v12286_v13 = vadd.f32 %v4733_v43, %v4653_v23  ;;  %v12288_v10 = vadd.f32 %v4724_v0, %v4628_v38  ;;  %v4734_v23 = vmul.f32 %v4731_v20, %v11954_v18  ;;  %v5133_v55 = vmul.f32 %v5131_v5, %v11932_v19 }
 0x64f   : > { %v4647_v42 = vpop.permute.xlu1 %4646  ;;  %v4641_v9 = vpop.permute.xlu0 %4640  ;;  %v5135_v62 = vmul.f32 %v5131_v5, %v11944_v54  ;;  %v5132_v47 = vmul.f32 %v5131_v5, %v11942_v4  ;;  %v12337_v54 = vld [vmem:[#allocation2 + $0x6a] sm:$0xff] }
 0x650   : > { %14979 = vst [vmem:[#allocation69_spill] sm:$0xff] %v12286_v13  ;;  %14980 = vst [vmem:[#allocation73_spill] sm:$0xff] %v12288_v10  ;;  %v4655_v49 = vadd.f32 %v4647_v42, %v4447_v51  ;;  %v4652_v63 = vadd.f32 %v4641_v9, %v4444_v44  ;;  %v12325_v44 = vld [vmem:[#allocation2 + $0x5a] sm:$0xff]  ;;  %v5241_v42 = vstv %s7889_s10  ;;  %v5371_v10 = vstv %s7894_s5  ;;  %s12506_s10 = sld [smem:[#allocation8 + $0x62]] }
 0x651   : > { %5116 = vrot.lane.b32.xlu1 %v5107_v59, %s8396_s25  ;;  %5092 = vrot.lane.b32.xlu0 %v5082_v12, %s8396_s25  ;;  %v5243_v9 = vmul.f32 %v5241_v42, %v12325_v44  ;;  %v5134_v59 = vmul.f32 %v5131_v5, %v11954_v18  ;;  %v12335_v12 = vld [vmem:[#allocation2 + $0x52] sm:$0xff]  ;;  %s12595_s5 = sld [smem:[#allocation8 + $0xf0]] }
 0x652   : > { %v12298_v39 = vadd.f32 %v4735_v30, %v4655_v49  ;;  %v12300_v11 = vadd.f32 %v4732_v56, %v4652_v63  ;;  %v5245_v63 = vmul.f32 %v5241_v42, %v12337_v54  ;;  %v5242_v30 = vmul.f32 %v5241_v42, %v12335_v12  ;;  %v12347_v56 = vld [vmem:[#allocation2 + $0x62] sm:$0xff] }
 0x653   : > { %v12302_v46 = vpop.permute.xlu1 %4752  ;;  %v4645_v61 = vpop.permute.xlu0 %4644  ;;  %v5268_v5 = vmul.f32 %v5267_v58, %v12335_v12 }
 0x654   : > { %14983 = vst [vmem:[#allocation71_spill] sm:$0xff] %v12298_v39  ;;  %14984 = vst [vmem:[#allocation49_spill] sm:$0xff] %v12300_v11  ;;  %v4654_v37 = vadd.f32 %v4645_v61, %v4446_v1  ;;  %v5269_v1 = vmul.f32 %v5267_v58, %v12325_v44  ;;  %v5244_v61 = vmul.f32 %v5241_v42, %v12347_v56 }
 0x655   : > { %5120 = vrot.lane.b32.xlu1 %v5109_v25, %s8396_s25  ;;  %5114 = vrot.lane.b32.xlu0 %v5106_v7, %s8396_s25 }
 0x656   : > { %v12309_v38 = vadd.f32 %v4734_v23, %v4654_v37  ;;  %v5271_v37 = vmul.f32 %v5267_v58, %v12337_v54  ;;  %v5293_v23 = vstv %s7891_s22  ;;  %s12540_s22 = sld [smem:[#allocation8 + $0x86]] }
 0x657   : > { %v12311_v43 = vpop.permute.xlu1 %4756  ;;  %v12313_v0 = vpop.permute.xlu0 %4750 }
 0x658   : > { %14985 = vst [vmem:[#allocation74_spill] sm:$0xff] %v12309_v38 }
 0x659   : > { %5142 = vrot.lane.b32.xlu1 %v5133_v55, %s8396_s25  ;;  %5118 = vrot.lane.b32.xlu0 %v5108_v41, %s8396_s25 }
 0x65b   : > { %v12319_v51 = vpop.permute.xlu1 %4778  ;;  %v12321_v20 = vpop.permute.xlu0 %4754 }
 0x65d   : > { %5146 = vrot.lane.b32.xlu1 %v5135_v62, %s8396_s25  ;;  %5140 = vrot.lane.b32.xlu0 %v5132_v47, %s8396_s25  ;;  %v5295_v62 = vmul.f32 %v5293_v23, %v12325_v44  ;;  %v5270_v47 = vmul.f32 %v5267_v58, %v12347_v56 }
 0x65f   : > { %v12329_v19 = vpop.permute.xlu1 %4782  ;;  %v12331_v8 = vpop.permute.xlu0 %4776 }
 0x661   : > { %5252 = vrot.lane.b32.xlu1 %v5243_v9, %s8395_s20  ;;  %5144 = vrot.lane.b32.xlu0 %v5134_v59, %s8396_s25  ;;  %v5297_v59 = vmul.f32 %v5293_v23, %v12337_v54 }
 0x663   : > { %v12341_v4 = vpop.permute.xlu1 %4804  ;;  %v12343_v49 = vpop.permute.xlu0 %4780 }
 0x665   : > { %5256 = vrot.lane.b32.xlu1 %v5245_v63, %s8395_s20  ;;  %5250 = vrot.lane.b32.xlu0 %v5242_v30, %s8395_s20  ;;  %v5294_v63 = vmul.f32 %v5293_v23, %v12335_v12  ;;  %v5319_v30 = vstv %s7892_s9  ;;  %s12561_s9 = sld [smem:[#allocation8 + $0xcc]] }
 0x667   : > { %v12351_v18 = vpop.permute.xlu1 %4808  ;;  %v12353_v21 = vpop.permute.xlu0 %4802 }
 0x669   : > { %5278 = vrot.lane.b32.xlu1 %v5269_v1, %s8395_s20  ;;  %5254 = vrot.lane.b32.xlu0 %v5244_v61, %s8395_s20  ;;  %v5321_v61 = vmul.f32 %v5319_v30, %v12325_v44 }
 0x66b   : > { %v12359_v25 = vpop.permute.xlu1 %4830  ;;  %v12361_v7 = vpop.permute.xlu0 %4806 }
 0x66d   : > { %5282 = vrot.lane.b32.xlu1 %v5271_v37, %s8395_s20  ;;  %5276 = vrot.lane.b32.xlu0 %v5268_v5, %s8395_s20  ;;  %v5296_v37 = vmul.f32 %v5293_v23, %v12347_v56 }
 0x66f   : > { %v12367_v55 = vpop.permute.xlu1 %4834  ;;  %v12369_v41 = vpop.permute.xlu0 %4828 }
 0x671   : > { %5304 = vrot.lane.b32.xlu1 %v5295_v62, %s8395_s20  ;;  %5280 = vrot.lane.b32.xlu0 %v5270_v47, %s8395_s20  ;;  %v5323_v47 = vmul.f32 %v5319_v30, %v12337_v54 }
 0x673   : > { %v12375_v42 = vpop.permute.xlu1 %4856  ;;  %v12377_v9 = vpop.permute.xlu0 %4832 }
 0x675   : > { %5308 = vrot.lane.b32.xlu1 %v5297_v59, %s8395_s20  ;;  %5302 = vrot.lane.b32.xlu0 %v5294_v63, %s8395_s20  ;;  %v5320_v59 = vmul.f32 %v5319_v30, %v12335_v12  ;;  %v5345_v63 = vstv %s7893_s23  ;;  %s12574_s23 = sld [smem:[#allocation8 + $0xaa]] }
 0x677   : > { %v12383_v1 = vpop.permute.xlu1 %4860  ;;  %v12385_v58 = vpop.permute.xlu0 %4854 }
 0x679   : > { %5330 = vrot.lane.b32.xlu1 %v5321_v61, %s8395_s20  ;;  %5306 = vrot.lane.b32.xlu0 %v5296_v37, %s8395_s20  ;;  %v5347_v61 = vmul.f32 %v5345_v63, %v12325_v44  ;;  %v5322_v37 = vmul.f32 %v5319_v30, %v12347_v56 }
 0x67b   : > { %v12391_v5 = vpop.permute.xlu1 %4882  ;;  %v12393_v62 = vpop.permute.xlu0 %4858 }
 0x67d   : > { %5334 = vrot.lane.b32.xlu1 %v5323_v47, %s8395_s20  ;;  %5328 = vrot.lane.b32.xlu0 %v5320_v59, %s8395_s20  ;;  %v5349_v47 = vmul.f32 %v5345_v63, %v12337_v54  ;;  %v5346_v59 = vmul.f32 %v5345_v63, %v12335_v12 }
 0x67f   : > { %v12399_v38 = vpop.permute.xlu1 %4886  ;;  %v12401_v23 = vpop.permute.xlu0 %4880 }
 0x681   : > { %5356 = vrot.lane.b32.xlu1 %v5347_v61, %s8395_s20  ;;  %5332 = vrot.lane.b32.xlu0 %v5322_v37, %s8395_s20  ;;  %v5373_v61 = vmul.f32 %v5371_v10, %v12325_v44  ;;  %v5348_v37 = vmul.f32 %v5345_v63, %v12347_v56 }
 0x683   : > { %v12407_v11 = vpop.permute.xlu1 %4908  ;;  %v12409_v39 = vpop.permute.xlu0 %4884 }
 0x684   : > { %14986 = vst [vmem:[#allocation70_spill] sm:$0xff] %v12407_v11  ;;  %14987 = vst [vmem:[#allocation79_spill] sm:$0xff] %v12409_v39  ;;  %v5425_v11 = vmul.f32 %v5423_v40, %v12325_v44 }
 0x685   : > { %5360 = vrot.lane.b32.xlu1 %v5349_v47, %s8395_s20  ;;  %5354 = vrot.lane.b32.xlu0 %v5346_v59, %s8395_s20  ;;  %v5375_v47 = vmul.f32 %v5371_v10, %v12337_v54  ;;  %v5372_v59 = vmul.f32 %v5371_v10, %v12335_v12 }
 0x687   : > { %v12415_v13 = vpop.permute.xlu1 %4912  ;;  %v12417_v30 = vpop.permute.xlu0 %4906 }
 0x688   : > { %14988 = vst [vmem:[#allocation77_spill] sm:$0xff] %v12415_v13  ;;  %14989 = vst [vmem:[#allocation50_spill] sm:$0xff] %v12417_v30  ;;  %v5397_v13 = vstv %s7895_s7  ;;  %v4763_v30 = vadd.f32 %v12302_v46, %v12059_v16  ;;  %v4762_v16 = vadd.f32 %v12313_v0, %v12075_v57  ;;  %v4789_v57 = vadd.f32 %v12319_v51, %v12089_v31  ;;  %s12608_s7 = sld [smem:[#allocation8 + $0xce]] }
 0x689   : > { %5382 = vrot.lane.b32.xlu1 %v5373_v61, %s8395_s20  ;;  %5358 = vrot.lane.b32.xlu0 %v5348_v37, %s8395_s20  ;;  %v5399_v37 = vmul.f32 %v5397_v13, %v12325_v44 }
 0x68b   : > { %v12423_v45 = vpop.permute.xlu1 %4934  ;;  %v12425_v27 = vpop.permute.xlu0 %4910 }
 0x68c   : > { %14990 = vst [vmem:[#allocation72_spill] sm:$0xff] %v12423_v45  ;;  %14991 = vst [vmem:[#allocation40_spill] sm:$0xff] %v12425_v27  ;;  %v5374_v45 = vmul.f32 %v5371_v10, %v12347_v56  ;;  %v5161_v27 = vstv %s7881_s12  ;;  %s12629_s12 = sld [smem:[#allocation8 + $0x114]] }
 0x68d   : > { %5386 = vrot.lane.b32.xlu1 %v5375_v47, %s8395_s20  ;;  %5380 = vrot.lane.b32.xlu0 %v5372_v59, %s8395_s20  ;;  %v5401_v59 = vmul.f32 %v5397_v13, %v12337_v54  ;;  %v5163_v10 = vmul.f32 %v5161_v27, %v12325_v44  ;;  %v5164_v51 = vmul.f32 %v5161_v27, %v12347_v56 }
 0x68f   : > { %v12431_v63 = vpop.permute.xlu1 %4938  ;;  %v12433_v61 = vpop.permute.xlu0 %4932 }
 0x690   : > { %14992 = vst [vmem:[#allocation86_spill] sm:$0xff] %v12431_v63  ;;  %14993 = vst [vmem:[#allocation88_spill] sm:$0xff] %v12433_v61  ;;  %v5398_v61 = vmul.f32 %v5397_v13, %v12335_v12 }
 0x691   : > { %5408 = vrot.lane.b32.xlu1 %v5399_v37, %s8395_s20  ;;  %5384 = vrot.lane.b32.xlu0 %v5374_v45, %s8395_s20  ;;  %v4765_v45 = vadd.f32 %v12311_v43, %v12073_v14  ;;  %v5171_v14 = vstv %s7882_s14  ;;  %v4764_v43 = vadd.f32 %v12321_v20, %v12091_v52  ;;  %v4791_v52 = vadd.f32 %v12329_v19, %v12106_v53  ;;  %s7904_s14 = sld [smem:[#allocation8 + $0x116]] }
 0x692   : > { %v5173_v31 = vmul.f32 %v5171_v14, %v12325_v44  ;;  %v5172_v53 = vmul.f32 %v5171_v14, %v12335_v12  ;;  %v4815_v19 = vadd.f32 %v12341_v4, %v12123_v36  ;;  %v5174_v4 = vmul.f32 %v5171_v14, %v12347_v56 }
 0x693   : > { %v4961_v47 = vpop.permute.xlu1 %4960  ;;  %v12441_v39 = vpop.permute.xlu0 %4936 }
 0x694   : > { %14994 = vst [vmem:[#allocation90_spill] sm:$0xff] %v12441_v39  ;;  %v4971_v63 = vadd.f32 %v4961_v47, %v4763_v30  ;;  %v5400_v30 = vmul.f32 %v5397_v13, %v12347_v56 }
 0x695   : > { %5412 = vrot.lane.b32.xlu1 %v5401_v59, %s8395_s20  ;;  %5406 = vrot.lane.b32.xlu0 %v5398_v61, %s8395_s20  ;;  %v5165_v59 = vmul.f32 %v5161_v27, %v12337_v54  ;;  %v5162_v61 = vmul.f32 %v5161_v27, %v12335_v12  ;;  %v5426_v27 = vmul.f32 %v5423_v40, %v12347_v56 }
 0x696   : > { %v12452_v46 = vadd.f32 %v5163_v10, %v4971_v63  ;;  %v5427_v10 = vmul.f32 %v5423_v40, %v12337_v54 }
 0x697   : > { %v4965_v37 = vpop.permute.xlu1 %4964  ;;  %v4959_v39 = vpop.permute.xlu0 %4958 }
 0x698   : > { %v4973_v47 = vadd.f32 %v4965_v37, %v4765_v45  ;;  %v4970_v48 = vadd.f32 %v4959_v39, %v4762_v16  ;;  %v5449_v45 = vstv %s7897_s26  ;;  %s7913_s26 = sld [smem:[#allocation8 + $0x1c]] }
 0x699   : > { %5434 = vrot.lane.b32.xlu1 %v5425_v11, %s8395_s20  ;;  %5410 = vrot.lane.b32.xlu0 %v5400_v30, %s8395_s20  ;;  %v5424_v11 = vmul.f32 %v5423_v40, %v12335_v12  ;;  %v4790_v40 = vadd.f32 %v12343_v49, %v12125_v32  ;;  %v4817_v32 = vadd.f32 %v12351_v18, %v12140_v33 }
 0x69a   : > { %v12466_v13 = vadd.f32 %v5165_v59, %v4973_v47  ;;  %v12468_v39 = vadd.f32 %v5162_v61, %v4970_v48  ;;  %v4788_v48 = vadd.f32 %v12331_v8, %v12108_v2  ;;  %v5451_v61 = vmul.f32 %v5449_v45, %v12325_v44 }
 0x69b   : > { %v4987_v0 = vpop.permute.xlu1 %4986  ;;  %v4963_v63 = vpop.permute.xlu0 %4962  ;;  %v5181_v2 = vstv %s12460_s29  ;;  %v4814_v49 = vadd.f32 %v12353_v21, %v12142_v15  ;;  %v5191_v15 = vstv %s12493_s30  ;;  %v4841_v18 = vadd.f32 %v12359_v25, %v12157_v28  ;;  %s7914_s29 = sld [smem:[#allocation8 + $0x40]] }
 0x69c   : > { %v4997_v16 = vadd.f32 %v4987_v0, %v4789_v57  ;;  %v4972_v37 = vadd.f32 %v4963_v63, %v4764_v43  ;;  %v5175_v0 = vmul.f32 %v5171_v14, %v12337_v54  ;;  %v5183_v36 = vmul.f32 %v5181_v2, %v12325_v44  ;;  %s7916_s30 = sld [smem:[#allocation8 + $0x88]] }
 0x69d   : > { %5438 = vrot.lane.b32.xlu1 %v5427_v10, %s8395_s20  ;;  %5432 = vrot.lane.b32.xlu0 %v5424_v11, %s8395_s20  ;;  %v5452_v14 = vmul.f32 %v5449_v45, %v12347_v56  ;;  %v5182_v33 = vmul.f32 %v5181_v2, %v12335_v12  ;;  %v4816_v21 = vadd.f32 %v12361_v7, %v12159_v50 }
 0x69e   : > { %v12482_v20 = vadd.f32 %v5173_v31, %v4997_v16  ;;  %v12484_v30 = vadd.f32 %v5164_v51, %v4972_v37  ;;  %v5453_v16 = vmul.f32 %v5449_v45, %v12337_v54  ;;  %v5450_v37 = vmul.f32 %v5449_v45, %v12335_v12 }
 0x69f   : > { %v4991_v47 = vpop.permute.xlu1 %4990  ;;  %v4985_v59 = vpop.permute.xlu0 %4984  ;;  %v5475_v31 = vstv %s12472_s8  ;;  %v5193_v28 = vmul.f32 %v5191_v15, %v12325_v44  ;;  %v5184_v25 = vmul.f32 %v5181_v2, %v12347_v56  ;;  %v4843_v50 = vadd.f32 %v12367_v55, %v12174_v29  ;;  %s7915_s8 = sld [smem:[#allocation8 + $0x64]] }
 0x6a0   : > { %v4999_v57 = vadd.f32 %v4991_v47, %v4791_v52  ;;  %v4996_v43 = vadd.f32 %v4985_v59, %v4788_v48  ;;  %v4840_v7 = vadd.f32 %v12369_v41, %v12176_v60  ;;  %v5192_v29 = vmul.f32 %v5191_v15, %v12335_v12 }
 0x6a1   : > { %5460 = vrot.lane.b32.xlu1 %v5451_v61, %s8396_s25  ;;  %5436 = vrot.lane.b32.xlu0 %v5426_v27, %s8395_s20  ;;  %v5477_v27 = vmul.f32 %v5475_v31, %v12325_v44  ;;  %v5201_v60 = vstv %s12527_s11  ;;  %v4867_v55 = vadd.f32 %v12375_v42, %v12191_v35  ;;  %v4842_v41 = vadd.f32 %v12377_v9, %v12193_v6  ;;  %s7918_s11 = sld [smem:[#allocation8 + $0xd0]] }
 0x6a2   : > { %v12499_v8 = vadd.f32 %v5175_v0, %v4999_v57  ;;  %v12501_v63 = vadd.f32 %v5172_v53, %v4996_v43  ;;  %v5185_v0 = vmul.f32 %v5181_v2, %v12337_v54  ;;  %v5478_v2 = vmul.f32 %v5475_v31, %v12347_v56 }
 0x6a3   : > { %v5013_v10 = vpop.permute.xlu1 %5012  ;;  %v4989_v11 = vpop.permute.xlu0 %4988  ;;  %v5203_v35 = vmul.f32 %v5201_v60, %v12325_v44  ;;  %v5194_v42 = vmul.f32 %v5191_v15, %v12347_v56  ;;  %v4869_v6 = vadd.f32 %v12383_v1, %v12208_v24  ;;  %v4866_v9 = vadd.f32 %v12385_v58, %v12210_v34 }
 0x6a4   : > { %v5023_v51 = vadd.f32 %v5013_v10, %v4815_v19  ;;  %v4998_v52 = vadd.f32 %v4989_v11, %v4790_v40  ;;  %v5479_v10 = vmul.f32 %v5475_v31, %v12337_v54  ;;  %v5476_v11 = vmul.f32 %v5475_v31, %v12335_v12 }
 0x6a5   : > { %5464 = vrot.lane.b32.xlu1 %v5453_v16, %s8396_s25  ;;  %5458 = vrot.lane.b32.xlu0 %v5450_v37, %s8396_s25  ;;  %v5501_v16 = vstv %s12506_s10  ;;  %v5202_v24 = vmul.f32 %v5201_v60, %v12335_v12  ;;  %v5211_v34 = vstv %s12561_s9  ;;  %v4893_v1 = vadd.f32 %v12391_v5, %v12225_v22  ;;  %s7917_s10 = sld [smem:[#allocation8 + $0xac]] }
 0x6a6   : > { %v12516_v48 = vadd.f32 %v5183_v36, %v5023_v51  ;;  %v12518_v47 = vadd.f32 %v5174_v4, %v4998_v52  ;;  %v4868_v58 = vadd.f32 %v12393_v62, %v12227_v26  ;;  %v5213_v22 = vmul.f32 %v5211_v34, %v12325_v44  ;;  %s7905_s9 = sld [smem:[#allocation8 + $0x1b]] }
 0x6a7   : > { %v5017_v59 = vpop.permute.xlu1 %5016  ;;  %v5011_v61 = vpop.permute.xlu0 %5010  ;;  %v5204_v5 = vmul.f32 %v5201_v60, %v12347_v56  ;;  %v4895_v26 = vadd.f32 %v12399_v38, %v12242_v17  ;;  %v4892_v62 = vadd.f32 %v12401_v23, %v12244_v3  ;;  %v5212_v17 = vmul.f32 %v5211_v34, %v12335_v12  ;;  %v14995_v38 = vld [vmem:[#allocation64_spill] sm:$0xff]  ;;  %v14996_v23 = vld [vmem:[#allocation70_spill] sm:$0xff] }
 0x6a8   : > { %v5025_v57 = vadd.f32 %v5017_v59, %v4817_v32  ;;  %v5022_v43 = vadd.f32 %v5011_v61, %v4814_v49  ;;  %v5503_v49 = vmul.f32 %v5501_v16, %v12325_v44  ;;  %v5221_v3 = vstv %s12595_s5  ;;  %s7906_s5 = sld [smem:[#allocation8 + $0x3f]] }
 0x6a9   : > { %5486 = vrot.lane.b32.xlu1 %v5477_v27, %s8396_s25  ;;  %5462 = vrot.lane.b32.xlu0 %v5452_v14, %s8396_s25  ;;  %v5195_v27 = vmul.f32 %v5191_v15, %v12337_v54  ;;  %v5504_v15 = vmul.f32 %v5501_v16, %v12347_v56 }
 0x6aa   : > { %v12533_v45 = vadd.f32 %v5185_v0, %v5025_v57  ;;  %v12535_v53 = vadd.f32 %v5182_v33, %v5022_v43  ;;  %v5505_v0 = vmul.f32 %v5501_v16, %v12337_v54  ;;  %v5502_v33 = vmul.f32 %v5501_v16, %v12335_v12 }
 0x6ab   : > { %v5039_v19 = vpop.permute.xlu1 %5038  ;;  %v5015_v40 = vpop.permute.xlu0 %5014 }
 0x6ac   : > { %v5049_v37 = vadd.f32 %v5039_v19, %v4841_v18  ;;  %v5024_v51 = vadd.f32 %v5015_v40, %v4816_v21  ;;  %v5527_v18 = vstv %s12540_s22  ;;  %s7919_s22 = sld [smem:[#allocation8 + $0xf4]] }
 0x6ad   : > { %5490 = vrot.lane.b32.xlu1 %v5479_v10, %s8396_s25  ;;  %5484 = vrot.lane.b32.xlu0 %v5476_v11, %s8396_s25 }
 0x6ae   : > { %v12550_v52 = vadd.f32 %v5193_v28, %v5049_v37  ;;  %v12552_v36 = vadd.f32 %v5184_v25, %v5024_v51  ;;  %v5529_v51 = vmul.f32 %v5527_v18, %v12325_v44 }
 0x6af   : > { %v5043_v4 = vpop.permute.xlu1 %5042  ;;  %v5037_v32 = vpop.permute.xlu0 %5036 }
 0x6b0   : > { %v5051_v59 = vadd.f32 %v5043_v4, %v4843_v50  ;;  %v5048_v61 = vadd.f32 %v5037_v32, %v4840_v7  ;;  %v5205_v50 = vmul.f32 %v5201_v60, %v12337_v54  ;;  %v5530_v60 = vmul.f32 %v5527_v18, %v12347_v56 }
 0x6b1   : > { %5512 = vrot.lane.b32.xlu1 %v5503_v49, %s8396_s25  ;;  %5488 = vrot.lane.b32.xlu0 %v5478_v2, %s8396_s25  ;;  %v5531_v49 = vmul.f32 %v5527_v18, %v12337_v54  ;;  %v5528_v2 = vmul.f32 %v5527_v18, %v12335_v12 }
 0x6b2   : > { %v12567_v31 = vadd.f32 %v5195_v27, %v5051_v59  ;;  %v12569_v14 = vadd.f32 %v5192_v29, %v5048_v61  ;;  %v5553_v59 = vstv %s12574_s23  ;;  %s7920_s23 = sld [smem:[#allocation8 + $0x118]] }
 0x6b3   : > { %v5065_v57 = vpop.permute.xlu1 %5064  ;;  %v5041_v43 = vpop.permute.xlu0 %5040 }
 0x6b4   : > { %v5075_v21 = vadd.f32 %v5065_v57, %v4867_v55  ;;  %v5050_v19 = vadd.f32 %v5041_v43, %v4842_v41  ;;  %v5555_v43 = vmul.f32 %v5553_v59, %v12325_v44 }
 0x6b5   : > { %5516 = vrot.lane.b32.xlu1 %v5505_v0, %s8396_s25  ;;  %5510 = vrot.lane.b32.xlu0 %v5502_v33, %s8396_s25 }
 0x6b6   : > { %v12584_v40 = vadd.f32 %v5203_v35, %v5075_v21  ;;  %v12586_v10 = vadd.f32 %v5194_v42, %v5050_v19  ;;  %v5215_v21 = vmul.f32 %v5211_v34, %v12337_v54  ;;  %v4919_v19 = vadd.f32 %v14996_v23, %v14995_v38  ;;  %v14997_v35 = vld [vmem:[#allocation30_spill] sm:$0xff]  ;;  %v14998_v42 = vld [vmem:[#allocation79_spill] sm:$0xff]  ;;  %v15007_v38 = vld [vmem:[#allocation73_spill] sm:$0xff] }
 0x6b7   : > { %v5069_v11 = vpop.permute.xlu1 %5068  ;;  %v5063_v37 = vpop.permute.xlu0 %5062  ;;  %v4894_v18 = vadd.f32 %v14998_v42, %v14997_v35  ;;  %v15008_v23 = vld [vmem:[#allocation40_spill] sm:$0xff] }
 0x6b8   : > { %v5077_v28 = vadd.f32 %v5069_v11, %v4869_v6  ;;  %v5074_v25 = vadd.f32 %v5063_v37, %v4866_v9 }
 0x6b9   : > { %5538 = vrot.lane.b32.xlu1 %v5529_v51, %s8396_s25  ;;  %5514 = vrot.lane.b32.xlu0 %v5504_v15, %s8396_s25  ;;  %v5557_v51 = vmul.f32 %v5553_v59, %v12337_v54  ;;  %v5554_v15 = vmul.f32 %v5553_v59, %v12335_v12 }
 0x6ba   : > { %v12601_v16 = vadd.f32 %v5205_v50, %v5077_v28  ;;  %v12603_v7 = vadd.f32 %v5202_v24, %v5074_v25  ;;  %v5579_v28 = vstv %s12608_s7  ;;  %v5223_v24 = vmul.f32 %v5221_v3, %v12325_v44  ;;  %s7921_s7 = sld [smem:[#allocation8 + $0x1d]] }
 0x6bb   : > { %v5091_v4 = vpop.permute.xlu1 %5090  ;;  %v5067_v32 = vpop.permute.xlu0 %5066 }
 0x6bc   : > { %v5101_v61 = vadd.f32 %v5091_v4, %v4893_v1  ;;  %v5076_v27 = vadd.f32 %v5067_v32, %v4868_v58  ;;  %v5214_v1 = vmul.f32 %v5211_v34, %v12347_v56  ;;  %v14999_v58 = vld [vmem:[#allocation68_spill] sm:$0xff]  ;;  %v15000_v4 = vld [vmem:[#allocation77_spill] sm:$0xff]  ;;  %v5556_v34 = vmul.f32 %v5553_v59, %v12347_v56 }
 0x6bd   : > { %5542 = vrot.lane.b32.xlu1 %v5531_v49, %s8396_s25  ;;  %5536 = vrot.lane.b32.xlu0 %v5528_v2, %s8396_s25  ;;  %v4921_v32 = vadd.f32 %v15000_v4, %v14999_v58  ;;  %v15001_v49 = vld [vmem:[#allocation75_spill] sm:$0xff]  ;;  %v15002_v2 = vld [vmem:[#allocation50_spill] sm:$0xff] }
 0x6be   : > { %v12618_v29 = vadd.f32 %v5213_v22, %v5101_v61  ;;  %v12620_v55 = vadd.f32 %v5204_v5, %v5076_v27  ;;  %v4918_v61 = vadd.f32 %v15002_v2, %v15001_v49  ;;  %v15012_v58 = vld [vmem:[#allocation86_spill] sm:$0xff]  ;;  %v15014_v49 = vld [vmem:[#allocation88_spill] sm:$0xff] }
 0x6bf   : > { %v5095_v41 = vpop.permute.xlu1 %5094  ;;  %v5089_v57 = vpop.permute.xlu0 %5088 }
 0x6c0   : > { %v5103_v0 = vadd.f32 %v5095_v41, %v4895_v26  ;;  %v5100_v33 = vadd.f32 %v5089_v57, %v4892_v62  ;;  %v5581_v62 = vmul.f32 %v5579_v28, %v12325_v44 }
 0x6c1   : > { %5564 = vrot.lane.b32.xlu1 %v5555_v43, %s8396_s25  ;;  %5540 = vrot.lane.b32.xlu0 %v5530_v60, %s8396_s25  ;;  %v5225_v43 = vmul.f32 %v5221_v3, %v12337_v54  ;;  %v5222_v60 = vmul.f32 %v5221_v3, %v12335_v12 }
 0x6c2   : > { %v12635_v6 = vadd.f32 %v5215_v21, %v5103_v0  ;;  %v12637_v9 = vadd.f32 %v5212_v17, %v5100_v33  ;;  %v5231_v0 = vstv %s12629_s12  ;;  %v15005_v33 = vld [vmem:[#allocation69_spill] sm:$0xff]  ;;  %v15006_v21 = vld [vmem:[#allocation72_spill] sm:$0xff]  ;;  %s12853_s12 = sld [smem:[#allocation8 + $0x63]] }
 0x6c3   : > { %v5117_v11 = vpop.permute.xlu1 %5116  ;;  %v5093_v37 = vpop.permute.xlu0 %5092  ;;  %v4945_v17 = vadd.f32 %v15006_v21, %v15005_v33  ;;  %v15017_v33 = vld [vmem:[#allocation74_spill] sm:$0xff] }
 0x6c4   : > { %v5127_v25 = vadd.f32 %v5117_v11, %v4919_v19  ;;  %v5102_v50 = vadd.f32 %v5093_v37, %v4894_v18  ;;  %v4920_v19 = vadd.f32 %v15008_v23, %v15007_v38  ;;  %v5583_v11 = vmul.f32 %v5579_v28, %v12337_v54  ;;  %v15018_v21 = vld [vmem:[#allocation90_spill] sm:$0xff] }
 0x6c5   : > { %5568 = vrot.lane.b32.xlu1 %v5557_v51, %s8396_s25  ;;  %5562 = vrot.lane.b32.xlu0 %v5554_v15, %s8396_s25  ;;  %v5580_v37 = vmul.f32 %v5579_v28, %v12335_v12  ;;  %v5605_v51 = vstv %s7903_s13  ;;  %s12865_s13 = sld [smem:[#allocation8 + $0x41]] }
 0x6c6   : > { %v12650_v27 = vadd.f32 %v5223_v24, %v5127_v25  ;;  %v12652_v22 = vadd.f32 %v5214_v1, %v5102_v50  ;;  %v5233_v50 = vmul.f32 %v5231_v0, %v12325_v44  ;;  %v5224_v24 = vmul.f32 %v5221_v3, %v12347_v56  ;;  %v15011_v1 = vld [vmem:[#allocation71_spill] sm:$0xff] }
 0x6c7   : > { %v5121_v5 = vpop.permute.xlu1 %5120  ;;  %v5115_v26 = vpop.permute.xlu0 %5114  ;;  %v4947_v4 = vadd.f32 %v15012_v58, %v15011_v1  ;;  %v5582_v3 = vmul.f32 %v5579_v28, %v12347_v56  ;;  %v5608_v58 = vmul.f32 %v5605_v51, %v12347_v56 }
 0x6c8   : > { %15003 = vst [vmem:[#allocation47_spill] sm:$0xff] %v12650_v27  ;;  %15004 = vst [vmem:[#allocation24_spill] sm:$0xff] %v12652_v22  ;;  %v5129_v41 = vadd.f32 %v5121_v5, %v4921_v32  ;;  %v5126_v57 = vadd.f32 %v5115_v26, %v4918_v61  ;;  %v15013_v32 = vld [vmem:[#allocation49_spill] sm:$0xff]  ;;  %v5923_v22 = vstv %s7920_s23  ;;  %s7927_s23 = sld [smem:[#allocation8 + $0xf5]] }
 0x6c9   : > { %5590 = vrot.lane.b32.xlu1 %v5581_v62, %s8396_s25  ;;  %5566 = vrot.lane.b32.xlu0 %v5556_v34, %s8396_s25  ;;  %v4944_v2 = vadd.f32 %v15014_v49, %v15013_v32  ;;  %v5607_v34 = vmul.f32 %v5605_v51, %v12325_v44 }
 0x6ca   : > { %v12665_v35 = vadd.f32 %v5225_v43, %v5129_v41  ;;  %v12667_v59 = vadd.f32 %v5222_v60, %v5126_v57  ;;  %v5235_v43 = vmul.f32 %v5231_v0, %v12337_v54  ;;  %v5232_v60 = vmul.f32 %v5231_v0, %v12335_v12 }
 0x6cb   : > { %v5143_v42 = vpop.permute.xlu1 %5142  ;;  %v5119_v18 = vpop.permute.xlu0 %5118 }
 0x6cc   : > { %15009 = vst [vmem:[#allocation21_spill] sm:$0xff] %v12665_v35  ;;  %15010 = vst [vmem:[#allocation23_spill] sm:$0xff] %v12667_v59  ;;  %v5153_v15 = vadd.f32 %v5143_v42, %v4945_v17  ;;  %v5128_v25 = vadd.f32 %v5119_v18, %v4920_v19  ;;  %v4946_v17 = vadd.f32 %v15018_v21, %v15017_v33  ;;  %v5767_v33 = vstv %s7914_s29  ;;  %s12920_s29 = sld [smem:[#allocation8 + $0xab]] }
 0x6cd   : > { %5594 = vrot.lane.b32.xlu1 %v5583_v11, %s8396_s25  ;;  %5588 = vrot.lane.b32.xlu0 %v5580_v37, %s8396_s25  ;;  %v5609_v42 = vmul.f32 %v5605_v51, %v12337_v54  ;;  %v5606_v18 = vmul.f32 %v5605_v51, %v12335_v12  ;;  %v5631_v37 = vstv %s7904_s14  ;;  %s12886_s14 = sld [smem:[#allocation8 + $0x87]] }
 0x6ce   : > { %v12679_v61 = vadd.f32 %v5233_v50, %v5153_v15  ;;  %v12681_v5 = vadd.f32 %v5224_v24, %v5128_v25  ;;  %v5234_v15 = vmul.f32 %v5231_v0, %v12347_v56  ;;  %v5633_v1 = vmul.f32 %v5631_v37, %v12325_v44 }
 0x6cf   : > { %v5147_v26 = vpop.permute.xlu1 %5146  ;;  %v5141_v62 = vpop.permute.xlu0 %5140  ;;  %v5635_v32 = vmul.f32 %v5631_v37, %v12337_v54  ;;  %v5632_v49 = vmul.f32 %v5631_v37, %v12335_v12  ;;  %v12730_v54 = vld [vmem:[#allocation2 + $0x90] sm:$0xff] }
 0x6d0   : > { %15015 = vst [vmem:[#allocation80_spill] sm:$0xff] %v12679_v61  ;;  %15016 = vst [vmem:[#allocation84_spill] sm:$0xff] %v12681_v5  ;;  %v5155_v41 = vadd.f32 %v5147_v26, %v4947_v4  ;;  %v5152_v57 = vadd.f32 %v5141_v62, %v4944_v2  ;;  %v12718_v2 = vld [vmem:[#allocation2 + $0x80] sm:$0xff]  ;;  %v5741_v26 = vstv %s7913_s26  ;;  %v5871_v5 = vstv %s7918_s11  ;;  %s12899_s26 = sld [smem:[#allocation8 + $0x65]] }
 0x6d1   : > { %5616 = vrot.lane.b32.xlu1 %v5607_v34, %s8396_s25  ;;  %5592 = vrot.lane.b32.xlu0 %v5582_v3, %s8396_s25  ;;  %v5743_v62 = vmul.f32 %v5741_v26, %v12718_v2  ;;  %v5634_v34 = vmul.f32 %v5631_v37, %v12347_v56  ;;  %v12728_v3 = vld [vmem:[#allocation2 + $0x78] sm:$0xff]  ;;  %s12988_s11 = sld [smem:[#allocation8 + $0xf3]] }
 0x6d2   : > { %v12691_v38 = vadd.f32 %v5235_v43, %v5155_v41  ;;  %v12693_v23 = vadd.f32 %v5232_v60, %v5152_v57  ;;  %v5745_v57 = vmul.f32 %v5741_v26, %v12730_v54  ;;  %v5742_v43 = vmul.f32 %v5741_v26, %v12728_v3  ;;  %v12740_v60 = vld [vmem:[#allocation2 + $0x88] sm:$0xff] }
 0x6d3   : > { %v12695_v19 = vpop.permute.xlu1 %5252  ;;  %v5145_v28 = vpop.permute.xlu0 %5144  ;;  %v5768_v37 = vmul.f32 %v5767_v33, %v12728_v3 }
 0x6d4   : > { %15019 = vst [vmem:[#allocation85_spill] sm:$0xff] %v12691_v38  ;;  %15020 = vst [vmem:[#allocation91_spill] sm:$0xff] %v12693_v23  ;;  %v5154_v11 = vadd.f32 %v5145_v28, %v4946_v17  ;;  %v5769_v17 = vmul.f32 %v5767_v33, %v12718_v2  ;;  %v5744_v28 = vmul.f32 %v5741_v26, %v12740_v60 }
 0x6d5   : > { %5620 = vrot.lane.b32.xlu1 %v5609_v42, %s8396_s25  ;;  %5614 = vrot.lane.b32.xlu0 %v5606_v18, %s8396_s25 }
 0x6d6   : > { %v12702_v25 = vadd.f32 %v5234_v15, %v5154_v11  ;;  %v5771_v11 = vmul.f32 %v5767_v33, %v12730_v54  ;;  %v5793_v15 = vstv %s7915_s8  ;;  %s12933_s8 = sld [smem:[#allocation8 + $0x89]] }
 0x6d7   : > { %v12704_v50 = vpop.permute.xlu1 %5256  ;;  %v12706_v24 = vpop.permute.xlu0 %5250 }
 0x6d8   : > { %15021 = vst [vmem:[#allocation92_spill] sm:$0xff] %v12702_v25 }
 0x6d9   : > { %5642 = vrot.lane.b32.xlu1 %v5633_v1, %s8396_s25  ;;  %5618 = vrot.lane.b32.xlu0 %v5608_v58, %s8396_s25 }
 0x6db   : > { %v12712_v4 = vpop.permute.xlu1 %5278  ;;  %v12714_v0 = vpop.permute.xlu0 %5254 }
 0x6dd   : > { %5646 = vrot.lane.b32.xlu1 %v5635_v32, %s8396_s25  ;;  %5640 = vrot.lane.b32.xlu0 %v5632_v49, %s8396_s25  ;;  %v5795_v32 = vmul.f32 %v5793_v15, %v12718_v2  ;;  %v5770_v49 = vmul.f32 %v5767_v33, %v12740_v60 }
 0x6df   : > { %v12722_v44 = vpop.permute.xlu1 %5282  ;;  %v12724_v51 = vpop.permute.xlu0 %5276 }
 0x6e1   : > { %5752 = vrot.lane.b32.xlu1 %v5743_v62, %s8395_s20  ;;  %5644 = vrot.lane.b32.xlu0 %v5634_v34, %s8396_s25  ;;  %v5797_v34 = vmul.f32 %v5793_v15, %v12730_v54 }
 0x6e3   : > { %v12734_v12 = vpop.permute.xlu1 %5304  ;;  %v12736_v41 = vpop.permute.xlu0 %5280 }
 0x6e5   : > { %5756 = vrot.lane.b32.xlu1 %v5745_v57, %s8395_s20  ;;  %5750 = vrot.lane.b32.xlu0 %v5742_v43, %s8395_s20  ;;  %v5794_v57 = vmul.f32 %v5793_v15, %v12728_v3  ;;  %v5819_v43 = vstv %s7916_s30  ;;  %s12954_s30 = sld [smem:[#allocation8 + $0xcf]] }
 0x6e7   : > { %v12744_v56 = vpop.permute.xlu1 %5308  ;;  %v12746_v21 = vpop.permute.xlu0 %5302 }
 0x6e9   : > { %5778 = vrot.lane.b32.xlu1 %v5769_v17, %s8395_s20  ;;  %5754 = vrot.lane.b32.xlu0 %v5744_v28, %s8395_s20  ;;  %v5821_v28 = vmul.f32 %v5819_v43, %v12718_v2 }
 0x6eb   : > { %v12752_v42 = vpop.permute.xlu1 %5330  ;;  %v12754_v18 = vpop.permute.xlu0 %5306 }
 0x6ed   : > { %5782 = vrot.lane.b32.xlu1 %v5771_v11, %s8395_s20  ;;  %5776 = vrot.lane.b32.xlu0 %v5768_v37, %s8395_s20  ;;  %v5796_v11 = vmul.f32 %v5793_v15, %v12740_v60 }
 0x6ef   : > { %v12760_v1 = vpop.permute.xlu1 %5334  ;;  %v12762_v58 = vpop.permute.xlu0 %5328 }
 0x6f1   : > { %5804 = vrot.lane.b32.xlu1 %v5795_v32, %s8395_s20  ;;  %5780 = vrot.lane.b32.xlu0 %v5770_v49, %s8395_s20  ;;  %v5823_v49 = vmul.f32 %v5819_v43, %v12730_v54 }
 0x6f3   : > { %v12768_v26 = vpop.permute.xlu1 %5356  ;;  %v12770_v62 = vpop.permute.xlu0 %5332 }
 0x6f5   : > { %5808 = vrot.lane.b32.xlu1 %v5797_v34, %s8395_s20  ;;  %5802 = vrot.lane.b32.xlu0 %v5794_v57, %s8395_s20  ;;  %v5820_v34 = vmul.f32 %v5819_v43, %v12728_v3  ;;  %v5845_v57 = vstv %s7917_s10  ;;  %s12967_s10 = sld [smem:[#allocation8 + $0xad]] }
 0x6f7   : > { %v12776_v17 = vpop.permute.xlu1 %5360  ;;  %v12778_v33 = vpop.permute.xlu0 %5354 }
 0x6f9   : > { %5830 = vrot.lane.b32.xlu1 %v5821_v28, %s8395_s20  ;;  %5806 = vrot.lane.b32.xlu0 %v5796_v11, %s8395_s20  ;;  %v5847_v28 = vmul.f32 %v5845_v57, %v12718_v2  ;;  %v5822_v11 = vmul.f32 %v5819_v43, %v12740_v60 }
 0x6fb   : > { %v12784_v37 = vpop.permute.xlu1 %5382  ;;  %v12786_v32 = vpop.permute.xlu0 %5358 }
 0x6fd   : > { %5834 = vrot.lane.b32.xlu1 %v5823_v49, %s8395_s20  ;;  %5828 = vrot.lane.b32.xlu0 %v5820_v34, %s8395_s20  ;;  %v5849_v49 = vmul.f32 %v5845_v57, %v12730_v54  ;;  %v5846_v34 = vmul.f32 %v5845_v57, %v12728_v3 }
 0x6ff   : > { %v12792_v25 = vpop.permute.xlu1 %5386  ;;  %v12794_v15 = vpop.permute.xlu0 %5380 }
 0x701   : > { %5856 = vrot.lane.b32.xlu1 %v5847_v28, %s8395_s20  ;;  %5832 = vrot.lane.b32.xlu0 %v5822_v11, %s8395_s20  ;;  %v5873_v28 = vmul.f32 %v5871_v5, %v12718_v2  ;;  %v5848_v11 = vmul.f32 %v5845_v57, %v12740_v60 }
 0x703   : > { %v12800_v23 = vpop.permute.xlu1 %5408  ;;  %v12802_v38 = vpop.permute.xlu0 %5384 }
 0x704   : > { %15022 = vst [vmem:[#allocation93_spill] sm:$0xff] %v12800_v23  ;;  %15023 = vst [vmem:[#allocation54_spill] sm:$0xff] %v12802_v38  ;;  %v5925_v23 = vmul.f32 %v5923_v22, %v12718_v2 }
 0x705   : > { %5860 = vrot.lane.b32.xlu1 %v5849_v49, %s8395_s20  ;;  %5854 = vrot.lane.b32.xlu0 %v5846_v34, %s8395_s20  ;;  %v5875_v49 = vmul.f32 %v5871_v5, %v12730_v54  ;;  %v5872_v34 = vmul.f32 %v5871_v5, %v12728_v3 }
 0x707   : > { %v12808_v61 = vpop.permute.xlu1 %5412  ;;  %v12810_v43 = vpop.permute.xlu0 %5406 }
 0x708   : > { %15024 = vst [vmem:[#allocation87_spill] sm:$0xff] %v12808_v61  ;;  %15025 = vst [vmem:[#allocation48_spill] sm:$0xff] %v12810_v43  ;;  %v5897_v61 = vstv %s7919_s22  ;;  %v5263_v43 = vadd.f32 %v12695_v19, %v12452_v46  ;;  %v5262_v46 = vadd.f32 %v12706_v24, %v12468_v39  ;;  %v5289_v39 = vadd.f32 %v12712_v4, %v12482_v20  ;;  %s13001_s22 = sld [smem:[#allocation8 + $0xd1]] }
 0x709   : > { %5882 = vrot.lane.b32.xlu1 %v5873_v28, %s8395_s20  ;;  %5858 = vrot.lane.b32.xlu0 %v5848_v11, %s8395_s20  ;;  %v5899_v11 = vmul.f32 %v5897_v61, %v12718_v2 }
 0x70b   : > { %v12816_v59 = vpop.permute.xlu1 %5434  ;;  %v12818_v35 = vpop.permute.xlu0 %5410 }
 0x70c   : > { %15026 = vst [vmem:[#allocation62_spill] sm:$0xff] %v12816_v59  ;;  %15027 = vst [vmem:[#allocation25_spill] sm:$0xff] %v12818_v35  ;;  %v5874_v59 = vmul.f32 %v5871_v5, %v12740_v60  ;;  %v5661_v35 = vstv %s7905_s9  ;;  %s13022_s9 = sld [smem:[#allocation8 + $0x117]] }
 0x70d   : > { %5886 = vrot.lane.b32.xlu1 %v5875_v49, %s8395_s20  ;;  %5880 = vrot.lane.b32.xlu0 %v5872_v34, %s8395_s20  ;;  %v5901_v34 = vmul.f32 %v5897_v61, %v12730_v54  ;;  %v5663_v5 = vmul.f32 %v5661_v35, %v12718_v2  ;;  %v5664_v4 = vmul.f32 %v5661_v35, %v12740_v60 }
 0x70f   : > { %v12824_v57 = vpop.permute.xlu1 %5438  ;;  %v12826_v28 = vpop.permute.xlu0 %5432 }
 0x710   : > { %15028 = vst [vmem:[#allocation37_spill] sm:$0xff] %v12824_v57  ;;  %15029 = vst [vmem:[#allocation82_spill] sm:$0xff] %v12826_v28  ;;  %v5898_v28 = vmul.f32 %v5897_v61, %v12728_v3 }
 0x711   : > { %5908 = vrot.lane.b32.xlu1 %v5899_v11, %s8395_s20  ;;  %5884 = vrot.lane.b32.xlu0 %v5874_v59, %s8395_s20  ;;  %v5265_v59 = vadd.f32 %v12704_v50, %v12466_v13  ;;  %v5671_v13 = vstv %s7906_s5  ;;  %v5264_v50 = vadd.f32 %v12714_v0, %v12484_v30  ;;  %v5291_v30 = vadd.f32 %v12722_v44, %v12499_v8  ;;  %s7928_s5 = sld [smem:[#allocation8 + $0x119]] }
 0x712   : > { %v5673_v20 = vmul.f32 %v5671_v13, %v12718_v2  ;;  %v5672_v8 = vmul.f32 %v5671_v13, %v12728_v3  ;;  %v5315_v44 = vadd.f32 %v12734_v12, %v12516_v48  ;;  %v5674_v12 = vmul.f32 %v5671_v13, %v12740_v60 }
 0x713   : > { %v5461_v49 = vpop.permute.xlu1 %5460  ;;  %v12834_v38 = vpop.permute.xlu0 %5436 }
 0x714   : > { %15030 = vst [vmem:[#allocation42_spill] sm:$0xff] %v12834_v38  ;;  %v5471_v57 = vadd.f32 %v5461_v49, %v5263_v43  ;;  %v5900_v43 = vmul.f32 %v5897_v61, %v12740_v60 }
 0x715   : > { %5912 = vrot.lane.b32.xlu1 %v5901_v34, %s8395_s20  ;;  %5906 = vrot.lane.b32.xlu0 %v5898_v28, %s8395_s20  ;;  %v5665_v34 = vmul.f32 %v5661_v35, %v12730_v54  ;;  %v5662_v28 = vmul.f32 %v5661_v35, %v12728_v3  ;;  %v5926_v35 = vmul.f32 %v5923_v22, %v12740_v60 }
 0x716   : > { %v12845_v19 = vadd.f32 %v5663_v5, %v5471_v57  ;;  %v5927_v5 = vmul.f32 %v5923_v22, %v12730_v54 }
 0x717   : > { %v5465_v11 = vpop.permute.xlu1 %5464  ;;  %v5459_v38 = vpop.permute.xlu0 %5458 }
 0x718   : > { %v5473_v49 = vadd.f32 %v5465_v11, %v5265_v59  ;;  %v5470_v27 = vadd.f32 %v5459_v38, %v5262_v46  ;;  %v5949_v59 = vstv %s7921_s7  ;;  %s7937_s7 = sld [smem:[#allocation8 + $0x1f]] }
 0x719   : > { %5934 = vrot.lane.b32.xlu1 %v5925_v23, %s8395_s20  ;;  %5910 = vrot.lane.b32.xlu0 %v5900_v43, %s8395_s20  ;;  %v5924_v23 = vmul.f32 %v5923_v22, %v12728_v3  ;;  %v5290_v22 = vadd.f32 %v12736_v41, %v12518_v47  ;;  %v5317_v47 = vadd.f32 %v12744_v56, %v12533_v45 }
 0x71a   : > { %v12859_v61 = vadd.f32 %v5665_v34, %v5473_v49  ;;  %v12861_v38 = vadd.f32 %v5662_v28, %v5470_v27  ;;  %v5288_v27 = vadd.f32 %v12724_v51, %v12501_v63  ;;  %v5951_v28 = vmul.f32 %v5949_v59, %v12718_v2 }
 0x71b   : > { %v5487_v24 = vpop.permute.xlu1 %5486  ;;  %v5463_v57 = vpop.permute.xlu0 %5462  ;;  %v5681_v63 = vstv %s12853_s12  ;;  %v5314_v41 = vadd.f32 %v12746_v21, %v12535_v53  ;;  %v5691_v53 = vstv %s12886_s14  ;;  %v5341_v56 = vadd.f32 %v12752_v42, %v12550_v52  ;;  %s7938_s12 = sld [smem:[#allocation8 + $0x43]] }
 0x71c   : > { %v5497_v46 = vadd.f32 %v5487_v24, %v5289_v39  ;;  %v5472_v11 = vadd.f32 %v5463_v57, %v5264_v50  ;;  %v5675_v24 = vmul.f32 %v5671_v13, %v12730_v54  ;;  %v5683_v48 = vmul.f32 %v5681_v63, %v12718_v2  ;;  %s7940_s14 = sld [smem:[#allocation8 + $0x8b]] }
 0x71d   : > { %5938 = vrot.lane.b32.xlu1 %v5927_v5, %s8395_s20  ;;  %5932 = vrot.lane.b32.xlu0 %v5924_v23, %s8395_s20  ;;  %v5952_v13 = vmul.f32 %v5949_v59, %v12740_v60  ;;  %v5682_v45 = vmul.f32 %v5681_v63, %v12728_v3  ;;  %v5316_v21 = vadd.f32 %v12754_v18, %v12552_v36 }
 0x71e   : > { %v12875_v0 = vadd.f32 %v5673_v20, %v5497_v46  ;;  %v12877_v43 = vadd.f32 %v5664_v4, %v5472_v11  ;;  %v5953_v46 = vmul.f32 %v5949_v59, %v12730_v54  ;;  %v5950_v11 = vmul.f32 %v5949_v59, %v12728_v3 }
 0x71f   : > { %v5491_v49 = vpop.permute.xlu1 %5490  ;;  %v5485_v34 = vpop.permute.xlu0 %5484  ;;  %v5975_v20 = vstv %s12865_s13  ;;  %v5693_v52 = vmul.f32 %v5691_v53, %v12718_v2  ;;  %v5684_v42 = vmul.f32 %v5681_v63, %v12740_v60  ;;  %v5343_v36 = vadd.f32 %v12760_v1, %v12567_v31  ;;  %s7939_s13 = sld [smem:[#allocation8 + $0x67]] }
 0x720   : > { %v5499_v39 = vadd.f32 %v5491_v49, %v5291_v30  ;;  %v5496_v50 = vadd.f32 %v5485_v34, %v5288_v27  ;;  %v5340_v18 = vadd.f32 %v12762_v58, %v12569_v14  ;;  %v5692_v31 = vmul.f32 %v5691_v53, %v12728_v3 }
 0x721   : > { %5960 = vrot.lane.b32.xlu1 %v5951_v28, %s8396_s25  ;;  %5936 = vrot.lane.b32.xlu0 %v5926_v35, %s8395_s20  ;;  %v5977_v35 = vmul.f32 %v5975_v20, %v12718_v2  ;;  %v5701_v14 = vstv %s12920_s29  ;;  %v5367_v1 = vadd.f32 %v12768_v26, %v12584_v40  ;;  %v5342_v58 = vadd.f32 %v12770_v62, %v12586_v10  ;;  %s7942_s29 = sld [smem:[#allocation8 + $0xd3]] }
 0x722   : > { %v12892_v51 = vadd.f32 %v5675_v24, %v5499_v39  ;;  %v12894_v57 = vadd.f32 %v5672_v8, %v5496_v50  ;;  %v5685_v24 = vmul.f32 %v5681_v63, %v12730_v54  ;;  %v5978_v63 = vmul.f32 %v5975_v20, %v12740_v60 }
 0x723   : > { %v5513_v5 = vpop.permute.xlu1 %5512  ;;  %v5489_v23 = vpop.permute.xlu0 %5488  ;;  %v5703_v40 = vmul.f32 %v5701_v14, %v12718_v2  ;;  %v5694_v26 = vmul.f32 %v5691_v53, %v12740_v60  ;;  %v5369_v10 = vadd.f32 %v12776_v17, %v12601_v16  ;;  %v5366_v62 = vadd.f32 %v12778_v33, %v12603_v7 }
 0x724   : > { %v5523_v4 = vadd.f32 %v5513_v5, %v5315_v44  ;;  %v5498_v30 = vadd.f32 %v5489_v23, %v5290_v22  ;;  %v5979_v5 = vmul.f32 %v5975_v20, %v12730_v54  ;;  %v5976_v23 = vmul.f32 %v5975_v20, %v12728_v3 }
 0x725   : > { %5964 = vrot.lane.b32.xlu1 %v5953_v46, %s8396_s25  ;;  %5958 = vrot.lane.b32.xlu0 %v5950_v11, %s8396_s25  ;;  %v6001_v46 = vstv %s12899_s26  ;;  %v5702_v16 = vmul.f32 %v5701_v14, %v12728_v3  ;;  %v5711_v7 = vstv %s12954_s30  ;;  %v5393_v17 = vadd.f32 %v12784_v37, %v12618_v29  ;;  %s7941_s26 = sld [smem:[#allocation8 + $0xaf]] }
 0x726   : > { %v12909_v27 = vadd.f32 %v5683_v48, %v5523_v4  ;;  %v12911_v49 = vadd.f32 %v5674_v12, %v5498_v30  ;;  %v5368_v33 = vadd.f32 %v12786_v32, %v12620_v55  ;;  %v5713_v29 = vmul.f32 %v5711_v7, %v12718_v2  ;;  %s7929_s30 = sld [smem:[#allocation8 + $0x1e]] }
 0x727   : > { %v5517_v34 = vpop.permute.xlu1 %5516  ;;  %v5511_v28 = vpop.permute.xlu0 %5510  ;;  %v5704_v37 = vmul.f32 %v5701_v14, %v12740_v60  ;;  %v5395_v55 = vadd.f32 %v12792_v25, %v12635_v6  ;;  %v5392_v32 = vadd.f32 %v12794_v15, %v12637_v9  ;;  %v5712_v6 = vmul.f32 %v5711_v7, %v12728_v3  ;;  %v15031_v25 = vld [vmem:[#allocation47_spill] sm:$0xff]  ;;  %v15032_v15 = vld [vmem:[#allocation93_spill] sm:$0xff] }
 0x728   : > { %v5525_v39 = vadd.f32 %v5517_v34, %v5317_v47  ;;  %v5522_v50 = vadd.f32 %v5511_v28, %v5314_v41  ;;  %v6003_v41 = vmul.f32 %v6001_v46, %v12718_v2  ;;  %v5721_v9 = vstv %s12988_s11  ;;  %s7930_s11 = sld [smem:[#allocation8 + $0x42]] }
 0x729   : > { %5986 = vrot.lane.b32.xlu1 %v5977_v35, %s8396_s25  ;;  %5962 = vrot.lane.b32.xlu0 %v5952_v13, %s8396_s25  ;;  %v5695_v35 = vmul.f32 %v5691_v53, %v12730_v54  ;;  %v6004_v53 = vmul.f32 %v6001_v46, %v12740_v60 }
 0x72a   : > { %v12926_v59 = vadd.f32 %v5685_v24, %v5525_v39  ;;  %v12928_v8 = vadd.f32 %v5682_v45, %v5522_v50  ;;  %v6005_v24 = vmul.f32 %v6001_v46, %v12730_v54  ;;  %v6002_v45 = vmul.f32 %v6001_v46, %v12728_v3 }
 0x72b   : > { %v5539_v44 = vpop.permute.xlu1 %5538  ;;  %v5515_v22 = vpop.permute.xlu0 %5514 }
 0x72c   : > { %v5549_v11 = vadd.f32 %v5539_v44, %v5341_v56  ;;  %v5524_v4 = vadd.f32 %v5515_v22, %v5316_v21  ;;  %v6027_v56 = vstv %s12933_s8  ;;  %s7943_s8 = sld [smem:[#allocation8 + $0xf7]] }
 0x72d   : > { %5990 = vrot.lane.b32.xlu1 %v5979_v5, %s8396_s25  ;;  %5984 = vrot.lane.b32.xlu0 %v5976_v23, %s8396_s25 }
 0x72e   : > { %v12943_v30 = vadd.f32 %v5693_v52, %v5549_v11  ;;  %v12945_v48 = vadd.f32 %v5684_v42, %v5524_v4  ;;  %v6029_v4 = vmul.f32 %v6027_v56, %v12718_v2 }
 0x72f   : > { %v5543_v12 = vpop.permute.xlu1 %5542  ;;  %v5537_v47 = vpop.permute.xlu0 %5536 }
 0x730   : > { %v5551_v34 = vadd.f32 %v5543_v12, %v5343_v36  ;;  %v5548_v28 = vadd.f32 %v5537_v47, %v5340_v18  ;;  %v5705_v36 = vmul.f32 %v5701_v14, %v12730_v54  ;;  %v6030_v14 = vmul.f32 %v6027_v56, %v12740_v60 }
 0x731   : > { %6012 = vrot.lane.b32.xlu1 %v6003_v41, %s8396_s25  ;;  %5988 = vrot.lane.b32.xlu0 %v5978_v63, %s8396_s25  ;;  %v6031_v41 = vmul.f32 %v6027_v56, %v12730_v54  ;;  %v6028_v63 = vmul.f32 %v6027_v56, %v12728_v3 }
 0x732   : > { %v12960_v20 = vadd.f32 %v5695_v35, %v5551_v34  ;;  %v12962_v13 = vadd.f32 %v5692_v31, %v5548_v28  ;;  %v6053_v34 = vstv %s12967_s10  ;;  %s7944_s10 = sld [smem:[#allocation8 + $0x11b]] }
 0x733   : > { %v5565_v39 = vpop.permute.xlu1 %5564  ;;  %v5541_v50 = vpop.permute.xlu0 %5540 }
 0x734   : > { %v5575_v21 = vadd.f32 %v5565_v39, %v5367_v1  ;;  %v5550_v44 = vadd.f32 %v5541_v50, %v5342_v58  ;;  %v6055_v50 = vmul.f32 %v6053_v34, %v12718_v2 }
 0x735   : > { %6016 = vrot.lane.b32.xlu1 %v6005_v24, %s8396_s25  ;;  %6010 = vrot.lane.b32.xlu0 %v6002_v45, %s8396_s25 }
 0x736   : > { %v12977_v22 = vadd.f32 %v5703_v40, %v5575_v21  ;;  %v12979_v5 = vadd.f32 %v5694_v26, %v5550_v44  ;;  %v5715_v21 = vmul.f32 %v5711_v7, %v12730_v54  ;;  %v5419_v44 = vadd.f32 %v15032_v15, %v15031_v25  ;;  %v15033_v40 = vld [vmem:[#allocation24_spill] sm:$0xff]  ;;  %v15034_v26 = vld [vmem:[#allocation54_spill] sm:$0xff]  ;;  %v15044_v15 = vld [vmem:[#allocation25_spill] sm:$0xff] }
 0x737   : > { %v5569_v23 = vpop.permute.xlu1 %5568  ;;  %v5563_v11 = vpop.permute.xlu0 %5562  ;;  %v5394_v56 = vadd.f32 %v15034_v26, %v15033_v40  ;;  %v15043_v25 = vld [vmem:[#allocation84_spill] sm:$0xff] }
 0x738   : > { %v5577_v52 = vadd.f32 %v5569_v23, %v5369_v10  ;;  %v5574_v42 = vadd.f32 %v5563_v11, %v5366_v62 }
 0x739   : > { %6038 = vrot.lane.b32.xlu1 %v6029_v4, %s8396_s25  ;;  %6014 = vrot.lane.b32.xlu0 %v6004_v53, %s8396_s25  ;;  %v6057_v4 = vmul.f32 %v6053_v34, %v12730_v54  ;;  %v6054_v53 = vmul.f32 %v6053_v34, %v12728_v3 }
 0x73a   : > { %v12994_v46 = vadd.f32 %v5705_v36, %v5577_v52  ;;  %v12996_v18 = vadd.f32 %v5702_v16, %v5574_v42  ;;  %v6079_v52 = vstv %s13001_s22  ;;  %v5723_v16 = vmul.f32 %v5721_v9, %v12718_v2  ;;  %s7945_s22 = sld [smem:[#allocation8 + $0x20]] }
 0x73b   : > { %v5591_v12 = vpop.permute.xlu1 %5590  ;;  %v5567_v47 = vpop.permute.xlu0 %5566 }
 0x73c   : > { %v5601_v28 = vadd.f32 %v5591_v12, %v5393_v17  ;;  %v5576_v35 = vadd.f32 %v5567_v47, %v5368_v33  ;;  %v5714_v17 = vmul.f32 %v5711_v7, %v12740_v60  ;;  %v15035_v33 = vld [vmem:[#allocation21_spill] sm:$0xff]  ;;  %v15036_v12 = vld [vmem:[#allocation87_spill] sm:$0xff]  ;;  %v6056_v7 = vmul.f32 %v6053_v34, %v12740_v60 }
 0x73d   : > { %6042 = vrot.lane.b32.xlu1 %v6031_v41, %s8396_s25  ;;  %6036 = vrot.lane.b32.xlu0 %v6028_v63, %s8396_s25  ;;  %v5421_v47 = vadd.f32 %v15036_v12, %v15035_v33  ;;  %v15037_v41 = vld [vmem:[#allocation23_spill] sm:$0xff]  ;;  %v15038_v63 = vld [vmem:[#allocation48_spill] sm:$0xff]  ;;  %v15048_v33 = vld [vmem:[#allocation37_spill] sm:$0xff] }
 0x73e   : > { %v13011_v31 = vadd.f32 %v5713_v29, %v5601_v28  ;;  %v13013_v1 = vadd.f32 %v5704_v37, %v5576_v35  ;;  %v5418_v28 = vadd.f32 %v15038_v63, %v15037_v41  ;;  %v15050_v41 = vld [vmem:[#allocation82_spill] sm:$0xff] }
 0x73f   : > { %v5595_v58 = vpop.permute.xlu1 %5594  ;;  %v5589_v39 = vpop.permute.xlu0 %5588 }
 0x740   : > { %v5603_v24 = vadd.f32 %v5595_v58, %v5395_v55  ;;  %v5600_v45 = vadd.f32 %v5589_v39, %v5392_v32  ;;  %v6081_v32 = vmul.f32 %v6079_v52, %v12718_v2 }
 0x741   : > { %6064 = vrot.lane.b32.xlu1 %v6055_v50, %s8396_s25  ;;  %6040 = vrot.lane.b32.xlu0 %v6030_v14, %s8396_s25  ;;  %v5725_v50 = vmul.f32 %v5721_v9, %v12730_v54  ;;  %v5722_v14 = vmul.f32 %v5721_v9, %v12728_v3 }
 0x742   : > { %v13028_v10 = vadd.f32 %v5715_v21, %v5603_v24  ;;  %v13030_v62 = vadd.f32 %v5712_v6, %v5600_v45  ;;  %v5731_v24 = vstv %s13022_s9  ;;  %v15041_v45 = vld [vmem:[#allocation80_spill] sm:$0xff]  ;;  %v15042_v21 = vld [vmem:[#allocation62_spill] sm:$0xff]  ;;  %s13246_s9 = sld [smem:[#allocation8 + $0x66]] }
 0x743   : > { %v5617_v23 = vpop.permute.xlu1 %5616  ;;  %v5593_v11 = vpop.permute.xlu0 %5592  ;;  %v5445_v6 = vadd.f32 %v15042_v21, %v15041_v45  ;;  %v15053_v45 = vld [vmem:[#allocation92_spill] sm:$0xff]  ;;  %v15054_v21 = vld [vmem:[#allocation42_spill] sm:$0xff] }
 0x744   : > { %v5627_v42 = vadd.f32 %v5617_v23, %v5419_v44  ;;  %v5602_v36 = vadd.f32 %v5593_v11, %v5394_v56  ;;  %v5420_v44 = vadd.f32 %v15044_v15, %v15043_v25  ;;  %v6083_v23 = vmul.f32 %v6079_v52, %v12730_v54 }
 0x745   : > { %6068 = vrot.lane.b32.xlu1 %v6057_v4, %s8396_s25  ;;  %6062 = vrot.lane.b32.xlu0 %v6054_v53, %s8396_s25  ;;  %v6080_v11 = vmul.f32 %v6079_v52, %v12728_v3  ;;  %v6105_v4 = vstv %s7927_s23  ;;  %s13258_s23 = sld [smem:[#allocation8 + $0x44]] }
 0x746   : > { %v13043_v35 = vadd.f32 %v5723_v16, %v5627_v42  ;;  %v13045_v29 = vadd.f32 %v5714_v17, %v5602_v36  ;;  %v5733_v36 = vmul.f32 %v5731_v24, %v12718_v2  ;;  %v5724_v16 = vmul.f32 %v5721_v9, %v12740_v60  ;;  %v15047_v17 = vld [vmem:[#allocation85_spill] sm:$0xff] }
 0x747   : > { %v5621_v37 = vpop.permute.xlu1 %5620  ;;  %v5615_v55 = vpop.permute.xlu0 %5614  ;;  %v5447_v12 = vadd.f32 %v15048_v33, %v15047_v17  ;;  %v6082_v9 = vmul.f32 %v6079_v52, %v12740_v60  ;;  %v6108_v33 = vmul.f32 %v6105_v4, %v12740_v60 }
 0x748   : > { %15039 = vst [vmem:[#allocation66_spill] sm:$0xff] %v13043_v35  ;;  %15040 = vst [vmem:[#allocation27_spill] sm:$0xff] %v13045_v29  ;;  %v5629_v58 = vadd.f32 %v5621_v37, %v5421_v47  ;;  %v5626_v39 = vadd.f32 %v5615_v55, %v5418_v28  ;;  %v15049_v47 = vld [vmem:[#allocation91_spill] sm:$0xff]  ;;  %v6423_v29 = vstv %s7944_s10  ;;  %s7951_s10 = sld [smem:[#allocation8 + $0xf8]] }
 0x749   : > { %6090 = vrot.lane.b32.xlu1 %v6081_v32, %s8396_s25  ;;  %6066 = vrot.lane.b32.xlu0 %v6056_v7, %s8396_s25  ;;  %v5444_v63 = vadd.f32 %v15050_v41, %v15049_v47  ;;  %v6107_v7 = vmul.f32 %v6105_v4, %v12718_v2 }
 0x74a   : > { %v13058_v40 = vadd.f32 %v5725_v50, %v5629_v58  ;;  %v13060_v34 = vadd.f32 %v5722_v14, %v5626_v39  ;;  %v5735_v50 = vmul.f32 %v5731_v24, %v12730_v54  ;;  %v5732_v14 = vmul.f32 %v5731_v24, %v12728_v3 }
 0x74b   : > { %v5643_v26 = vpop.permute.xlu1 %5642  ;;  %v5619_v56 = vpop.permute.xlu0 %5618 }
 0x74c   : > { %15045 = vst [vmem:[#allocation83_spill] sm:$0xff] %v13058_v40  ;;  %15046 = vst [vmem:[#allocation56_spill] sm:$0xff] %v13060_v34  ;;  %v5653_v53 = vadd.f32 %v5643_v26, %v5445_v6  ;;  %v5628_v42 = vadd.f32 %v5619_v56, %v5420_v44  ;;  %v5446_v6 = vadd.f32 %v15054_v21, %v15053_v45  ;;  %v6267_v45 = vstv %s7938_s12  ;;  %s13313_s12 = sld [smem:[#allocation8 + $0xae]] }
 0x74d   : > { %6094 = vrot.lane.b32.xlu1 %v6083_v23, %s8396_s25  ;;  %6088 = vrot.lane.b32.xlu0 %v6080_v11, %s8396_s25  ;;  %v6109_v26 = vmul.f32 %v6105_v4, %v12730_v54  ;;  %v6106_v56 = vmul.f32 %v6105_v4, %v12728_v3  ;;  %v6131_v11 = vstv %s7928_s5  ;;  %s13279_s5 = sld [smem:[#allocation8 + $0x8a]] }
 0x74e   : > { %v13072_v28 = vadd.f32 %v5733_v36, %v5653_v53  ;;  %v13074_v37 = vadd.f32 %v5724_v16, %v5628_v42  ;;  %v5734_v53 = vmul.f32 %v5731_v24, %v12740_v60  ;;  %v6133_v17 = vmul.f32 %v6131_v11, %v12718_v2 }
 0x74f   : > { %v5647_v55 = vpop.permute.xlu1 %5646  ;;  %v5641_v32 = vpop.permute.xlu0 %5640  ;;  %v6135_v47 = vmul.f32 %v6131_v11, %v12730_v54  ;;  %v6132_v41 = vmul.f32 %v6131_v11, %v12728_v3  ;;  %v13123_v54 = vld [vmem:[#allocation2 + $0x91] sm:$0xff] }
 0x750   : > { %15051 = vst [vmem:[#allocation36_spill] sm:$0xff] %v13072_v28  ;;  %15052 = vst [vmem:[#allocation52_spill] sm:$0xff] %v13074_v37  ;;  %v5655_v58 = vadd.f32 %v5647_v55, %v5447_v12  ;;  %v5652_v39 = vadd.f32 %v5641_v32, %v5444_v63  ;;  %v13111_v63 = vld [vmem:[#allocation2 + $0x81] sm:$0xff]  ;;  %v6241_v55 = vstv %s7937_s7  ;;  %v6371_v37 = vstv %s7942_s29  ;;  %s13292_s7 = sld [smem:[#allocation8 + $0x68]] }
 0x751   : > { %6116 = vrot.lane.b32.xlu1 %v6107_v7, %s8396_s25  ;;  %6092 = vrot.lane.b32.xlu0 %v6082_v9, %s8396_s25  ;;  %v6243_v32 = vmul.f32 %v6241_v55, %v13111_v63  ;;  %v6134_v7 = vmul.f32 %v6131_v11, %v12740_v60  ;;  %v13121_v9 = vld [vmem:[#allocation2 + $0x79] sm:$0xff]  ;;  %s13381_s29 = sld [smem:[#allocation8 + $0xf6]] }
 0x752   : > { %v13084_v25 = vadd.f32 %v5735_v50, %v5655_v58  ;;  %v13086_v15 = vadd.f32 %v5732_v14, %v5652_v39  ;;  %v6245_v39 = vmul.f32 %v6241_v55, %v13123_v54  ;;  %v6242_v50 = vmul.f32 %v6241_v55, %v13121_v9  ;;  %v13133_v14 = vld [vmem:[#allocation2 + $0x89] sm:$0xff] }
 0x753   : > { %v13088_v44 = vpop.permute.xlu1 %5752  ;;  %v5645_v52 = vpop.permute.xlu0 %5644  ;;  %v6268_v11 = vmul.f32 %v6267_v45, %v13121_v9 }
 0x754   : > { %15055 = vst [vmem:[#allocation39_spill] sm:$0xff] %v13084_v25  ;;  %15056 = vst [vmem:[#allocation57_spill] sm:$0xff] %v13086_v15  ;;  %v5654_v23 = vadd.f32 %v5645_v52, %v5446_v6  ;;  %v6269_v6 = vmul.f32 %v6267_v45, %v13111_v63  ;;  %v6244_v52 = vmul.f32 %v6241_v55, %v13133_v14 }
 0x755   : > { %6120 = vrot.lane.b32.xlu1 %v6109_v26, %s8396_s25  ;;  %6114 = vrot.lane.b32.xlu0 %v6106_v56, %s8396_s25 }
 0x756   : > { %v13095_v42 = vadd.f32 %v5734_v53, %v5654_v23  ;;  %v6271_v23 = vmul.f32 %v6267_v45, %v13123_v54  ;;  %v6293_v53 = vstv %s7939_s13  ;;  %s13326_s13 = sld [smem:[#allocation8 + $0x8c]] }
 0x757   : > { %v13097_v36 = vpop.permute.xlu1 %5756  ;;  %v13099_v16 = vpop.permute.xlu0 %5750 }
 0x758   : > { %15057 = vst [vmem:[#allocation65_spill] sm:$0xff] %v13095_v42 }
 0x759   : > { %6142 = vrot.lane.b32.xlu1 %v6133_v17, %s8396_s25  ;;  %6118 = vrot.lane.b32.xlu0 %v6108_v33, %s8396_s25 }
 0x75b   : > { %v13105_v12 = vpop.permute.xlu1 %5778  ;;  %v13107_v24 = vpop.permute.xlu0 %5754 }
 0x75d   : > { %6146 = vrot.lane.b32.xlu1 %v6135_v47, %s8396_s25  ;;  %6140 = vrot.lane.b32.xlu0 %v6132_v41, %s8396_s25  ;;  %v6295_v47 = vmul.f32 %v6293_v53, %v13111_v63  ;;  %v6270_v41 = vmul.f32 %v6267_v45, %v13133_v14 }
 0x75f   : > { %v13115_v2 = vpop.permute.xlu1 %5782  ;;  %v13117_v4 = vpop.permute.xlu0 %5776 }
 0x761   : > { %6252 = vrot.lane.b32.xlu1 %v6243_v32, %s8395_s20  ;;  %6144 = vrot.lane.b32.xlu0 %v6134_v7, %s8396_s25  ;;  %v6297_v7 = vmul.f32 %v6293_v53, %v13123_v54 }
 0x763   : > { %v13127_v3 = vpop.permute.xlu1 %5804  ;;  %v13129_v58 = vpop.permute.xlu0 %5780 }
 0x765   : > { %6256 = vrot.lane.b32.xlu1 %v6245_v39, %s8395_s20  ;;  %6250 = vrot.lane.b32.xlu0 %v6242_v50, %s8395_s20  ;;  %v6294_v39 = vmul.f32 %v6293_v53, %v13121_v9  ;;  %v6319_v50 = vstv %s7940_s14  ;;  %s13347_s14 = sld [smem:[#allocation8 + $0xd2]] }
 0x767   : > { %v13137_v60 = vpop.permute.xlu1 %5808  ;;  %v13139_v21 = vpop.permute.xlu0 %5802 }
 0x769   : > { %6278 = vrot.lane.b32.xlu1 %v6269_v6, %s8395_s20  ;;  %6254 = vrot.lane.b32.xlu0 %v6244_v52, %s8395_s20  ;;  %v6321_v52 = vmul.f32 %v6319_v50, %v13111_v63 }
 0x76b   : > { %v13145_v26 = vpop.permute.xlu1 %5830  ;;  %v13147_v56 = vpop.permute.xlu0 %5806 }
 0x76d   : > { %6282 = vrot.lane.b32.xlu1 %v6271_v23, %s8395_s20  ;;  %6276 = vrot.lane.b32.xlu0 %v6268_v11, %s8395_s20  ;;  %v6296_v23 = vmul.f32 %v6293_v53, %v13133_v14 }
 0x76f   : > { %v13153_v17 = vpop.permute.xlu1 %5834  ;;  %v13155_v33 = vpop.permute.xlu0 %5828 }
 0x771   : > { %6304 = vrot.lane.b32.xlu1 %v6295_v47, %s8395_s20  ;;  %6280 = vrot.lane.b32.xlu0 %v6270_v41, %s8395_s20  ;;  %v6323_v41 = vmul.f32 %v6319_v50, %v13123_v54 }
 0x773   : > { %v13161_v55 = vpop.permute.xlu1 %5856  ;;  %v13163_v32 = vpop.permute.xlu0 %5832 }
 0x775   : > { %6308 = vrot.lane.b32.xlu1 %v6297_v7, %s8395_s20  ;;  %6302 = vrot.lane.b32.xlu0 %v6294_v39, %s8395_s20  ;;  %v6320_v7 = vmul.f32 %v6319_v50, %v13121_v9  ;;  %v6345_v39 = vstv %s7941_s26  ;;  %s13360_s26 = sld [smem:[#allocation8 + $0xb0]] }
 0x777   : > { %v13169_v6 = vpop.permute.xlu1 %5860  ;;  %v13171_v45 = vpop.permute.xlu0 %5854 }
 0x779   : > { %6330 = vrot.lane.b32.xlu1 %v6321_v52, %s8395_s20  ;;  %6306 = vrot.lane.b32.xlu0 %v6296_v23, %s8395_s20  ;;  %v6347_v52 = vmul.f32 %v6345_v39, %v13111_v63  ;;  %v6322_v23 = vmul.f32 %v6319_v50, %v13133_v14 }
 0x77b   : > { %v13177_v11 = vpop.permute.xlu1 %5882  ;;  %v13179_v47 = vpop.permute.xlu0 %5858 }
 0x77d   : > { %6334 = vrot.lane.b32.xlu1 %v6323_v41, %s8395_s20  ;;  %6328 = vrot.lane.b32.xlu0 %v6320_v7, %s8395_s20  ;;  %v6349_v41 = vmul.f32 %v6345_v39, %v13123_v54  ;;  %v6346_v7 = vmul.f32 %v6345_v39, %v13121_v9 }
 0x77f   : > { %v13185_v42 = vpop.permute.xlu1 %5886  ;;  %v13187_v53 = vpop.permute.xlu0 %5880 }
 0x781   : > { %6356 = vrot.lane.b32.xlu1 %v6347_v52, %s8395_s20  ;;  %6332 = vrot.lane.b32.xlu0 %v6322_v23, %s8395_s20  ;;  %v6373_v52 = vmul.f32 %v6371_v37, %v13111_v63  ;;  %v6348_v23 = vmul.f32 %v6345_v39, %v13133_v14 }
 0x783   : > { %v13193_v15 = vpop.permute.xlu1 %5908  ;;  %v13195_v25 = vpop.permute.xlu0 %5884 }
 0x784   : > { %15058 = vst [vmem:[#allocation78_spill] sm:$0xff] %v13193_v15  ;;  %15059 = vst [vmem:[#allocation53_spill] sm:$0xff] %v13195_v25  ;;  %v6425_v15 = vmul.f32 %v6423_v29, %v13111_v63 }
 0x785   : > { %6360 = vrot.lane.b32.xlu1 %v6349_v41, %s8395_s20  ;;  %6354 = vrot.lane.b32.xlu0 %v6346_v7, %s8395_s20  ;;  %v6375_v41 = vmul.f32 %v6371_v37, %v13123_v54  ;;  %v6372_v7 = vmul.f32 %v6371_v37, %v13121_v9 }
 0x787   : > { %v13201_v28 = vpop.permute.xlu1 %5912  ;;  %v13203_v50 = vpop.permute.xlu0 %5906 }
 0x788   : > { %15060 = vst [vmem:[#allocation41_spill] sm:$0xff] %v13201_v28  ;;  %15061 = vst [vmem:[#allocation67_spill] sm:$0xff] %v13203_v50  ;;  %v6397_v28 = vstv %s7943_s8  ;;  %v5763_v50 = vadd.f32 %v13088_v44, %v12845_v19  ;;  %v5762_v19 = vadd.f32 %v13099_v16, %v12861_v38  ;;  %v5789_v38 = vadd.f32 %v13105_v12, %v12875_v0  ;;  %s13394_s8 = sld [smem:[#allocation8 + $0xd4]] }
 0x789   : > { %6382 = vrot.lane.b32.xlu1 %v6373_v52, %s8395_s20  ;;  %6358 = vrot.lane.b32.xlu0 %v6348_v23, %s8395_s20  ;;  %v6399_v23 = vmul.f32 %v6397_v28, %v13111_v63 }
 0x78b   : > { %v13209_v34 = vpop.permute.xlu1 %5934  ;;  %v13211_v40 = vpop.permute.xlu0 %5910 }
 0x78c   : > { %15062 = vst [vmem:[#allocation46_spill] sm:$0xff] %v13209_v34  ;;  %15063 = vst [vmem:[#allocation89_spill] sm:$0xff] %v13211_v40  ;;  %v6374_v34 = vmul.f32 %v6371_v37, %v13133_v14  ;;  %v6161_v40 = vstv %s7929_s30  ;;  %s13415_s30 = sld [smem:[#allocation8 + $0x11a]] }
 0x78d   : > { %6386 = vrot.lane.b32.xlu1 %v6375_v41, %s8395_s20  ;;  %6380 = vrot.lane.b32.xlu0 %v6372_v7, %s8395_s20  ;;  %v6401_v7 = vmul.f32 %v6397_v28, %v13123_v54  ;;  %v6163_v37 = vmul.f32 %v6161_v40, %v13111_v63  ;;  %v6164_v12 = vmul.f32 %v6161_v40, %v13133_v14 }
 0x78f   : > { %v13217_v39 = vpop.permute.xlu1 %5938  ;;  %v13219_v52 = vpop.permute.xlu0 %5932 }
 0x790   : > { %15064 = vst [vmem:[#allocation29_spill] sm:$0xff] %v13217_v39  ;;  %15065 = vst [vmem:[#allocation32_spill] sm:$0xff] %v13219_v52  ;;  %v6398_v52 = vmul.f32 %v6397_v28, %v13121_v9 }
 0x791   : > { %6408 = vrot.lane.b32.xlu1 %v6399_v23, %s8395_s20  ;;  %6384 = vrot.lane.b32.xlu0 %v6374_v34, %s8395_s20  ;;  %v5765_v34 = vadd.f32 %v13097_v36, %v12859_v61  ;;  %v6171_v61 = vstv %s7930_s11  ;;  %v5764_v36 = vadd.f32 %v13107_v24, %v12877_v43  ;;  %v5791_v43 = vadd.f32 %v13115_v2, %v12892_v51  ;;  %s7952_s11 = sld [smem:[#allocation8 + $0x11c]] }
 0x792   : > { %v6173_v0 = vmul.f32 %v6171_v61, %v13111_v63  ;;  %v6172_v51 = vmul.f32 %v6171_v61, %v13121_v9  ;;  %v5815_v2 = vadd.f32 %v13127_v3, %v12909_v27  ;;  %v6174_v3 = vmul.f32 %v6171_v61, %v13133_v14 }
 0x793   : > { %v5961_v41 = vpop.permute.xlu1 %5960  ;;  %v13227_v25 = vpop.permute.xlu0 %5936 }
 0x794   : > { %15066 = vst [vmem:[#allocation81_spill] sm:$0xff] %v13227_v25  ;;  %v5971_v39 = vadd.f32 %v5961_v41, %v5763_v50  ;;  %v6400_v50 = vmul.f32 %v6397_v28, %v13133_v14 }
 0x795   : > { %6412 = vrot.lane.b32.xlu1 %v6401_v7, %s8395_s20  ;;  %6406 = vrot.lane.b32.xlu0 %v6398_v52, %s8395_s20  ;;  %v6165_v7 = vmul.f32 %v6161_v40, %v13123_v54  ;;  %v6162_v52 = vmul.f32 %v6161_v40, %v13121_v9  ;;  %v6426_v40 = vmul.f32 %v6423_v29, %v13133_v14 }
 0x796   : > { %v13238_v44 = vadd.f32 %v6163_v37, %v5971_v39  ;;  %v6427_v37 = vmul.f32 %v6423_v29, %v13123_v54 }
 0x797   : > { %v5965_v23 = vpop.permute.xlu1 %5964  ;;  %v5959_v25 = vpop.permute.xlu0 %5958 }
 0x798   : > { %v5973_v41 = vadd.f32 %v5965_v23, %v5765_v34  ;;  %v5970_v35 = vadd.f32 %v5959_v25, %v5762_v19  ;;  %v6449_v34 = vstv %s7945_s22  ;;  %s7961_s22 = sld [smem:[#allocation8 + $0x22]] }
 0x799   : > { %6434 = vrot.lane.b32.xlu1 %v6425_v15, %s8395_s20  ;;  %6410 = vrot.lane.b32.xlu0 %v6400_v50, %s8395_s20  ;;  %v6424_v15 = vmul.f32 %v6423_v29, %v13121_v9  ;;  %v5790_v29 = vadd.f32 %v13129_v58, %v12911_v49  ;;  %v5817_v49 = vadd.f32 %v13137_v60, %v12926_v59 }
 0x79a   : > { %v13252_v28 = vadd.f32 %v6165_v7, %v5973_v41  ;;  %v13254_v25 = vadd.f32 %v6162_v52, %v5970_v35  ;;  %v5788_v35 = vadd.f32 %v13117_v4, %v12894_v57  ;;  %v6451_v52 = vmul.f32 %v6449_v34, %v13111_v63 }
 0x79b   : > { %v5987_v16 = vpop.permute.xlu1 %5986  ;;  %v5963_v39 = vpop.permute.xlu0 %5962  ;;  %v6181_v57 = vstv %s13246_s9  ;;  %v5814_v58 = vadd.f32 %v13139_v21, %v12928_v8  ;;  %v6191_v8 = vstv %s13279_s5  ;;  %v5841_v60 = vadd.f32 %v13145_v26, %v12943_v30  ;;  %s7962_s9 = sld [smem:[#allocation8 + $0x46]] }
 0x79c   : > { %v5997_v19 = vadd.f32 %v5987_v16, %v5789_v38  ;;  %v5972_v23 = vadd.f32 %v5963_v39, %v5764_v36  ;;  %v6175_v16 = vmul.f32 %v6171_v61, %v13123_v54  ;;  %v6183_v27 = vmul.f32 %v6181_v57, %v13111_v63  ;;  %s7964_s5 = sld [smem:[#allocation8 + $0x8e]] }
 0x79d   : > { %6438 = vrot.lane.b32.xlu1 %v6427_v37, %s8395_s20  ;;  %6432 = vrot.lane.b32.xlu0 %v6424_v15, %s8395_s20  ;;  %v6452_v61 = vmul.f32 %v6449_v34, %v13133_v14  ;;  %v6182_v59 = vmul.f32 %v6181_v57, %v13121_v9  ;;  %v5816_v21 = vadd.f32 %v13147_v56, %v12945_v48 }
 0x79e   : > { %v13268_v24 = vadd.f32 %v6173_v0, %v5997_v19  ;;  %v13270_v50 = vadd.f32 %v6164_v12, %v5972_v23  ;;  %v6453_v19 = vmul.f32 %v6449_v34, %v13123_v54  ;;  %v6450_v23 = vmul.f32 %v6449_v34, %v13121_v9 }
 0x79f   : > { %v5991_v41 = vpop.permute.xlu1 %5990  ;;  %v5985_v7 = vpop.permute.xlu0 %5984  ;;  %v6475_v0 = vstv %s13258_s23  ;;  %v6193_v30 = vmul.f32 %v6191_v8, %v13111_v63  ;;  %v6184_v26 = vmul.f32 %v6181_v57, %v13133_v14  ;;  %v5843_v48 = vadd.f32 %v13153_v17, %v12960_v20  ;;  %s7963_s23 = sld [smem:[#allocation8 + $0x6a]] }
 0x7a0   : > { %v5999_v38 = vadd.f32 %v5991_v41, %v5791_v43  ;;  %v5996_v36 = vadd.f32 %v5985_v7, %v5788_v35  ;;  %v5840_v56 = vadd.f32 %v13155_v33, %v12962_v13  ;;  %v6192_v20 = vmul.f32 %v6191_v8, %v13121_v9 }
 0x7a1   : > { %6460 = vrot.lane.b32.xlu1 %v6451_v52, %s8396_s25  ;;  %6436 = vrot.lane.b32.xlu0 %v6426_v40, %s8395_s20  ;;  %v6477_v40 = vmul.f32 %v6475_v0, %v13111_v63  ;;  %v6201_v13 = vstv %s13313_s12  ;;  %v5867_v17 = vadd.f32 %v13161_v55, %v12977_v22  ;;  %v5842_v33 = vadd.f32 %v13163_v32, %v12979_v5  ;;  %s7966_s12 = sld [smem:[#allocation8 + $0xd6]] }
 0x7a2   : > { %v13285_v4 = vadd.f32 %v6175_v16, %v5999_v38  ;;  %v13287_v39 = vadd.f32 %v6172_v51, %v5996_v36  ;;  %v6185_v16 = vmul.f32 %v6181_v57, %v13123_v54  ;;  %v6478_v57 = vmul.f32 %v6475_v0, %v13133_v14 }
 0x7a3   : > { %v6013_v37 = vpop.permute.xlu1 %6012  ;;  %v5989_v15 = vpop.permute.xlu0 %5988  ;;  %v6203_v22 = vmul.f32 %v6201_v13, %v13111_v63  ;;  %v6194_v55 = vmul.f32 %v6191_v8, %v13133_v14  ;;  %v5869_v5 = vadd.f32 %v13169_v6, %v12994_v46  ;;  %v5866_v32 = vadd.f32 %v13171_v45, %v12996_v18 }
 0x7a4   : > { %v6023_v12 = vadd.f32 %v6013_v37, %v5815_v2  ;;  %v5998_v43 = vadd.f32 %v5989_v15, %v5790_v29  ;;  %v6479_v37 = vmul.f32 %v6475_v0, %v13123_v54  ;;  %v6476_v15 = vmul.f32 %v6475_v0, %v13121_v9 }
 0x7a5   : > { %6464 = vrot.lane.b32.xlu1 %v6453_v19, %s8396_s25  ;;  %6458 = vrot.lane.b32.xlu0 %v6450_v23, %s8396_s25  ;;  %v6501_v19 = vstv %s13292_s7  ;;  %v6202_v46 = vmul.f32 %v6201_v13, %v13121_v9  ;;  %v6211_v18 = vstv %s13347_s14  ;;  %v5893_v6 = vadd.f32 %v13177_v11, %v13011_v31  ;;  %s7965_s7 = sld [smem:[#allocation8 + $0xb2]] }
 0x7a6   : > { %v13302_v35 = vadd.f32 %v6183_v27, %v6023_v12  ;;  %v13304_v41 = vadd.f32 %v6174_v3, %v5998_v43  ;;  %v5868_v45 = vadd.f32 %v13179_v47, %v13013_v1  ;;  %v6213_v31 = vmul.f32 %v6211_v18, %v13111_v63  ;;  %s7968_s14 = sld [smem:[#allocation8 + $0x11e]] }
 0x7a7   : > { %v6017_v7 = vpop.permute.xlu1 %6016  ;;  %v6011_v52 = vpop.permute.xlu0 %6010  ;;  %v6204_v11 = vmul.f32 %v6201_v13, %v13133_v14  ;;  %v5895_v1 = vadd.f32 %v13185_v42, %v13028_v10  ;;  %v5892_v47 = vadd.f32 %v13187_v53, %v13030_v62  ;;  %v6212_v10 = vmul.f32 %v6211_v18, %v13121_v9  ;;  %v15067_v42 = vld [vmem:[#allocation66_spill] sm:$0xff] }
 0x7a8   : > { %v6025_v38 = vadd.f32 %v6017_v7, %v5817_v49  ;;  %v6022_v36 = vadd.f32 %v6011_v52, %v5814_v58  ;;  %v6503_v58 = vmul.f32 %v6501_v19, %v13111_v63  ;;  %v6221_v62 = vstv %s13381_s29  ;;  %v15068_v53 = vld [vmem:[#allocation78_spill] sm:$0xff]  ;;  %s7969_s29 = sld [smem:[#allocation8 + $0x23]] }
 0x7a9   : > { %6486 = vrot.lane.b32.xlu1 %v6477_v40, %s8396_s25  ;;  %6462 = vrot.lane.b32.xlu0 %v6452_v61, %s8396_s25  ;;  %v6195_v40 = vmul.f32 %v6191_v8, %v13123_v54  ;;  %v6504_v8 = vmul.f32 %v6501_v19, %v13133_v14 }
 0x7aa   : > { %v13319_v34 = vadd.f32 %v6185_v16, %v6025_v38  ;;  %v13321_v51 = vadd.f32 %v6182_v59, %v6022_v36  ;;  %v6505_v16 = vmul.f32 %v6501_v19, %v13123_v54  ;;  %v6502_v59 = vmul.f32 %v6501_v19, %v13121_v9 }
 0x7ab   : > { %v6039_v2 = vpop.permute.xlu1 %6038  ;;  %v6015_v29 = vpop.permute.xlu0 %6014 }
 0x7ac   : > { %v6049_v23 = vadd.f32 %v6039_v2, %v5841_v60  ;;  %v6024_v12 = vadd.f32 %v6015_v29, %v5816_v21  ;;  %v6527_v60 = vstv %s13326_s13  ;;  %s7967_s13 = sld [smem:[#allocation8 + $0xfa]] }
 0x7ad   : > { %6490 = vrot.lane.b32.xlu1 %v6479_v37, %s8396_s25  ;;  %6484 = vrot.lane.b32.xlu0 %v6476_v15, %s8396_s25 }
 0x7ae   : > { %v13336_v43 = vadd.f32 %v6193_v30, %v6049_v23  ;;  %v13338_v27 = vadd.f32 %v6184_v26, %v6024_v12  ;;  %v6529_v12 = vmul.f32 %v6527_v60, %v13111_v63 }
 0x7af   : > { %v6043_v3 = vpop.permute.xlu1 %6042  ;;  %v6037_v49 = vpop.permute.xlu0 %6036 }
 0x7b0   : > { %v6051_v7 = vadd.f32 %v6043_v3, %v5843_v48  ;;  %v6048_v52 = vadd.f32 %v6037_v49, %v5840_v56  ;;  %v6205_v48 = vmul.f32 %v6201_v13, %v13123_v54  ;;  %v6530_v13 = vmul.f32 %v6527_v60, %v13133_v14 }
 0x7b1   : > { %6512 = vrot.lane.b32.xlu1 %v6503_v58, %s8396_s25  ;;  %6488 = vrot.lane.b32.xlu0 %v6478_v57, %s8396_s25  ;;  %v6531_v58 = vmul.f32 %v6527_v60, %v13123_v54  ;;  %v6528_v57 = vmul.f32 %v6527_v60, %v13121_v9 }
 0x7b2   : > { %v13353_v0 = vadd.f32 %v6195_v40, %v6051_v7  ;;  %v13355_v61 = vadd.f32 %v6192_v20, %v6048_v52  ;;  %v6553_v7 = vstv %s13360_s26  ;;  %s7953_s26 = sld [smem:[#allocation8 + $0x21]] }
 0x7b3   : > { %v6065_v38 = vpop.permute.xlu1 %6064  ;;  %v6041_v36 = vpop.permute.xlu0 %6040 }
 0x7b4   : > { %v6075_v21 = vadd.f32 %v6065_v38, %v5867_v17  ;;  %v6050_v2 = vadd.f32 %v6041_v36, %v5842_v33  ;;  %v6555_v36 = vmul.f32 %v6553_v7, %v13111_v63 }
 0x7b5   : > { %6516 = vrot.lane.b32.xlu1 %v6505_v16, %s8396_s25  ;;  %6510 = vrot.lane.b32.xlu0 %v6502_v59, %s8396_s25 }
 0x7b6   : > { %v13370_v29 = vadd.f32 %v6203_v22, %v6075_v21  ;;  %v13372_v37 = vadd.f32 %v6194_v55, %v6050_v2  ;;  %v6215_v21 = vmul.f32 %v6211_v18, %v13123_v54  ;;  %v5919_v2 = vadd.f32 %v15068_v53, %v15067_v42  ;;  %v15069_v22 = vld [vmem:[#allocation27_spill] sm:$0xff]  ;;  %v15070_v55 = vld [vmem:[#allocation53_spill] sm:$0xff]  ;;  %v15079_v42 = vld [vmem:[#allocation52_spill] sm:$0xff] }
 0x7b7   : > { %v6069_v15 = vpop.permute.xlu1 %6068  ;;  %v6063_v23 = vpop.permute.xlu0 %6062  ;;  %v5894_v60 = vadd.f32 %v15070_v55, %v15069_v22  ;;  %v15080_v53 = vld [vmem:[#allocation89_spill] sm:$0xff] }
 0x7b8   : > { %v6077_v30 = vadd.f32 %v6069_v15, %v5869_v5  ;;  %v6074_v26 = vadd.f32 %v6063_v23, %v5866_v32 }
 0x7b9   : > { %6538 = vrot.lane.b32.xlu1 %v6529_v12, %s8396_s25  ;;  %6514 = vrot.lane.b32.xlu0 %v6504_v8, %s8396_s25  ;;  %v6557_v12 = vmul.f32 %v6553_v7, %v13123_v54  ;;  %v6554_v8 = vmul.f32 %v6553_v7, %v13121_v9 }
 0x7ba   : > { %v13387_v19 = vadd.f32 %v6205_v48, %v6077_v30  ;;  %v13389_v56 = vadd.f32 %v6202_v46, %v6074_v26  ;;  %v6579_v30 = vstv %s13394_s8  ;;  %v6223_v46 = vmul.f32 %v6221_v62, %v13111_v63  ;;  %s7970_s8 = sld [smem:[#allocation8 + $0x47]] }
 0x7bb   : > { %v6091_v3 = vpop.permute.xlu1 %6090  ;;  %v6067_v49 = vpop.permute.xlu0 %6066 }
 0x7bc   : > { %v6101_v52 = vadd.f32 %v6091_v3, %v5893_v6  ;;  %v6076_v40 = vadd.f32 %v6067_v49, %v5868_v45  ;;  %v6214_v6 = vmul.f32 %v6211_v18, %v13133_v14  ;;  %v15071_v45 = vld [vmem:[#allocation83_spill] sm:$0xff]  ;;  %v15072_v3 = vld [vmem:[#allocation41_spill] sm:$0xff]  ;;  %v6556_v18 = vmul.f32 %v6553_v7, %v13133_v14 }
 0x7bd   : > { %6542 = vrot.lane.b32.xlu1 %v6531_v58, %s8396_s25  ;;  %6536 = vrot.lane.b32.xlu0 %v6528_v57, %s8396_s25  ;;  %v5921_v49 = vadd.f32 %v15072_v3, %v15071_v45  ;;  %v15073_v58 = vld [vmem:[#allocation56_spill] sm:$0xff]  ;;  %v15074_v57 = vld [vmem:[#allocation67_spill] sm:$0xff]  ;;  %v15084_v45 = vld [vmem:[#allocation29_spill] sm:$0xff] }
 0x7be   : > { %v13404_v20 = vadd.f32 %v6213_v31, %v6101_v52  ;;  %v13406_v17 = vadd.f32 %v6204_v11, %v6076_v40  ;;  %v5918_v52 = vadd.f32 %v15074_v57, %v15073_v58  ;;  %v15086_v58 = vld [vmem:[#allocation32_spill] sm:$0xff] }
 0x7bf   : > { %v6095_v33 = vpop.permute.xlu1 %6094  ;;  %v6089_v38 = vpop.permute.xlu0 %6088 }
 0x7c0   : > { %v6103_v16 = vadd.f32 %v6095_v33, %v5895_v1  ;;  %v6100_v59 = vadd.f32 %v6089_v38, %v5892_v47  ;;  %v6581_v47 = vmul.f32 %v6579_v30, %v13111_v63 }
 0x7c1   : > { %6564 = vrot.lane.b32.xlu1 %v6555_v36, %s8396_s25  ;;  %6540 = vrot.lane.b32.xlu0 %v6530_v13, %s8396_s25  ;;  %v6225_v36 = vmul.f32 %v6221_v62, %v13123_v54  ;;  %v6222_v13 = vmul.f32 %v6221_v62, %v13121_v9 }
 0x7c2   : > { %v13421_v5 = vadd.f32 %v6215_v21, %v6103_v16  ;;  %v13423_v32 = vadd.f32 %v6212_v10, %v6100_v59  ;;  %v6231_v16 = vstv %s13415_s30  ;;  %v15077_v59 = vld [vmem:[#allocation36_spill] sm:$0xff]  ;;  %v15078_v21 = vld [vmem:[#allocation46_spill] sm:$0xff]  ;;  %s7954_s30 = sld [smem:[#allocation8 + $0x45]] }
 0x7c3   : > { %v6117_v15 = vpop.permute.xlu1 %6116  ;;  %v6093_v23 = vpop.permute.xlu0 %6092  ;;  %v5945_v10 = vadd.f32 %v15078_v21, %v15077_v59  ;;  %v15089_v59 = vld [vmem:[#allocation65_spill] sm:$0xff] }
 0x7c4   : > { %v6127_v26 = vadd.f32 %v6117_v15, %v5919_v2  ;;  %v6102_v48 = vadd.f32 %v6093_v23, %v5894_v60  ;;  %v5920_v2 = vadd.f32 %v15080_v53, %v15079_v42  ;;  %v6583_v15 = vmul.f32 %v6579_v30, %v13123_v54  ;;  %v15090_v21 = vld [vmem:[#allocation81_spill] sm:$0xff] }
 0x7c5   : > { %6568 = vrot.lane.b32.xlu1 %v6557_v12, %s8396_s25  ;;  %6562 = vrot.lane.b32.xlu0 %v6554_v8, %s8396_s25  ;;  %v6580_v23 = vmul.f32 %v6579_v30, %v13121_v9  ;;  %v6605_v12 = vstv %s7951_s10  ;;  %s13636_s10 = sld [smem:[#allocation8 + $0x6b]] }
 0x7c6   : > { %v13436_v40 = vadd.f32 %v6223_v46, %v6127_v26  ;;  %v13438_v31 = vadd.f32 %v6214_v6, %v6102_v48  ;;  %v6233_v48 = vmul.f32 %v6231_v16, %v13111_v63  ;;  %v6224_v46 = vmul.f32 %v6221_v62, %v13133_v14  ;;  %v15083_v6 = vld [vmem:[#allocation39_spill] sm:$0xff] }
 0x7c7   : > { %v6121_v11 = vpop.permute.xlu1 %6120  ;;  %v6115_v1 = vpop.permute.xlu0 %6114  ;;  %v5947_v3 = vadd.f32 %v15084_v45, %v15083_v6  ;;  %v6582_v62 = vmul.f32 %v6579_v30, %v13133_v14  ;;  %v6608_v45 = vmul.f32 %v6605_v12, %v13133_v14 }
 0x7c8   : > { %15075 = vst [vmem:[#allocation28_spill] sm:$0xff] %v13436_v40  ;;  %15076 = vst [vmem:[#allocation44_spill] sm:$0xff] %v13438_v31  ;;  %v6129_v33 = vadd.f32 %v6121_v11, %v5921_v49  ;;  %v6126_v38 = vadd.f32 %v6115_v1, %v5918_v52  ;;  %v15085_v49 = vld [vmem:[#allocation57_spill] sm:$0xff] }
 0x7c9   : > { %6590 = vrot.lane.b32.xlu1 %v6581_v47, %s8396_s25  ;;  %6566 = vrot.lane.b32.xlu0 %v6556_v18, %s8396_s25  ;;  %v5944_v57 = vadd.f32 %v15086_v58, %v15085_v49  ;;  %v6607_v18 = vmul.f32 %v6605_v12, %v13111_v63 }
 0x7ca   : > { %v13451_v22 = vadd.f32 %v6225_v36, %v6129_v33  ;;  %v13453_v7 = vadd.f32 %v6222_v13, %v6126_v38  ;;  %v6235_v36 = vmul.f32 %v6231_v16, %v13123_v54  ;;  %v6232_v13 = vmul.f32 %v6231_v16, %v13121_v9 }
 0x7cb   : > { %v6143_v55 = vpop.permute.xlu1 %6142  ;;  %v6119_v60 = vpop.permute.xlu0 %6118 }
 0x7cc   : > { %15081 = vst [vmem:[#allocation59_spill] sm:$0xff] %v13451_v22  ;;  %15082 = vst [vmem:[#allocation76_spill] sm:$0xff] %v13453_v7  ;;  %v6153_v8 = vadd.f32 %v6143_v55, %v5945_v10  ;;  %v6128_v26 = vadd.f32 %v6119_v60, %v5920_v2  ;;  %v5946_v10 = vadd.f32 %v15090_v21, %v15089_v59  ;;  %v6767_v59 = vstv %s7962_s9  ;;  %s13681_s9 = sld [smem:[#allocation8 + $0xb3]] }
 0x7cd   : > { %6594 = vrot.lane.b32.xlu1 %v6583_v15, %s8396_s25  ;;  %6588 = vrot.lane.b32.xlu0 %v6580_v23, %s8396_s25  ;;  %v6609_v55 = vmul.f32 %v6605_v12, %v13123_v54  ;;  %v6606_v60 = vmul.f32 %v6605_v12, %v13121_v9  ;;  %v6631_v23 = vstv %s7952_s11  ;;  %v13592_v7 = vstv %s7966_s12  ;;  %s13658_s11 = sld [smem:[#allocation8 + $0x8f]] }
 0x7ce   : > { %v13465_v52 = vadd.f32 %v6233_v48, %v6153_v8  ;;  %v13467_v11 = vadd.f32 %v6224_v46, %v6128_v26  ;;  %v6234_v8 = vmul.f32 %v6231_v16, %v13133_v14  ;;  %v6633_v6 = vmul.f32 %v6631_v23, %v13111_v63  ;;  %s13747_s12 = sld [smem:[#allocation8 + $0x11f]] }
 0x7cf   : > { %v6147_v1 = vpop.permute.xlu1 %6146  ;;  %v6141_v47 = vpop.permute.xlu0 %6140  ;;  %v6635_v49 = vmul.f32 %v6631_v23, %v13123_v54  ;;  %v6632_v58 = vmul.f32 %v6631_v23, %v13121_v9  ;;  %v13516_v54 = vld [vmem:[#allocation2 + $0x92] sm:$0xff] }
 0x7d0   : > { %15087 = vst [vmem:[#allocation43_spill] sm:$0xff] %v13465_v52  ;;  %15088 = vst [vmem:[#allocation33_spill] sm:$0xff] %v13467_v11  ;;  %v6155_v33 = vadd.f32 %v6147_v1, %v5947_v3  ;;  %v6152_v38 = vadd.f32 %v6141_v47, %v5944_v57  ;;  %v13504_v57 = vld [vmem:[#allocation2 + $0x82] sm:$0xff]  ;;  %v6741_v1 = vstv %s7961_s22  ;;  %s13664_s22 = sld [smem:[#allocation8 + $0x69]] }
 0x7d1   : > { %6616 = vrot.lane.b32.xlu1 %v6607_v18, %s8396_s25  ;;  %6592 = vrot.lane.b32.xlu0 %v6582_v62, %s8396_s25  ;;  %v6743_v47 = vmul.f32 %v6741_v1, %v13504_v57  ;;  %v6634_v18 = vmul.f32 %v6631_v23, %v13133_v14  ;;  %v13514_v62 = vld [vmem:[#allocation2 + $0x7a] sm:$0xff] }
 0x7d2   : > { %v13477_v42 = vadd.f32 %v6235_v36, %v6155_v33  ;;  %v13479_v53 = vadd.f32 %v6232_v13, %v6152_v38  ;;  %v6745_v38 = vmul.f32 %v6741_v1, %v13516_v54  ;;  %v6742_v36 = vmul.f32 %v6741_v1, %v13514_v62  ;;  %v13526_v13 = vld [vmem:[#allocation2 + $0x8a] sm:$0xff] }
 0x7d3   : > { %v13481_v2 = vpop.permute.xlu1 %6252  ;;  %v6145_v30 = vpop.permute.xlu0 %6144  ;;  %v6768_v23 = vmul.f32 %v6767_v59, %v13514_v62 }
 0x7d4   : > { %15091 = vst [vmem:[#allocation60_spill] sm:$0xff] %v13479_v53  ;;  %v6154_v15 = vadd.f32 %v6145_v30, %v5946_v10  ;;  %v6769_v10 = vmul.f32 %v6767_v59, %v13504_v57  ;;  %v6744_v30 = vmul.f32 %v6741_v1, %v13526_v13 }
 0x7d5   : > { %6620 = vrot.lane.b32.xlu1 %v6609_v55, %s8396_s25  ;;  %6614 = vrot.lane.b32.xlu0 %v6606_v60, %s8396_s25 }
 0x7d6   : > { %v13488_v26 = vadd.f32 %v6234_v8, %v6154_v15  ;;  %v6771_v15 = vmul.f32 %v6767_v59, %v13516_v54  ;;  %v6793_v8 = vstv %s7963_s23  ;;  %s13702_s23 = sld [smem:[#allocation8 + $0xd7]] }
 0x7d7   : > { %v13490_v48 = vpop.permute.xlu1 %6256  ;;  %v13492_v46 = vpop.permute.xlu0 %6250 }
 0x7d9   : > { %6642 = vrot.lane.b32.xlu1 %v6633_v6, %s8396_s25  ;;  %6618 = vrot.lane.b32.xlu0 %v6608_v45, %s8396_s25 }
 0x7db   : > { %v13498_v3 = vpop.permute.xlu1 %6278  ;;  %v13500_v16 = vpop.permute.xlu0 %6254 }
 0x7dd   : > { %6646 = vrot.lane.b32.xlu1 %v6635_v49, %s8396_s25  ;;  %6640 = vrot.lane.b32.xlu0 %v6632_v58, %s8396_s25  ;;  %v6795_v49 = vmul.f32 %v6793_v8, %v13504_v57  ;;  %v6770_v58 = vmul.f32 %v6767_v59, %v13526_v13 }
 0x7df   : > { %v13508_v63 = vpop.permute.xlu1 %6282  ;;  %v13510_v12 = vpop.permute.xlu0 %6276 }
 0x7e1   : > { %6752 = vrot.lane.b32.xlu1 %v6743_v47, %s8395_s20  ;;  %6644 = vrot.lane.b32.xlu0 %v6634_v18, %s8396_s25  ;;  %v6797_v18 = vmul.f32 %v6793_v8, %v13516_v54 }
 0x7e3   : > { %v13520_v9 = vpop.permute.xlu1 %6304  ;;  %v13522_v33 = vpop.permute.xlu0 %6280 }
 0x7e5   : > { %6756 = vrot.lane.b32.xlu1 %v6745_v38, %s8395_s20  ;;  %6750 = vrot.lane.b32.xlu0 %v6742_v36, %s8395_s20  ;;  %v6794_v38 = vmul.f32 %v6793_v8, %v13514_v62  ;;  %v6819_v36 = vstv %s7964_s5  ;;  %s13709_s5 = sld [smem:[#allocation8 + $0x8d]] }
 0x7e7   : > { %v13530_v14 = vpop.permute.xlu1 %6308  ;;  %v13532_v21 = vpop.permute.xlu0 %6302 }
 0x7e9   : > { %6778 = vrot.lane.b32.xlu1 %v6769_v10, %s8395_s20  ;;  %6754 = vrot.lane.b32.xlu0 %v6744_v30, %s8395_s20  ;;  %v6821_v30 = vmul.f32 %v6819_v36, %v13504_v57 }
 0x7eb   : > { %v13538_v55 = vpop.permute.xlu1 %6330  ;;  %v13540_v60 = vpop.permute.xlu0 %6306 }
 0x7ed   : > { %6782 = vrot.lane.b32.xlu1 %v6771_v15, %s8395_s20  ;;  %6776 = vrot.lane.b32.xlu0 %v6768_v23, %s8395_s20  ;;  %v6796_v15 = vmul.f32 %v6793_v8, %v13526_v13 }
 0x7ef   : > { %v13546_v6 = vpop.permute.xlu1 %6334  ;;  %v13548_v45 = vpop.permute.xlu0 %6328 }
 0x7f1   : > { %6804 = vrot.lane.b32.xlu1 %v6795_v49, %s8395_s20  ;;  %6780 = vrot.lane.b32.xlu0 %v6770_v58, %s8395_s20  ;;  %v6823_v58 = vmul.f32 %v6819_v36, %v13516_v54 }
 0x7f3   : > { %v13554_v1 = vpop.permute.xlu1 %6356  ;;  %v13556_v47 = vpop.permute.xlu0 %6332 }
 0x7f5   : > { %6808 = vrot.lane.b32.xlu1 %v6797_v18, %s8395_s20  ;;  %6802 = vrot.lane.b32.xlu0 %v6794_v38, %s8395_s20  ;;  %v6820_v18 = vmul.f32 %v6819_v36, %v13514_v62  ;;  %v6845_v38 = vstv %s7965_s7  ;;  %s13726_s7 = sld [smem:[#allocation8 + $0xfb]] }
 0x7f6   : > { %v6848_v22 = vmul.f32 %v6845_v38, %v13526_v13 }
 0x7f7   : > { %v13562_v10 = vpop.permute.xlu1 %6360  ;;  %v13564_v59 = vpop.permute.xlu0 %6354 }
 0x7f9   : > { %6830 = vrot.lane.b32.xlu1 %v6821_v30, %s8395_s20  ;;  %6806 = vrot.lane.b32.xlu0 %v6796_v15, %s8395_s20  ;;  %v6847_v30 = vmul.f32 %v6845_v38, %v13504_v57  ;;  %v6822_v15 = vmul.f32 %v6819_v36, %v13526_v13 }
 0x7fb   : > { %v13570_v23 = vpop.permute.xlu1 %6382  ;;  %v13572_v49 = vpop.permute.xlu0 %6358 }
 0x7fd   : > { %6834 = vrot.lane.b32.xlu1 %v6823_v58, %s8395_s20  ;;  %6828 = vrot.lane.b32.xlu0 %v6820_v18, %s8395_s20  ;;  %v6849_v58 = vmul.f32 %v6845_v38, %v13516_v54  ;;  %v6846_v18 = vmul.f32 %v6845_v38, %v13514_v62 }
 0x7ff   : > { %v13578_v53 = vpop.permute.xlu1 %6386  ;;  %v13580_v8 = vpop.permute.xlu0 %6380 }
 0x800   : > { %15092 = vst [vmem:[#allocation45_spill] sm:$0xff] %v13580_v8 }
 0x801   : > { %6856 = vrot.lane.b32.xlu1 %v6847_v30, %s8395_s20  ;;  %6832 = vrot.lane.b32.xlu0 %v6822_v15, %s8395_s20  ;;  %v6873_v15 = vmul.f32 %v13592_v7, %v13504_v57 }
 0x803   : > { %v13586_v11 = vpop.permute.xlu1 %6408  ;;  %v13588_v52 = vpop.permute.xlu0 %6384 }
 0x804   : > { %15093 = vst [vmem:[#allocation22_spill] sm:$0xff] %v13586_v11  ;;  %15094 = vst [vmem:[#allocation18_spill] sm:$0xff] %v13588_v52  ;;  %v13603_v52 = vstv %s7967_s13  ;;  %s13754_s13 = sld [smem:[#allocation8 + $0xb1]] }
 0x805   : > { %6860 = vrot.lane.b32.xlu1 %v6849_v58, %s8395_s20  ;;  %6854 = vrot.lane.b32.xlu0 %v6846_v18, %s8395_s20  ;;  %v6899_v18 = vmul.f32 %v13603_v52, %v13504_v57  ;;  %v6900_v40 = vmul.f32 %v13603_v52, %v13526_v13 }
 0x807   : > { %v13596_v36 = vpop.permute.xlu1 %6412  ;;  %v13598_v30 = vpop.permute.xlu0 %6406 }
 0x808   : > { %15095 = vst [vmem:[#allocation31_spill] sm:$0xff] %v13596_v36  ;;  %15096 = vst [vmem:[#allocation35_spill] sm:$0xff] %v13598_v30  ;;  %v6872_v30 = vmul.f32 %v13592_v7, %v13514_v62  ;;  %v13615_v36 = vstv %s7968_s14  ;;  %s7958_s14 = sld [smem:[#allocation8 + $0xd5]] }
 0x809   : > { %6882 = vrot.lane.b32.xlu1 %v6873_v15, %s8395_s20  ;;  %6858 = vrot.lane.b32.xlu0 %v6848_v22, %s8395_s20  ;;  %v6925_v15 = vmul.f32 %v13615_v36, %v13504_v57  ;;  %v6924_v8 = vmul.f32 %v13615_v36, %v13514_v62 }
 0x80b   : > { %v13607_v31 = vpop.permute.xlu1 %6434  ;;  %v13609_v58 = vpop.permute.xlu0 %6410 }
 0x80c   : > { %15097 = vst [vmem:[#allocation38_spill] sm:$0xff] %v13607_v31  ;;  %15098 = vst [vmem:[#allocation55_spill] sm:$0xff] %v13609_v58  ;;  %v6898_v58 = vmul.f32 %v13603_v52, %v13514_v62 }
 0x80d   : > { %6908 = vrot.lane.b32.xlu1 %v6899_v18, %s8395_s20  ;;  %6880 = vrot.lane.b32.xlu0 %v6872_v30, %s8395_s20  ;;  %v6661_v18 = vstv %s7953_s26  ;;  %v6263_v30 = vadd.f32 %v13481_v2, %v13238_v44  ;;  %v6265_v44 = vadd.f32 %v13490_v48, %v13252_v28  ;;  %v6262_v2 = vadd.f32 %v13492_v46, %v13254_v25  ;;  %s7959_s26 = sld [smem:[#allocation8 + $0xf9]] }
 0x80e   : > { %v6665_v48 = vmul.f32 %v6661_v18, %v13516_v54  ;;  %v6662_v25 = vmul.f32 %v6661_v18, %v13514_v62  ;;  %v6671_v46 = vstv %s7954_s30 }
 0x80f   : > { %v6439_v38 = vpop.permute.xlu1 %6438  ;;  %v13619_v22 = vpop.permute.xlu0 %6432 }
 0x810   : > { %15099 = vst [vmem:[#allocation34_spill] sm:$0xff] %v13619_v22  ;;  %v13626_v31 = vadd.f32 %v6439_v38, %v13477_v42 }
 0x811   : > { %6934 = vrot.lane.b32.xlu1 %v6925_v15, %s8395_s20  ;;  %6906 = vrot.lane.b32.xlu0 %v6898_v58, %s8395_s20  ;;  %v13641_v58 = vstv %s7969_s29  ;;  %v6663_v15 = vmul.f32 %v6661_v18, %v13504_v57  ;;  %s7960_s29 = sld [smem:[#allocation8 + $0x11d]] }
 0x812   : > { %15100 = vst [vmem:[#allocation26_spill] sm:$0xff] %v13626_v31 }
 0x813   : > { %v6461_v22 = vpop.permute.xlu1 %6460  ;;  %v6437_v11 = vpop.permute.xlu0 %6436 }
 0x814   : > { %v6471_v42 = vadd.f32 %v6461_v22, %v6263_v30  ;;  %v13639_v38 = vadd.f32 %v6437_v11, %v13488_v26  ;;  %v6950_v11 = vmul.f32 %v13641_v58, %v13514_v62  ;;  %v6874_v26 = vmul.f32 %v13592_v7, %v13526_v13 }
 0x815   : > { %6910 = vrot.lane.b32.xlu1 %v6900_v40, %s8395_s20  ;;  %6932 = vrot.lane.b32.xlu0 %v6924_v8, %s8395_s20  ;;  %v6289_v8 = vadd.f32 %v13498_v3, %v13268_v24 }
 0x816   : > { %15101 = vst [vmem:[#allocation51_spill] sm:$0xff] %v13639_v38  ;;  %v13650_v31 = vadd.f32 %v6663_v15, %v6471_v42  ;;  %v13656_v38 = vstv %s7970_s8  ;;  %v6264_v42 = vadd.f32 %v13500_v16, %v13270_v50  ;;  %v6673_v50 = vmul.f32 %v6671_v46, %v13504_v57  ;;  %s7630_s8 = sshll.u32 %s8551_s6, 4 }
 0x817   : > { %v6465_v22 = vpop.permute.xlu1 %6464  ;;  %v6459_v30 = vpop.permute.xlu0 %6458  ;;  %v6664_v16 = vmul.f32 %v6661_v18, %v13526_v13  ;;  %s14258_s30 = scalar_lea.vmem [#allocation11], %s7630_s8 }
 0x818   : > { %v6473_v40 = vadd.f32 %v6465_v22, %v6265_v44  ;;  %v6470_v28 = vadd.f32 %v6459_v30, %v6262_v2  ;;  %v6976_v30 = vmul.f32 %v13656_v38, %v13514_v62 }
 0x819   : > { %6958 = vrot.lane.b32.xlu1 %v6950_v11, %s8396_s25  ;;  %6884 = vrot.lane.b32.xlu0 %v6874_v26, %s8395_s20  ;;  %v6926_v11 = vmul.f32 %v13615_v36, %v13526_v13  ;;  %v13679_v26 = vstv %s13636_s10  ;;  %s8014_s10 = sshll.u32 %s8447_s19, 12 }
 0x81a   : > { %v13670_v15 = vadd.f32 %v6665_v48, %v6473_v40  ;;  %v13672_v44 = vadd.f32 %v6662_v25, %v6470_v28  ;;  %v6291_v40 = vadd.f32 %v13508_v63, %v13285_v4  ;;  %v6288_v28 = vadd.f32 %v13510_v12, %v13287_v39 }
 0x81b   : > { %v6487_v2 = vpop.permute.xlu1 %6486  ;;  %v6463_v22 = vpop.permute.xlu0 %6462  ;;  %v7002_v18 = vmul.f32 %v13679_v26, %v13514_v62  ;;  %v6675_v39 = vmul.f32 %v6671_v46, %v13516_v54  ;;  %v6672_v12 = vmul.f32 %v6671_v46, %v13514_v62 }
 0x81c   : > { %v6497_v24 = vadd.f32 %v6487_v2, %v6289_v8  ;;  %v6472_v3 = vadd.f32 %v6463_v22, %v6264_v42  ;;  %v6951_v2 = vmul.f32 %v13641_v58, %v13504_v57  ;;  %v13700_v22 = vstv %s13658_s11 }
 0x81d   : > { %6984 = vrot.lane.b32.xlu1 %v6976_v30, %s8396_s25  ;;  %6936 = vrot.lane.b32.xlu0 %v6926_v11, %s8395_s20  ;;  %v6681_v30 = vstv %s13664_s22  ;;  %v6315_v11 = vadd.f32 %v13520_v9, %v13302_v35 }
 0x81e   : > { %v13691_v48 = vadd.f32 %v6673_v50, %v6497_v24  ;;  %v13693_v25 = vadd.f32 %v6664_v16, %v6472_v3  ;;  %v6290_v24 = vadd.f32 %v13522_v33, %v13304_v41  ;;  %v6683_v41 = vmul.f32 %v6681_v30, %v13504_v57 }
 0x81f   : > { %v6491_v8 = vpop.permute.xlu1 %6490  ;;  %v6485_v42 = vpop.permute.xlu0 %6484  ;;  %v6674_v33 = vmul.f32 %v6671_v46, %v13526_v13 }
 0x820   : > { %v6499_v4 = vadd.f32 %v6491_v8, %v6291_v40  ;;  %v6496_v63 = vadd.f32 %v6485_v42, %v6288_v28  ;;  %v7028_v28 = vmul.f32 %v13700_v22, %v13514_v62  ;;  %v6977_v8 = vmul.f32 %v13656_v38, %v13504_v57 }
 0x821   : > { %7010 = vrot.lane.b32.xlu1 %v7002_v18, %s8396_s25  ;;  %6960 = vrot.lane.b32.xlu0 %v6951_v2, %s8396_s25  ;;  %v13724_v42 = vstv %s13681_s9  ;;  %v6317_v18 = vadd.f32 %v13530_v14, %v13319_v34  ;;  %v6314_v2 = vadd.f32 %v13532_v21, %v13321_v51  ;;  %v6685_v51 = vmul.f32 %v6681_v30, %v13516_v54 }
 0x822   : > { %v13715_v3 = vadd.f32 %v6675_v39, %v6499_v4  ;;  %v13717_v50 = vadd.f32 %v6672_v12, %v6496_v63  ;;  %v7054_v46 = vmul.f32 %v13724_v42, %v13514_v62  ;;  %v6682_v21 = vmul.f32 %v6681_v30, %v13514_v62 }
 0x823   : > { %v6513_v16 = vpop.permute.xlu1 %6512  ;;  %v6489_v40 = vpop.permute.xlu0 %6488 }
 0x824   : > { %v6523_v35 = vadd.f32 %v6513_v16, %v6315_v11  ;;  %v6498_v9 = vadd.f32 %v6489_v40, %v6290_v24  ;;  %v7003_v11 = vmul.f32 %v13679_v26, %v13504_v57  ;;  %v13745_v24 = vstv %s13702_s23  ;;  %s14294_s23 = scalar_lea.hbm %s14406_s3, %s8014_s10 }
 0x825   : > { %7036 = vrot.lane.b32.xlu1 %v7028_v28, %s8396_s25  ;;  %6986 = vrot.lane.b32.xlu0 %v6977_v8, %s8396_s25  ;;  %v6691_v16 = vstv %s13709_s5  ;;  %v6341_v40 = vadd.f32 %v13538_v55, %v13336_v43  ;;  %v6316_v28 = vadd.f32 %v13540_v60, %v13338_v27  ;;  %v6684_v27 = vmul.f32 %v6681_v30, %v13526_v13  ;;  %s7454_s5 = scalar_lea.sflag [#allocation5], %s8551_s6 }
 0x826   : > { %v13736_v4 = vadd.f32 %v6683_v41, %v6523_v35  ;;  %v13738_v63 = vadd.f32 %v6674_v33, %v6498_v9  ;;  %v7080_v33 = vmul.f32 %v13745_v24, %v13514_v62  ;;  %v6693_v55 = vmul.f32 %v6691_v16, %v13504_v57 }
 0x827   : > { %v6517_v39 = vpop.permute.xlu1 %6516  ;;  %v6511_v12 = vpop.permute.xlu0 %6510  ;;  %v6343_v60 = vadd.f32 %v13546_v6, %v13353_v0  ;;  %v6695_v0 = vmul.f32 %v6691_v16, %v13516_v54  ;;  %v6701_v6 = vstv %s13754_s13 }
 0x828   : > { %v6525_v34 = vadd.f32 %v6517_v39, %v6317_v18  ;;  %v6522_v14 = vadd.f32 %v6511_v12, %v6314_v2  ;;  %v7029_v18 = vmul.f32 %v13700_v22, %v13504_v57  ;;  %v13769_v2 = vstv %s13726_s7 }
 0x829   : > { %7062 = vrot.lane.b32.xlu1 %v7054_v46, %s8396_s25  ;;  %7012 = vrot.lane.b32.xlu0 %v7003_v11, %s8396_s25  ;;  %v6340_v12 = vadd.f32 %v13548_v45, %v13355_v61  ;;  %v7106_v30 = vmul.f32 %v13769_v2, %v13514_v62  ;;  %v6692_v61 = vmul.f32 %v6691_v16, %v13514_v62 }
 0x82a   : > { %v13760_v8 = vadd.f32 %v6685_v51, %v6525_v34  ;;  %v13762_v35 = vadd.f32 %v6682_v21, %v6522_v14  ;;  %v7055_v51 = vmul.f32 %v13724_v42, %v13504_v57  ;;  %v13788_v21 = vstv %s13747_s12  ;;  %s8397_s12 = smov [#allocation10]  }
 0x82b   : > { %v6539_v9 = vpop.permute.xlu1 %6538  ;;  %v6515_v41 = vpop.permute.xlu0 %6514  ;;  %v6367_v45 = vadd.f32 %v13554_v1, %v13370_v29  ;;  %v6694_v29 = vmul.f32 %v6691_v16, %v13526_v13  ;;  %v6366_v1 = vadd.f32 %v13564_v59, %v13389_v56  ;;  %v7107_v16 = vmul.f32 %v13769_v2, %v13504_v57  ;;  %s8287_s13 = sshll.u32 %s8397_s12, 4  ;;  %s8288_s13 = int_to_ptr.vmem [resolvable:$false] %s8287_s13 }
 0x82c   : > { %v6549_v39 = vadd.f32 %v6539_v9, %v6341_v40  ;;  %v6524_v43 = vadd.f32 %v6515_v41, %v6316_v28  ;;  %v6342_v9 = vadd.f32 %v13556_v47, %v13372_v37  ;;  %v6369_v37 = vadd.f32 %v13562_v10, %v13387_v19 }
 0x82d   : > { %7088 = vrot.lane.b32.xlu1 %v7080_v33, %s8396_s25  ;;  %7038 = vrot.lane.b32.xlu0 %v7029_v18, %s8396_s25  ;;  %v6702_v19 = vmul.f32 %v6701_v6, %v13514_v62  ;;  %v6711_v56 = vstv %s7958_s14  ;;  %v6393_v10 = vadd.f32 %v13570_v23, %v13404_v20  ;;  %v6704_v20 = vmul.f32 %v6701_v6, %v13526_v13  ;;  %v15102_v23 = vld [vmem:[#allocation45_spill] sm:$0xff]  ;;  %s8289_s14 = scalar_lea.vmem %s8288_s13, 8192 }
 0x82e   : > { %v13779_v46 = vadd.f32 %v6693_v55, %v6549_v39  ;;  %v13781_v11 = vadd.f32 %v6684_v27, %v6524_v43  ;;  %v7132_v43 = vmul.f32 %v13788_v21, %v13514_v62  ;;  %v7081_v55 = vmul.f32 %v13745_v24, %v13504_v57 }
 0x82f   : > { %v6543_v34 = vpop.permute.xlu1 %6542  ;;  %v6537_v14 = vpop.permute.xlu0 %6536 }
 0x830   : > { %v6551_v40 = vadd.f32 %v6543_v34, %v6343_v60  ;;  %v6548_v28 = vadd.f32 %v6537_v14, %v6340_v12  ;;  %v6703_v12 = vmul.f32 %v6701_v6, %v13504_v57 }
 0x831   : > { %7114 = vrot.lane.b32.xlu1 %v7106_v30, %s8396_s25  ;;  %7064 = vrot.lane.b32.xlu0 %v7055_v51, %s8396_s25  ;;  %v6875_v51 = vmul.f32 %v13592_v7, %v13516_v54  ;;  %v6368_v7 = vadd.f32 %v13572_v49, %v13406_v17  ;;  %v6395_v17 = vadd.f32 %v13578_v53, %v13421_v5  ;;  %v15103_v53 = vld [vmem:[#allocation28_spill] sm:$0xff] }
 0x832   : > { %v13799_v41 = vadd.f32 %v6695_v0, %v6551_v40  ;;  %v13801_v33 = vadd.f32 %v6692_v61, %v6548_v28  ;;  %v6705_v0 = vmul.f32 %v6701_v6, %v13516_v54  ;;  %v6392_v49 = vadd.f32 %v15102_v23, %v13423_v32  ;;  %v15109_v23 = vld [vmem:[#allocation76_spill] sm:$0xff] }
 0x833   : > { %v6565_v18 = vpop.permute.xlu1 %6564  ;;  %v6541_v39 = vpop.permute.xlu0 %6540  ;;  %v6901_v6 = vmul.f32 %v13603_v52, %v13516_v54  ;;  %v6715_v5 = vmul.f32 %v6711_v56, %v13516_v54  ;;  %v6721_v32 = vstv %s7959_s26 }
 0x834   : > { %v6575_v27 = vadd.f32 %v6565_v18, %v6367_v45  ;;  %v6550_v60 = vadd.f32 %v6541_v39, %v6342_v9  ;;  %v6927_v18 = vmul.f32 %v13615_v36, %v13516_v54  ;;  %v7133_v39 = vmul.f32 %v13788_v21, %v13504_v57 }
 0x835   : > { %7140 = vrot.lane.b32.xlu1 %v7132_v43, %s8396_s25  ;;  %7090 = vrot.lane.b32.xlu0 %v7081_v55, %s8396_s25 }
 0x836   : > { %v13815_v47 = vadd.f32 %v6703_v12, %v6575_v27  ;;  %v13817_v34 = vadd.f32 %v6694_v29, %v6550_v60  ;;  %v6713_v27 = vmul.f32 %v6711_v56, %v13504_v57 }
 0x837   : > { %v6569_v14 = vpop.permute.xlu1 %6568  ;;  %v6563_v30 = vpop.permute.xlu0 %6562 }
 0x838   : > { %v6577_v40 = vadd.f32 %v6569_v14, %v6369_v37  ;;  %v6574_v28 = vadd.f32 %v6563_v30, %v6366_v1  ;;  %v6978_v37 = vmul.f32 %v13656_v38, %v13526_v13  ;;  %v6712_v30 = vmul.f32 %v6711_v56, %v13514_v62 }
 0x839   : > { %6886 = vrot.lane.b32.xlu1 %v6875_v51, %s8395_s20  ;;  %7116 = vrot.lane.b32.xlu0 %v7107_v16, %s8396_s25  ;;  %v15104_v51 = vld [vmem:[#allocation22_spill] sm:$0xff] }
 0x83a   : > { %v13831_v59 = vadd.f32 %v6705_v0, %v6577_v40  ;;  %v13833_v61 = vadd.f32 %v6702_v19, %v6574_v28  ;;  %v6419_v16 = vadd.f32 %v15104_v51, %v15103_v53  ;;  %v15105_v40 = vld [vmem:[#allocation44_spill] sm:$0xff]  ;;  %v15106_v28 = vld [vmem:[#allocation18_spill] sm:$0xff]  ;;  %v6722_v53 = vmul.f32 %v6721_v32, %v13514_v62 }
 0x83b   : > { %v6591_v45 = vpop.permute.xlu1 %6590  ;;  %v6567_v9 = vpop.permute.xlu0 %6566  ;;  %v6394_v0 = vadd.f32 %v15106_v28, %v15105_v40  ;;  %v6725_v51 = vmul.f32 %v6721_v32, %v13516_v54  ;;  %v15111_v40 = vld [vmem:[#allocation43_spill] sm:$0xff]  ;;  %v15112_v28 = vld [vmem:[#allocation38_spill] sm:$0xff] }
 0x83c   : > { %v6601_v43 = vadd.f32 %v6591_v45, %v6393_v10  ;;  %v6576_v55 = vadd.f32 %v6567_v9, %v6368_v7  ;;  %v7030_v45 = vmul.f32 %v13700_v22, %v13526_v13  ;;  %v6952_v9 = vmul.f32 %v13641_v58, %v13526_v13 }
 0x83d   : > { %6938 = vrot.lane.b32.xlu1 %v6927_v18, %s8395_s20  ;;  %7142 = vrot.lane.b32.xlu0 %v7133_v39, %s8396_s25 }
 0x83e   : > { %v13847_v36 = vadd.f32 %v6713_v27, %v6601_v43  ;;  %v13849_v60 = vadd.f32 %v6704_v20, %v6576_v55  ;;  %v6723_v43 = vmul.f32 %v6721_v32, %v13504_v57  ;;  %v6714_v55 = vmul.f32 %v6711_v56, %v13526_v13  ;;  %v15107_v27 = vld [vmem:[#allocation59_spill] sm:$0xff] }
 0x83f   : > { %v6595_v12 = vpop.permute.xlu1 %6594  ;;  %v6589_v29 = vpop.permute.xlu0 %6588  ;;  %v15108_v20 = vld [vmem:[#allocation31_spill] sm:$0xff]  ;;  %v7004_v56 = vmul.f32 %v13679_v26, %v13526_v13 }
 0x840   : > { %v6603_v1 = vadd.f32 %v6595_v12, %v6395_v17  ;;  %v6600_v14 = vadd.f32 %v6589_v29, %v6392_v49  ;;  %v6421_v17 = vadd.f32 %v15108_v20, %v15107_v27  ;;  %v15110_v49 = vld [vmem:[#allocation35_spill] sm:$0xff]  ;;  %v7056_v27 = vmul.f32 %v13724_v42, %v13526_v13 }
 0x841   : > { %6988 = vrot.lane.b32.xlu1 %v6978_v37, %s8396_s25  ;;  %6912 = vrot.lane.b32.xlu0 %v6901_v6, %s8395_s20  ;;  %v6418_v12 = vadd.f32 %v15110_v49, %v15109_v23  ;;  %v6724_v49 = vmul.f32 %v6721_v32, %v13526_v13  ;;  %v15117_v32 = vld [vmem:[#allocation26_spill] sm:$0xff]  ;;  %s7629_s20 = sshll.u32 %s8551_s6, 8 }
 0x842   : > { %v13863_v19 = vadd.f32 %v6712_v30, %v6600_v14  ;;  %v13865_v52 = vadd.f32 %v6715_v5, %v6603_v1  ;;  %v7082_v14 = vmul.f32 %v13745_v24, %v13526_v13 }
 0x843   : > { %v6617_v10 = vpop.permute.xlu1 %6616  ;;  %v6593_v7 = vpop.permute.xlu0 %6592 }
 0x844   : > { %v6627_v18 = vadd.f32 %v6617_v10, %v6419_v16  ;;  %v6602_v39 = vadd.f32 %v6593_v7, %v6394_v0  ;;  %v6731_v16 = vstv %s7960_s29  ;;  %v6445_v0 = vadd.f32 %v15112_v28, %v15111_v40  ;;  %v15113_v10 = vld [vmem:[#allocation33_spill] sm:$0xff]  ;;  %v15114_v7 = vld [vmem:[#allocation55_spill] sm:$0xff] }
 0x845   : > { %7040 = vrot.lane.b32.xlu1 %v7030_v45, %s8396_s25  ;;  %6962 = vrot.lane.b32.xlu0 %v6952_v9, %s8396_s25  ;;  %v6420_v45 = vadd.f32 %v15114_v7, %v15113_v10  ;;  %v6733_v23 = vmul.f32 %v6731_v16, %v13504_v57  ;;  %v7108_v57 = vmul.f32 %v13769_v2, %v13526_v13 }
 0x846   : > { %v13879_v29 = vadd.f32 %v6723_v43, %v6627_v18  ;;  %v13881_v37 = vadd.f32 %v6714_v55, %v6602_v39  ;;  %v7134_v55 = vmul.f32 %v13788_v21, %v13526_v13  ;;  %v6732_v28 = vmul.f32 %v6731_v16, %v13514_v62  ;;  %v15118_v62 = vld [vmem:[#allocation51_spill] sm:$0xff] }
 0x847   : > { %v6621_v6 = vpop.permute.xlu1 %6620  ;;  %v6615_v1 = vpop.permute.xlu0 %6614 }
 0x848   : > { %v6629_v30 = vadd.f32 %v6621_v6, %v6421_v17  ;;  %v6626_v5 = vadd.f32 %v6615_v1, %v6418_v12  ;;  %v15115_v12 = vld [vmem:[#allocation60_spill] sm:$0xff]  ;;  %v15116_v6 = vld [vmem:[#allocation34_spill] sm:$0xff] }
 0x849   : > { %7092 = vrot.lane.b32.xlu1 %v7082_v14, %s8396_s25  ;;  %7014 = vrot.lane.b32.xlu0 %v7004_v56, %s8396_s25  ;;  %v6444_v1 = vadd.f32 %v15116_v6, %v15115_v12  ;;  %v7135_v12 = vmul.f32 %v13788_v21, %v13516_v54  ;;  %v7057_v6 = vmul.f32 %v13724_v42, %v13516_v54 }
 0x84a   : > { %v13895_v9 = vadd.f32 %v6722_v53, %v6626_v5  ;;  %v13897_v18 = vadd.f32 %v6725_v51, %v6629_v30  ;;  %v6979_v53 = vmul.f32 %v13656_v38, %v13516_v54 }
 0x84b   : > { %v6643_v39 = vpop.permute.xlu1 %6642  ;;  %v6619_v43 = vpop.permute.xlu0 %6618 }
 0x84c   : > { %v6653_v20 = vadd.f32 %v6643_v39, %v6445_v0  ;;  %v6628_v17 = vadd.f32 %v6619_v43, %v6420_v45  ;;  %v6735_v0 = vmul.f32 %v6731_v16, %v13516_v54  ;;  %v7031_v39 = vmul.f32 %v13700_v22, %v13516_v54 }
 0x84d   : > { %7144 = vrot.lane.b32.xlu1 %v7134_v55, %s8396_s25  ;;  %7066 = vrot.lane.b32.xlu0 %v7056_v27, %s8396_s25  ;;  %v6953_v43 = vmul.f32 %v13641_v58, %v13516_v54  ;;  %v6734_v27 = vmul.f32 %v6731_v16, %v13526_v13  ;;  %v7005_v22 = vmul.f32 %v13679_v26, %v13516_v54 }
 0x84e   : > { %v13909_v14 = vadd.f32 %v6733_v23, %v6653_v20  ;;  %v13911_v56 = vadd.f32 %v6724_v49, %v6628_v17  ;;  %v7083_v49 = vmul.f32 %v13745_v24, %v13516_v54 }
 0x84f   : > { %v6647_v30 = vpop.permute.xlu1 %6646  ;;  %v6641_v5 = vpop.permute.xlu0 %6640 }
 0x850   : > { %v6655_v51 = vadd.f32 %v6647_v30, %v15117_v32  ;;  %v6652_v40 = vadd.f32 %v6641_v5, %v6444_v1  ;;  %v7109_v1 = vmul.f32 %v13769_v2, %v13516_v54 }
 0x851   : > { %6990 = vrot.lane.b32.xlu1 %v6979_v53, %s8396_s25  ;;  %7118 = vrot.lane.b32.xlu0 %v7108_v57, %s8396_s25 }
 0x852   : > { %v13922_v10 = vadd.f32 %v6732_v28, %v6652_v40  ;;  %v13924_v7 = vadd.f32 %v6735_v0, %v6655_v51 }
 0x853   : > { %v13926_v45 = vpop.permute.xlu1 %6752  ;;  %v6645_v38 = vpop.permute.xlu0 %6644 }
 0x854   : > { %v6654_v55 = vadd.f32 %v6645_v38, %v15118_v62 }
 0x855   : > { %7042 = vrot.lane.b32.xlu1 %v7031_v39, %s8396_s25  ;;  %6964 = vrot.lane.b32.xlu0 %v6953_v43, %s8396_s25 }
 0x856   : > { %v13936_v20 = vadd.f32 %v6734_v27, %v6654_v55 }
 0x857   : > { %v6757_v17 = vpop.permute.xlu1 %6756  ;;  %v6751_v23 = vpop.permute.xlu0 %6750 }
 0x858   : > { %v13943_v58 = vadd.f32 %v6757_v17, %v13670_v15 }
 0x859   : > { %7094 = vrot.lane.b32.xlu1 %v7083_v49, %s8396_s25  ;;  %7016 = vrot.lane.b32.xlu0 %v7005_v22, %s8396_s25 }
 0x85b   : > { %v6779_v13 = vpop.permute.xlu1 %6778  ;;  %v6755_v16 = vpop.permute.xlu0 %6754 }
 0x85c   : > { %v13952_v24 = vadd.f32 %v6755_v16, %v13693_v25 }
 0x85d   : > { %7146 = vrot.lane.b32.xlu1 %v7135_v12, %s8396_s25  ;;  %7068 = vrot.lane.b32.xlu0 %v7057_v6, %s8396_s25 }
 0x85f   : > { %v6783_v15 = vpop.permute.xlu1 %6782  ;;  %v6777_v26 = vpop.permute.xlu0 %6776 }
 0x860   : > { %v13959_v30 = vadd.f32 %v6783_v15, %v13715_v3  ;;  %v6788_v12 = vadd.f32 %v6777_v26, %v13717_v50 }
 0x861   : > { %7120 = vrot.lane.b32.xlu0 %v7109_v1, %s8396_s25  ;;  %s14004_s25 = scalar_lea.vmem [#allocation10], %s7629_s20 }
 0x862   : > { %s7472_s11 = sshll.u32 %s14004_s25, 4  ;;  %s14296_s11 = int_to_ptr.vmem [resolvable:$true] %s7472_s11 }
 0x863   : > { %v6805_v21 = vpop.permute.xlu1 %6804  ;;  %v6781_v5 = vpop.permute.xlu0 %6780  ;;  %s8283_s7 = scalar_lea.vmem %s14296_s11, 4096  ;;  %p8290_p4 = scmp.lt.s32.totalorder %s14296_s11, %s8288_s13 }
 0x864   : > { %v13963_v42 = vadd.f32 %v6781_v5, %v13738_v63  ;;  %p8284_p9 = scmp.ne.s32.totalorder %s14296_s11, %s8283_s7  ;;  %p8291_p5 = scmp.lt.s32.totalorder %s8289_s14, %s8283_s7 }
 0x866   : > { %p8285_p2 = pnand %p8284_p9, %p15119_p10  ;;  %p8292_p1 = por %p8291_p5, %p8290_p4 }
 0x867   : > { %v6809_v25 = vpop.permute.xlu1 %6808  ;;  %v6803_v53 = vpop.permute.xlu0 %6802 }
 0x868   : > { %v13966_v57 = vadd.f32 %v6809_v25, %v13760_v8  ;;  %p8286_p0 = pneg %p8285_p2 }
 0x86a   : > { %p8293_p8 = pnand %p8292_p1, %p8286_p0 }
 0x86b   : > { %v13968_v32 = vpop.permute.xlu1 %6830  ;;  %v6807_v51 = vpop.permute.xlu0 %6806 }
 0x86c   : > { %v13971_v54 = vadd.f32 %v6807_v51, %v13781_v11 }
 0x86f   : > { %v6835_v3 = vpop.permute.xlu1 %6834  ;;  %v6829_v2 = vpop.permute.xlu0 %6828 }
 0x870   : > { %v13974_v40 = vadd.f32 %v6835_v3, %v13799_v41  ;;  %v6789_v3 = vadd.f32 %v6779_v13, %v13691_v48 }
 0x873   : > { %v13976_v28 = vpop.permute.xlu1 %6856  ;;  %v6833_v63 = vpop.permute.xlu0 %6832 }
 0x874   : > { %v13979_v0 = vadd.f32 %v6833_v63, %v13817_v34  ;;  %v6840_v63 = vadd.f32 %v6829_v2, %v13801_v33 }
 0x877   : > { %v6861_v8 = vpop.permute.xlu1 %6860  ;;  %v6855_v38 = vpop.permute.xlu0 %6854 }
 0x878   : > { %v13982_v39 = vadd.f32 %v6861_v8, %v13831_v59  ;;  %v6762_v59 = vadd.f32 %v6751_v23, %v13672_v44  ;;  %v6763_v44 = vadd.f32 %v13926_v45, %v13650_v31  ;;  %v6814_v23 = vadd.f32 %v6803_v53, %v13762_v35 }
 0x87b   : > { %v13984_v43 = vpop.permute.xlu1 %6882  ;;  %v6859_v11 = vpop.permute.xlu0 %6858 }
 0x87c   : > { %v13987_v62 = vadd.f32 %v6859_v11, %v13849_v60 }
 0x87f   : > { %v13989_v41 = vpop.permute.xlu1 %6908  ;;  %v6881_v55 = vpop.permute.xlu0 %6880 }
 0x883   : > { %v13991_v27 = vpop.permute.xlu1 %6934  ;;  %v13993_v17 = vpop.permute.xlu0 %6906 }
 0x887   : > { %v13995_v34 = vpop.permute.xlu1 %6910  ;;  %v13997_v49 = vpop.permute.xlu0 %6932 }
 0x88b   : > { %v6959_v22 = vpop.permute.xlu1 %6958  ;;  %v14001_v16 = vpop.permute.xlu0 %6884 }
 0x88c   : > { %v6970_v60 = vadd.f32 %v6959_v22, %v6762_v59  ;;  %v6815_v22 = vadd.f32 %v6805_v21, %v13736_v4 }
 0x88e   : > { %7157 = vst.msk [vmem:[%s14004_s25] sm:$0xff] %vm7156_vm10, %v6970_v60  ;;  %v7176_v50 = vmul.f32 %v6970_v60, %v6970_v60  ;;  %v7161_v8 = vsel %vm7156_vm10, %v6970_v60, 0.0 }
 0x88f   : > { %v6985_v6 = vpop.permute.xlu1 %6984  ;;  %v14008_v15 = vpop.permute.xlu0 %6936 }
 0x890   : > { %v6996_v1 = vadd.f32 %v6985_v6, %v6788_v12  ;;  %v7180_v45 = vsel %vm7156_vm10, %v7176_v50, 0.0  ;;  %v6866_v12 = vadd.f32 %v6855_v38, %v13833_v61 }
 0x892   : > { %7977 = vst.msk [vmem:[%s14004_s25 + $0x20] sm:$0xff] %vm7156_vm10, %v6996_v1  ;;  %v7213_v48 = vmul.f32 %v6996_v1, %v6996_v1  ;;  %v7199_v6 = vsel %vm7156_vm10, %v6996_v1, 0.0 }
 0x893   : > { %v7011_v26 = vpop.permute.xlu1 %7010  ;;  %v6961_v5 = vpop.permute.xlu0 %6960 }
 0x894   : > { %v7022_v25 = vadd.f32 %v7011_v26, %v6814_v23  ;;  %v6971_v51 = vadd.f32 %v6961_v5, %v6763_v44  ;;  %v7217_v21 = vsel %vm7156_vm10, %v7213_v48, 0.0  ;;  %v6867_v48 = vadd.f32 %v13976_v28, %v13815_v47 }
 0x896   : > { %7981 = vst.msk [vmem:[%s14004_s25 + $0x40] sm:$0xff] %vm7156_vm10, %v7022_v25  ;;  %7158 = vst.msk [vmem:[%s14004_s25 + $0x8] sm:$0xff] %vm7156_vm10, %v6971_v51  ;;  %v7162_v31 = vsel %vm7156_vm10, %v6971_v51, 0.0  ;;  %v7177_v35 = vmul.f32 %v6971_v51, %v6971_v51  ;;  %v7250_v50 = vmul.f32 %v7022_v25, %v7022_v25  ;;  %v6841_v51 = vadd.f32 %v13968_v32, %v13779_v46 }
 0x897   : > { %v14024_v53 = vadd.f32 %v7162_v31, %v7161_v8  ;;  %v7037_v11 = vpop.permute.xlu1 %7036  ;;  %v6987_v59 = vpop.permute.xlu0 %6986  ;;  %v7236_v8 = vsel %vm7156_vm10, %v7022_v25, 0.0 }
 0x898   : > { %v7181_v33 = vsel %vm7156_vm10, %v7177_v35, 0.0  ;;  %v7048_v13 = vadd.f32 %v7037_v11, %v6840_v63  ;;  %v6997_v2 = vadd.f32 %v6987_v59, %v6789_v3  ;;  %v6892_v63 = vadd.f32 %v6881_v55, %v13863_v19 }
 0x899   : > { %v14028_v60 = vadd.f32 %v7181_v33, %v7180_v45  ;;  %v7254_v45 = vsel %vm7156_vm10, %v7250_v50, 0.0 }
 0x89a   : > { %7985 = vst.msk [vmem:[%s14004_s25 + $0x60] sm:$0xff] %vm7156_vm10, %v7048_v13  ;;  %7978 = vst.msk [vmem:[%s14004_s25 + $0x28] sm:$0xff] %vm7156_vm10, %v6997_v2  ;;  %v7200_v44 = vsel %vm7156_vm10, %v6997_v2, 0.0  ;;  %v7214_v23 = vmul.f32 %v6997_v2, %v6997_v2  ;;  %v7287_v59 = vmul.f32 %v7048_v13, %v7048_v13  ;;  %v6918_v2 = vadd.f32 %v13993_v17, %v13895_v9 }
 0x89b   : > { %v14037_v26 = vadd.f32 %v7200_v44, %v7199_v6  ;;  %v7063_v5 = vpop.permute.xlu1 %7062  ;;  %v7013_v4 = vpop.permute.xlu0 %7012 }
 0x89c   : > { %v7218_v61 = vsel %vm7156_vm10, %v7214_v23, 0.0  ;;  %v7074_v38 = vadd.f32 %v7063_v5, %v6866_v12  ;;  %v7023_v1 = vadd.f32 %v7013_v4, %v6815_v22  ;;  %v7273_v22 = vsel %vm7156_vm10, %v7048_v13, 0.0 }
 0x89d   : > { %v14043_v3 = vadd.f32 %v7218_v61, %v7217_v21  ;;  %v7291_v50 = vsel %vm7156_vm10, %v7287_v59, 0.0  ;;  %v6893_v5 = vadd.f32 %v13984_v43, %v13847_v36  ;;  %v6944_v21 = vadd.f32 %v13997_v49, %v13922_v10 }
 0x89e   : > { %7989 = vst.msk [vmem:[%s14004_s25 + $0x80] sm:$0xff] %vm7156_vm10, %v7074_v38  ;;  %7982 = vst.msk [vmem:[%s14004_s25 + $0x48] sm:$0xff] %vm7156_vm10, %v7023_v1  ;;  %v7237_v31 = vsel %vm7156_vm10, %v7023_v1, 0.0  ;;  %v7251_v35 = vmul.f32 %v7023_v1, %v7023_v1  ;;  %v7324_v44 = vmul.f32 %v7074_v38, %v7074_v38  ;;  %v7310_v61 = vsel %vm7156_vm10, %v7074_v38, 0.0 }
 0x89f   : > { %v14053_v11 = vadd.f32 %v7237_v31, %v7236_v8  ;;  %v7089_v46 = vpop.permute.xlu1 %7088  ;;  %v7039_v32 = vpop.permute.xlu0 %7038 }
 0x8a0   : > { %v7255_v19 = vsel %vm7156_vm10, %v7251_v35, 0.0  ;;  %v7100_v55 = vadd.f32 %v7089_v46, %v6892_v63  ;;  %v7049_v25 = vadd.f32 %v7039_v32, %v6841_v51  ;;  %v7328_v63 = vsel %vm7156_vm10, %v7324_v44, 0.0 }
 0x8a1   : > { %v14058_v33 = vadd.f32 %v7255_v19, %v7254_v45  ;;  %v6919_v45 = vadd.f32 %v13989_v41, %v13879_v29 }
 0x8a2   : > { %7993 = vst.msk [vmem:[%s14004_s25 + $0xa0] sm:$0xff] %vm7156_vm10, %v7100_v55  ;;  %7986 = vst.msk [vmem:[%s14004_s25 + $0x68] sm:$0xff] %vm7156_vm10, %v7049_v25  ;;  %v7274_v12 = vsel %vm7156_vm10, %v7049_v25, 0.0  ;;  %v7288_v6 = vmul.f32 %v7049_v25, %v7049_v25  ;;  %v7361_v31 = vmul.f32 %v7100_v55, %v7100_v55  ;;  %v7347_v46 = vsel %vm7156_vm10, %v7100_v55, 0.0 }
 0x8a3   : > { %v14068_v23 = vadd.f32 %v7274_v12, %v7273_v22  ;;  %v7115_v47 = vpop.permute.xlu1 %7114  ;;  %v7065_v28 = vpop.permute.xlu0 %7064  ;;  %v6945_v12 = vadd.f32 %v13991_v27, %v13909_v14 }
 0x8a4   : > { %v7292_v9 = vsel %vm7156_vm10, %v7288_v6, 0.0  ;;  %v7126_v17 = vadd.f32 %v7115_v47, %v6918_v2  ;;  %v7075_v13 = vadd.f32 %v7065_v28, %v6867_v48  ;;  %v7365_v2 = vsel %vm7156_vm10, %v7361_v31, 0.0 }
 0x8a5   : > { %v14074_v4 = vadd.f32 %v7292_v9, %v7291_v50 }
 0x8a6   : > { %7997 = vst.msk [vmem:[%s14004_s25 + $0xc0] sm:$0xff] %vm7156_vm10, %v7126_v17  ;;  %7990 = vst.msk [vmem:[%s14004_s25 + $0x88] sm:$0xff] %vm7156_vm10, %v7075_v13  ;;  %v7311_v1 = vsel %vm7156_vm10, %v7075_v13, 0.0  ;;  %v7325_v51 = vmul.f32 %v7075_v13, %v7075_v13  ;;  %v7398_v22 = vmul.f32 %v7126_v17, %v7126_v17  ;;  %v7384_v6 = vsel %vm7156_vm10, %v7126_v17, 0.0 }
 0x8a7   : > { %v14085_v8 = vadd.f32 %v7311_v1, %v7310_v61  ;;  %v7141_v36 = vpop.permute.xlu1 %7140  ;;  %v7091_v43 = vpop.permute.xlu0 %7090 }
 0x8a8   : > { %v7329_v10 = vsel %vm7156_vm10, %v7325_v51, 0.0  ;;  %v7152_v49 = vadd.f32 %v7141_v36, %v6944_v21  ;;  %v7101_v38 = vadd.f32 %v7091_v43, %v6893_v5  ;;  %v7402_v13 = vsel %vm7156_vm10, %v7398_v22, 0.0 }
 0x8a9   : > { %v14088_v35 = vadd.f32 %v7329_v10, %v7328_v63 }
 0x8aa   : > { %8001 = vst.msk [vmem:[%s14004_s25 + $0xe0] sm:$0xff] %vm7156_vm10, %v7152_v49  ;;  %7994 = vst.msk [vmem:[%s14004_s25 + $0xa8] sm:$0xff] %vm7156_vm10, %v7101_v38  ;;  %v7348_v32 = vsel %vm7156_vm10, %v7101_v38, 0.0  ;;  %v7362_v59 = vmul.f32 %v7101_v38, %v7101_v38  ;;  %v7435_v5 = vmul.f32 %v7152_v49, %v7152_v49  ;;  %v7421_v27 = vsel %vm7156_vm10, %v7152_v49, 0.0 }
 0x8ab   : > { %v14098_v19 = vadd.f32 %v7348_v32, %v7347_v46  ;;  %v14100_v25 = vpop.permute.xlu1 %6886  ;;  %v7117_v48 = vpop.permute.xlu0 %7116 }
 0x8ac   : > { %v7366_v29 = vsel %vm7156_vm10, %v7362_v59, 0.0  ;;  %v7127_v41 = vadd.f32 %v7117_v48, %v6919_v45  ;;  %v7439_v43 = vsel %vm7156_vm10, %v7435_v5, 0.0 }
 0x8ad   : > { %v14104_v55 = vadd.f32 %v7366_v29, %v7365_v2 }
 0x8ae   : > { %7998 = vst.msk [vmem:[%s14004_s25 + $0xc8] sm:$0xff] %vm7156_vm10, %v7127_v41  ;;  %v7385_v44 = vsel %vm7156_vm10, %v7127_v41, 0.0  ;;  %v7399_v47 = vmul.f32 %v7127_v41, %v7127_v41 }
 0x8af   : > { %v14112_v28 = vadd.f32 %v7385_v44, %v7384_v6  ;;  %v14114_v50 = vpop.permute.xlu1 %6938  ;;  %v7143_v9 = vpop.permute.xlu0 %7142 }
 0x8b0   : > { %v7403_v21 = vsel %vm7156_vm10, %v7399_v47, 0.0  ;;  %v7153_v61 = vadd.f32 %v7143_v9, %v6945_v12 }
 0x8b1   : > { %v14118_v14 = vadd.f32 %v7403_v21, %v7402_v13  ;;  %v6946_v13 = vadd.f32 %v14008_v15, %v13936_v20 }
 0x8b2   : > { %8002 = vst.msk [vmem:[%s14004_s25 + $0xe8] sm:$0xff] %vm7156_vm10, %v7153_v61  ;;  %v7422_v17 = vsel %vm7156_vm10, %v7153_v61, 0.0  ;;  %v7436_v1 = vmul.f32 %v7153_v61, %v7153_v61 }
 0x8b3   : > { %v7423_v51 = vadd.f32 %v7422_v17, %v7421_v27  ;;  %v6989_v63 = vpop.permute.xlu1 %6988  ;;  %v14124_v36 = vpop.permute.xlu0 %6912 }
 0x8b4   : > { %v7440_v31 = vsel %vm7156_vm10, %v7436_v1, 0.0  ;;  %v6998_v10 = vadd.f32 %v6989_v63, %v13963_v42  ;;  %v6894_v42 = vadd.f32 %v14001_v16, %v13881_v37 }
 0x8b5   : > { %v7441_v38 = vadd.f32 %v7440_v31, %v7439_v43  ;;  %v6920_v43 = vadd.f32 %v13995_v34, %v13911_v56 }
 0x8b6   : > { %7979 = vst.msk [vmem:[%s14004_s25 + $0x30] sm:$0xff] %vm7156_vm10, %v6998_v10  ;;  %v7202_v49 = vsel %vm7156_vm10, %v6998_v10, 0.0  ;;  %v7215_v45 = vmul.f32 %v6998_v10, %v6998_v10 }
 0x8b7   : > { %v14133_v46 = vadd.f32 %v7202_v49, %v14037_v26  ;;  %v7041_v32 = vpop.permute.xlu1 %7040  ;;  %v6963_v59 = vpop.permute.xlu0 %6962 }
 0x8b8   : > { %v7220_v48 = vsel %vm7156_vm10, %v7215_v45, 0.0  ;;  %v7050_v2 = vadd.f32 %v7041_v32, %v13979_v0  ;;  %v6972_v22 = vadd.f32 %v6963_v59, %v13952_v24 }
 0x8b9   : > { %v14141_v29 = vadd.f32 %v7220_v48, %v14043_v3 }
 0x8ba   : > { %7987 = vst.msk [vmem:[%s14004_s25 + $0x70] sm:$0xff] %vm7156_vm10, %v7050_v2  ;;  %v7276_v41 = vsel %vm7156_vm10, %v7050_v2, 0.0  ;;  %v7289_v26 = vmul.f32 %v7050_v2, %v7050_v2  ;;  %7159 = vst.msk [vmem:[%s14004_s25 + $0x10] sm:$0xff] %vm7156_vm10, %v6972_v22  ;;  %v7164_v12 = vsel %vm7156_vm10, %v6972_v22, 0.0  ;;  %v7178_v0 = vmul.f32 %v6972_v22, %v6972_v22 }
 0x8bb   : > { %v14150_v24 = vadd.f32 %v7276_v41, %v14068_v23  ;;  %v14153_v37 = vadd.f32 %v7164_v12, %v14024_v53  ;;  %v7093_v16 = vpop.permute.xlu1 %7092  ;;  %v7015_v3 = vpop.permute.xlu0 %7014 }
 0x8bc   : > { %v7294_v6 = vsel %vm7156_vm10, %v7289_v26, 0.0  ;;  %v7183_v44 = vsel %vm7156_vm10, %v7178_v0, 0.0  ;;  %v7102_v47 = vadd.f32 %v7093_v16, %v6894_v42  ;;  %v7024_v9 = vadd.f32 %v7015_v3, %v13971_v54 }
 0x8bd   : > { %v14161_v5 = vadd.f32 %v7294_v6, %v14074_v4  ;;  %v14164_v23 = vadd.f32 %v7183_v44, %v14028_v60 }
 0x8be   : > { %7995 = vst.msk [vmem:[%s14004_s25 + $0xb0] sm:$0xff] %vm7156_vm10, %v7102_v47  ;;  %v7350_v53 = vsel %vm7156_vm10, %v7102_v47, 0.0  ;;  %v7363_v21 = vmul.f32 %v7102_v47, %v7102_v47  ;;  %7983 = vst.msk [vmem:[%s14004_s25 + $0x50] sm:$0xff] %vm7156_vm10, %v7024_v9  ;;  %v7239_v61 = vsel %vm7156_vm10, %v7024_v9, 0.0  ;;  %v7252_v54 = vmul.f32 %v7024_v9, %v7024_v9 }
 0x8bf   : > { %v14173_v20 = vadd.f32 %v7350_v53, %v14098_v19  ;;  %v14176_v15 = vadd.f32 %v7239_v61, %v14053_v11  ;;  %v7145_v60 = vpop.permute.xlu1 %7144  ;;  %v7067_v4 = vpop.permute.xlu0 %7066 }
 0x8c0   : > { %v7368_v27 = vsel %vm7156_vm10, %v7363_v21, 0.0  ;;  %v7257_v17 = vsel %vm7156_vm10, %v7252_v54, 0.0  ;;  %v7154_v1 = vadd.f32 %v7145_v60, %v6946_v13  ;;  %v7076_v63 = vadd.f32 %v7067_v4, %v13987_v62 }
 0x8c1   : > { %v14184_v31 = vadd.f32 %v7368_v27, %v14104_v55  ;;  %v14187_v19 = vadd.f32 %v7257_v17, %v14058_v33 }
 0x8c2   : > { %8003 = vst.msk [vmem:[%s14004_s25 + $0xf0] sm:$0xff] %vm7156_vm10, %v7154_v1  ;;  %v7424_v11 = vsel %vm7156_vm10, %v7154_v1, 0.0  ;;  %v7437_v10 = vmul.f32 %v7154_v1, %v7154_v1  ;;  %7991 = vst.msk [vmem:[%s14004_s25 + $0x90] sm:$0xff] %vm7156_vm10, %v7076_v63  ;;  %v7313_v62 = vsel %vm7156_vm10, %v7076_v63, 0.0  ;;  %v7326_v49 = vmul.f32 %v7076_v63, %v7076_v63 }
 0x8c3   : > { %v14195_v45 = vadd.f32 %v7424_v11, %v7423_v51  ;;  %v14198_v56 = vadd.f32 %v7313_v62, %v14085_v8  ;;  %v6991_v34 = vpop.permute.xlu1 %6990  ;;  %v7119_v33 = vpop.permute.xlu0 %7118 }
 0x8c4   : > { %v7442_v55 = vsel %vm7156_vm10, %v7437_v10, 0.0  ;;  %v7331_v32 = vsel %vm7156_vm10, %v7326_v49, 0.0  ;;  %v6999_v59 = vadd.f32 %v6991_v34, %v13959_v30  ;;  %v7128_v48 = vadd.f32 %v7119_v33, %v6920_v43 }
 0x8c5   : > { %v14203_v2 = vadd.f32 %v7442_v55, %v7441_v38  ;;  %v14206_v22 = vadd.f32 %v7331_v32, %v14088_v35  ;;  %v6895_v30 = vadd.f32 %v14100_v25, %v13865_v52  ;;  %v14218_v38 = vadd.f32 %v14114_v50, %v13924_v7 }
 0x8c6   : > { %7980 = vst.msk [vmem:[%s14004_s25 + $0x38] sm:$0xff] %vm7156_vm10, %v6999_v59  ;;  %v7204_v51 = vsel %vm7156_vm10, %v6999_v59, 0.0  ;;  %v7216_v8 = vmul.f32 %v6999_v59, %v6999_v59  ;;  %7999 = vst.msk [vmem:[%s14004_s25 + $0xd0] sm:$0xff] %vm7156_vm10, %v7128_v48  ;;  %v7387_v42 = vsel %vm7156_vm10, %v7128_v48, 0.0  ;;  %v7400_v41 = vmul.f32 %v7128_v48, %v7128_v48 }
 0x8c7   : > { %v7205_v35 = vadd.f32 %v7204_v51, %v14133_v46  ;;  %v14222_v26 = vadd.f32 %v7387_v42, %v14112_v28  ;;  %v7043_v12 = vpop.permute.xlu1 %7042  ;;  %v6965_v0 = vpop.permute.xlu0 %6964  ;;  %v14230_v7 = vadd.f32 %v14124_v36, %v13897_v18 }
 0x8c8   : > { %v7222_v16 = vsel %vm7156_vm10, %v7216_v8, 0.0  ;;  %v7405_v3 = vsel %vm7156_vm10, %v7400_v41, 0.0  ;;  %v7051_v6 = vadd.f32 %v7043_v12, %v13974_v40  ;;  %v6973_v52 = vadd.f32 %v6965_v0, %v13943_v58 }
 0x8c9   : > { %v7206_v25 = vrot.slane %v7205_v35, 4  ;;  %v7223_v50 = vadd.f32 %v7222_v16, %v14141_v29  ;;  %v14234_v28 = vadd.f32 %v7405_v3, %v14118_v14 }
 0x8ca   : > { %7988 = vst.msk [vmem:[%s14004_s25 + $0x78] sm:$0xff] %vm7156_vm10, %v7051_v6  ;;  %v7278_v46 = vsel %vm7156_vm10, %v7051_v6, 0.0  ;;  %v7290_v44 = vmul.f32 %v7051_v6, %v7051_v6  ;;  %7160 = vst.msk [vmem:[%s14004_s25 + $0x18] sm:$0xff] %vm7156_vm10, %v6973_v52  ;;  %v7166_v58 = vsel %vm7156_vm10, %v6973_v52, 0.0  ;;  %v7179_v40 = vmul.f32 %v6973_v52, %v6973_v52 }
 0x8cb   : > { %v7207_v47 = vadd.f32 %v7206_v25, %v7205_v35  ;;  %v7224_v18 = vrot.slane %v7223_v50, 4  ;;  %v7279_v36 = vadd.f32 %v7278_v46, %v14150_v24  ;;  %v7167_v29 = vadd.f32 %v7166_v58, %v14153_v37  ;;  %v7095_v14 = vpop.permute.xlu1 %7094  ;;  %v7017_v9 = vpop.permute.xlu0 %7016 }
 0x8cc   : > { %v7296_v13 = vsel %vm7156_vm10, %v7290_v44, 0.0  ;;  %v7185_v53 = vsel %vm7156_vm10, %v7179_v40, 0.0  ;;  %v7103_v21 = vadd.f32 %v7095_v14, %v6895_v30  ;;  %v7025_v61 = vadd.f32 %v7017_v9, %v13966_v57 }
 0x8cd   : > { %v7208_v54 = vrot.slane %v7207_v47, 2  ;;  %v7225_v60 = vadd.f32 %v7224_v18, %v7223_v50  ;;  %v7280_v4 = vrot.slane %v7279_v36, 4  ;;  %v7297_v27 = vadd.f32 %v7296_v13, %v14161_v5 }
 0x8ce   : > { %v7168_v17 = vrot.slane %v7167_v29, 4  ;;  %v7186_v24 = vadd.f32 %v7185_v53, %v14164_v23  ;;  %7996 = vst.msk [vmem:[%s14004_s25 + $0xb8] sm:$0xff] %vm7156_vm10, %v7103_v21  ;;  %v7352_v37 = vsel %vm7156_vm10, %v7103_v21, 0.0  ;;  %v7364_v1 = vmul.f32 %v7103_v21, %v7103_v21  ;;  %7984 = vst.msk [vmem:[%s14004_s25 + $0x58] sm:$0xff] %vm7156_vm10, %v7025_v61 }
 0x8cf   : > { %v7209_v63 = vadd.f32 %v7208_v54, %v7207_v47  ;;  %v7226_v43 = vrot.slane %v7225_v60, 2  ;;  %v7281_v11 = vadd.f32 %v7280_v4, %v7279_v36  ;;  %v7298_v57 = vrot.slane %v7297_v27, 4  ;;  %v7147_v44 = vpop.permute.xlu1 %7146  ;;  %v7069_v58 = vpop.permute.xlu0 %7068 }
 0x8d0   : > { %v7169_v10 = vadd.f32 %v7168_v17, %v7167_v29  ;;  %v7187_v62 = vrot.slane %v7186_v24, 4  ;;  %v7353_v49 = vadd.f32 %v7352_v37, %v14173_v20  ;;  %v7370_v5 = vsel %vm7156_vm10, %v7364_v1, 0.0 }
 0x8d1   : > { %v7210_v34 = vrot.slane %v7209_v63, 1  ;;  %v7227_v23 = vadd.f32 %v7226_v43, %v7225_v60  ;;  %v7282_v33 = vrot.slane %v7281_v11, 2  ;;  %v7299_v55 = vadd.f32 %v7298_v57, %v7297_v27 }
 0x8d2   : > { %v7170_v32 = vrot.slane %v7169_v10, 2  ;;  %v7188_v59 = vadd.f32 %v7187_v62, %v7186_v24  ;;  %v7354_v48 = vrot.slane %v7353_v49, 4  ;;  %v7371_v51 = vadd.f32 %v7370_v5, %v14184_v31 }
 0x8d3   : > { %v7211_v8 = vadd.f32 %v7210_v34, %v7209_v63  ;;  %v7228_v42 = vrot.slane %v7227_v23, 1  ;;  %v7283_v41 = vadd.f32 %v7282_v33, %v7281_v11  ;;  %v7300_v30 = vrot.slane %v7299_v55, 2  ;;  %v7121_v11 = vpop.permute.xlu0 %7120 }
 0x8d4   : > { %v7171_v35 = vadd.f32 %v7170_v32, %v7169_v10  ;;  %v7189_v12 = vrot.slane %v7188_v59, 2  ;;  %v7355_v0 = vadd.f32 %v7354_v48, %v7353_v49  ;;  %v7372_v16 = vrot.slane %v7371_v51, 4 }
 0x8d5   : > { %7212 = vst.msk [vmem:[%s14258_s30 + $0x1] sm:$0x1] %vm7174_vm11, %v7211_v8  ;;  %v7229_v20 = vadd.f32 %v7228_v42, %v7227_v23  ;;  %v7284_v3 = vrot.slane %v7283_v41, 1  ;;  %v7301_v6 = vadd.f32 %v7300_v30, %v7299_v55  ;;  %v7241_v52 = vsel %vm7156_vm10, %v7025_v61, 0.0 }
 0x8d6   : > { %v7172_v31 = vrot.slane %v7171_v35, 1  ;;  %v7190_v25 = vadd.f32 %v7189_v12, %v7188_v59  ;;  %v7356_v50 = vrot.slane %v7355_v0, 2  ;;  %v7373_v46 = vadd.f32 %v7372_v16, %v7371_v51 }
 0x8d7   : > { %7230 = vst.msk [vmem:[%s14258_s30 + $0x9] sm:$0x1] %vm7174_vm11, %v7229_v20  ;;  %v7285_v40 = vadd.f32 %v7284_v3, %v7283_v41  ;;  %v7302_v47 = vrot.slane %v7301_v6, 1  ;;  %v7242_v18 = vadd.f32 %v7241_v52, %v14176_v15  ;;  %v7253_v36 = vmul.f32 %v7025_v61, %v7025_v61 }
 0x8d8   : > { %v7173_v29 = vadd.f32 %v7172_v31, %v7171_v35  ;;  %v7191_v14 = vrot.slane %v7190_v25, 1  ;;  %v7357_v9 = vadd.f32 %v7356_v50, %v7355_v0  ;;  %v7374_v13 = vrot.slane %v7373_v46, 2 }
 0x8d9   : > { %7286 = vst.msk [vmem:[%s14258_s30 + $0x3] sm:$0x1] %vm7174_vm11, %v7285_v40  ;;  %v7303_v53 = vadd.f32 %v7302_v47, %v7301_v6  ;;  %v7243_v21 = vrot.slane %v7242_v18, 4  ;;  %v7259_v54 = vsel %vm7156_vm10, %v7253_v36, 0.0  ;;  %v7155_v60 = vadd.f32 %v7147_v44, %v14218_v38 }
 0x8da   : > { %7175 = vst.msk [vmem:[%s14258_s30] sm:$0x1] %vm7174_vm11, %v7173_v29  ;;  %v7192_v15 = vadd.f32 %v7191_v14, %v7190_v25  ;;  %v7358_v61 = vrot.slane %v7357_v9, 1  ;;  %v7375_v4 = vadd.f32 %v7374_v13, %v7373_v46  ;;  %v7260_v27 = vadd.f32 %v7259_v54, %v14187_v19 }
 0x8db   : > { %7304 = vst.msk [vmem:[%s14258_s30 + $0xb] sm:$0x1] %vm7174_vm11, %v7303_v53  ;;  %v7244_v17 = vadd.f32 %v7243_v21, %v7242_v18  ;;  %v7426_v24 = vsel %vm7156_vm10, %v7155_v60, 0.0  ;;  %v7438_v37 = vmul.f32 %v7155_v60, %v7155_v60  ;;  %v7077_v1 = vadd.f32 %v7069_v58, %v13982_v39 }
 0x8dc   : > { %8004 = vst.msk [vmem:[%s14004_s25 + $0xf8] sm:$0xff] %vm7156_vm10, %v7155_v60  ;;  %v7359_v38 = vadd.f32 %v7358_v61, %v7357_v9  ;;  %v7376_v63 = vrot.slane %v7375_v4, 1  ;;  %v7261_v43 = vrot.slane %v7260_v27, 4  ;;  %v7427_v19 = vadd.f32 %v7426_v24, %v14195_v45 }
 0x8dd   : > { %7193 = vst.msk [vmem:[%s14258_s30 + $0x8] sm:$0x1] %vm7174_vm11, %v7192_v15  ;;  %v7245_v57 = vrot.slane %v7244_v17, 2  ;;  %v7444_v10 = vsel %vm7156_vm10, %v7438_v37, 0.0  ;;  %v7315_v62 = vsel %vm7156_vm10, %v7077_v1, 0.0  ;;  %v7327_v49 = vmul.f32 %v7077_v1, %v7077_v1 }
 0x8de   : > { %7992 = vst.msk [vmem:[%s14004_s25 + $0x98] sm:$0xff] %vm7156_vm10, %v7077_v1  ;;  %v7377_v39 = vadd.f32 %v7376_v63, %v7375_v4  ;;  %v7262_v5 = vadd.f32 %v7261_v43, %v7260_v27  ;;  %v7428_v34 = vrot.slane %v7427_v19, 4  ;;  %v7445_v23 = vadd.f32 %v7444_v10, %v14203_v2 }
 0x8df   : > { %7360 = vst.msk [vmem:[%s14258_s30 + $0x5] sm:$0x1] %vm7174_vm11, %v7359_v38  ;;  %v7246_v45 = vadd.f32 %v7245_v57, %v7244_v17  ;;  %v7316_v33 = vadd.f32 %v7315_v62, %v14198_v56  ;;  %v7333_v55 = vsel %vm7156_vm10, %v7327_v49, 0.0  ;;  %v7129_v32 = vadd.f32 %v7121_v11, %v14230_v7 }
 0x8e0   : > { %7378 = vst.msk [vmem:[%s14258_s30 + $0xd] sm:$0x1] %vm7174_vm11, %v7377_v39  ;;  %v7263_v2 = vrot.slane %v7262_v5, 2  ;;  %v7429_v59 = vadd.f32 %v7428_v34, %v7427_v19  ;;  %v7446_v48 = vrot.slane %v7445_v23, 4  ;;  %v7334_v51 = vadd.f32 %v7333_v55, %v14206_v22 }
 0x8e1   : > { %v7247_v8 = vrot.slane %v7246_v45, 1  ;;  %v7317_v42 = vrot.slane %v7316_v33, 4  ;;  %8000 = vst.msk [vmem:[%s14004_s25 + $0xd8] sm:$0xff] %vm7156_vm10, %v7129_v32  ;;  %v7389_v56 = vsel %vm7156_vm10, %v7129_v32, 0.0  ;;  %v7401_v41 = vmul.f32 %v7129_v32, %v7129_v32 }
 0x8e2   : > { %v7264_v30 = vadd.f32 %v7263_v2, %v7262_v5  ;;  %v7430_v7 = vrot.slane %v7429_v59, 2  ;;  %v7447_v35 = vadd.f32 %v7446_v48, %v7445_v23  ;;  %v7335_v12 = vrot.slane %v7334_v51, 4 }
 0x8e3   : > { %8296 = shalt.err (!%p8293_p8)
}
 0x8e4   : > { %s8297_s26 = scalar_lea.hbm %s14294_s23, 4096  ;;  %s8301_s25 = scalar_lea.hbm %s14406_s3, 8192 }
 0x8e5   : > { %p8298_p7 = scmp.ne.s32.totalorder %s14294_s23, %s8297_s26  ;;  %p8302_p12 = scmp.lt.s32.totalorder %s14294_s23, %s14406_s3 }
 0x8e6   : > { %p8303_p13 = scmp.lt.s32.totalorder %s8301_s25, %s8297_s26 }
 0x8e7   : > { %p8299_p6 = pnand %p8298_p7, %p15119_p10 }
 0x8e8   : > { %p8304_p3 = por %p8303_p13, %p8302_p12 }
 0x8e9   : > { %p8300_p11 = pneg %p8299_p6 }
 0x8eb   : > { %p8305_p9 = pnand %p8304_p3, %p8300_p11 }
 0x8ed   : > { %8308 = shalt.err (!%p8305_p9)
}
 0x8ee   : > { %s8398_s22 = smov 128   ;;  %s8399_s9 = smov 8   ;;  %v7248_v22 = vadd.f32 %v7247_v8, %v7246_v45  ;;  %v7318_v0 = vadd.f32 %v7317_v42, %v7316_v33  ;;  %v7390_v16 = vadd.f32 %v7389_v56, %v14222_v26  ;;  %v7407_v20 = vsel %vm7156_vm10, %v7401_v41, 0.0 }
 0x8ef   : > { %8154 = dma.vmem_to_hbm [thread:$0]  (%p15119_p10), %s14296_s11, 4096, %s14294_s23, %s7454_s5, %s8398_s22, %s8398_s22, %s8399_s9   ;;  %v7265_v3 = vrot.slane %v7264_v30, 1  ;;  %v7431_v6 = vadd.f32 %v7430_v7, %v7429_v59  ;;  %v7448_v52 = vrot.slane %v7447_v35, 2  ;;  %v7336_v31 = vadd.f32 %v7335_v12, %v7334_v51 }
 0x8f0   : > { %7249 = vst.msk [vmem:[%s14258_s30 + $0x2] sm:$0x1] %vm7174_vm11, %v7248_v22  ;;  %v7319_v25 = vrot.slane %v7318_v0, 2  ;;  %v7391_v50 = vrot.slane %v7390_v16, 4  ;;  %v7408_v46 = vadd.f32 %v7407_v20, %v14234_v28  ;;  %s8015_s11 = sshll.u32 %s8447_s19, 8  ;;  %s7488_s23 = sshll.u32 %s14258_s30, 4  ;;  %s14357_s23 = int_to_ptr.vmem [resolvable:$true] %s7488_s23 }
 0x8f1   : > { %v7266_v44 = vadd.f32 %v7265_v3, %v7264_v30  ;;  %v7432_v58 = vrot.slane %v7431_v6, 1  ;;  %v7449_v40 = vadd.f32 %v7448_v52, %v7447_v35  ;;  %v7337_v47 = vrot.slane %v7336_v31, 2  ;;  %s14355_s12 = scalar_lea.hbm %s14407_s4, %s8015_s11  ;;  %s7459_s13 = scalar_lea.sflag [#allocation12], %s8551_s6 }
 0x8f2   : > { %v7320_v18 = vadd.f32 %v7319_v25, %v7318_v0  ;;  %v7392_v26 = vadd.f32 %v7391_v50, %v7390_v16  ;;  %v7409_v36 = vrot.slane %v7408_v46, 4  ;;  %s8309_s19 = scalar_lea.vmem %s14357_s23, 256  ;;  %s8400_s14 = smov [#allocation11]  }
 0x8f3   : > { %7267 = vst.msk [vmem:[%s14258_s30 + $0xa] sm:$0x1] %vm7174_vm11, %v7266_v44  ;;  %v7433_v29 = vadd.f32 %v7432_v58, %v7431_v6  ;;  %v7450_v14 = vrot.slane %v7449_v40, 1  ;;  %v7338_v9 = vadd.f32 %v7337_v47, %v7336_v31  ;;  %p8310_p2 = scmp.ne.s32.totalorder %s14357_s23, %s8309_s19  ;;  %s8313_s26 = sshll.u32 %s8400_s14, 4  ;;  %s8314_s26 = int_to_ptr.vmem [resolvable:$false] %s8313_s26 }
 0x8f4   : > { %v7321_v13 = vrot.slane %v7320_v18, 1  ;;  %v7393_v53 = vrot.slane %v7392_v26, 2  ;;  %v7410_v28 = vadd.f32 %v7409_v36, %v7408_v46  ;;  %s8315_s29 = scalar_lea.vmem %s8314_s26, 512  ;;  %p8316_p5 = scmp.lt.s32.totalorder %s14357_s23, %s8314_s26 }
 0x8f5   : > { %7434 = vst.msk [vmem:[%s14258_s30 + $0x7] sm:$0x1] %vm7174_vm11, %v7433_v29  ;;  %v7451_v21 = vadd.f32 %v7450_v14, %v7449_v40  ;;  %v7339_v54 = vrot.slane %v7338_v9, 1  ;;  %p8311_p0 = pnand %p8310_p2, %p15119_p10  ;;  %p8317_p1 = scmp.lt.s32.totalorder %s8315_s29, %s8309_s19 }
 0x8f6   : > { %v7322_v60 = vadd.f32 %v7321_v13, %v7320_v18  ;;  %v7394_v15 = vadd.f32 %v7393_v53, %v7392_v26  ;;  %v7411_v61 = vrot.slane %v7410_v28, 2 }
 0x8f7   : > { %7452 = vst.msk [vmem:[%s14258_s30 + $0xf] sm:$0x1] %vm7174_vm11, %v7451_v21  ;;  %v7340_v4 = vadd.f32 %v7339_v54, %v7338_v9  ;;  %p8312_p4 = pneg %p8311_p0  ;;  %p8318_p8 = por %p8317_p1, %p8316_p5 }
 0x8f8   : > { %7323 = vst.msk [vmem:[%s14258_s30 + $0x4] sm:$0x1] %vm7174_vm11, %v7322_v60  ;;  %v7395_v27 = vrot.slane %v7394_v15, 1  ;;  %v7412_v17 = vadd.f32 %v7411_v61, %v7410_v28 }
 0x8f9   : > { %7341 = vst.msk [vmem:[%s14258_s30 + $0xc] sm:$0x1] %vm7174_vm11, %v7340_v4  ;;  %p8319_p7 = pnand %p8318_p8, %p8312_p4 }
 0x8fa   : > { %v7396_v24 = vadd.f32 %v7395_v27, %v7394_v15  ;;  %v7413_v37 = vrot.slane %v7412_v17, 1 }
 0x8fc   : > { %7397 = vst.msk [vmem:[%s14258_s30 + $0x6] sm:$0x1] %vm7174_vm11, %v7396_v24  ;;  %v7414_v1 = vadd.f32 %v7413_v37, %v7412_v17 }
 0x8fe   : > { %7415 = vst.msk [vmem:[%s14258_s30 + $0xe] sm:$0x1] %vm7174_vm11, %v7414_v1 }
 0x8ff   : > { %8322 = shalt.err (!%p8319_p7)
}
 0x900   : > { %s8323_s30 = scalar_lea.hbm %s14355_s12, 256  ;;  %s8327_s25 = scalar_lea.hbm %s14407_s4, 512 }
 0x901   : > { %p8324_p6 = scmp.ne.s32.totalorder %s14355_s12, %s8323_s30  ;;  %p8328_p13 = scmp.lt.s32.totalorder %s14355_s12, %s14407_s4 }
 0x902   : > { %p8329_p3 = scmp.lt.s32.totalorder %s8327_s25, %s8323_s30 }
 0x903   : > { %p8325_p11 = pnand %p8324_p6, %p15119_p10 }
 0x904   : > { %p8330_p9 = por %p8329_p3, %p8328_p13 }
 0x905   : > { %p8326_p12 = pneg %p8325_p11 }
 0x907   : > { %p8331_p2 = pnand %p8330_p9, %p8326_p12 }
 0x909   : > { %8334 = shalt.err (!%p8331_p2)
}
 0x90a   : > { %8155 = dma.vmem_to_hbm [thread:$0]  (%p15119_p10), %s14357_s23, 256, %s14355_s12, %s7459_s13, %s8398_s22, %s8398_s22, %s8399_s9  }
 0x90b PF: > { %s7503_s11 = sand.u32 1, %s8373_s15   ;;  %p15120_p0 = scmp.ne.s32.totalorder %s14559_s28, 0 }
 0x90c   : > { %p15121_p4 = scmp.ge.s32.totalorder %s8385_s18, 2  ;;  %s7504_s5 = scalar_lea.sflag [#allocation5], %s7503_s11 }
 0x90e   : > { %p8170_p5 = pnand %p15121_p4, %p15120_p0 }
 0x910   : > { %p8171_p1 = pneg %p8170_p5 }
 0x912   : > { %8364 = dma.done.wait (%p8171_p1), %s7504_s5, 4096  }
 0x913   : > { %8366 = vsyncadd (%p8171_p1), %s7504_s5, 4294963200  ;;  %s7513_s7 = scalar_lea.sflag [#allocation12], %s7503_s11 }
 0x914   : > { %8368 = dma.done.wait (%p8171_p1), %s7513_s7, 256  }
 0x915   : > { %8370 = vsyncadd (%p8171_p1), %s7513_s7, 4294967040  ;;  %p23_p10 = scmp.ge.s32.totalorder %s8451_s21, 4   ;;  %s15122_s15 = smov %s8377_s16 }
 0x916   : > { %s15123_s16 = smov %s8381_s17  ;;  %s15124_s17 = smov %s8463_s24 }
 0x917   : > { %s15125_s18 = smov %s8451_s21  ;;  %25 = sbr.rel (!%p23_p10) target bundleno = 9 (0x9), region = 117 }
 0x91c   :  { %7518 = vsyncpa [#allocation4], 1 }
 0x91d   :  { %7520 = vsyncpa [#allocation4 + $0x1], 1 }
 0x91e   :  { %7521 = vsyncpa [#allocation5], 1 }
 0x91f   :  { %7523 = vsyncpa [#allocation5 + $0x1], 1 }
 0x920   :  { %7524 = vsyncpa [#allocation12], 1 }
 0x921   :  { %7526 = vsyncpa [#allocation12 + $0x1], 1 }
 0x922   :  { %7527 = vsyncpa [#allocation6], 1 }
 0x923   :  { %7529 = vsyncpa [#allocation6 + $0x1], 1 }
 0x924   :  { %7530 = vsyncpa [#allocation7], 1 }
 0x925   :  { %7532 = vsyncpa [#allocation7 + $0x1], 1 }

</bundles_post_ra>
